<compile_context>
chip_gen: v5e
topology: v5e:2x2
jax: 0.10.0
libtpu: 0.0.40
codegen_flags: <defaults>
</compile_context>

<pallas_src>
import functools

import jax
import jax.numpy as jnp
from jax.experimental import pallas as pl
from jax.experimental.pallas import tpu as pltpu


def _round_up(x, m):
    return (x + m - 1) // m * m


def _pick_tile(total, maximum, base):
    """Largest multiple of `base` that divides `total` and is <= maximum."""
    best = base
    t = base
    while t <= min(total, maximum):
        if total % t == 0:
            best = t
        t += base
    return best


def _tn_max():
    # 256-wide N tiles for the 256x256 MXUs (v6e / v7x); 128 for older chips.
    try:
        kind = jax.devices()[0].device_kind.lower()
    except Exception:
        return 256
    if any(v in kind for v in ("v2", "v3", "v4", "v5")):
        return 128
    return 256


_TN_MAX = _tn_max()


# ----------------------------- Pallas kernels -----------------------------

def _mm_kernel(x_ref, w_ref, b_ref, o_ref, acc_ref, *, relu):
    # acc += x @ w (bf16 MXU operands, f32 accumulation); epilogue at last K step.
    @pl.when(pl.program_id(2) == 0)
    def _():
        acc_ref[...] = jnp.zeros_like(acc_ref)

    acc_ref[...] += jnp.dot(x_ref[...], w_ref[...],
                            preferred_element_type=jnp.float32)

    @pl.when(pl.program_id(2) == pl.num_programs(2) - 1)
    def _():
        acc = acc_ref[...] + b_ref[...]
        if relu:
            acc = jnp.maximum(acc, 0.0)
        o_ref[...] = acc.astype(o_ref.dtype)


def _mm_res_kernel(x_ref, w_ref, b_ref, r_ref, o_ref, acc_ref, *, relu):
    @pl.when(pl.program_id(2) == 0)
    def _():
        acc_ref[...] = jnp.zeros_like(acc_ref)

    acc_ref[...] += jnp.dot(x_ref[...], w_ref[...],
                            preferred_element_type=jnp.float32)

    @pl.when(pl.program_id(2) == pl.num_programs(2) - 1)
    def _():
        acc = acc_ref[...] + b_ref[...] + r_ref[...].astype(jnp.float32)
        if relu:
            acc = jnp.maximum(acc, 0.0)
        o_ref[...] = acc.astype(o_ref.dtype)


def _maxpool_kernel(p_ref, o_ref):
    # p_ref: (K, TM, C) -> elementwise max over the K pooling taps.
    acc = p_ref[0]
    for k in range(1, p_ref.shape[0]):
        acc = jnp.maximum(acc, p_ref[k])
    o_ref[...] = acc


def _gap_fc_kernel(x_ref, w_ref, b_ref, o_ref, *, inv):
    # global average pool over spatial positions (f32) fused with the FC matmul.
    xm = jnp.sum(x_ref[...].astype(jnp.float32), axis=0) * inv      # (Nb, C)
    acc = jnp.dot(xm.astype(jnp.bfloat16), w_ref[...],
                  preferred_element_type=jnp.float32)               # (Nb, Np)
    o_ref[...] = acc + b_ref[...]


# ----------------------------- wrappers -----------------------------------

def fused_matmul(x, w, shift, residual=None, relu=True, out_dtype=jnp.bfloat16):
    """out = relu((x @ w) + shift [+ residual]); returns padded (Mp, Np) result.

    BN scale must already be folded into `w`.  MXU operands are cast to bf16;
    accumulation and the epilogue run in f32; output is stored in `out_dtype`.
    """
    M, K = x.shape
    K2, N = w.shape
    assert K == K2
    Mp, Kp, Np = _round_up(M, 8), _round_up(K, 128), _round_up(N, 128)
    TM = _pick_tile(Mp, 256, 8)
    TK = _pick_tile(Kp, 1024, 128)
    TN = _pick_tile(Np, _TN_MAX, 128)

    xp = jnp.pad(x, ((0, Mp - M), (0, Kp - K))).astype(jnp.bfloat16)
    wp = jnp.pad(w, ((0, Kp - K), (0, Np - N))).astype(jnp.bfloat16)
    bp = jnp.pad(shift, (0, Np - N)).astype(jnp.float32).reshape(1, Np)

    in_specs = [
        pl.BlockSpec((TM, TK), lambda i, j, k: (i, k)),
        pl.BlockSpec((TK, TN), lambda i, j, k: (k, j)),
        pl.BlockSpec((1, TN), lambda i, j, k: (0, j)),
    ]
    args = [xp, wp, bp]
    if residual is None:
        kernel = functools.partial(_mm_kernel, relu=relu)
    else:
        rM, rN = residual.shape
        rp = jnp.pad(residual, ((0, Mp - rM), (0, Np - rN))).astype(jnp.bfloat16)
        in_specs.append(pl.BlockSpec((TM, TN), lambda i, j, k: (i, j)))
        args.append(rp)
        kernel = functools.partial(_mm_res_kernel, relu=relu)

    out = pl.pallas_call(
        kernel,
        out_shape=jax.ShapeDtypeStruct((Mp, Np), out_dtype),
        grid=(Mp // TM, Np // TN, Kp // TK),
        in_specs=in_specs,
        out_specs=pl.BlockSpec((TM, TN), lambda i, j, k: (i, j)),
        scratch_shapes=[pltpu.VMEM((TM, TN), jnp.float32)],
        compiler_params=pltpu.CompilerParams(
            dimension_semantics=("parallel", "parallel", "arbitrary"),
            vmem_limit_bytes=32 * 1024 * 1024,
        ),
    )(*args)
    return out, Np


def extract_patches(x, kh, kw, stride, pad, pad_value):
    """NHWC -> list of kh*kw shifted views (im2col glue), tap-major order."""
    Nb, H, W, C = x.shape
    xp = jnp.pad(x, ((0, 0), (pad, pad), (pad, pad), (0, 0)),
                 constant_values=pad_value)
    Ho = (H + 2 * pad - kh) // stride + 1
    Wo = (W + 2 * pad - kw) // stride + 1
    cols = [xp[:, i:i + stride * Ho:stride, j:j + stride * Wo:stride, :]
            for i in range(kh) for j in range(kw)]
    return cols, Ho, Wo


def conv_bn(x, w, scale, shift, stride, pad, relu=True, residual=None):
    """Conv2d (bias-free, PyTorch OIHW weights) + folded BN [+ residual] [+ relu].

    `x` may carry lane-padded channels (extra channels are exactly zero); the
    output keeps its channels padded to a multiple of 128.
    """
    Nb, H, W, Ca = x.shape
    Cout, Cin, kh, kw = w.shape
    # Fold the BN scale into the weights; pad Cin up to the activation's padded
    # channel count so no activation-side channel slicing/re-padding is needed.
    wm = jnp.transpose(w, (2, 3, 1, 0)) * scale              # (kh, kw, Cin, Cout)
    wm = jnp.pad(wm, ((0, 0), (0, 0), (0, Ca - Cin), (0, 0)))
    wm = wm.reshape(kh * kw * Ca, Cout)

    cols, Ho, Wo = extract_patches(x, kh, kw, stride, pad, pad_value=0.0)
    M = Nb * Ho * Wo
    pm = jnp.concatenate(cols, axis=-1).reshape(M, kh * kw * Ca)
    rm = residual.reshape(M, residual.shape[-1]) if residual is not None else None

    out, Np = fused_matmul(pm, wm, shift, residual=rm, relu=relu)
    return out[:M].reshape(Nb, Ho, Wo, Np)


def maxpool_3x3_s2(x):
    Nb, H, W, C = x.shape
    cols, Ho, Wo = extract_patches(x, 3, 3, 2, 1, pad_value=float("-inf"))
    M = Nb * Ho * Wo
    pm = jnp.stack(cols, axis=0).reshape(9, M, C)
    Mp = _round_up(M, 8)
    TM = _pick_tile(Mp, 512, 8)
    pm = jnp.pad(pm, ((0, 0), (0, Mp - M), (0, 0)))
    out = pl.pallas_call(
        _maxpool_kernel,
        out_shape=jax.ShapeDtypeStruct((Mp, C), x.dtype),
        grid=(Mp // TM,),
        in_specs=[pl.BlockSpec((9, TM, C), lambda i: (0, i, 0))],
        out_specs=pl.BlockSpec((TM, C), lambda i: (0, i)),
        compiler_params=pltpu.CompilerParams(dimension_semantics=("parallel",)),
    )(pm)
    return out[:M].reshape(Nb, Ho, Wo, C)


def global_avgpool_fc(x, fc_w, fc_b):
    """Fused global average pool + final Linear layer (single pallas_call)."""
    Nb, H, W, C = x.shape
    Nout, Cin = fc_w.shape
    Np = _round_up(Nout, 128)
    xm = x.reshape(Nb, H * W, C).transpose(1, 0, 2)                 # (HW, Nb, C)
    wm = jnp.pad(fc_w.T, ((0, C - Cin), (0, Np - Nout))).astype(jnp.bfloat16)
    bp = jnp.pad(fc_b, (0, Np - Nout)).astype(jnp.float32).reshape(1, Np)
    out = pl.pallas_call(
        functools.partial(_gap_fc_kernel, inv=1.0 / (H * W)),
        out_shape=jax.ShapeDtypeStruct((Nb, Np), jnp.float32),
        grid=(1,),
        in_specs=[pl.BlockSpec((H * W, Nb, C), lambda i: (0, 0, 0)),
                  pl.BlockSpec((C, Np), lambda i: (0, 0)),
                  pl.BlockSpec((1, Np), lambda i: (0, 0))],
        out_specs=pl.BlockSpec((Nb, Np), lambda i: (0, 0)),
    )(xm, wm, bp)
    return out[:, :Nout]


# ----------------------------- parameters ---------------------------------

def init_params(key):
    ki = iter(jax.random.split(key, 256))

    def conv_w(cout, cin, k):
        std = (2.0 / (cin * k * k)) ** 0.5
        return std * jax.random.normal(next(ki), (cout, cin, k, k), jnp.float32)

    def bn_folded(c):
        # eval-mode BatchNorm: y = gamma*(x-mean)/sqrt(var+eps)+beta -> scale/shift
        gamma = 1.0 + 0.1 * jax.random.normal(next(ki), (c,), jnp.float32)
        beta = 0.1 * jax.random.normal(next(ki), (c,), jnp.float32)
        mean = 0.1 * jax.random.normal(next(ki), (c,), jnp.float32)
        var = 1.0 + 0.1 * jnp.abs(jax.random.normal(next(ki), (c,), jnp.float32))
        scale = gamma * jax.lax.rsqrt(var + 1e-5)
        shift = beta - mean * scale
        return scale, shift

    p = {"conv1_w": conv_w(64, 1, 7), "bn1": bn_folded(64)}
    cfg = [("layer1", 64, 64, 1), ("layer2", 64, 128, 2),
           ("layer3", 128, 256, 2), ("layer4", 256, 512, 2)]
    for name, cin, cout, stride in cfg:
        for b in range(2):
            in_c = cin if b == 0 else cout
            blk = {
                "conv1_w": conv_w(cout, in_c, 3), "bn1": bn_folded(cout),
                "conv2_w": conv_w(cout, cout, 3), "bn2": bn_folded(cout),
            }
            if b == 0 and (stride != 1 or in_c != cout):
                blk["down_w"] = conv_w(cout, in_c, 1)
                blk["down_bn"] = bn_folded(cout)
            p[f"{name}_{b}"] = blk
    p["fc_w"] = 0.02 * jax.random.normal(next(ki), (7, 512), jnp.float32)
    p["fc_b"] = 0.01 * jax.random.normal(next(ki), (7,), jnp.float32)
    return p


# ----------------------------- forward ------------------------------------

def resnet18_forward(x_nchw, p):
    x = jnp.transpose(x_nchw, (0, 2, 3, 1)).astype(jnp.float32)  # NCHW -> NHWC
    s, b = p["bn1"]
    x = conv_bn(x, p["conv1_w"], s, b, stride=2, pad=3, relu=True)
    x = maxpool_3x3_s2(x)

    cfg = [("layer1", 1), ("layer2", 2), ("layer3", 2), ("layer4", 2)]
    for name, first_stride in cfg:
        for blk_idx in range(2):
            blk = p[f"{name}_{blk_idx}"]
            stride = first_stride if blk_idx == 0 else 1
            identity = x
            s1, b1 = blk["bn1"]
            out = conv_bn(x, blk["conv1_w"], s1, b1, stride=stride, pad=1, relu=True)
            if "down_w" in blk:
                ds, db = blk["down_bn"]
                identity = conv_bn(x, blk["down_w"], ds, db,
                                   stride=stride, pad=0, relu=False)
            s2, b2 = blk["bn2"]
            x = conv_bn(out, blk["conv2_w"], s2, b2, stride=1, pad=1, relu=True,
                        residual=identity)

    logits = global_avgpool_fc(x, p["fc_w"], p["fc_b"])          # (N, 7), f32
    return logits


if __name__ == "__main__":
    key = jax.random.PRNGKey(0)
    pkey, xkey = jax.random.split(key)
    params = init_params(pkey)
    x = jax.random.normal(xkey, (2, 1, 32, 32), jnp.float32)  # NCHW, 1 channel
    fwd = jax.jit(functools.partial(resnet18_forward, p=params))
    logits = jax.block_until_ready(fwd(x))
    assert logits.shape == (2, 7), logits.shape
    assert bool(jnp.all(jnp.isfinite(logits)))
    print("KERNEL_OK")
</pallas_src>

<mosaic_0001>
module attributes {stable_mosaic.version = 11 : i64} {
  func.func @_mm_kernel(%arg0: i32, %arg1: i32, %arg2: i32, %arg3: memref<256x128xbf16, #tpu.memory_space<vmem>>, %arg4: memref<128x128xbf16, #tpu.memory_space<vmem>>, %arg5: memref<1x128xf32, #tpu.memory_space<vmem>>, %arg6: memref<256x128xbf16, #tpu.memory_space<vmem>>, %arg7: memref<256x128xf32, #tpu.memory_space<vmem>>) attributes {dimension_semantics = [#tpu.dimension_semantics<parallel>, #tpu.dimension_semantics<parallel>, #tpu.dimension_semantics<arbitrary>], iteration_bounds = array<i64: 2, 1, 1>, scalar_prefetch = 0 : i64, scratch_operands = 1 : i64, tpu.core_type = #tpu.core_type<tc>, window_params = [{transform_indices = @transform_0, window_bounds = array<i64: 256, 128>}, {transform_indices = @transform_1, window_bounds = array<i64: 128, 128>}, {transform_indices = @transform_2, window_bounds = array<i64: 1, 128>}, {transform_indices = @transform_3, window_bounds = array<i64: 256, 128>}]} {
    %c0_i32 = arith.constant 0 : i32
    %0 = arith.cmpi eq, %arg2, %c0_i32 : i32
    %1 = arith.extui %0 : i1 to i32
    %c0_i32_0 = arith.constant 0 : i32
    %2 = arith.cmpi ne, %1, %c0_i32_0 : i32
    scf.if %2 {
      %cst_10 = arith.constant 0.000000e+00 : f32
      %12 = vector.broadcast %cst_10 : f32 to vector<256x128xf32>
      %c0_11 = arith.constant 0 : index
      %c0_12 = arith.constant 0 : index
      %13 = vector.load %arg7[%c0_11, %c0_12] : memref<256x128xf32, #tpu.memory_space<vmem>>, vector<256x128xf32>
      tpu.vector_store %arg7[%c0_11, %c0_12], %12 {strides = array<i32>} : memref<256x128xf32, #tpu.memory_space<vmem>>, vector<256x128xf32>,
    } else {
    }
    %c0 = arith.constant 0 : index
    %c0_1 = arith.constant 0 : index
    %3 = vector.load %arg7[%c0, %c0_1] : memref<256x128xf32, #tpu.memory_space<vmem>>, vector<256x128xf32>
    %c0_2 = arith.constant 0 : index
    %c0_3 = arith.constant 0 : index
    %4 = vector.load %arg3[%c0_2, %c0_3] : memref<256x128xbf16, #tpu.memory_space<vmem>>, vector<256x128xbf16>
    %c0_4 = arith.constant 0 : index
    %c0_5 = arith.constant 0 : index
    %5 = vector.load %arg4[%c0_4, %c0_5] : memref<128x128xbf16, #tpu.memory_space<vmem>>, vector<128x128xbf16>
    %cst = arith.constant dense<0.000000e+00> : vector<256x128xf32>
    %6 = tpu.matmul %4, %5, %cst {dimension_numbers = #tpu.dot_dimension_numbers<[1], [0], [0], [1], [0, 0, 1, 1], [], []>} : vector<256x128xbf16>, vector<128x128xbf16>, vector<256x128xf32> -> vector<256x128xf32>
    %7 = arith.addf %3, %6 : vector<256x128xf32>
    %c0_6 = arith.constant 0 : index
    %c0_7 = arith.constant 0 : index
    %8 = vector.load %arg7[%c0_6, %c0_7] : memref<256x128xf32, #tpu.memory_space<vmem>>, vector<256x128xf32>
    tpu.vector_store %arg7[%c0_6, %c0_7], %7 {strides = array<i32>} : memref<256x128xf32, #tpu.memory_space<vmem>>, vector<256x128xf32>,
    %c0_i32_8 = arith.constant 0 : i32
    %9 = arith.cmpi eq, %arg2, %c0_i32_8 : i32
    %10 = arith.extui %9 : i1 to i32
    %c0_i32_9 = arith.constant 0 : i32
    %11 = arith.cmpi ne, %10, %c0_i32_9 : i32
    scf.if %11 {
      %c0_10 = arith.constant 0 : index
      %c0_11 = arith.constant 0 : index
      %12 = vector.load %arg7[%c0_10, %c0_11] : memref<256x128xf32, #tpu.memory_space<vmem>>, vector<256x128xf32>
      %c0_12 = arith.constant 0 : index
      %c0_13 = arith.constant 0 : index
      %13 = vector.load %arg5[%c0_12, %c0_13] : memref<1x128xf32, #tpu.memory_space<vmem>>, vector<1x128xf32>
      %14 = vector.broadcast %13 : vector<1x128xf32> to vector<256x128xf32>
      %15 = arith.addf %12, %14 : vector<256x128xf32>
      %cst_14 = arith.constant 0.000000e+00 : f32
      %16 = vector.broadcast %cst_14 : f32 to vector<256x128xf32>
      %17 = arith.maximumf %15, %16 : vector<256x128xf32>
      %18 = arith.truncf %17 : vector<256x128xf32> to vector<256x128xbf16>
      %c0_15 = arith.constant 0 : index
      %c0_16 = arith.constant 0 : index
      %19 = vector.load %arg6[%c0_15, %c0_16] : memref<256x128xbf16, #tpu.memory_space<vmem>>, vector<256x128xbf16>
      tpu.vector_store %arg6[%c0_15, %c0_16], %18 {strides = array<i32>} : memref<256x128xbf16, #tpu.memory_space<vmem>>, vector<256x128xbf16>,
    } else {
    }
    return
  }
  func.func @transform_0(%arg0: i32, %arg1: i32, %arg2: i32) -> (i32, i32) {
    %c0_i32 = arith.constant 0 : i32
    return %arg0, %arg2 : i32, i32
  }
  func.func @transform_1(%arg0: i32, %arg1: i32, %arg2: i32) -> (i32, i32) {
    %c0_i32 = arith.constant 0 : i32
    return %arg2, %arg1 : i32, i32
  }
  func.func @transform_2(%arg0: i32, %arg1: i32, %arg2: i32) -> (i32, i32) {
    %c0_i32 = arith.constant 0 : i32
    %c0_i32_0 = arith.constant 0 : i32
    return %c0_i32, %arg1 : i32, i32
  }
  func.func @transform_3(%arg0: i32, %arg1: i32, %arg2: i32) -> (i32, i32) {
    %c0_i32 = arith.constant 0 : i32
    return %arg0, %arg1 : i32, i32
  }
}

module attributes {stable_mosaic.version = 11 : i64} {
  func.func @_maxpool_kernel(%arg0: i32, %arg1: memref<9x128x128xbf16, #tpu.memory_space<vmem>>, %arg2: memref<128x128xbf16, #tpu.memory_space<vmem>>) attributes {dimension_semantics = [#tpu.dimension_semantics<parallel>], iteration_bounds = array<i64: 1>, scalar_prefetch = 0 : i64, scratch_operands = 0 : i64, tpu.core_type = #tpu.core_type<tc>, window_params = [{transform_indices = @transform_0, window_bounds = array<i64: 9, 128, 128>}, {transform_indices = @transform_1, window_bounds = array<i64: 128, 128>}]} {
    %c0 = arith.constant 0 : index
    %c0_0 = arith.constant 0 : index
    %c0_1 = arith.constant 0 : index
    %0 = vector.load %arg1[%c0, %c0_0, %c0_1] : memref<9x128x128xbf16, #tpu.memory_space<vmem>>, vector<1x128x128xbf16>
    %1 = vector.shape_cast %0 : vector<1x128x128xbf16> to vector<128x128xbf16>
    %c1 = arith.constant 1 : index
    %c0_2 = arith.constant 0 : index
    %c0_3 = arith.constant 0 : index
    %2 = vector.load %arg1[%c1, %c0_2, %c0_3] : memref<9x128x128xbf16, #tpu.memory_space<vmem>>, vector<1x128x128xbf16>
    %3 = vector.shape_cast %2 : vector<1x128x128xbf16> to vector<128x128xbf16>
    %4 = arith.maximumf %1, %3 : vector<128x128xbf16>
    %c2 = arith.constant 2 : index
    %c0_4 = arith.constant 0 : index
    %c0_5 = arith.constant 0 : index
    %5 = vector.load %arg1[%c2, %c0_4, %c0_5] : memref<9x128x128xbf16, #tpu.memory_space<vmem>>, vector<1x128x128xbf16>
    %6 = vector.shape_cast %5 : vector<1x128x128xbf16> to vector<128x128xbf16>
    %7 = arith.maximumf %4, %6 : vector<128x128xbf16>
    %c3 = arith.constant 3 : index
    %c0_6 = arith.constant 0 : index
    %c0_7 = arith.constant 0 : index
    %8 = vector.load %arg1[%c3, %c0_6, %c0_7] : memref<9x128x128xbf16, #tpu.memory_space<vmem>>, vector<1x128x128xbf16>
    %9 = vector.shape_cast %8 : vector<1x128x128xbf16> to vector<128x128xbf16>
    %10 = arith.maximumf %7, %9 : vector<128x128xbf16>
    %c4 = arith.constant 4 : index
    %c0_8 = arith.constant 0 : index
    %c0_9 = arith.constant 0 : index
    %11 = vector.load %arg1[%c4, %c0_8, %c0_9] : memref<9x128x128xbf16, #tpu.memory_space<vmem>>, vector<1x128x128xbf16>
    %12 = vector.shape_cast %11 : vector<1x128x128xbf16> to vector<128x128xbf16>
    %13 = arith.maximumf %10, %12 : vector<128x128xbf16>
    %c5 = arith.constant 5 : index
    %c0_10 = arith.constant 0 : index
    %c0_11 = arith.constant 0 : index
    %14 = vector.load %arg1[%c5, %c0_10, %c0_11] : memref<9x128x128xbf16, #tpu.memory_space<vmem>>, vector<1x128x128xbf16>
    %15 = vector.shape_cast %14 : vector<1x128x128xbf16> to vector<128x128xbf16>
    %16 = arith.maximumf %13, %15 : vector<128x128xbf16>
    %c6 = arith.constant 6 : index
    %c0_12 = arith.constant 0 : index
    %c0_13 = arith.constant 0 : index
    %17 = vector.load %arg1[%c6, %c0_12, %c0_13] : memref<9x128x128xbf16, #tpu.memory_space<vmem>>, vector<1x128x128xbf16>
    %18 = vector.shape_cast %17 : vector<1x128x128xbf16> to vector<128x128xbf16>
    %19 = arith.maximumf %16, %18 : vector<128x128xbf16>
    %c7 = arith.constant 7 : index
    %c0_14 = arith.constant 0 : index
    %c0_15 = arith.constant 0 : index
    %20 = vector.load %arg1[%c7, %c0_14, %c0_15] : memref<9x128x128xbf16, #tpu.memory_space<vmem>>, vector<1x128x128xbf16>
    %21 = vector.shape_cast %20 : vector<1x128x128xbf16> to vector<128x128xbf16>
    %22 = arith.maximumf %19, %21 : vector<128x128xbf16>
    %c8 = arith.constant 8 : index
    %c0_16 = arith.constant 0 : index
    %c0_17 = arith.constant 0 : index
    %23 = vector.load %arg1[%c8, %c0_16, %c0_17] : memref<9x128x128xbf16, #tpu.memory_space<vmem>>, vector<1x128x128xbf16>
    %24 = vector.shape_cast %23 : vector<1x128x128xbf16> to vector<128x128xbf16>
    %25 = arith.maximumf %22, %24 : vector<128x128xbf16>
    %c0_18 = arith.constant 0 : index
    %c0_19 = arith.constant 0 : index
    %26 = vector.load %arg2[%c0_18, %c0_19] : memref<128x128xbf16, #tpu.memory_space<vmem>>, vector<128x128xbf16>
    tpu.vector_store %arg2[%c0_18, %c0_19], %25 {strides = array<i32>} : memref<128x128xbf16, #tpu.memory_space<vmem>>, vector<128x128xbf16>,
    return
  }
  func.func @transform_0(%arg0: i32) -> (i32, i32, i32) {
    %c0_i32 = arith.constant 0 : i32
    %c0_i32_0 = arith.constant 0 : i32
    %c0_i32_1 = arith.constant 0 : i32
    return %c0_i32, %arg0, %c0_i32_0 : i32, i32, i32
  }
  func.func @transform_1(%arg0: i32) -> (i32, i32) {
    %c0_i32 = arith.constant 0 : i32
    %c0_i32_0 = arith.constant 0 : i32
    return %c0_i32, %arg0 : i32, i32
  }
}

module attributes {stable_mosaic.version = 11 : i64} {
  func.func @_mm_kernel(%arg0: i32, %arg1: i32, %arg2: i32, %arg3: memref<128x384xbf16, #tpu.memory_space<vmem>>, %arg4: memref<384x128xbf16, #tpu.memory_space<vmem>>, %arg5: memref<1x128xf32, #tpu.memory_space<vmem>>, %arg6: memref<128x128xbf16, #tpu.memory_space<vmem>>, %arg7: memref<128x128xf32, #tpu.memory_space<vmem>>) attributes {dimension_semantics = [#tpu.dimension_semantics<parallel>, #tpu.dimension_semantics<parallel>, #tpu.dimension_semantics<arbitrary>], iteration_bounds = array<i64: 1, 1, 3>, scalar_prefetch = 0 : i64, scratch_operands = 1 : i64, tpu.core_type = #tpu.core_type<tc>, window_params = [{transform_indices = @transform_0, window_bounds = array<i64: 128, 384>}, {transform_indices = @transform_1, window_bounds = array<i64: 384, 128>}, {transform_indices = @transform_2, window_bounds = array<i64: 1, 128>}, {transform_indices = @transform_3, window_bounds = array<i64: 128, 128>}]} {
    %c0_i32 = arith.constant 0 : i32
    %0 = arith.cmpi eq, %arg2, %c0_i32 : i32
    %1 = arith.extui %0 : i1 to i32
    %c0_i32_0 = arith.constant 0 : i32
    %2 = arith.cmpi ne, %1, %c0_i32_0 : i32
    scf.if %2 {
      %cst_9 = arith.constant 0.000000e+00 : f32
      %12 = vector.broadcast %cst_9 : f32 to vector<128x128xf32>
      %c0_10 = arith.constant 0 : index
      %c0_11 = arith.constant 0 : index
      %13 = vector.load %arg7[%c0_10, %c0_11] : memref<128x128xf32, #tpu.memory_space<vmem>>, vector<128x128xf32>
      tpu.vector_store %arg7[%c0_10, %c0_11], %12 {strides = array<i32>} : memref<128x128xf32, #tpu.memory_space<vmem>>, vector<128x128xf32>,
    } else {
    }
    %c0 = arith.constant 0 : index
    %c0_1 = arith.constant 0 : index
    %3 = vector.load %arg7[%c0, %c0_1] : memref<128x128xf32, #tpu.memory_space<vmem>>, vector<128x128xf32>
    %c0_2 = arith.constant 0 : index
    %c0_3 = arith.constant 0 : index
    %4 = vector.load %arg3[%c0_2, %c0_3] : memref<128x384xbf16, #tpu.memory_space<vmem>>, vector<128x384xbf16>
    %c0_4 = arith.constant 0 : index
    %c0_5 = arith.constant 0 : index
    %5 = vector.load %arg4[%c0_4, %c0_5] : memref<384x128xbf16, #tpu.memory_space<vmem>>, vector<384x128xbf16>
    %cst = arith.constant dense<0.000000e+00> : vector<128x128xf32>
    %6 = tpu.matmul %4, %5, %cst {dimension_numbers = #tpu.dot_dimension_numbers<[1], [0], [0], [1], [0, 0, 1, 1], [], []>} : vector<128x384xbf16>, vector<384x128xbf16>, vector<128x128xf32> -> vector<128x128xf32>
    %7 = arith.addf %3, %6 : vector<128x128xf32>
    %c0_6 = arith.constant 0 : index
    %c0_7 = arith.constant 0 : index
    %8 = vector.load %arg7[%c0_6, %c0_7] : memref<128x128xf32, #tpu.memory_space<vmem>>, vector<128x128xf32>
    tpu.vector_store %arg7[%c0_6, %c0_7], %7 {strides = array<i32>} : memref<128x128xf32, #tpu.memory_space<vmem>>, vector<128x128xf32>,
    %c2_i32 = arith.constant 2 : i32
    %9 = arith.cmpi eq, %arg2, %c2_i32 : i32
    %10 = arith.extui %9 : i1 to i32
    %c0_i32_8 = arith.constant 0 : i32
    %11 = arith.cmpi ne, %10, %c0_i32_8 : i32
    scf.if %11 {
      %c0_9 = arith.constant 0 : index
      %c0_10 = arith.constant 0 : index
      %12 = vector.load %arg7[%c0_9, %c0_10] : memref<128x128xf32, #tpu.memory_space<vmem>>, vector<128x128xf32>
      %c0_11 = arith.constant 0 : index
      %c0_12 = arith.constant 0 : index
      %13 = vector.load %arg5[%c0_11, %c0_12] : memref<1x128xf32, #tpu.memory_space<vmem>>, vector<1x128xf32>
      %14 = vector.broadcast %13 : vector<1x128xf32> to vector<128x128xf32>
      %15 = arith.addf %12, %14 : vector<128x128xf32>
      %cst_13 = arith.constant 0.000000e+00 : f32
      %16 = vector.broadcast %cst_13 : f32 to vector<128x128xf32>
      %17 = arith.maximumf %15, %16 : vector<128x128xf32>
      %18 = arith.truncf %17 : vector<128x128xf32> to vector<128x128xbf16>
      %c0_14 = arith.constant 0 : index
      %c0_15 = arith.constant 0 : index
      %19 = vector.load %arg6[%c0_14, %c0_15] : memref<128x128xbf16, #tpu.memory_space<vmem>>, vector<128x128xbf16>
      tpu.vector_store %arg6[%c0_14, %c0_15], %18 {strides = array<i32>} : memref<128x128xbf16, #tpu.memory_space<vmem>>, vector<128x128xbf16>,
    } else {
    }
    return
  }
  func.func @transform_0(%arg0: i32, %arg1: i32, %arg2: i32) -> (i32, i32) {
    %c0_i32 = arith.constant 0 : i32
    return %arg0, %arg2 : i32, i32
  }
  func.func @transform_1(%arg0: i32, %arg1: i32, %arg2: i32) -> (i32, i32) {
    %c0_i32 = arith.constant 0 : i32
    return %arg2, %arg1 : i32, i32
  }
  func.func @transform_2(%arg0: i32, %arg1: i32, %arg2: i32) -> (i32, i32) {
    %c0_i32 = arith.constant 0 : i32
    %c0_i32_0 = arith.constant 0 : i32
    return %c0_i32, %arg1 : i32, i32
  }
  func.func @transform_3(%arg0: i32, %arg1: i32, %arg2: i32) -> (i32, i32) {
    %c0_i32 = arith.constant 0 : i32
    return %arg0, %arg1 : i32, i32
  }
}

module attributes {stable_mosaic.version = 11 : i64} {
  func.func @_mm_res_kernel(%arg0: i32, %arg1: i32, %arg2: i32, %arg3: memref<128x384xbf16, #tpu.memory_space<vmem>>, %arg4: memref<384x128xbf16, #tpu.memory_space<vmem>>, %arg5: memref<1x128xf32, #tpu.memory_space<vmem>>, %arg6: memref<128x128xbf16, #tpu.memory_space<vmem>>, %arg7: memref<128x128xbf16, #tpu.memory_space<vmem>>, %arg8: memref<128x128xf32, #tpu.memory_space<vmem>>) attributes {dimension_semantics = [#tpu.dimension_semantics<parallel>, #tpu.dimension_semantics<parallel>, #tpu.dimension_semantics<arbitrary>], iteration_bounds = array<i64: 1, 1, 3>, scalar_prefetch = 0 : i64, scratch_operands = 1 : i64, tpu.core_type = #tpu.core_type<tc>, window_params = [{transform_indices = @transform_0, window_bounds = array<i64: 128, 384>}, {transform_indices = @transform_1, window_bounds = array<i64: 384, 128>}, {transform_indices = @transform_2, window_bounds = array<i64: 1, 128>}, {transform_indices = @transform_3, window_bounds = array<i64: 128, 128>}, {transform_indices = @transform_4, window_bounds = array<i64: 128, 128>}]} {
    %c0_i32 = arith.constant 0 : i32
    %0 = arith.cmpi eq, %arg2, %c0_i32 : i32
    %1 = arith.extui %0 : i1 to i32
    %c0_i32_0 = arith.constant 0 : i32
    %2 = arith.cmpi ne, %1, %c0_i32_0 : i32
    scf.if %2 {
      %cst_9 = arith.constant 0.000000e+00 : f32
      %12 = vector.broadcast %cst_9 : f32 to vector<128x128xf32>
      %c0_10 = arith.constant 0 : index
      %c0_11 = arith.constant 0 : index
      %13 = vector.load %arg8[%c0_10, %c0_11] : memref<128x128xf32, #tpu.memory_space<vmem>>, vector<128x128xf32>
      tpu.vector_store %arg8[%c0_10, %c0_11], %12 {strides = array<i32>} : memref<128x128xf32, #tpu.memory_space<vmem>>, vector<128x128xf32>,
    } else {
    }
    %c0 = arith.constant 0 : index
    %c0_1 = arith.constant 0 : index
    %3 = vector.load %arg8[%c0, %c0_1] : memref<128x128xf32, #tpu.memory_space<vmem>>, vector<128x128xf32>
    %c0_2 = arith.constant 0 : index
    %c0_3 = arith.constant 0 : index
    %4 = vector.load %arg3[%c0_2, %c0_3] : memref<128x384xbf16, #tpu.memory_space<vmem>>, vector<128x384xbf16>
    %c0_4 = arith.constant 0 : index
    %c0_5 = arith.constant 0 : index
    %5 = vector.load %arg4[%c0_4, %c0_5] : memref<384x128xbf16, #tpu.memory_space<vmem>>, vector<384x128xbf16>
    %cst = arith.constant dense<0.000000e+00> : vector<128x128xf32>
    %6 = tpu.matmul %4, %5, %cst {dimension_numbers = #tpu.dot_dimension_numbers<[1], [0], [0], [1], [0, 0, 1, 1], [], []>} : vector<128x384xbf16>, vector<384x128xbf16>, vector<128x128xf32> -> vector<128x128xf32>
    %7 = arith.addf %3, %6 : vector<128x128xf32>
    %c0_6 = arith.constant 0 : index
    %c0_7 = arith.constant 0 : index
    %8 = vector.load %arg8[%c0_6, %c0_7] : memref<128x128xf32, #tpu.memory_space<vmem>>, vector<128x128xf32>
    tpu.vector_store %arg8[%c0_6, %c0_7], %7 {strides = array<i32>} : memref<128x128xf32, #tpu.memory_space<vmem>>, vector<128x128xf32>,
    %c2_i32 = arith.constant 2 : i32
    %9 = arith.cmpi eq, %arg2, %c2_i32 : i32
    %10 = arith.extui %9 : i1 to i32
    %c0_i32_8 = arith.constant 0 : i32
    %11 = arith.cmpi ne, %10, %c0_i32_8 : i32
    scf.if %11 {
      %c0_9 = arith.constant 0 : index
      %c0_10 = arith.constant 0 : index
      %12 = vector.load %arg8[%c0_9, %c0_10] : memref<128x128xf32, #tpu.memory_space<vmem>>, vector<128x128xf32>
      %c0_11 = arith.constant 0 : index
      %c0_12 = arith.constant 0 : index
      %13 = vector.load %arg5[%c0_11, %c0_12] : memref<1x128xf32, #tpu.memory_space<vmem>>, vector<1x128xf32>
      %14 = vector.broadcast %13 : vector<1x128xf32> to vector<128x128xf32>
      %15 = arith.addf %12, %14 : vector<128x128xf32>
      %c0_13 = arith.constant 0 : index
      %c0_14 = arith.constant 0 : index
      %16 = vector.load %arg6[%c0_13, %c0_14] : memref<128x128xbf16, #tpu.memory_space<vmem>>, vector<128x128xbf16>
      %17 = arith.extf %16 : vector<128x128xbf16> to vector<128x128xf32>
      %18 = arith.addf %15, %17 : vector<128x128xf32>
      %cst_15 = arith.constant 0.000000e+00 : f32
      %19 = vector.broadcast %cst_15 : f32 to vector<128x128xf32>
      %20 = arith.maximumf %18, %19 : vector<128x128xf32>
      %21 = arith.truncf %20 : vector<128x128xf32> to vector<128x128xbf16>
      %c0_16 = arith.constant 0 : index
      %c0_17 = arith.constant 0 : index
      %22 = vector.load %arg7[%c0_16, %c0_17] : memref<128x128xbf16, #tpu.memory_space<vmem>>, vector<128x128xbf16>
      tpu.vector_store %arg7[%c0_16, %c0_17], %21 {strides = array<i32>} : memref<128x128xbf16, #tpu.memory_space<vmem>>, vector<128x128xbf16>,
    } else {
    }
    return
  }
  func.func @transform_0(%arg0: i32, %arg1: i32, %arg2: i32) -> (i32, i32) {
    %c0_i32 = arith.constant 0 : i32
    return %arg0, %arg2 : i32, i32
  }
  func.func @transform_1(%arg0: i32, %arg1: i32, %arg2: i32) -> (i32, i32) {
    %c0_i32 = arith.constant 0 : i32
    return %arg2, %arg1 : i32, i32
  }
  func.func @transform_2(%arg0: i32, %arg1: i32, %arg2: i32) -> (i32, i32) {
    %c0_i32 = arith.constant 0 : i32
    %c0_i32_0 = arith.constant 0 : i32
    return %c0_i32, %arg1 : i32, i32
  }
  func.func @transform_3(%arg0: i32, %arg1: i32, %arg2: i32) -> (i32, i32) {
    %c0_i32 = arith.constant 0 : i32
    return %arg0, %arg1 : i32, i32
  }
  func.func @transform_4(%arg0: i32, %arg1: i32, %arg2: i32) -> (i32, i32) {
    %c0_i32 = arith.constant 0 : i32
    return %arg0, %arg1 : i32, i32
  }
}

module attributes {stable_mosaic.version = 11 : i64} {
  func.func @_mm_kernel(%arg0: i32, %arg1: i32, %arg2: i32, %arg3: memref<32x384xbf16, #tpu.memory_space<vmem>>, %arg4: memref<384x128xbf16, #tpu.memory_space<vmem>>, %arg5: memref<1x128xf32, #tpu.memory_space<vmem>>, %arg6: memref<32x128xbf16, #tpu.memory_space<vmem>>, %arg7: memref<32x128xf32, #tpu.memory_space<vmem>>) attributes {dimension_semantics = [#tpu.dimension_semantics<parallel>, #tpu.dimension_semantics<parallel>, #tpu.dimension_semantics<arbitrary>], iteration_bounds = array<i64: 1, 1, 3>, scalar_prefetch = 0 : i64, scratch_operands = 1 : i64, tpu.core_type = #tpu.core_type<tc>, window_params = [{transform_indices = @transform_0, window_bounds = array<i64: 32, 384>}, {transform_indices = @transform_1, window_bounds = array<i64: 384, 128>}, {transform_indices = @transform_2, window_bounds = array<i64: 1, 128>}, {transform_indices = @transform_3, window_bounds = array<i64: 32, 128>}]} {
    %c0_i32 = arith.constant 0 : i32
    %0 = arith.cmpi eq, %arg2, %c0_i32 : i32
    %1 = arith.extui %0 : i1 to i32
    %c0_i32_0 = arith.constant 0 : i32
    %2 = arith.cmpi ne, %1, %c0_i32_0 : i32
    scf.if %2 {
      %cst_9 = arith.constant 0.000000e+00 : f32
      %12 = vector.broadcast %cst_9 : f32 to vector<32x128xf32>
      %c0_10 = arith.constant 0 : index
      %c0_11 = arith.constant 0 : index
      %13 = vector.load %arg7[%c0_10, %c0_11] : memref<32x128xf32, #tpu.memory_space<vmem>>, vector<32x128xf32>
      tpu.vector_store %arg7[%c0_10, %c0_11], %12 {strides = array<i32>} : memref<32x128xf32, #tpu.memory_space<vmem>>, vector<32x128xf32>,
    } else {
    }
    %c0 = arith.constant 0 : index
    %c0_1 = arith.constant 0 : index
    %3 = vector.load %arg7[%c0, %c0_1] : memref<32x128xf32, #tpu.memory_space<vmem>>, vector<32x128xf32>
    %c0_2 = arith.constant 0 : index
    %c0_3 = arith.constant 0 : index
    %4 = vector.load %arg3[%c0_2, %c0_3] : memref<32x384xbf16, #tpu.memory_space<vmem>>, vector<32x384xbf16>
    %c0_4 = arith.constant 0 : index
    %c0_5 = arith.constant 0 : index
    %5 = vector.load %arg4[%c0_4, %c0_5] : memref<384x128xbf16, #tpu.memory_space<vmem>>, vector<384x128xbf16>
    %cst = arith.constant dense<0.000000e+00> : vector<32x128xf32>
    %6 = tpu.matmul %4, %5, %cst {dimension_numbers = #tpu.dot_dimension_numbers<[1], [0], [0], [1], [0, 0, 1, 1], [], []>} : vector<32x384xbf16>, vector<384x128xbf16>, vector<32x128xf32> -> vector<32x128xf32>
    %7 = arith.addf %3, %6 : vector<32x128xf32>
    %c0_6 = arith.constant 0 : index
    %c0_7 = arith.constant 0 : index
    %8 = vector.load %arg7[%c0_6, %c0_7] : memref<32x128xf32, #tpu.memory_space<vmem>>, vector<32x128xf32>
    tpu.vector_store %arg7[%c0_6, %c0_7], %7 {strides = array<i32>} : memref<32x128xf32, #tpu.memory_space<vmem>>, vector<32x128xf32>,
    %c2_i32 = arith.constant 2 : i32
    %9 = arith.cmpi eq, %arg2, %c2_i32 : i32
    %10 = arith.extui %9 : i1 to i32
    %c0_i32_8 = arith.constant 0 : i32
    %11 = arith.cmpi ne, %10, %c0_i32_8 : i32
    scf.if %11 {
      %c0_9 = arith.constant 0 : index
      %c0_10 = arith.constant 0 : index
      %12 = vector.load %arg7[%c0_9, %c0_10] : memref<32x128xf32, #tpu.memory_space<vmem>>, vector<32x128xf32>
      %c0_11 = arith.constant 0 : index
      %c0_12 = arith.constant 0 : index
      %13 = vector.load %arg5[%c0_11, %c0_12] : memref<1x128xf32, #tpu.memory_space<vmem>>, vector<1x128xf32>
      %14 = vector.broadcast %13 : vector<1x128xf32> to vector<32x128xf32>
      %15 = arith.addf %12, %14 : vector<32x128xf32>
      %cst_13 = arith.constant 0.000000e+00 : f32
      %16 = vector.broadcast %cst_13 : f32 to vector<32x128xf32>
      %17 = arith.maximumf %15, %16 : vector<32x128xf32>
      %18 = arith.truncf %17 : vector<32x128xf32> to vector<32x128xbf16>
      %c0_14 = arith.constant 0 : index
      %c0_15 = arith.constant 0 : index
      %19 = vector.load %arg6[%c0_14, %c0_15] : memref<32x128xbf16, #tpu.memory_space<vmem>>, vector<32x128xbf16>
      tpu.vector_store %arg6[%c0_14, %c0_15], %18 {strides = array<i32>} : memref<32x128xbf16, #tpu.memory_space<vmem>>, vector<32x128xbf16>,
    } else {
    }
    return
  }
  func.func @transform_0(%arg0: i32, %arg1: i32, %arg2: i32) -> (i32, i32) {
    %c0_i32 = arith.constant 0 : i32
    return %arg0, %arg2 : i32, i32
  }
  func.func @transform_1(%arg0: i32, %arg1: i32, %arg2: i32) -> (i32, i32) {
    %c0_i32 = arith.constant 0 : i32
    return %arg2, %arg1 : i32, i32
  }
  func.func @transform_2(%arg0: i32, %arg1: i32, %arg2: i32) -> (i32, i32) {
    %c0_i32 = arith.constant 0 : i32
    %c0_i32_0 = arith.constant 0 : i32
    return %c0_i32, %arg1 : i32, i32
  }
  func.func @transform_3(%arg0: i32, %arg1: i32, %arg2: i32) -> (i32, i32) {
    %c0_i32 = arith.constant 0 : i32
    return %arg0, %arg1 : i32, i32
  }
}

module attributes {stable_mosaic.version = 11 : i64} {
  func.func @_mm_res_kernel(%arg0: i32, %arg1: i32, %arg2: i32, %arg3: memref<32x384xbf16, #tpu.memory_space<vmem>>, %arg4: memref<384x128xbf16, #tpu.memory_space<vmem>>, %arg5: memref<1x128xf32, #tpu.memory_space<vmem>>, %arg6: memref<32x128xbf16, #tpu.memory_space<vmem>>, %arg7: memref<32x128xbf16, #tpu.memory_space<vmem>>, %arg8: memref<32x128xf32, #tpu.memory_space<vmem>>) attributes {dimension_semantics = [#tpu.dimension_semantics<parallel>, #tpu.dimension_semantics<parallel>, #tpu.dimension_semantics<arbitrary>], iteration_bounds = array<i64: 1, 1, 3>, scalar_prefetch = 0 : i64, scratch_operands = 1 : i64, tpu.core_type = #tpu.core_type<tc>, window_params = [{transform_indices = @transform_0, window_bounds = array<i64: 32, 384>}, {transform_indices = @transform_1, window_bounds = array<i64: 384, 128>}, {transform_indices = @transform_2, window_bounds = array<i64: 1, 128>}, {transform_indices = @transform_3, window_bounds = array<i64: 32, 128>}, {transform_indices = @transform_4, window_bounds = array<i64: 32, 128>}]} {
    %c0_i32 = arith.constant 0 : i32
    %0 = arith.cmpi eq, %arg2, %c0_i32 : i32
    %1 = arith.extui %0 : i1 to i32
    %c0_i32_0 = arith.constant 0 : i32
    %2 = arith.cmpi ne, %1, %c0_i32_0 : i32
    scf.if %2 {
      %cst_9 = arith.constant 0.000000e+00 : f32
      %12 = vector.broadcast %cst_9 : f32 to vector<32x128xf32>
      %c0_10 = arith.constant 0 : index
      %c0_11 = arith.constant 0 : index
      %13 = vector.load %arg8[%c0_10, %c0_11] : memref<32x128xf32, #tpu.memory_space<vmem>>, vector<32x128xf32>
      tpu.vector_store %arg8[%c0_10, %c0_11], %12 {strides = array<i32>} : memref<32x128xf32, #tpu.memory_space<vmem>>, vector<32x128xf32>,
    } else {
    }
    %c0 = arith.constant 0 : index
    %c0_1 = arith.constant 0 : index
    %3 = vector.load %arg8[%c0, %c0_1] : memref<32x128xf32, #tpu.memory_space<vmem>>, vector<32x128xf32>
    %c0_2 = arith.constant 0 : index
    %c0_3 = arith.constant 0 : index
    %4 = vector.load %arg3[%c0_2, %c0_3] : memref<32x384xbf16, #tpu.memory_space<vmem>>, vector<32x384xbf16>
    %c0_4 = arith.constant 0 : index
    %c0_5 = arith.constant 0 : index
    %5 = vector.load %arg4[%c0_4, %c0_5] : memref<384x128xbf16, #tpu.memory_space<vmem>>, vector<384x128xbf16>
    %cst = arith.constant dense<0.000000e+00> : vector<32x128xf32>
    %6 = tpu.matmul %4, %5, %cst {dimension_numbers = #tpu.dot_dimension_numbers<[1], [0], [0], [1], [0, 0, 1, 1], [], []>} : vector<32x384xbf16>, vector<384x128xbf16>, vector<32x128xf32> -> vector<32x128xf32>
    %7 = arith.addf %3, %6 : vector<32x128xf32>
    %c0_6 = arith.constant 0 : index
    %c0_7 = arith.constant 0 : index
    %8 = vector.load %arg8[%c0_6, %c0_7] : memref<32x128xf32, #tpu.memory_space<vmem>>, vector<32x128xf32>
    tpu.vector_store %arg8[%c0_6, %c0_7], %7 {strides = array<i32>} : memref<32x128xf32, #tpu.memory_space<vmem>>, vector<32x128xf32>,
    %c2_i32 = arith.constant 2 : i32
    %9 = arith.cmpi eq, %arg2, %c2_i32 : i32
    %10 = arith.extui %9 : i1 to i32
    %c0_i32_8 = arith.constant 0 : i32
    %11 = arith.cmpi ne, %10, %c0_i32_8 : i32
    scf.if %11 {
      %c0_9 = arith.constant 0 : index
      %c0_10 = arith.constant 0 : index
      %12 = vector.load %arg8[%c0_9, %c0_10] : memref<32x128xf32, #tpu.memory_space<vmem>>, vector<32x128xf32>
      %c0_11 = arith.constant 0 : index
      %c0_12 = arith.constant 0 : index
      %13 = vector.load %arg5[%c0_11, %c0_12] : memref<1x128xf32, #tpu.memory_space<vmem>>, vector<1x128xf32>
      %14 = vector.broadcast %13 : vector<1x128xf32> to vector<32x128xf32>
      %15 = arith.addf %12, %14 : vector<32x128xf32>
      %c0_13 = arith.constant 0 : index
      %c0_14 = arith.constant 0 : index
      %16 = vector.load %arg6[%c0_13, %c0_14] : memref<32x128xbf16, #tpu.memory_space<vmem>>, vector<32x128xbf16>
      %17 = arith.extf %16 : vector<32x128xbf16> to vector<32x128xf32>
      %18 = arith.addf %15, %17 : vector<32x128xf32>
      %cst_15 = arith.constant 0.000000e+00 : f32
      %19 = vector.broadcast %cst_15 : f32 to vector<32x128xf32>
      %20 = arith.maximumf %18, %19 : vector<32x128xf32>
      %21 = arith.truncf %20 : vector<32x128xf32> to vector<32x128xbf16>
      %c0_16 = arith.constant 0 : index
      %c0_17 = arith.constant 0 : index
      %22 = vector.load %arg7[%c0_16, %c0_17] : memref<32x128xbf16, #tpu.memory_space<vmem>>, vector<32x128xbf16>
      tpu.vector_store %arg7[%c0_16, %c0_17], %21 {strides = array<i32>} : memref<32x128xbf16, #tpu.memory_space<vmem>>, vector<32x128xbf16>,
    } else {
    }
    return
  }
  func.func @transform_0(%arg0: i32, %arg1: i32, %arg2: i32) -> (i32, i32) {
    %c0_i32 = arith.constant 0 : i32
    return %arg0, %arg2 : i32, i32
  }
  func.func @transform_1(%arg0: i32, %arg1: i32, %arg2: i32) -> (i32, i32) {
    %c0_i32 = arith.constant 0 : i32
    return %arg2, %arg1 : i32, i32
  }
  func.func @transform_2(%arg0: i32, %arg1: i32, %arg2: i32) -> (i32, i32) {
    %c0_i32 = arith.constant 0 : i32
    %c0_i32_0 = arith.constant 0 : i32
    return %c0_i32, %arg1 : i32, i32
  }
  func.func @transform_3(%arg0: i32, %arg1: i32, %arg2: i32) -> (i32, i32) {
    %c0_i32 = arith.constant 0 : i32
    return %arg0, %arg1 : i32, i32
  }
  func.func @transform_4(%arg0: i32, %arg1: i32, %arg2: i32) -> (i32, i32) {
    %c0_i32 = arith.constant 0 : i32
    return %arg0, %arg1 : i32, i32
  }
}

module attributes {stable_mosaic.version = 11 : i64} {
  func.func @_mm_kernel(%arg0: i32, %arg1: i32, %arg2: i32, %arg3: memref<32x128xbf16, #tpu.memory_space<vmem>>, %arg4: memref<128x128xbf16, #tpu.memory_space<vmem>>, %arg5: memref<1x128xf32, #tpu.memory_space<vmem>>, %arg6: memref<32x128xbf16, #tpu.memory_space<vmem>>, %arg7: memref<32x128xf32, #tpu.memory_space<vmem>>) attributes {dimension_semantics = [#tpu.dimension_semantics<parallel>, #tpu.dimension_semantics<parallel>, #tpu.dimension_semantics<arbitrary>], iteration_bounds = array<i64: 1, 1, 1>, scalar_prefetch = 0 : i64, scratch_operands = 1 : i64, tpu.core_type = #tpu.core_type<tc>, window_params = [{transform_indices = @transform_0, window_bounds = array<i64: 32, 128>}, {transform_indices = @transform_1, window_bounds = array<i64: 128, 128>}, {transform_indices = @transform_2, window_bounds = array<i64: 1, 128>}, {transform_indices = @transform_3, window_bounds = array<i64: 32, 128>}]} {
    %c0_i32 = arith.constant 0 : i32
    %0 = arith.cmpi eq, %arg2, %c0_i32 : i32
    %1 = arith.extui %0 : i1 to i32
    %c0_i32_0 = arith.constant 0 : i32
    %2 = arith.cmpi ne, %1, %c0_i32_0 : i32
    scf.if %2 {
      %cst_10 = arith.constant 0.000000e+00 : f32
      %12 = vector.broadcast %cst_10 : f32 to vector<32x128xf32>
      %c0_11 = arith.constant 0 : index
      %c0_12 = arith.constant 0 : index
      %13 = vector.load %arg7[%c0_11, %c0_12] : memref<32x128xf32, #tpu.memory_space<vmem>>, vector<32x128xf32>
      tpu.vector_store %arg7[%c0_11, %c0_12], %12 {strides = array<i32>} : memref<32x128xf32, #tpu.memory_space<vmem>>, vector<32x128xf32>,
    } else {
    }
    %c0 = arith.constant 0 : index
    %c0_1 = arith.constant 0 : index
    %3 = vector.load %arg7[%c0, %c0_1] : memref<32x128xf32, #tpu.memory_space<vmem>>, vector<32x128xf32>
    %c0_2 = arith.constant 0 : index
    %c0_3 = arith.constant 0 : index
    %4 = vector.load %arg3[%c0_2, %c0_3] : memref<32x128xbf16, #tpu.memory_space<vmem>>, vector<32x128xbf16>
    %c0_4 = arith.constant 0 : index
    %c0_5 = arith.constant 0 : index
    %5 = vector.load %arg4[%c0_4, %c0_5] : memref<128x128xbf16, #tpu.memory_space<vmem>>, vector<128x128xbf16>
    %cst = arith.constant dense<0.000000e+00> : vector<32x128xf32>
    %6 = tpu.matmul %4, %5, %cst {dimension_numbers = #tpu.dot_dimension_numbers<[1], [0], [0], [1], [0, 0, 1, 1], [], []>} : vector<32x128xbf16>, vector<128x128xbf16>, vector<32x128xf32> -> vector<32x128xf32>
    %7 = arith.addf %3, %6 : vector<32x128xf32>
    %c0_6 = arith.constant 0 : index
    %c0_7 = arith.constant 0 : index
    %8 = vector.load %arg7[%c0_6, %c0_7] : memref<32x128xf32, #tpu.memory_space<vmem>>, vector<32x128xf32>
    tpu.vector_store %arg7[%c0_6, %c0_7], %7 {strides = array<i32>} : memref<32x128xf32, #tpu.memory_space<vmem>>, vector<32x128xf32>,
    %c0_i32_8 = arith.constant 0 : i32
    %9 = arith.cmpi eq, %arg2, %c0_i32_8 : i32
    %10 = arith.extui %9 : i1 to i32
    %c0_i32_9 = arith.constant 0 : i32
    %11 = arith.cmpi ne, %10, %c0_i32_9 : i32
    scf.if %11 {
      %c0_10 = arith.constant 0 : index
      %c0_11 = arith.constant 0 : index
      %12 = vector.load %arg7[%c0_10, %c0_11] : memref<32x128xf32, #tpu.memory_space<vmem>>, vector<32x128xf32>
      %c0_12 = arith.constant 0 : index
      %c0_13 = arith.constant 0 : index
      %13 = vector.load %arg5[%c0_12, %c0_13] : memref<1x128xf32, #tpu.memory_space<vmem>>, vector<1x128xf32>
      %14 = vector.broadcast %13 : vector<1x128xf32> to vector<32x128xf32>
      %15 = arith.addf %12, %14 : vector<32x128xf32>
      %16 = arith.truncf %15 : vector<32x128xf32> to vector<32x128xbf16>
      %c0_14 = arith.constant 0 : index
      %c0_15 = arith.constant 0 : index
      %17 = vector.load %arg6[%c0_14, %c0_15] : memref<32x128xbf16, #tpu.memory_space<vmem>>, vector<32x128xbf16>
      tpu.vector_store %arg6[%c0_14, %c0_15], %16 {strides = array<i32>} : memref<32x128xbf16, #tpu.memory_space<vmem>>, vector<32x128xbf16>,
    } else {
    }
    return
  }
  func.func @transform_0(%arg0: i32, %arg1: i32, %arg2: i32) -> (i32, i32) {
    %c0_i32 = arith.constant 0 : i32
    return %arg0, %arg2 : i32, i32
  }
  func.func @transform_1(%arg0: i32, %arg1: i32, %arg2: i32) -> (i32, i32) {
    %c0_i32 = arith.constant 0 : i32
    return %arg2, %arg1 : i32, i32
  }
  func.func @transform_2(%arg0: i32, %arg1: i32, %arg2: i32) -> (i32, i32) {
    %c0_i32 = arith.constant 0 : i32
    %c0_i32_0 = arith.constant 0 : i32
    return %c0_i32, %arg1 : i32, i32
  }
  func.func @transform_3(%arg0: i32, %arg1: i32, %arg2: i32) -> (i32, i32) {
    %c0_i32 = arith.constant 0 : i32
    return %arg0, %arg1 : i32, i32
  }
}

module attributes {stable_mosaic.version = 11 : i64} {
  func.func @_mm_kernel(%arg0: i32, %arg1: i32, %arg2: i32, %arg3: memref<8x384xbf16, #tpu.memory_space<vmem>>, %arg4: memref<384x256xbf16, #tpu.memory_space<vmem>>, %arg5: memref<1x256xf32, #tpu.memory_space<vmem>>, %arg6: memref<8x256xbf16, #tpu.memory_space<vmem>>, %arg7: memref<8x256xf32, #tpu.memory_space<vmem>>) attributes {dimension_semantics = [#tpu.dimension_semantics<parallel>, #tpu.dimension_semantics<parallel>, #tpu.dimension_semantics<arbitrary>], iteration_bounds = array<i64: 1, 1, 3>, scalar_prefetch = 0 : i64, scratch_operands = 1 : i64, tpu.core_type = #tpu.core_type<tc>, window_params = [{transform_indices = @transform_0, window_bounds = array<i64: 8, 384>}, {transform_indices = @transform_1, window_bounds = array<i64: 384, 256>}, {transform_indices = @transform_2, window_bounds = array<i64: 1, 256>}, {transform_indices = @transform_3, window_bounds = array<i64: 8, 256>}]} {
    %c0_i32 = arith.constant 0 : i32
    %0 = arith.cmpi eq, %arg2, %c0_i32 : i32
    %1 = arith.extui %0 : i1 to i32
    %c0_i32_0 = arith.constant 0 : i32
    %2 = arith.cmpi ne, %1, %c0_i32_0 : i32
    scf.if %2 {
      %cst_9 = arith.constant 0.000000e+00 : f32
      %12 = vector.broadcast %cst_9 : f32 to vector<8x256xf32>
      %c0_10 = arith.constant 0 : index
      %c0_11 = arith.constant 0 : index
      %13 = vector.load %arg7[%c0_10, %c0_11] : memref<8x256xf32, #tpu.memory_space<vmem>>, vector<8x256xf32>
      tpu.vector_store %arg7[%c0_10, %c0_11], %12 {strides = array<i32>} : memref<8x256xf32, #tpu.memory_space<vmem>>, vector<8x256xf32>,
    } else {
    }
    %c0 = arith.constant 0 : index
    %c0_1 = arith.constant 0 : index
    %3 = vector.load %arg7[%c0, %c0_1] : memref<8x256xf32, #tpu.memory_space<vmem>>, vector<8x256xf32>
    %c0_2 = arith.constant 0 : index
    %c0_3 = arith.constant 0 : index
    %4 = vector.load %arg3[%c0_2, %c0_3] : memref<8x384xbf16, #tpu.memory_space<vmem>>, vector<8x384xbf16>
    %c0_4 = arith.constant 0 : index
    %c0_5 = arith.constant 0 : index
    %5 = vector.load %arg4[%c0_4, %c0_5] : memref<384x256xbf16, #tpu.memory_space<vmem>>, vector<384x256xbf16>
    %cst = arith.constant dense<0.000000e+00> : vector<8x256xf32>
    %6 = tpu.matmul %4, %5, %cst {dimension_numbers = #tpu.dot_dimension_numbers<[1], [0], [0], [1], [0, 0, 1, 1], [], []>} : vector<8x384xbf16>, vector<384x256xbf16>, vector<8x256xf32> -> vector<8x256xf32>
    %7 = arith.addf %3, %6 : vector<8x256xf32>
    %c0_6 = arith.constant 0 : index
    %c0_7 = arith.constant 0 : index
    %8 = vector.load %arg7[%c0_6, %c0_7] : memref<8x256xf32, #tpu.memory_space<vmem>>, vector<8x256xf32>
    tpu.vector_store %arg7[%c0_6, %c0_7], %7 {strides = array<i32>} : memref<8x256xf32, #tpu.memory_space<vmem>>, vector<8x256xf32>,
    %c2_i32 = arith.constant 2 : i32
    %9 = arith.cmpi eq, %arg2, %c2_i32 : i32
    %10 = arith.extui %9 : i1 to i32
    %c0_i32_8 = arith.constant 0 : i32
    %11 = arith.cmpi ne, %10, %c0_i32_8 : i32
    scf.if %11 {
      %c0_9 = arith.constant 0 : index
      %c0_10 = arith.constant 0 : index
      %12 = vector.load %arg7[%c0_9, %c0_10] : memref<8x256xf32, #tpu.memory_space<vmem>>, vector<8x256xf32>
      %c0_11 = arith.constant 0 : index
      %c0_12 = arith.constant 0 : index
      %13 = vector.load %arg5[%c0_11, %c0_12] : memref<1x256xf32, #tpu.memory_space<vmem>>, vector<1x256xf32>
      %14 = vector.broadcast %13 : vector<1x256xf32> to vector<8x256xf32>
      %15 = arith.addf %12, %14 : vector<8x256xf32>
      %cst_13 = arith.constant 0.000000e+00 : f32
      %16 = vector.broadcast %cst_13 : f32 to vector<8x256xf32>
      %17 = arith.maximumf %15, %16 : vector<8x256xf32>
      %18 = arith.truncf %17 : vector<8x256xf32> to vector<8x256xbf16>
      %c0_14 = arith.constant 0 : index
      %c0_15 = arith.constant 0 : index
      %19 = vector.load %arg6[%c0_14, %c0_15] : memref<8x256xbf16, #tpu.memory_space<vmem>>, vector<8x256xbf16>
      tpu.vector_store %arg6[%c0_14, %c0_15], %18 {strides = array<i32>} : memref<8x256xbf16, #tpu.memory_space<vmem>>, vector<8x256xbf16>,
    } else {
    }
    return
  }
  func.func @transform_0(%arg0: i32, %arg1: i32, %arg2: i32) -> (i32, i32) {
    %c0_i32 = arith.constant 0 : i32
    return %arg0, %arg2 : i32, i32
  }
  func.func @transform_1(%arg0: i32, %arg1: i32, %arg2: i32) -> (i32, i32) {
    %c0_i32 = arith.constant 0 : i32
    return %arg2, %arg1 : i32, i32
  }
  func.func @transform_2(%arg0: i32, %arg1: i32, %arg2: i32) -> (i32, i32) {
    %c0_i32 = arith.constant 0 : i32
    %c0_i32_0 = arith.constant 0 : i32
    return %c0_i32, %arg1 : i32, i32
  }
  func.func @transform_3(%arg0: i32, %arg1: i32, %arg2: i32) -> (i32, i32) {
    %c0_i32 = arith.constant 0 : i32
    return %arg0, %arg1 : i32, i32
  }
}

module attributes {stable_mosaic.version = 11 : i64} {
  func.func @_mm_kernel(%arg0: i32, %arg1: i32, %arg2: i32, %arg3: memref<8x128xbf16, #tpu.memory_space<vmem>>, %arg4: memref<128x256xbf16, #tpu.memory_space<vmem>>, %arg5: memref<1x256xf32, #tpu.memory_space<vmem>>, %arg6: memref<8x256xbf16, #tpu.memory_space<vmem>>, %arg7: memref<8x256xf32, #tpu.memory_space<vmem>>) attributes {dimension_semantics = [#tpu.dimension_semantics<parallel>, #tpu.dimension_semantics<parallel>, #tpu.dimension_semantics<arbitrary>], iteration_bounds = array<i64: 1, 1, 1>, scalar_prefetch = 0 : i64, scratch_operands = 1 : i64, tpu.core_type = #tpu.core_type<tc>, window_params = [{transform_indices = @transform_0, window_bounds = array<i64: 8, 128>}, {transform_indices = @transform_1, window_bounds = array<i64: 128, 256>}, {transform_indices = @transform_2, window_bounds = array<i64: 1, 256>}, {transform_indices = @transform_3, window_bounds = array<i64: 8, 256>}]} {
    %c0_i32 = arith.constant 0 : i32
    %0 = arith.cmpi eq, %arg2, %c0_i32 : i32
    %1 = arith.extui %0 : i1 to i32
    %c0_i32_0 = arith.constant 0 : i32
    %2 = arith.cmpi ne, %1, %c0_i32_0 : i32
    scf.if %2 {
      %cst_10 = arith.constant 0.000000e+00 : f32
      %12 = vector.broadcast %cst_10 : f32 to vector<8x256xf32>
      %c0_11 = arith.constant 0 : index
      %c0_12 = arith.constant 0 : index
      %13 = vector.load %arg7[%c0_11, %c0_12] : memref<8x256xf32, #tpu.memory_space<vmem>>, vector<8x256xf32>
      tpu.vector_store %arg7[%c0_11, %c0_12], %12 {strides = array<i32>} : memref<8x256xf32, #tpu.memory_space<vmem>>, vector<8x256xf32>,
    } else {
    }
    %c0 = arith.constant 0 : index
    %c0_1 = arith.constant 0 : index
    %3 = vector.load %arg7[%c0, %c0_1] : memref<8x256xf32, #tpu.memory_space<vmem>>, vector<8x256xf32>
    %c0_2 = arith.constant 0 : index
    %c0_3 = arith.constant 0 : index
    %4 = vector.load %arg3[%c0_2, %c0_3] : memref<8x128xbf16, #tpu.memory_space<vmem>>, vector<8x128xbf16>
    %c0_4 = arith.constant 0 : index
    %c0_5 = arith.constant 0 : index
    %5 = vector.load %arg4[%c0_4, %c0_5] : memref<128x256xbf16, #tpu.memory_space<vmem>>, vector<128x256xbf16>
    %cst = arith.constant dense<0.000000e+00> : vector<8x256xf32>
    %6 = tpu.matmul %4, %5, %cst {dimension_numbers = #tpu.dot_dimension_numbers<[1], [0], [0], [1], [0, 0, 1, 1], [], []>} : vector<8x128xbf16>, vector<128x256xbf16>, vector<8x256xf32> -> vector<8x256xf32>
    %7 = arith.addf %3, %6 : vector<8x256xf32>
    %c0_6 = arith.constant 0 : index
    %c0_7 = arith.constant 0 : index
    %8 = vector.load %arg7[%c0_6, %c0_7] : memref<8x256xf32, #tpu.memory_space<vmem>>, vector<8x256xf32>
    tpu.vector_store %arg7[%c0_6, %c0_7], %7 {strides = array<i32>} : memref<8x256xf32, #tpu.memory_space<vmem>>, vector<8x256xf32>,
    %c0_i32_8 = arith.constant 0 : i32
    %9 = arith.cmpi eq, %arg2, %c0_i32_8 : i32
    %10 = arith.extui %9 : i1 to i32
    %c0_i32_9 = arith.constant 0 : i32
    %11 = arith.cmpi ne, %10, %c0_i32_9 : i32
    scf.if %11 {
      %c0_10 = arith.constant 0 : index
      %c0_11 = arith.constant 0 : index
      %12 = vector.load %arg7[%c0_10, %c0_11] : memref<8x256xf32, #tpu.memory_space<vmem>>, vector<8x256xf32>
      %c0_12 = arith.constant 0 : index
      %c0_13 = arith.constant 0 : index
      %13 = vector.load %arg5[%c0_12, %c0_13] : memref<1x256xf32, #tpu.memory_space<vmem>>, vector<1x256xf32>
      %14 = vector.broadcast %13 : vector<1x256xf32> to vector<8x256xf32>
      %15 = arith.addf %12, %14 : vector<8x256xf32>
      %16 = arith.truncf %15 : vector<8x256xf32> to vector<8x256xbf16>
      %c0_14 = arith.constant 0 : index
      %c0_15 = arith.constant 0 : index
      %17 = vector.load %arg6[%c0_14, %c0_15] : memref<8x256xbf16, #tpu.memory_space<vmem>>, vector<8x256xbf16>
      tpu.vector_store %arg6[%c0_14, %c0_15], %16 {strides = array<i32>} : memref<8x256xbf16, #tpu.memory_space<vmem>>, vector<8x256xbf16>,
    } else {
    }
    return
  }
  func.func @transform_0(%arg0: i32, %arg1: i32, %arg2: i32) -> (i32, i32) {
    %c0_i32 = arith.constant 0 : i32
    return %arg0, %arg2 : i32, i32
  }
  func.func @transform_1(%arg0: i32, %arg1: i32, %arg2: i32) -> (i32, i32) {
    %c0_i32 = arith.constant 0 : i32
    return %arg2, %arg1 : i32, i32
  }
  func.func @transform_2(%arg0: i32, %arg1: i32, %arg2: i32) -> (i32, i32) {
    %c0_i32 = arith.constant 0 : i32
    %c0_i32_0 = arith.constant 0 : i32
    return %c0_i32, %arg1 : i32, i32
  }
  func.func @transform_3(%arg0: i32, %arg1: i32, %arg2: i32) -> (i32, i32) {
    %c0_i32 = arith.constant 0 : i32
    return %arg0, %arg1 : i32, i32
  }
}

module attributes {stable_mosaic.version = 11 : i64} {
  func.func @_mm_res_kernel(%arg0: i32, %arg1: i32, %arg2: i32, %arg3: memref<8x768xbf16, #tpu.memory_space<vmem>>, %arg4: memref<768x256xbf16, #tpu.memory_space<vmem>>, %arg5: memref<1x256xf32, #tpu.memory_space<vmem>>, %arg6: memref<8x256xbf16, #tpu.memory_space<vmem>>, %arg7: memref<8x256xbf16, #tpu.memory_space<vmem>>, %arg8: memref<8x256xf32, #tpu.memory_space<vmem>>) attributes {dimension_semantics = [#tpu.dimension_semantics<parallel>, #tpu.dimension_semantics<parallel>, #tpu.dimension_semantics<arbitrary>], iteration_bounds = array<i64: 1, 1, 3>, scalar_prefetch = 0 : i64, scratch_operands = 1 : i64, tpu.core_type = #tpu.core_type<tc>, window_params = [{transform_indices = @transform_0, window_bounds = array<i64: 8, 768>}, {transform_indices = @transform_1, window_bounds = array<i64: 768, 256>}, {transform_indices = @transform_2, window_bounds = array<i64: 1, 256>}, {transform_indices = @transform_3, window_bounds = array<i64: 8, 256>}, {transform_indices = @transform_4, window_bounds = array<i64: 8, 256>}]} {
    %c0_i32 = arith.constant 0 : i32
    %0 = arith.cmpi eq, %arg2, %c0_i32 : i32
    %1 = arith.extui %0 : i1 to i32
    %c0_i32_0 = arith.constant 0 : i32
    %2 = arith.cmpi ne, %1, %c0_i32_0 : i32
    scf.if %2 {
      %cst_9 = arith.constant 0.000000e+00 : f32
      %12 = vector.broadcast %cst_9 : f32 to vector<8x256xf32>
      %c0_10 = arith.constant 0 : index
      %c0_11 = arith.constant 0 : index
      %13 = vector.load %arg8[%c0_10, %c0_11] : memref<8x256xf32, #tpu.memory_space<vmem>>, vector<8x256xf32>
      tpu.vector_store %arg8[%c0_10, %c0_11], %12 {strides = array<i32>} : memref<8x256xf32, #tpu.memory_space<vmem>>, vector<8x256xf32>,
    } else {
    }
    %c0 = arith.constant 0 : index
    %c0_1 = arith.constant 0 : index
    %3 = vector.load %arg8[%c0, %c0_1] : memref<8x256xf32, #tpu.memory_space<vmem>>, vector<8x256xf32>
    %c0_2 = arith.constant 0 : index
    %c0_3 = arith.constant 0 : index
    %4 = vector.load %arg3[%c0_2, %c0_3] : memref<8x768xbf16, #tpu.memory_space<vmem>>, vector<8x768xbf16>
    %c0_4 = arith.constant 0 : index
    %c0_5 = arith.constant 0 : index
    %5 = vector.load %arg4[%c0_4, %c0_5] : memref<768x256xbf16, #tpu.memory_space<vmem>>, vector<768x256xbf16>
    %cst = arith.constant dense<0.000000e+00> : vector<8x256xf32>
    %6 = tpu.matmul %4, %5, %cst {dimension_numbers = #tpu.dot_dimension_numbers<[1], [0], [0], [1], [0, 0, 1, 1], [], []>} : vector<8x768xbf16>, vector<768x256xbf16>, vector<8x256xf32> -> vector<8x256xf32>
    %7 = arith.addf %3, %6 : vector<8x256xf32>
    %c0_6 = arith.constant 0 : index
    %c0_7 = arith.constant 0 : index
    %8 = vector.load %arg8[%c0_6, %c0_7] : memref<8x256xf32, #tpu.memory_space<vmem>>, vector<8x256xf32>
    tpu.vector_store %arg8[%c0_6, %c0_7], %7 {strides = array<i32>} : memref<8x256xf32, #tpu.memory_space<vmem>>, vector<8x256xf32>,
    %c2_i32 = arith.constant 2 : i32
    %9 = arith.cmpi eq, %arg2, %c2_i32 : i32
    %10 = arith.extui %9 : i1 to i32
    %c0_i32_8 = arith.constant 0 : i32
    %11 = arith.cmpi ne, %10, %c0_i32_8 : i32
    scf.if %11 {
      %c0_9 = arith.constant 0 : index
      %c0_10 = arith.constant 0 : index
      %12 = vector.load %arg8[%c0_9, %c0_10] : memref<8x256xf32, #tpu.memory_space<vmem>>, vector<8x256xf32>
      %c0_11 = arith.constant 0 : index
      %c0_12 = arith.constant 0 : index
      %13 = vector.load %arg5[%c0_11, %c0_12] : memref<1x256xf32, #tpu.memory_space<vmem>>, vector<1x256xf32>
      %14 = vector.broadcast %13 : vector<1x256xf32> to vector<8x256xf32>
      %15 = arith.addf %12, %14 : vector<8x256xf32>
      %c0_13 = arith.constant 0 : index
      %c0_14 = arith.constant 0 : index
      %16 = vector.load %arg6[%c0_13, %c0_14] : memref<8x256xbf16, #tpu.memory_space<vmem>>, vector<8x256xbf16>
      %17 = arith.extf %16 : vector<8x256xbf16> to vector<8x256xf32>
      %18 = arith.addf %15, %17 : vector<8x256xf32>
      %cst_15 = arith.constant 0.000000e+00 : f32
      %19 = vector.broadcast %cst_15 : f32 to vector<8x256xf32>
      %20 = arith.maximumf %18, %19 : vector<8x256xf32>
      %21 = arith.truncf %20 : vector<8x256xf32> to vector<8x256xbf16>
      %c0_16 = arith.constant 0 : index
      %c0_17 = arith.constant 0 : index
      %22 = vector.load %arg7[%c0_16, %c0_17] : memref<8x256xbf16, #tpu.memory_space<vmem>>, vector<8x256xbf16>
      tpu.vector_store %arg7[%c0_16, %c0_17], %21 {strides = array<i32>} : memref<8x256xbf16, #tpu.memory_space<vmem>>, vector<8x256xbf16>,
    } else {
    }
    return
  }
  func.func @transform_0(%arg0: i32, %arg1: i32, %arg2: i32) -> (i32, i32) {
    %c0_i32 = arith.constant 0 : i32
    return %arg0, %arg2 : i32, i32
  }
  func.func @transform_1(%arg0: i32, %arg1: i32, %arg2: i32) -> (i32, i32) {
    %c0_i32 = arith.constant 0 : i32
    return %arg2, %arg1 : i32, i32
  }
  func.func @transform_2(%arg0: i32, %arg1: i32, %arg2: i32) -> (i32, i32) {
    %c0_i32 = arith.constant 0 : i32
    %c0_i32_0 = arith.constant 0 : i32
    return %c0_i32, %arg1 : i32, i32
  }
  func.func @transform_3(%arg0: i32, %arg1: i32, %arg2: i32) -> (i32, i32) {
    %c0_i32 = arith.constant 0 : i32
    return %arg0, %arg1 : i32, i32
  }
  func.func @transform_4(%arg0: i32, %arg1: i32, %arg2: i32) -> (i32, i32) {
    %c0_i32 = arith.constant 0 : i32
    return %arg0, %arg1 : i32, i32
  }
}

module attributes {stable_mosaic.version = 11 : i64} {
  func.func @_mm_kernel(%arg0: i32, %arg1: i32, %arg2: i32, %arg3: memref<8x768xbf16, #tpu.memory_space<vmem>>, %arg4: memref<768x256xbf16, #tpu.memory_space<vmem>>, %arg5: memref<1x256xf32, #tpu.memory_space<vmem>>, %arg6: memref<8x256xbf16, #tpu.memory_space<vmem>>, %arg7: memref<8x256xf32, #tpu.memory_space<vmem>>) attributes {dimension_semantics = [#tpu.dimension_semantics<parallel>, #tpu.dimension_semantics<parallel>, #tpu.dimension_semantics<arbitrary>], iteration_bounds = array<i64: 1, 1, 3>, scalar_prefetch = 0 : i64, scratch_operands = 1 : i64, tpu.core_type = #tpu.core_type<tc>, window_params = [{transform_indices = @transform_0, window_bounds = array<i64: 8, 768>}, {transform_indices = @transform_1, window_bounds = array<i64: 768, 256>}, {transform_indices = @transform_2, window_bounds = array<i64: 1, 256>}, {transform_indices = @transform_3, window_bounds = array<i64: 8, 256>}]} {
    %c0_i32 = arith.constant 0 : i32
    %0 = arith.cmpi eq, %arg2, %c0_i32 : i32
    %1 = arith.extui %0 : i1 to i32
    %c0_i32_0 = arith.constant 0 : i32
    %2 = arith.cmpi ne, %1, %c0_i32_0 : i32
    scf.if %2 {
      %cst_9 = arith.constant 0.000000e+00 : f32
      %12 = vector.broadcast %cst_9 : f32 to vector<8x256xf32>
      %c0_10 = arith.constant 0 : index
      %c0_11 = arith.constant 0 : index
      %13 = vector.load %arg7[%c0_10, %c0_11] : memref<8x256xf32, #tpu.memory_space<vmem>>, vector<8x256xf32>
      tpu.vector_store %arg7[%c0_10, %c0_11], %12 {strides = array<i32>} : memref<8x256xf32, #tpu.memory_space<vmem>>, vector<8x256xf32>,
    } else {
    }
    %c0 = arith.constant 0 : index
    %c0_1 = arith.constant 0 : index
    %3 = vector.load %arg7[%c0, %c0_1] : memref<8x256xf32, #tpu.memory_space<vmem>>, vector<8x256xf32>
    %c0_2 = arith.constant 0 : index
    %c0_3 = arith.constant 0 : index
    %4 = vector.load %arg3[%c0_2, %c0_3] : memref<8x768xbf16, #tpu.memory_space<vmem>>, vector<8x768xbf16>
    %c0_4 = arith.constant 0 : index
    %c0_5 = arith.constant 0 : index
    %5 = vector.load %arg4[%c0_4, %c0_5] : memref<768x256xbf16, #tpu.memory_space<vmem>>, vector<768x256xbf16>
    %cst = arith.constant dense<0.000000e+00> : vector<8x256xf32>
    %6 = tpu.matmul %4, %5, %cst {dimension_numbers = #tpu.dot_dimension_numbers<[1], [0], [0], [1], [0, 0, 1, 1], [], []>} : vector<8x768xbf16>, vector<768x256xbf16>, vector<8x256xf32> -> vector<8x256xf32>
    %7 = arith.addf %3, %6 : vector<8x256xf32>
    %c0_6 = arith.constant 0 : index
    %c0_7 = arith.constant 0 : index
    %8 = vector.load %arg7[%c0_6, %c0_7] : memref<8x256xf32, #tpu.memory_space<vmem>>, vector<8x256xf32>
    tpu.vector_store %arg7[%c0_6, %c0_7], %7 {strides = array<i32>} : memref<8x256xf32, #tpu.memory_space<vmem>>, vector<8x256xf32>,
    %c2_i32 = arith.constant 2 : i32
    %9 = arith.cmpi eq, %arg2, %c2_i32 : i32
    %10 = arith.extui %9 : i1 to i32
    %c0_i32_8 = arith.constant 0 : i32
    %11 = arith.cmpi ne, %10, %c0_i32_8 : i32
    scf.if %11 {
      %c0_9 = arith.constant 0 : index
      %c0_10 = arith.constant 0 : index
      %12 = vector.load %arg7[%c0_9, %c0_10] : memref<8x256xf32, #tpu.memory_space<vmem>>, vector<8x256xf32>
      %c0_11 = arith.constant 0 : index
      %c0_12 = arith.constant 0 : index
      %13 = vector.load %arg5[%c0_11, %c0_12] : memref<1x256xf32, #tpu.memory_space<vmem>>, vector<1x256xf32>
      %14 = vector.broadcast %13 : vector<1x256xf32> to vector<8x256xf32>
      %15 = arith.addf %12, %14 : vector<8x256xf32>
      %cst_13 = arith.constant 0.000000e+00 : f32
      %16 = vector.broadcast %cst_13 : f32 to vector<8x256xf32>
      %17 = arith.maximumf %15, %16 : vector<8x256xf32>
      %18 = arith.truncf %17 : vector<8x256xf32> to vector<8x256xbf16>
      %c0_14 = arith.constant 0 : index
      %c0_15 = arith.constant 0 : index
      %19 = vector.load %arg6[%c0_14, %c0_15] : memref<8x256xbf16, #tpu.memory_space<vmem>>, vector<8x256xbf16>
      tpu.vector_store %arg6[%c0_14, %c0_15], %18 {strides = array<i32>} : memref<8x256xbf16, #tpu.memory_space<vmem>>, vector<8x256xbf16>,
    } else {
    }
    return
  }
  func.func @transform_0(%arg0: i32, %arg1: i32, %arg2: i32) -> (i32, i32) {
    %c0_i32 = arith.constant 0 : i32
    return %arg0, %arg2 : i32, i32
  }
  func.func @transform_1(%arg0: i32, %arg1: i32, %arg2: i32) -> (i32, i32) {
    %c0_i32 = arith.constant 0 : i32
    return %arg2, %arg1 : i32, i32
  }
  func.func @transform_2(%arg0: i32, %arg1: i32, %arg2: i32) -> (i32, i32) {
    %c0_i32 = arith.constant 0 : i32
    %c0_i32_0 = arith.constant 0 : i32
    return %c0_i32, %arg1 : i32, i32
  }
  func.func @transform_3(%arg0: i32, %arg1: i32, %arg2: i32) -> (i32, i32) {
    %c0_i32 = arith.constant 0 : i32
    return %arg0, %arg1 : i32, i32
  }
}

module attributes {stable_mosaic.version = 11 : i64} {
  func.func @_mm_kernel(%arg0: i32, %arg1: i32, %arg2: i32, %arg3: memref<8x768xbf16, #tpu.memory_space<vmem>>, %arg4: memref<768x256xbf16, #tpu.memory_space<vmem>>, %arg5: memref<1x256xf32, #tpu.memory_space<vmem>>, %arg6: memref<8x256xbf16, #tpu.memory_space<vmem>>, %arg7: memref<8x256xf32, #tpu.memory_space<vmem>>) attributes {dimension_semantics = [#tpu.dimension_semantics<parallel>, #tpu.dimension_semantics<parallel>, #tpu.dimension_semantics<arbitrary>], iteration_bounds = array<i64: 1, 2, 3>, scalar_prefetch = 0 : i64, scratch_operands = 1 : i64, tpu.core_type = #tpu.core_type<tc>, window_params = [{transform_indices = @transform_0, window_bounds = array<i64: 8, 768>}, {transform_indices = @transform_1, window_bounds = array<i64: 768, 256>}, {transform_indices = @transform_2, window_bounds = array<i64: 1, 256>}, {transform_indices = @transform_3, window_bounds = array<i64: 8, 256>}]} {
    %c0_i32 = arith.constant 0 : i32
    %0 = arith.cmpi eq, %arg2, %c0_i32 : i32
    %1 = arith.extui %0 : i1 to i32
    %c0_i32_0 = arith.constant 0 : i32
    %2 = arith.cmpi ne, %1, %c0_i32_0 : i32
    scf.if %2 {
      %cst_9 = arith.constant 0.000000e+00 : f32
      %12 = vector.broadcast %cst_9 : f32 to vector<8x256xf32>
      %c0_10 = arith.constant 0 : index
      %c0_11 = arith.constant 0 : index
      %13 = vector.load %arg7[%c0_10, %c0_11] : memref<8x256xf32, #tpu.memory_space<vmem>>, vector<8x256xf32>
      tpu.vector_store %arg7[%c0_10, %c0_11], %12 {strides = array<i32>} : memref<8x256xf32, #tpu.memory_space<vmem>>, vector<8x256xf32>,
    } else {
    }
    %c0 = arith.constant 0 : index
    %c0_1 = arith.constant 0 : index
    %3 = vector.load %arg7[%c0, %c0_1] : memref<8x256xf32, #tpu.memory_space<vmem>>, vector<8x256xf32>
    %c0_2 = arith.constant 0 : index
    %c0_3 = arith.constant 0 : index
    %4 = vector.load %arg3[%c0_2, %c0_3] : memref<8x768xbf16, #tpu.memory_space<vmem>>, vector<8x768xbf16>
    %c0_4 = arith.constant 0 : index
    %c0_5 = arith.constant 0 : index
    %5 = vector.load %arg4[%c0_4, %c0_5] : memref<768x256xbf16, #tpu.memory_space<vmem>>, vector<768x256xbf16>
    %cst = arith.constant dense<0.000000e+00> : vector<8x256xf32>
    %6 = tpu.matmul %4, %5, %cst {dimension_numbers = #tpu.dot_dimension_numbers<[1], [0], [0], [1], [0, 0, 1, 1], [], []>} : vector<8x768xbf16>, vector<768x256xbf16>, vector<8x256xf32> -> vector<8x256xf32>
    %7 = arith.addf %3, %6 : vector<8x256xf32>
    %c0_6 = arith.constant 0 : index
    %c0_7 = arith.constant 0 : index
    %8 = vector.load %arg7[%c0_6, %c0_7] : memref<8x256xf32, #tpu.memory_space<vmem>>, vector<8x256xf32>
    tpu.vector_store %arg7[%c0_6, %c0_7], %7 {strides = array<i32>} : memref<8x256xf32, #tpu.memory_space<vmem>>, vector<8x256xf32>,
    %c2_i32 = arith.constant 2 : i32
    %9 = arith.cmpi eq, %arg2, %c2_i32 : i32
    %10 = arith.extui %9 : i1 to i32
    %c0_i32_8 = arith.constant 0 : i32
    %11 = arith.cmpi ne, %10, %c0_i32_8 : i32
    scf.if %11 {
      %c0_9 = arith.constant 0 : index
      %c0_10 = arith.constant 0 : index
      %12 = vector.load %arg7[%c0_9, %c0_10] : memref<8x256xf32, #tpu.memory_space<vmem>>, vector<8x256xf32>
      %c0_11 = arith.constant 0 : index
      %c0_12 = arith.constant 0 : index
      %13 = vector.load %arg5[%c0_11, %c0_12] : memref<1x256xf32, #tpu.memory_space<vmem>>, vector<1x256xf32>
      %14 = vector.broadcast %13 : vector<1x256xf32> to vector<8x256xf32>
      %15 = arith.addf %12, %14 : vector<8x256xf32>
      %cst_13 = arith.constant 0.000000e+00 : f32
      %16 = vector.broadcast %cst_13 : f32 to vector<8x256xf32>
      %17 = arith.maximumf %15, %16 : vector<8x256xf32>
      %18 = arith.truncf %17 : vector<8x256xf32> to vector<8x256xbf16>
      %c0_14 = arith.constant 0 : index
      %c0_15 = arith.constant 0 : index
      %19 = vector.load %arg6[%c0_14, %c0_15] : memref<8x256xbf16, #tpu.memory_space<vmem>>, vector<8x256xbf16>
      tpu.vector_store %arg6[%c0_14, %c0_15], %18 {strides = array<i32>} : memref<8x256xbf16, #tpu.memory_space<vmem>>, vector<8x256xbf16>,
    } else {
    }
    return
  }
  func.func @transform_0(%arg0: i32, %arg1: i32, %arg2: i32) -> (i32, i32) {
    %c0_i32 = arith.constant 0 : i32
    return %arg0, %arg2 : i32, i32
  }
  func.func @transform_1(%arg0: i32, %arg1: i32, %arg2: i32) -> (i32, i32) {
    %c0_i32 = arith.constant 0 : i32
    return %arg2, %arg1 : i32, i32
  }
  func.func @transform_2(%arg0: i32, %arg1: i32, %arg2: i32) -> (i32, i32) {
    %c0_i32 = arith.constant 0 : i32
    %c0_i32_0 = arith.constant 0 : i32
    return %c0_i32, %arg1 : i32, i32
  }
  func.func @transform_3(%arg0: i32, %arg1: i32, %arg2: i32) -> (i32, i32) {
    %c0_i32 = arith.constant 0 : i32
    return %arg0, %arg1 : i32, i32
  }
}

module attributes {stable_mosaic.version = 11 : i64} {
  func.func @_mm_kernel(%arg0: i32, %arg1: i32, %arg2: i32, %arg3: memref<8x256xbf16, #tpu.memory_space<vmem>>, %arg4: memref<256x256xbf16, #tpu.memory_space<vmem>>, %arg5: memref<1x256xf32, #tpu.memory_space<vmem>>, %arg6: memref<8x256xbf16, #tpu.memory_space<vmem>>, %arg7: memref<8x256xf32, #tpu.memory_space<vmem>>) attributes {dimension_semantics = [#tpu.dimension_semantics<parallel>, #tpu.dimension_semantics<parallel>, #tpu.dimension_semantics<arbitrary>], iteration_bounds = array<i64: 1, 2, 1>, scalar_prefetch = 0 : i64, scratch_operands = 1 : i64, tpu.core_type = #tpu.core_type<tc>, window_params = [{transform_indices = @transform_0, window_bounds = array<i64: 8, 256>}, {transform_indices = @transform_1, window_bounds = array<i64: 256, 256>}, {transform_indices = @transform_2, window_bounds = array<i64: 1, 256>}, {transform_indices = @transform_3, window_bounds = array<i64: 8, 256>}]} {
    %c0_i32 = arith.constant 0 : i32
    %0 = arith.cmpi eq, %arg2, %c0_i32 : i32
    %1 = arith.extui %0 : i1 to i32
    %c0_i32_0 = arith.constant 0 : i32
    %2 = arith.cmpi ne, %1, %c0_i32_0 : i32
    scf.if %2 {
      %cst_10 = arith.constant 0.000000e+00 : f32
      %12 = vector.broadcast %cst_10 : f32 to vector<8x256xf32>
      %c0_11 = arith.constant 0 : index
      %c0_12 = arith.constant 0 : index
      %13 = vector.load %arg7[%c0_11, %c0_12] : memref<8x256xf32, #tpu.memory_space<vmem>>, vector<8x256xf32>
      tpu.vector_store %arg7[%c0_11, %c0_12], %12 {strides = array<i32>} : memref<8x256xf32, #tpu.memory_space<vmem>>, vector<8x256xf32>,
    } else {
    }
    %c0 = arith.constant 0 : index
    %c0_1 = arith.constant 0 : index
    %3 = vector.load %arg7[%c0, %c0_1] : memref<8x256xf32, #tpu.memory_space<vmem>>, vector<8x256xf32>
    %c0_2 = arith.constant 0 : index
    %c0_3 = arith.constant 0 : index
    %4 = vector.load %arg3[%c0_2, %c0_3] : memref<8x256xbf16, #tpu.memory_space<vmem>>, vector<8x256xbf16>
    %c0_4 = arith.constant 0 : index
    %c0_5 = arith.constant 0 : index
    %5 = vector.load %arg4[%c0_4, %c0_5] : memref<256x256xbf16, #tpu.memory_space<vmem>>, vector<256x256xbf16>
    %cst = arith.constant dense<0.000000e+00> : vector<8x256xf32>
    %6 = tpu.matmul %4, %5, %cst {dimension_numbers = #tpu.dot_dimension_numbers<[1], [0], [0], [1], [0, 0, 1, 1], [], []>} : vector<8x256xbf16>, vector<256x256xbf16>, vector<8x256xf32> -> vector<8x256xf32>
    %7 = arith.addf %3, %6 : vector<8x256xf32>
    %c0_6 = arith.constant 0 : index
    %c0_7 = arith.constant 0 : index
    %8 = vector.load %arg7[%c0_6, %c0_7] : memref<8x256xf32, #tpu.memory_space<vmem>>, vector<8x256xf32>
    tpu.vector_store %arg7[%c0_6, %c0_7], %7 {strides = array<i32>} : memref<8x256xf32, #tpu.memory_space<vmem>>, vector<8x256xf32>,
    %c0_i32_8 = arith.constant 0 : i32
    %9 = arith.cmpi eq, %arg2, %c0_i32_8 : i32
    %10 = arith.extui %9 : i1 to i32
    %c0_i32_9 = arith.constant 0 : i32
    %11 = arith.cmpi ne, %10, %c0_i32_9 : i32
    scf.if %11 {
      %c0_10 = arith.constant 0 : index
      %c0_11 = arith.constant 0 : index
      %12 = vector.load %arg7[%c0_10, %c0_11] : memref<8x256xf32, #tpu.memory_space<vmem>>, vector<8x256xf32>
      %c0_12 = arith.constant 0 : index
      %c0_13 = arith.constant 0 : index
      %13 = vector.load %arg5[%c0_12, %c0_13] : memref<1x256xf32, #tpu.memory_space<vmem>>, vector<1x256xf32>
      %14 = vector.broadcast %13 : vector<1x256xf32> to vector<8x256xf32>
      %15 = arith.addf %12, %14 : vector<8x256xf32>
      %16 = arith.truncf %15 : vector<8x256xf32> to vector<8x256xbf16>
      %c0_14 = arith.constant 0 : index
      %c0_15 = arith.constant 0 : index
      %17 = vector.load %arg6[%c0_14, %c0_15] : memref<8x256xbf16, #tpu.memory_space<vmem>>, vector<8x256xbf16>
      tpu.vector_store %arg6[%c0_14, %c0_15], %16 {strides = array<i32>} : memref<8x256xbf16, #tpu.memory_space<vmem>>, vector<8x256xbf16>,
    } else {
    }
    return
  }
  func.func @transform_0(%arg0: i32, %arg1: i32, %arg2: i32) -> (i32, i32) {
    %c0_i32 = arith.constant 0 : i32
    return %arg0, %arg2 : i32, i32
  }
  func.func @transform_1(%arg0: i32, %arg1: i32, %arg2: i32) -> (i32, i32) {
    %c0_i32 = arith.constant 0 : i32
    return %arg2, %arg1 : i32, i32
  }
  func.func @transform_2(%arg0: i32, %arg1: i32, %arg2: i32) -> (i32, i32) {
    %c0_i32 = arith.constant 0 : i32
    %c0_i32_0 = arith.constant 0 : i32
    return %c0_i32, %arg1 : i32, i32
  }
  func.func @transform_3(%arg0: i32, %arg1: i32, %arg2: i32) -> (i32, i32) {
    %c0_i32 = arith.constant 0 : i32
    return %arg0, %arg1 : i32, i32
  }
}

module attributes {stable_mosaic.version = 11 : i64} {
  func.func @_mm_res_kernel(%arg0: i32, %arg1: i32, %arg2: i32, %arg3: memref<8x768xbf16, #tpu.memory_space<vmem>>, %arg4: memref<768x256xbf16, #tpu.memory_space<vmem>>, %arg5: memref<1x256xf32, #tpu.memory_space<vmem>>, %arg6: memref<8x256xbf16, #tpu.memory_space<vmem>>, %arg7: memref<8x256xbf16, #tpu.memory_space<vmem>>, %arg8: memref<8x256xf32, #tpu.memory_space<vmem>>) attributes {dimension_semantics = [#tpu.dimension_semantics<parallel>, #tpu.dimension_semantics<parallel>, #tpu.dimension_semantics<arbitrary>], iteration_bounds = array<i64: 1, 2, 6>, scalar_prefetch = 0 : i64, scratch_operands = 1 : i64, tpu.core_type = #tpu.core_type<tc>, window_params = [{transform_indices = @transform_0, window_bounds = array<i64: 8, 768>}, {transform_indices = @transform_1, window_bounds = array<i64: 768, 256>}, {transform_indices = @transform_2, window_bounds = array<i64: 1, 256>}, {transform_indices = @transform_3, window_bounds = array<i64: 8, 256>}, {transform_indices = @transform_4, window_bounds = array<i64: 8, 256>}]} {
    %c0_i32 = arith.constant 0 : i32
    %0 = arith.cmpi eq, %arg2, %c0_i32 : i32
    %1 = arith.extui %0 : i1 to i32
    %c0_i32_0 = arith.constant 0 : i32
    %2 = arith.cmpi ne, %1, %c0_i32_0 : i32
    scf.if %2 {
      %cst_9 = arith.constant 0.000000e+00 : f32
      %12 = vector.broadcast %cst_9 : f32 to vector<8x256xf32>
      %c0_10 = arith.constant 0 : index
      %c0_11 = arith.constant 0 : index
      %13 = vector.load %arg8[%c0_10, %c0_11] : memref<8x256xf32, #tpu.memory_space<vmem>>, vector<8x256xf32>
      tpu.vector_store %arg8[%c0_10, %c0_11], %12 {strides = array<i32>} : memref<8x256xf32, #tpu.memory_space<vmem>>, vector<8x256xf32>,
    } else {
    }
    %c0 = arith.constant 0 : index
    %c0_1 = arith.constant 0 : index
    %3 = vector.load %arg8[%c0, %c0_1] : memref<8x256xf32, #tpu.memory_space<vmem>>, vector<8x256xf32>
    %c0_2 = arith.constant 0 : index
    %c0_3 = arith.constant 0 : index
    %4 = vector.load %arg3[%c0_2, %c0_3] : memref<8x768xbf16, #tpu.memory_space<vmem>>, vector<8x768xbf16>
    %c0_4 = arith.constant 0 : index
    %c0_5 = arith.constant 0 : index
    %5 = vector.load %arg4[%c0_4, %c0_5] : memref<768x256xbf16, #tpu.memory_space<vmem>>, vector<768x256xbf16>
    %cst = arith.constant dense<0.000000e+00> : vector<8x256xf32>
    %6 = tpu.matmul %4, %5, %cst {dimension_numbers = #tpu.dot_dimension_numbers<[1], [0], [0], [1], [0, 0, 1, 1], [], []>} : vector<8x768xbf16>, vector<768x256xbf16>, vector<8x256xf32> -> vector<8x256xf32>
    %7 = arith.addf %3, %6 : vector<8x256xf32>
    %c0_6 = arith.constant 0 : index
    %c0_7 = arith.constant 0 : index
    %8 = vector.load %arg8[%c0_6, %c0_7] : memref<8x256xf32, #tpu.memory_space<vmem>>, vector<8x256xf32>
    tpu.vector_store %arg8[%c0_6, %c0_7], %7 {strides = array<i32>} : memref<8x256xf32, #tpu.memory_space<vmem>>, vector<8x256xf32>,
    %c5_i32 = arith.constant 5 : i32
    %9 = arith.cmpi eq, %arg2, %c5_i32 : i32
    %10 = arith.extui %9 : i1 to i32
    %c0_i32_8 = arith.constant 0 : i32
    %11 = arith.cmpi ne, %10, %c0_i32_8 : i32
    scf.if %11 {
      %c0_9 = arith.constant 0 : index
      %c0_10 = arith.constant 0 : index
      %12 = vector.load %arg8[%c0_9, %c0_10] : memref<8x256xf32, #tpu.memory_space<vmem>>, vector<8x256xf32>
      %c0_11 = arith.constant 0 : index
      %c0_12 = arith.constant 0 : index
      %13 = vector.load %arg5[%c0_11, %c0_12] : memref<1x256xf32, #tpu.memory_space<vmem>>, vector<1x256xf32>
      %14 = vector.broadcast %13 : vector<1x256xf32> to vector<8x256xf32>
      %15 = arith.addf %12, %14 : vector<8x256xf32>
      %c0_13 = arith.constant 0 : index
      %c0_14 = arith.constant 0 : index
      %16 = vector.load %arg6[%c0_13, %c0_14] : memref<8x256xbf16, #tpu.memory_space<vmem>>, vector<8x256xbf16>
      %17 = arith.extf %16 : vector<8x256xbf16> to vector<8x256xf32>
      %18 = arith.addf %15, %17 : vector<8x256xf32>
      %cst_15 = arith.constant 0.000000e+00 : f32
      %19 = vector.broadcast %cst_15 : f32 to vector<8x256xf32>
      %20 = arith.maximumf %18, %19 : vector<8x256xf32>
      %21 = arith.truncf %20 : vector<8x256xf32> to vector<8x256xbf16>
      %c0_16 = arith.constant 0 : index
      %c0_17 = arith.constant 0 : index
      %22 = vector.load %arg7[%c0_16, %c0_17] : memref<8x256xbf16, #tpu.memory_space<vmem>>, vector<8x256xbf16>
      tpu.vector_store %arg7[%c0_16, %c0_17], %21 {strides = array<i32>} : memref<8x256xbf16, #tpu.memory_space<vmem>>, vector<8x256xbf16>,
    } else {
    }
    return
  }
  func.func @transform_0(%arg0: i32, %arg1: i32, %arg2: i32) -> (i32, i32) {
    %c0_i32 = arith.constant 0 : i32
    return %arg0, %arg2 : i32, i32
  }
  func.func @transform_1(%arg0: i32, %arg1: i32, %arg2: i32) -> (i32, i32) {
    %c0_i32 = arith.constant 0 : i32
    return %arg2, %arg1 : i32, i32
  }
  func.func @transform_2(%arg0: i32, %arg1: i32, %arg2: i32) -> (i32, i32) {
    %c0_i32 = arith.constant 0 : i32
    %c0_i32_0 = arith.constant 0 : i32
    return %c0_i32, %arg1 : i32, i32
  }
  func.func @transform_3(%arg0: i32, %arg1: i32, %arg2: i32) -> (i32, i32) {
    %c0_i32 = arith.constant 0 : i32
    return %arg0, %arg1 : i32, i32
  }
  func.func @transform_4(%arg0: i32, %arg1: i32, %arg2: i32) -> (i32, i32) {
    %c0_i32 = arith.constant 0 : i32
    return %arg0, %arg1 : i32, i32
  }
}

module attributes {stable_mosaic.version = 11 : i64} {
  func.func @_mm_kernel(%arg0: i32, %arg1: i32, %arg2: i32, %arg3: memref<8x768xbf16, #tpu.memory_space<vmem>>, %arg4: memref<768x256xbf16, #tpu.memory_space<vmem>>, %arg5: memref<1x256xf32, #tpu.memory_space<vmem>>, %arg6: memref<8x256xbf16, #tpu.memory_space<vmem>>, %arg7: memref<8x256xf32, #tpu.memory_space<vmem>>) attributes {dimension_semantics = [#tpu.dimension_semantics<parallel>, #tpu.dimension_semantics<parallel>, #tpu.dimension_semantics<arbitrary>], iteration_bounds = array<i64: 1, 2, 6>, scalar_prefetch = 0 : i64, scratch_operands = 1 : i64, tpu.core_type = #tpu.core_type<tc>, window_params = [{transform_indices = @transform_0, window_bounds = array<i64: 8, 768>}, {transform_indices = @transform_1, window_bounds = array<i64: 768, 256>}, {transform_indices = @transform_2, window_bounds = array<i64: 1, 256>}, {transform_indices = @transform_3, window_bounds = array<i64: 8, 256>}]} {
    %c0_i32 = arith.constant 0 : i32
    %0 = arith.cmpi eq, %arg2, %c0_i32 : i32
    %1 = arith.extui %0 : i1 to i32
    %c0_i32_0 = arith.constant 0 : i32
    %2 = arith.cmpi ne, %1, %c0_i32_0 : i32
    scf.if %2 {
      %cst_9 = arith.constant 0.000000e+00 : f32
      %12 = vector.broadcast %cst_9 : f32 to vector<8x256xf32>
      %c0_10 = arith.constant 0 : index
      %c0_11 = arith.constant 0 : index
      %13 = vector.load %arg7[%c0_10, %c0_11] : memref<8x256xf32, #tpu.memory_space<vmem>>, vector<8x256xf32>
      tpu.vector_store %arg7[%c0_10, %c0_11], %12 {strides = array<i32>} : memref<8x256xf32, #tpu.memory_space<vmem>>, vector<8x256xf32>,
    } else {
    }
    %c0 = arith.constant 0 : index
    %c0_1 = arith.constant 0 : index
    %3 = vector.load %arg7[%c0, %c0_1] : memref<8x256xf32, #tpu.memory_space<vmem>>, vector<8x256xf32>
    %c0_2 = arith.constant 0 : index
    %c0_3 = arith.constant 0 : index
    %4 = vector.load %arg3[%c0_2, %c0_3] : memref<8x768xbf16, #tpu.memory_space<vmem>>, vector<8x768xbf16>
    %c0_4 = arith.constant 0 : index
    %c0_5 = arith.constant 0 : index
    %5 = vector.load %arg4[%c0_4, %c0_5] : memref<768x256xbf16, #tpu.memory_space<vmem>>, vector<768x256xbf16>
    %cst = arith.constant dense<0.000000e+00> : vector<8x256xf32>
    %6 = tpu.matmul %4, %5, %cst {dimension_numbers = #tpu.dot_dimension_numbers<[1], [0], [0], [1], [0, 0, 1, 1], [], []>} : vector<8x768xbf16>, vector<768x256xbf16>, vector<8x256xf32> -> vector<8x256xf32>
    %7 = arith.addf %3, %6 : vector<8x256xf32>
    %c0_6 = arith.constant 0 : index
    %c0_7 = arith.constant 0 : index
    %8 = vector.load %arg7[%c0_6, %c0_7] : memref<8x256xf32, #tpu.memory_space<vmem>>, vector<8x256xf32>
    tpu.vector_store %arg7[%c0_6, %c0_7], %7 {strides = array<i32>} : memref<8x256xf32, #tpu.memory_space<vmem>>, vector<8x256xf32>,
    %c5_i32 = arith.constant 5 : i32
    %9 = arith.cmpi eq, %arg2, %c5_i32 : i32
    %10 = arith.extui %9 : i1 to i32
    %c0_i32_8 = arith.constant 0 : i32
    %11 = arith.cmpi ne, %10, %c0_i32_8 : i32
    scf.if %11 {
      %c0_9 = arith.constant 0 : index
      %c0_10 = arith.constant 0 : index
      %12 = vector.load %arg7[%c0_9, %c0_10] : memref<8x256xf32, #tpu.memory_space<vmem>>, vector<8x256xf32>
      %c0_11 = arith.constant 0 : index
      %c0_12 = arith.constant 0 : index
      %13 = vector.load %arg5[%c0_11, %c0_12] : memref<1x256xf32, #tpu.memory_space<vmem>>, vector<1x256xf32>
      %14 = vector.broadcast %13 : vector<1x256xf32> to vector<8x256xf32>
      %15 = arith.addf %12, %14 : vector<8x256xf32>
      %cst_13 = arith.constant 0.000000e+00 : f32
      %16 = vector.broadcast %cst_13 : f32 to vector<8x256xf32>
      %17 = arith.maximumf %15, %16 : vector<8x256xf32>
      %18 = arith.truncf %17 : vector<8x256xf32> to vector<8x256xbf16>
      %c0_14 = arith.constant 0 : index
      %c0_15 = arith.constant 0 : index
      %19 = vector.load %arg6[%c0_14, %c0_15] : memref<8x256xbf16, #tpu.memory_space<vmem>>, vector<8x256xbf16>
      tpu.vector_store %arg6[%c0_14, %c0_15], %18 {strides = array<i32>} : memref<8x256xbf16, #tpu.memory_space<vmem>>, vector<8x256xbf16>,
    } else {
    }
    return
  }
  func.func @transform_0(%arg0: i32, %arg1: i32, %arg2: i32) -> (i32, i32) {
    %c0_i32 = arith.constant 0 : i32
    return %arg0, %arg2 : i32, i32
  }
  func.func @transform_1(%arg0: i32, %arg1: i32, %arg2: i32) -> (i32, i32) {
    %c0_i32 = arith.constant 0 : i32
    return %arg2, %arg1 : i32, i32
  }
  func.func @transform_2(%arg0: i32, %arg1: i32, %arg2: i32) -> (i32, i32) {
    %c0_i32 = arith.constant 0 : i32
    %c0_i32_0 = arith.constant 0 : i32
    return %c0_i32, %arg1 : i32, i32
  }
  func.func @transform_3(%arg0: i32, %arg1: i32, %arg2: i32) -> (i32, i32) {
    %c0_i32 = arith.constant 0 : i32
    return %arg0, %arg1 : i32, i32
  }
}

module attributes {stable_mosaic.version = 11 : i64} {
  func.func @_gap_fc_kernel(%arg0: i32, %arg1: memref<1x2x512xbf16, #tpu.memory_space<vmem>>, %arg2: memref<512x128xbf16, #tpu.memory_space<vmem>>, %arg3: memref<1x128xf32, #tpu.memory_space<vmem>>, %arg4: memref<2x128xf32, #tpu.memory_space<vmem>>) attributes {dimension_semantics = [#tpu.dimension_semantics<arbitrary>], iteration_bounds = array<i64: 1>, scalar_prefetch = 0 : i64, scratch_operands = 0 : i64, tpu.core_type = #tpu.core_type<tc>, window_params = [{pipeline_mode = #tpu.pipeline_mode<synchronous>, transform_indices = @transform_0, window_bounds = array<i64: 1, 2, 512>}, {pipeline_mode = #tpu.pipeline_mode<synchronous>, transform_indices = @transform_1, window_bounds = array<i64: 512, 128>}, {pipeline_mode = #tpu.pipeline_mode<synchronous>, transform_indices = @transform_2, window_bounds = array<i64: 1, 128>}, {pipeline_mode = #tpu.pipeline_mode<synchronous>, transform_indices = @transform_3, window_bounds = array<i64: 2, 128>}]} {
    %c0 = arith.constant 0 : index
    %c0_0 = arith.constant 0 : index
    %c0_1 = arith.constant 0 : index
    %0 = vector.load %arg1[%c0, %c0_0, %c0_1] : memref<1x2x512xbf16, #tpu.memory_space<vmem>>, vector<1x2x512xbf16>
    %1 = arith.extf %0 : vector<1x2x512xbf16> to vector<1x2x512xf32>
    %cst = arith.constant dense<0.000000e+00> : vector<2x512xf32>
    %2 = vector.multi_reduction <add>, %1, %cst [0] : vector<1x2x512xf32> to vector<2x512xf32>
    %cst_2 = arith.constant 1.000000e+00 : f32
    %3 = vector.broadcast %cst_2 : f32 to vector<2x512xf32>
    %4 = arith.mulf %2, %3 : vector<2x512xf32>
    %5 = arith.truncf %4 : vector<2x512xf32> to vector<2x512xbf16>
    %c0_3 = arith.constant 0 : index
    %c0_4 = arith.constant 0 : index
    %6 = vector.load %arg2[%c0_3, %c0_4] : memref<512x128xbf16, #tpu.memory_space<vmem>>, vector<512x128xbf16>
    %cst_5 = arith.constant dense<0.000000e+00> : vector<2x128xf32>
    %7 = tpu.matmul %5, %6, %cst_5 {dimension_numbers = #tpu.dot_dimension_numbers<[1], [0], [0], [1], [0, 0, 1, 1], [], []>} : vector<2x512xbf16>, vector<512x128xbf16>, vector<2x128xf32> -> vector<2x128xf32>
    %c0_6 = arith.constant 0 : index
    %c0_7 = arith.constant 0 : index
    %8 = vector.load %arg3[%c0_6, %c0_7] : memref<1x128xf32, #tpu.memory_space<vmem>>, vector<1x128xf32>
    %9 = vector.broadcast %8 : vector<1x128xf32> to vector<2x128xf32>
    %10 = arith.addf %7, %9 : vector<2x128xf32>
    %c0_8 = arith.constant 0 : index
    %c0_9 = arith.constant 0 : index
    %11 = vector.load %arg4[%c0_8, %c0_9] : memref<2x128xf32, #tpu.memory_space<vmem>>, vector<2x128xf32>
    tpu.vector_store %arg4[%c0_8, %c0_9], %10 {strides = array<i32>} : memref<2x128xf32, #tpu.memory_space<vmem>>, vector<2x128xf32>,
    return
  }
  func.func @transform_0(%arg0: i32) -> (i32, i32, i32) {
    %c0_i32 = arith.constant 0 : i32
    %c0_i32_0 = arith.constant 0 : i32
    %c0_i32_1 = arith.constant 0 : i32
    %c0_i32_2 = arith.constant 0 : i32
    return %c0_i32, %c0_i32_0, %c0_i32_1 : i32, i32, i32
  }
  func.func @transform_1(%arg0: i32) -> (i32, i32) {
    %c0_i32 = arith.constant 0 : i32
    %c0_i32_0 = arith.constant 0 : i32
    %c0_i32_1 = arith.constant 0 : i32
    return %c0_i32, %c0_i32_0 : i32, i32
  }
  func.func @transform_2(%arg0: i32) -> (i32, i32) {
    %c0_i32 = arith.constant 0 : i32
    %c0_i32_0 = arith.constant 0 : i32
    %c0_i32_1 = arith.constant 0 : i32
    return %c0_i32, %c0_i32_0 : i32, i32
  }
  func.func @transform_3(%arg0: i32) -> (i32, i32) {
    %c0_i32 = arith.constant 0 : i32
    %c0_i32_0 = arith.constant 0 : i32
    %c0_i32_1 = arith.constant 0 : i32
    return %c0_i32, %c0_i32_0 : i32, i32
  }
}

</mosaic_0001>

<bundles_post_ra>
// kernel: resnet18_forward.22
= control target key start
LH: loop header
LB: loop body
LE: loop exit
PB: predicated region body
PF: predicated region fallthrough
CT: control target
= control target key end

     0   :  { %8 = vsyncpa [#allocation4], 0  ;;  %s1510_s0 = inlined_call_operand.vmem [shape: bf16[512,128], index: 0, kind: input, shape index: {}]   ;;  %s1511_s1 = inlined_call_operand.hbm [shape: bf16[128,128], index: 1, kind: input, shape index: {}]   ;;  %s1512_s2 = inlined_call_operand.hbm [shape: f32[1,128], index: 2, kind: input, shape index: {}]   ;;  %s1513_s3 = inlined_call_operand.vmem [shape: bf16[512,128], index: 3, kind: output, shape index: {}]  }
   0x1   :  { %9 = vsyncpa [#allocation6], 0  ;;  %s1368_s12 = smov 0   ;;  %s1370_s13 = smov 0  }
   0x2   :  { %s1372_s14 = smov 0  }
   0x3 LB: > { %s950_s15 = sadd.s32 4294967295, %s1342_s14   ;;  %s34_s16 = sadd.s32 1, %s1338_s13  ;;  %s1342_s14 = sphi %s1372_s14, %s15_s14   ;;  %s1338_s13 = sphi %s1370_s13, %s1517_s13   ;;  %s1334_s12 = sphi %s1368_s12, %s1516_s12  }
   0x4   : > { %p36_p0 = scmp.ge.s32.totalorder %s34_s16, 2  ;;  %p952_p1 = scmp.ge.s32.totalorder %s1342_s14, 1 }
   0x5   : > { %p149_p2 = scmp.lt.s32.totalorder %s1342_s14, 3  ;;  %p1393_p4 = scmp.eq.s32.totalorder %s950_s15, 0 }
   0x6   : > { %s1519_s16 = smov (%p36_p0, %s34_s16), 0  ;;  %s164_s21 = sshll.u32 %s1511_s1, 4  ;;  %s165_s21 = int_to_ptr.hbm [resolvable:$true] %s164_s21 }
   0x7   : > { %p1389_p3 = pnand %p952_p1, %p149_p2  ;;  %s1344_s22 = smov [#allocation3]  }
   0x8   : > { %s166_s23 = sshll.u32 %s1344_s22, 4  ;;  %s180_s26 = sshll.u32 %s1512_s2, 4  ;;  %s167_s23 = int_to_ptr.vmem [resolvable:$true] %s166_s23  ;;  %s181_s26 = int_to_ptr.hbm [resolvable:$true] %s180_s26 }
   0x9   : > { %p1212_p5 = pneg %p1389_p3  ;;  %s1345_s27 = smov 64  }
   0xa   : > { %s1346_s28 = smov 4   ;;  %s1347_s29 = smov [#allocation5]  }
   0xb   : > { %p1213_p6 = pnand %p1393_p4, %p1212_p5  ;;  %s182_s30 = sshll.u32 %s1347_s29, 4  ;;  %s183_s30 = int_to_ptr.vmem [resolvable:$true] %s182_s30 }
   0xc   : > { %207 = sbr.rel (%p1389_p3) target bundleno = 249 (0xf9), region = 32 }
   0xd   : > { %1215 = dma.hbm_to_vmem [thread:$0]  (!%p1213_p6), %s165_s21, 1024, %s167_s23, [#allocation4], %s1345_s27, %s1345_s27, %s1346_s28  }
   0xe   : > { %1218 = dma.hbm_to_vmem [thread:$0]  (!%p1213_p6), %s181_s26, 16, %s183_s30, [#allocation6]  }
  0x11   : > { %1325 = dma.done.wait (%p1393_p4), [#allocation4], 1024  }
  0x12   : > { %1327 = vsyncadd (%p1393_p4), [#allocation4], 4294966272 }
  0x13   : > { %1329 = dma.done.wait (%p1393_p4), [#allocation6], 16  }
  0x14   : > { %1331 = vsyncadd (%p1393_p4), [#allocation6], 4294967280  ;;  %v1084_v0 = vld [vmem:[#allocation3 + $0x38] sm:$0xff]  ;;  %v1083_v1 = vld [vmem:[#allocation3 + $0x30] sm:$0xff]  ;;  %s959_s4 = sshll.u32 %s1334_s12, 5 }
  0x15   : > { %522 = vmatpush.bf16.msra.mxu0 %v1084_v0  ;;  %1180 = vmatpush.bf16.msra.mxu1 %v1084_v0  ;;  %v1082_v2 = vld [vmem:[#allocation3 + $0x28] sm:$0xff]  ;;  %v1081_v3 = vld [vmem:[#allocation3 + $0x20] sm:$0xff]  ;;  %v1080_v4 = vld [vmem:[#allocation3 + $0x18] sm:$0xff]  ;;  %p244_p7 = scmp.lt.s32.totalorder %s959_s4, 63 }
  0x16   : > { %1181 = vmatpush.bf16.msra.mxu2 %v1084_v0  ;;  %1182 = vmatpush.bf16.msra.mxu3 %v1084_v0  ;;  %v1079_v5 = vld [vmem:[#allocation3 + $0x10] sm:$0xff]  ;;  %v1078_v6 = vld [vmem:[#allocation3 + $0x8] sm:$0xff]  ;;  %v1077_v7 = vld [vmem:[#allocation3] sm:$0xff] }
  0x17   : > { %s1521_s4 = smov (!%p244_p7, %s959_s4), 63  ;;  %v1444_v26 = vld [vmem:[#allocation5] ss:$0 sm:$0xff] }
  0x18   : > { %s960_s5 = sshll.u32 %s1521_s4, 2 }
  0x19   : > { %523 = vmatpush.bf16.msra.mxu0 %v1083_v1  ;;  %1183 = vmatpush.bf16.msra.mxu1 %v1083_v1  ;;  %s1426_s8 = scalar_lea.vmem %s1510_s0, %s960_s5  ;;  %s1455_s11 = scalar_lea.vmem %s1513_s3, %s960_s5 }
  0x1a   : > { %1184 = vmatpush.bf16.msra.mxu2 %v1083_v1  ;;  %1185 = vmatpush.bf16.msra.mxu3 %v1083_v1  ;;  %v1061_v8 = vld [vmem:[%s1426_s8] sm:$0xff]  ;;  %v1062_v12 = vld [vmem:[%s1426_s8 + $0x8] sm:$0xff]  ;;  %v1063_v16 = vld [vmem:[%s1426_s8 + $0x10] sm:$0xff] }
  0x1b   : > { %v1065_v9 = vld [vmem:[%s1426_s8 + $0x20] sm:$0xff]  ;;  %v1066_v13 = vld [vmem:[%s1426_s8 + $0x28] sm:$0xff]  ;;  %v1067_v17 = vld [vmem:[%s1426_s8 + $0x30] sm:$0xff] }
  0x1c   : > { %v1069_v10 = vld [vmem:[%s1426_s8 + $0x40] sm:$0xff]  ;;  %v1070_v14 = vld [vmem:[%s1426_s8 + $0x48] sm:$0xff]  ;;  %v1071_v18 = vld [vmem:[%s1426_s8 + $0x50] sm:$0xff] }
  0x1d   : > { %524 = vmatpush.bf16.msra.mxu0 %v1082_v2  ;;  %1186 = vmatpush.bf16.msra.mxu1 %v1082_v2  ;;  %v1073_v11 = vld [vmem:[%s1426_s8 + $0x60] sm:$0xff]  ;;  %v1074_v15 = vld [vmem:[%s1426_s8 + $0x68] sm:$0xff]  ;;  %v1075_v19 = vld [vmem:[%s1426_s8 + $0x70] sm:$0xff] }
  0x1e   : > { %1187 = vmatpush.bf16.msra.mxu2 %v1082_v2  ;;  %1188 = vmatpush.bf16.msra.mxu3 %v1082_v2  ;;  %v1064_v20 = vld [vmem:[%s1426_s8 + $0x18] sm:$0xff] }
  0x1f   : > { %v1068_v21 = vld [vmem:[%s1426_s8 + $0x38] sm:$0xff] }
  0x20   : > { %v1072_v22 = vld [vmem:[%s1426_s8 + $0x58] sm:$0xff] }
  0x21   : > { %525 = vmatpush.bf16.msra.mxu0 %v1081_v3  ;;  %1189 = vmatpush.bf16.msra.mxu1 %v1081_v3  ;;  %v1076_v23 = vld [vmem:[%s1426_s8 + $0x78] sm:$0xff] }
  0x22   : > { %1190 = vmatpush.bf16.msra.mxu2 %v1081_v3  ;;  %1191 = vmatpush.bf16.msra.mxu3 %v1081_v3 }
  0x25   : > { %526 = vmatpush.bf16.msra.mxu0 %v1080_v4  ;;  %1192 = vmatpush.bf16.msra.mxu1 %v1080_v4 }
  0x26   : > { %1193 = vmatpush.bf16.msra.mxu2 %v1080_v4  ;;  %1194 = vmatpush.bf16.msra.mxu3 %v1080_v4 }
  0x29   : > { %527 = vmatpush.bf16.msra.mxu0 %v1079_v5  ;;  %1195 = vmatpush.bf16.msra.mxu1 %v1079_v5 }
  0x2a   : > { %1196 = vmatpush.bf16.msra.mxu2 %v1079_v5  ;;  %1197 = vmatpush.bf16.msra.mxu3 %v1079_v5 }
  0x2d   : > { %528 = vmatpush.bf16.msra.mxu0 %v1078_v6  ;;  %1198 = vmatpush.bf16.msra.mxu1 %v1078_v6 }
  0x2e   : > { %1199 = vmatpush.bf16.msra.mxu2 %v1078_v6  ;;  %1200 = vmatpush.bf16.msra.mxu3 %v1078_v6 }
  0x31   : > { %529 = vmatpush.bf16.msra.mxu0 %v1077_v7  ;;  %1201 = vmatpush.bf16.msra.mxu1 %v1077_v7 }
  0x32   : > { %1202 = vmatpush.bf16.msra.mxu2 %v1077_v7  ;;  %1203 = vmatpush.bf16.msra.mxu3 %v1077_v7 }
  0x34   : > { %530 = vmatmul.bf16.vlgmr.msra.gmra.mxu0 %v1061_v8  ;;  %550 = vmatmul.bf16.vlgmr.msra.gmra.mxu1 %v1065_v9 }
  0x35   : > { %570 = vmatmul.bf16.vlgmr.msra.gmra.mxu2 %v1069_v10  ;;  %590 = vmatmul.bf16.vlgmr.msra.gmra.mxu3 %v1073_v11 }
  0x44   : > { %535 = vmatmul.bf16.gmra.mxu0 %v1062_v12  ;;  %555 = vmatmul.bf16.gmra.mxu1 %v1066_v13 }
  0x45   : > { %575 = vmatmul.bf16.gmra.mxu2 %v1070_v14  ;;  %595 = vmatmul.bf16.gmra.mxu3 %v1074_v15 }
  0x54   : > { %540 = vmatmul.bf16.gmra.mxu0 %v1063_v16  ;;  %560 = vmatmul.bf16.gmra.mxu1 %v1067_v17 }
  0x55   : > { %580 = vmatmul.bf16.gmra.mxu2 %v1071_v18  ;;  %600 = vmatmul.bf16.gmra.mxu3 %v1075_v19 }
  0x64   : > { %545 = vmatmul.bf16.gmra.mxu0 %v1064_v20  ;;  %565 = vmatmul.bf16.gmra.mxu1 %v1068_v21 }
  0x65   : > { %585 = vmatmul.bf16.gmra.mxu2 %v1072_v22  ;;  %605 = vmatmul.bf16.gmra.mxu3 %v1076_v23 }
  0xb1   : > { %v531_v24 = vpop.f32.mrf.mxu0  ;;  %v551_v25 = vpop.f32.mrf.mxu1 }
  0xb2   : > { %v714_v27 = vadd.f32 %v1444_v26, %v531_v24  ;;  %v722_v28 = vadd.f32 %v1444_v26, %v551_v25 }
  0xb4   : > { %v746_v35 = vmax.f32 %v714_v27, 0.0  ;;  %v754_v36 = vmax.f32 %v722_v28, 0.0 }
  0xb8   : > { %v571_v29 = vpop.f32.mrf.mxu2  ;;  %v591_v30 = vpop.f32.mrf.mxu3 }
  0xb9   : > { %v533_v31 = vpop.f32.mrf.mxu0  ;;  %v553_v32 = vpop.f32.mrf.mxu1  ;;  %v730_v41 = vadd.f32 %v1444_v26, %v571_v29  ;;  %v738_v42 = vadd.f32 %v1444_v26, %v591_v30 }
  0xba   : > { %v715_v33 = vadd.f32 %v1444_v26, %v533_v31  ;;  %v723_v34 = vadd.f32 %v1444_v26, %v553_v32 }
  0xbb   : > { %v762_v49 = vmax.f32 %v730_v41, 0.0  ;;  %v770_v50 = vmax.f32 %v738_v42, 0.0 }
  0xbc   : > { %v747_v37 = vmax.f32 %v715_v33, 0.0  ;;  %v755_v38 = vmax.f32 %v723_v34, 0.0 }
  0xbe   : > { %v1088_v39 = vpack.c.bf16 %v747_v37, %v746_v35  ;;  %v1108_v40 = vpack.c.bf16 %v755_v38, %v754_v36 }
  0xc0   : > { %1089 = vst [vmem:[%s1455_s11] sm:$0xff] %v1088_v39   ;;  %v573_v43 = vpop.f32.mrf.mxu2  ;;  %v593_v44 = vpop.f32.mrf.mxu3 }
  0xc1   : > { %1168 = vst [vmem:[%s1455_s11 + $0x20] sm:$0xff] %v1108_v40   ;;  %v731_v45 = vadd.f32 %v1444_v26, %v573_v43  ;;  %v739_v46 = vadd.f32 %v1444_v26, %v593_v44  ;;  %v536_v47 = vpop.f32.mrf.mxu0  ;;  %v556_v48 = vpop.f32.mrf.mxu1 }
  0xc2   : > { %v716_v55 = vadd.f32 %v1444_v26, %v536_v47  ;;  %v724_v56 = vadd.f32 %v1444_v26, %v556_v48 }
  0xc3   : > { %v763_v51 = vmax.f32 %v731_v45, 0.0  ;;  %v771_v52 = vmax.f32 %v739_v46, 0.0 }
  0xc4   : > { %v748_v63 = vmax.f32 %v716_v55, 0.0  ;;  %v756_v0 = vmax.f32 %v724_v56, 0.0 }
  0xc5   : > { %v1128_v53 = vpack.c.bf16 %v763_v51, %v762_v49  ;;  %v1148_v54 = vpack.c.bf16 %v771_v52, %v770_v50 }
  0xc7   : > { %1172 = vst [vmem:[%s1455_s11 + $0x40] sm:$0xff] %v1128_v53  }
  0xc8   : > { %1176 = vst [vmem:[%s1455_s11 + $0x60] sm:$0xff] %v1148_v54   ;;  %v576_v57 = vpop.f32.mrf.mxu2  ;;  %v596_v58 = vpop.f32.mrf.mxu3 }
  0xc9   : > { %v538_v59 = vpop.f32.mrf.mxu0  ;;  %v558_v60 = vpop.f32.mrf.mxu1  ;;  %v732_v5 = vadd.f32 %v1444_v26, %v576_v57  ;;  %v740_v6 = vadd.f32 %v1444_v26, %v596_v58 }
  0xca   : > { %v717_v61 = vadd.f32 %v1444_v26, %v538_v59  ;;  %v725_v62 = vadd.f32 %v1444_v26, %v558_v60 }
  0xcb   : > { %v764_v13 = vmax.f32 %v732_v5, 0.0  ;;  %v772_v14 = vmax.f32 %v740_v6, 0.0 }
  0xcc   : > { %v749_v1 = vmax.f32 %v717_v61, 0.0  ;;  %v757_v2 = vmax.f32 %v725_v62, 0.0 }
  0xce   : > { %v1093_v3 = vpack.c.bf16 %v749_v1, %v748_v63  ;;  %v1113_v4 = vpack.c.bf16 %v757_v2, %v756_v0 }
  0xd0   : > { %1165 = vst [vmem:[%s1455_s11 + $0x8] sm:$0xff] %v1093_v3   ;;  %v578_v7 = vpop.f32.mrf.mxu2  ;;  %v598_v8 = vpop.f32.mrf.mxu3 }
  0xd1   : > { %1169 = vst [vmem:[%s1455_s11 + $0x28] sm:$0xff] %v1113_v4   ;;  %v733_v9 = vadd.f32 %v1444_v26, %v578_v7  ;;  %v741_v10 = vadd.f32 %v1444_v26, %v598_v8  ;;  %v541_v11 = vpop.f32.mrf.mxu0  ;;  %v561_v12 = vpop.f32.mrf.mxu1 }
  0xd2   : > { %v718_v19 = vadd.f32 %v1444_v26, %v541_v11  ;;  %v726_v20 = vadd.f32 %v1444_v26, %v561_v12 }
  0xd3   : > { %v765_v15 = vmax.f32 %v733_v9, 0.0  ;;  %v773_v16 = vmax.f32 %v741_v10, 0.0 }
  0xd4   : > { %v750_v28 = vmax.f32 %v718_v19, 0.0  ;;  %v758_v29 = vmax.f32 %v726_v20, 0.0 }
  0xd5   : > { %v1133_v17 = vpack.c.bf16 %v765_v15, %v764_v13  ;;  %v1153_v18 = vpack.c.bf16 %v773_v16, %v772_v14 }
  0xd7   : > { %1173 = vst [vmem:[%s1455_s11 + $0x48] sm:$0xff] %v1133_v17  }
  0xd8   : > { %1177 = vst [vmem:[%s1455_s11 + $0x68] sm:$0xff] %v1153_v18   ;;  %v581_v21 = vpop.f32.mrf.mxu2  ;;  %v601_v22 = vpop.f32.mrf.mxu3 }
  0xd9   : > { %v543_v23 = vpop.f32.mrf.mxu0  ;;  %v563_v24 = vpop.f32.mrf.mxu1  ;;  %v734_v34 = vadd.f32 %v1444_v26, %v581_v21  ;;  %v742_v35 = vadd.f32 %v1444_v26, %v601_v22 }
  0xda   : > { %v719_v25 = vadd.f32 %v1444_v26, %v543_v23  ;;  %v727_v27 = vadd.f32 %v1444_v26, %v563_v24 }
  0xdb   : > { %v766_v42 = vmax.f32 %v734_v34, 0.0  ;;  %v774_v43 = vmax.f32 %v742_v35, 0.0 }
  0xdc   : > { %v751_v30 = vmax.f32 %v719_v25, 0.0  ;;  %v759_v31 = vmax.f32 %v727_v27, 0.0 }
  0xde   : > { %v1098_v32 = vpack.c.bf16 %v751_v30, %v750_v28  ;;  %v1118_v33 = vpack.c.bf16 %v759_v31, %v758_v29 }
  0xe0   : > { %1166 = vst [vmem:[%s1455_s11 + $0x10] sm:$0xff] %v1098_v32   ;;  %v583_v36 = vpop.f32.mrf.mxu2  ;;  %v603_v37 = vpop.f32.mrf.mxu3 }
  0xe1   : > { %1170 = vst [vmem:[%s1455_s11 + $0x30] sm:$0xff] %v1118_v33   ;;  %v735_v38 = vadd.f32 %v1444_v26, %v583_v36  ;;  %v743_v39 = vadd.f32 %v1444_v26, %v603_v37  ;;  %v546_v40 = vpop.f32.mrf.mxu0  ;;  %v566_v41 = vpop.f32.mrf.mxu1 }
  0xe2   : > { %v720_v48 = vadd.f32 %v1444_v26, %v546_v40  ;;  %v728_v49 = vadd.f32 %v1444_v26, %v566_v41 }
  0xe3   : > { %v767_v44 = vmax.f32 %v735_v38, 0.0  ;;  %v775_v45 = vmax.f32 %v743_v39, 0.0 }
  0xe4   : > { %v752_v56 = vmax.f32 %v720_v48, 0.0  ;;  %v760_v57 = vmax.f32 %v728_v49, 0.0 }
  0xe5   : > { %v1138_v46 = vpack.c.bf16 %v767_v44, %v766_v42  ;;  %v1158_v47 = vpack.c.bf16 %v775_v45, %v774_v43 }
  0xe7   : > { %1174 = vst [vmem:[%s1455_s11 + $0x50] sm:$0xff] %v1138_v46  }
  0xe8   : > { %1178 = vst [vmem:[%s1455_s11 + $0x70] sm:$0xff] %v1158_v47   ;;  %v586_v50 = vpop.f32.mrf.mxu2  ;;  %v606_v51 = vpop.f32.mrf.mxu3 }
  0xe9   : > { %v548_v52 = vpop.f32.mrf.mxu0  ;;  %v568_v53 = vpop.f32.mrf.mxu1  ;;  %v736_v62 = vadd.f32 %v1444_v26, %v586_v50  ;;  %v744_v63 = vadd.f32 %v1444_v26, %v606_v51 }
  0xea   : > { %v721_v54 = vadd.f32 %v1444_v26, %v548_v52  ;;  %v729_v55 = vadd.f32 %v1444_v26, %v568_v53 }
  0xeb   : > { %v768_v4 = vmax.f32 %v736_v62, 0.0  ;;  %v776_v5 = vmax.f32 %v744_v63, 0.0 }
  0xec   : > { %v753_v58 = vmax.f32 %v721_v54, 0.0  ;;  %v761_v59 = vmax.f32 %v729_v55, 0.0 }
  0xee   : > { %v1103_v60 = vpack.c.bf16 %v753_v58, %v752_v56  ;;  %v1123_v61 = vpack.c.bf16 %v761_v59, %v760_v57 }
  0xf0   : > { %1167 = vst [vmem:[%s1455_s11 + $0x18] sm:$0xff] %v1103_v60   ;;  %v588_v0 = vpop.f32.mrf.mxu2  ;;  %v608_v1 = vpop.f32.mrf.mxu3 }
  0xf1   : > { %1171 = vst [vmem:[%s1455_s11 + $0x38] sm:$0xff] %v1123_v61   ;;  %v737_v2 = vadd.f32 %v1444_v26, %v588_v0  ;;  %v745_v3 = vadd.f32 %v1444_v26, %v608_v1 }
  0xf3   : > { %v769_v6 = vmax.f32 %v737_v2, 0.0  ;;  %v777_v7 = vmax.f32 %v745_v3, 0.0 }
  0xf5   : > { %v1143_v8 = vpack.c.bf16 %v769_v6, %v768_v4  ;;  %v1163_v9 = vpack.c.bf16 %v777_v7, %v776_v5 }
  0xf7   : > { %1175 = vst [vmem:[%s1455_s11 + $0x58] sm:$0xff] %v1143_v8  }
  0xf8   : > { %1179 = vst [vmem:[%s1455_s11 + $0x78] sm:$0xff] %v1163_v9  }
  0xf9 PF: > { %s15_s14 = sadd.s32 1, %s1342_s14   ;;  %s1516_s12 = smov %s1338_s13 }
  0xfa   : > { %p12_p8 = scmp.ge.s32.totalorder %s15_s14, 4   ;;  %s1517_s13 = smov %s1519_s16 }
  0xfc   :  { %14 = sbr.rel (!%p12_p8) target bundleno = 3 (0x3), region = 81 }
 0x101   :  { %870 = vsyncpa [#allocation4], 1 }
 0x102   :  { %872 = vsyncpa [#allocation4 + $0x1], 1 }
 0x103   :  { %873 = vsyncpa [#allocation6], 1 }

// kernel: resnet18_forward.23
= control target key start
LH: loop header
LB: loop body
LE: loop exit
PB: predicated region body
PF: predicated region fallthrough
CT: control target
= control target key end

     0   :  { %s1484_s0 = inlined_call_operand.vmem [shape: bf16[9,128,128], index: 0, kind: input, shape index: {}]   ;;  %s1485_s1 = inlined_call_operand.vmem [shape: bf16[128,128], index: 1, kind: output, shape index: {}]  }
   0x1   :  { %v821_v0 = vld [vmem:[%s1484_s0] sm:$0xff]   ;;  %v1148_v20 = vld [vmem:[%s1484_s0 + $0x8] sm:$0xff]   ;;  %v1149_v61 = vld [vmem:[%s1484_s0 + $0x10] sm:$0xff]  }
   0x2   :  { %v1155_v1 = vld [vmem:[%s1484_s0 + $0x40] sm:$0xff]   ;;  %v822_v3 = vunpack.c.l.bf16 %v821_v0  ;;  %v823_v4 = vunpack.c.h.bf16 %v821_v0  ;;  %v1156_v25 = vld [vmem:[%s1484_s0 + $0x48] sm:$0xff]   ;;  %v826_v34 = vunpack.c.l.bf16 %v1148_v20  ;;  %v827_v35 = vunpack.c.h.bf16 %v1148_v20 }
   0x3   :  { %v1163_v2 = vld [vmem:[%s1484_s0 + $0x80] sm:$0xff]   ;;  %v854_v5 = vunpack.c.l.bf16 %v1155_v1  ;;  %v855_v6 = vunpack.c.h.bf16 %v1155_v1  ;;  %v1164_v30 = vld [vmem:[%s1484_s0 + $0x88] sm:$0xff]   ;;  %v858_v38 = vunpack.c.l.bf16 %v1156_v25  ;;  %v859_v39 = vunpack.c.h.bf16 %v1156_v25  ;;  %v1181_v25 = vld [vmem:[%s1484_s0 + $0x110] sm:$0xff]  }
   0x4   :  { %v1171_v7 = vld [vmem:[%s1484_s0 + $0xc0] sm:$0xff]   ;;  %v886_v10 = vunpack.c.l.bf16 %v1163_v2  ;;  %v887_v11 = vunpack.c.h.bf16 %v1163_v2  ;;  %v1172_v31 = vld [vmem:[%s1484_s0 + $0xc8] sm:$0xff]   ;;  %v890_v42 = vunpack.c.l.bf16 %v1164_v30  ;;  %v891_v43 = vunpack.c.h.bf16 %v1164_v30  ;;  %v1189_v30 = vld [vmem:[%s1484_s0 + $0x150] sm:$0xff]  }
   0x5   :  { %v1179_v8 = vld [vmem:[%s1484_s0 + $0x100] sm:$0xff]   ;;  %v918_v12 = vunpack.c.l.bf16 %v1171_v7  ;;  %v73_v15 = vmax.f32 %v822_v3, %v854_v5  ;;  %v74_v16 = vmax.f32 %v823_v4, %v855_v6  ;;  %v919_v17 = vunpack.c.h.bf16 %v1171_v7  ;;  %v1180_v40 = vld [vmem:[%s1484_s0 + $0x108] sm:$0xff]   ;;  %v1157_v6 = vld [vmem:[%s1484_s0 + $0x50] sm:$0xff]  }
   0x6   :  { %v1187_v9 = vld [vmem:[%s1484_s0 + $0x140] sm:$0xff]   ;;  %v950_v18 = vunpack.c.l.bf16 %v1179_v8  ;;  %v951_v21 = vunpack.c.h.bf16 %v1179_v8  ;;  %v1188_v41 = vld [vmem:[%s1484_s0 + $0x148] sm:$0xff]   ;;  %v922_v44 = vunpack.c.l.bf16 %v1172_v31  ;;  %v923_v45 = vunpack.c.h.bf16 %v1172_v31  ;;  %v1165_v7 = vld [vmem:[%s1484_s0 + $0x90] sm:$0xff]  }
   0x7   :  { %v1195_v13 = vld [vmem:[%s1484_s0 + $0x180] sm:$0xff]   ;;  %v982_v22 = vunpack.c.l.bf16 %v1187_v9  ;;  %v983_v23 = vunpack.c.h.bf16 %v1187_v9  ;;  %v154_v26 = vmax.f32 %v73_v15, %v886_v10  ;;  %v155_v27 = vmax.f32 %v74_v16, %v887_v11  ;;  %v1196_v50 = vld [vmem:[%s1484_s0 + $0x188] sm:$0xff]   ;;  %v1173_v16 = vld [vmem:[%s1484_s0 + $0xd0] sm:$0xff]  }
   0x8   :  { %v1260_v14 = vld [vmem:[%s1484_s0 + $0x1c0] sm:$0xff]   ;;  %v1014_v24 = vunpack.c.l.bf16 %v1195_v13  ;;  %v1015_v28 = vunpack.c.h.bf16 %v1195_v13  ;;  %v75_v48 = vmax.f32 %v826_v34, %v858_v38  ;;  %v76_v49 = vmax.f32 %v827_v35, %v859_v39  ;;  %v1204_v51 = vld [vmem:[%s1484_s0 + $0x1c8] sm:$0xff]  }
   0x9   :  { %v1265_v19 = vld [vmem:[%s1484_s0 + $0x200] sm:$0xff]   ;;  %v1046_v29 = vunpack.c.l.bf16 %v1260_v14  ;;  %v1047_v32 = vunpack.c.h.bf16 %v1260_v14  ;;  %v235_v36 = vmax.f32 %v154_v26, %v918_v12  ;;  %v236_v37 = vmax.f32 %v155_v27, %v919_v17  ;;  %v1212_v60 = vld [vmem:[%s1484_s0 + $0x208] sm:$0xff]  }
   0xa   :  { %v1078_v33 = vunpack.c.l.bf16 %v1265_v19  ;;  %v1079_v52 = vunpack.c.h.bf16 %v1265_v19  ;;  %v954_v53 = vunpack.c.l.bf16 %v1180_v40  ;;  %v955_v54 = vunpack.c.h.bf16 %v1180_v40  ;;  %v1205_v40 = vld [vmem:[%s1484_s0 + $0x1d0] sm:$0xff]  }
   0xb   :  { %v316_v46 = vmax.f32 %v235_v36, %v950_v18  ;;  %v317_v47 = vmax.f32 %v236_v37, %v951_v21  ;;  %v986_v55 = vunpack.c.l.bf16 %v1188_v41  ;;  %v156_v58 = vmax.f32 %v75_v48, %v890_v42 }
   0xc   :  { %v157_v59 = vmax.f32 %v76_v49, %v891_v43  ;;  %v987_v62 = vunpack.c.h.bf16 %v1188_v41  ;;  %v1018_v63 = vunpack.c.l.bf16 %v1196_v50  ;;  %v1019_v0 = vunpack.c.h.bf16 %v1196_v50 }
   0xd   :  { %v397_v56 = vmax.f32 %v316_v46, %v982_v22  ;;  %v398_v57 = vmax.f32 %v317_v47, %v983_v23  ;;  %v1050_v1 = vunpack.c.l.bf16 %v1204_v51  ;;  %v237_v4 = vmax.f32 %v156_v58, %v922_v44  ;;  %v1150_v46 = vld [vmem:[%s1484_s0 + $0x18] sm:$0xff]  }
   0xe   :  { %v238_v5 = vmax.f32 %v157_v59, %v923_v45  ;;  %v1051_v8 = vunpack.c.h.bf16 %v1204_v51  ;;  %v1082_v9 = vunpack.c.l.bf16 %v1212_v60  ;;  %v830_v10 = vunpack.c.l.bf16 %v1149_v61  ;;  %v1213_v45 = vld [vmem:[%s1484_s0 + $0x210] sm:$0xff]   ;;  %v1158_v51 = vld [vmem:[%s1484_s0 + $0x58] sm:$0xff]  }
   0xf   :  { %v478_v2 = vmax.f32 %v397_v56, %v1014_v24  ;;  %v479_v3 = vmax.f32 %v398_v57, %v1015_v28  ;;  %v831_v11 = vunpack.c.h.bf16 %v1149_v61  ;;  %v318_v14 = vmax.f32 %v237_v4, %v954_v53  ;;  %v1166_v56 = vld [vmem:[%s1484_s0 + $0x98] sm:$0xff]  }
  0x10   :  { %v319_v15 = vmax.f32 %v238_v5, %v955_v54  ;;  %v862_v17 = vunpack.c.l.bf16 %v1157_v6  ;;  %v863_v18 = vunpack.c.h.bf16 %v1157_v6  ;;  %v894_v19 = vunpack.c.l.bf16 %v1165_v7  ;;  %v1174_v61 = vld [vmem:[%s1484_s0 + $0xd8] sm:$0xff]  }
  0x11   :  { %v559_v12 = vmax.f32 %v478_v2, %v1046_v29  ;;  %v560_v13 = vmax.f32 %v479_v3, %v1047_v32  ;;  %v895_v20 = vunpack.c.h.bf16 %v1165_v7  ;;  %v399_v23 = vmax.f32 %v318_v14, %v986_v55  ;;  %v1182_v2 = vld [vmem:[%s1484_s0 + $0x118] sm:$0xff]  }
  0x12   :  { %v400_v24 = vmax.f32 %v319_v15, %v987_v62  ;;  %v77_v26 = vmax.f32 %v830_v10, %v862_v17  ;;  %v78_v27 = vmax.f32 %v831_v11, %v863_v18  ;;  %v926_v28 = vunpack.c.l.bf16 %v1173_v16  ;;  %v1190_v7 = vld [vmem:[%s1484_s0 + $0x158] sm:$0xff]  }
  0x13   :  { %v640_v21 = vmax.f32 %v559_v12, %v1078_v33  ;;  %v641_v22 = vmax.f32 %v560_v13, %v1079_v52  ;;  %v927_v29 = vunpack.c.h.bf16 %v1173_v16  ;;  %v480_v32 = vmax.f32 %v399_v23, %v1018_v63  ;;  %v1197_v33 = vld [vmem:[%s1484_s0 + $0x190] sm:$0xff]   ;;  %v1198_v12 = vld [vmem:[%s1484_s0 + $0x198] sm:$0xff]  }
  0x14   :  { %v481_v34 = vmax.f32 %v400_v24, %v1019_v0  ;;  %v1083_v35 = vunpack.c.h.bf16 %v1212_v60  ;;  %v158_v36 = vmax.f32 %v77_v26, %v894_v19  ;;  %v159_v37 = vmax.f32 %v78_v27, %v895_v20  ;;  %v1206_v17 = vld [vmem:[%s1484_s0 + $0x1d8] sm:$0xff]   ;;  %v1151_v27 = vld [vmem:[%s1484_s0 + $0x20] sm:$0xff]  }
  0x15   :  { %v1111_v31 = vpack.c.bf16 %v641_v22, %v640_v21  ;;  %v958_v38 = vunpack.c.l.bf16 %v1181_v25  ;;  %v959_v39 = vunpack.c.h.bf16 %v1181_v25  ;;  %v561_v41 = vmax.f32 %v480_v32, %v1050_v1  ;;  %v1214_v22 = vld [vmem:[%s1484_s0 + $0x218] sm:$0xff]   ;;  %v1159_v32 = vld [vmem:[%s1484_s0 + $0x60] sm:$0xff]  }
  0x16   :  { %v562_v42 = vmax.f32 %v481_v34, %v1051_v8  ;;  %v990_v43 = vunpack.c.l.bf16 %v1189_v30  ;;  %v991_v44 = vunpack.c.h.bf16 %v1189_v30  ;;  %v239_v47 = vmax.f32 %v158_v36, %v926_v28  ;;  %v1167_v34 = vld [vmem:[%s1484_s0 + $0xa0] sm:$0xff]  }
  0x17   :  { %1112 = vst [vmem:[%s1485_s1] sm:$0xff] %v1111_v31   ;;  %v240_v48 = vmax.f32 %v159_v37, %v927_v29  ;;  %v1022_v49 = vunpack.c.l.bf16 %v1197_v33  ;;  %v1023_v50 = vunpack.c.h.bf16 %v1197_v33  ;;  %v642_v52 = vmax.f32 %v561_v41, %v1082_v9 }
  0x18   :  { %v643_v53 = vmax.f32 %v562_v42, %v1083_v35  ;;  %v1054_v54 = vunpack.c.l.bf16 %v1205_v40  ;;  %v1055_v55 = vunpack.c.h.bf16 %v1205_v40  ;;  %v320_v57 = vmax.f32 %v239_v47, %v958_v38  ;;  %v1175_v42 = vld [vmem:[%s1484_s0 + $0xe0] sm:$0xff]  }
  0x19   :  { %v321_v58 = vmax.f32 %v240_v48, %v959_v39  ;;  %v1086_v59 = vunpack.c.l.bf16 %v1213_v45  ;;  %v834_v60 = vunpack.c.l.bf16 %v1150_v46  ;;  %v835_v63 = vunpack.c.h.bf16 %v1150_v46  ;;  %v1183_v47 = vld [vmem:[%s1484_s0 + $0x120] sm:$0xff]  }
  0x1a   :  { %v1116_v62 = vpack.c.bf16 %v643_v53, %v642_v52  ;;  %v866_v0 = vunpack.c.l.bf16 %v1158_v51  ;;  %v867_v1 = vunpack.c.h.bf16 %v1158_v51  ;;  %v401_v3 = vmax.f32 %v320_v57, %v990_v43  ;;  %v1191_v52 = vld [vmem:[%s1484_s0 + $0x160] sm:$0xff]  }
  0x1b   :  { %v402_v4 = vmax.f32 %v321_v58, %v991_v44  ;;  %v898_v5 = vunpack.c.l.bf16 %v1166_v56  ;;  %v899_v6 = vunpack.c.h.bf16 %v1166_v56  ;;  %v930_v10 = vunpack.c.l.bf16 %v1174_v61  ;;  %v1199_v57 = vld [vmem:[%s1484_s0 + $0x1a0] sm:$0xff]  }
  0x1c   :  { %1219 = vst [vmem:[%s1485_s1 + $0x8] sm:$0xff] %v1116_v62   ;;  %v79_v8 = vmax.f32 %v834_v60, %v866_v0  ;;  %v80_v9 = vmax.f32 %v835_v63, %v867_v1  ;;  %v931_v11 = vunpack.c.h.bf16 %v1174_v61  ;;  %v482_v13 = vmax.f32 %v401_v3, %v1022_v49  ;;  %v1207_v62 = vld [vmem:[%s1484_s0 + $0x1e0] sm:$0xff]  }
  0x1d   :  { %v483_v14 = vmax.f32 %v402_v4, %v1023_v50  ;;  %v1087_v15 = vunpack.c.h.bf16 %v1213_v45  ;;  %v962_v16 = vunpack.c.l.bf16 %v1182_v2  ;;  %v963_v20 = vunpack.c.h.bf16 %v1182_v2  ;;  %v1215_v3 = vld [vmem:[%s1484_s0 + $0x220] sm:$0xff]   ;;  %v1152_v4 = vld [vmem:[%s1484_s0 + $0x28] sm:$0xff]  }
  0x1e   :  { %v160_v18 = vmax.f32 %v79_v8, %v898_v5  ;;  %v161_v19 = vmax.f32 %v80_v9, %v899_v6  ;;  %v994_v21 = vunpack.c.l.bf16 %v1190_v7  ;;  %v563_v23 = vmax.f32 %v482_v13, %v1054_v54  ;;  %v1160_v9 = vld [vmem:[%s1484_s0 + $0x68] sm:$0xff]  }
  0x1f   :  { %v564_v24 = vmax.f32 %v483_v14, %v1055_v55  ;;  %v995_v25 = vunpack.c.h.bf16 %v1190_v7  ;;  %v1026_v26 = vunpack.c.l.bf16 %v1198_v12  ;;  %v1027_v30 = vunpack.c.h.bf16 %v1198_v12  ;;  %v1168_v14 = vld [vmem:[%s1484_s0 + $0xa8] sm:$0xff]  }
  0x20   :  { %v241_v28 = vmax.f32 %v160_v18, %v930_v10  ;;  %v242_v29 = vmax.f32 %v161_v19, %v931_v11  ;;  %v1058_v31 = vunpack.c.l.bf16 %v1206_v17  ;;  %v644_v35 = vmax.f32 %v563_v23, %v1086_v59  ;;  %v1176_v19 = vld [vmem:[%s1484_s0 + $0xe8] sm:$0xff]  }
  0x21   :  { %v645_v33 = vmax.f32 %v564_v24, %v1087_v15  ;;  %v1059_v36 = vunpack.c.h.bf16 %v1206_v17  ;;  %v1090_v37 = vunpack.c.l.bf16 %v1214_v22  ;;  %v838_v40 = vunpack.c.l.bf16 %v1151_v27  ;;  %v1184_v24 = vld [vmem:[%s1484_s0 + $0x128] sm:$0xff]  }
  0x22   :  { %v322_v38 = vmax.f32 %v241_v28, %v962_v16  ;;  %v323_v39 = vmax.f32 %v242_v29, %v963_v20  ;;  %v839_v41 = vunpack.c.h.bf16 %v1151_v27  ;;  %v870_v44 = vunpack.c.l.bf16 %v1159_v32 }
  0x23   :  { %v1121_v43 = vpack.c.bf16 %v645_v33, %v644_v35  ;;  %v871_v45 = vunpack.c.h.bf16 %v1159_v32  ;;  %v902_v46 = vunpack.c.l.bf16 %v1167_v34  ;;  %v1091_v50 = vunpack.c.h.bf16 %v1214_v22  ;;  %v1200_v35 = vld [vmem:[%s1484_s0 + $0x1a8] sm:$0xff]  }
  0x24   :  { %v403_v48 = vmax.f32 %v322_v38, %v994_v21  ;;  %v404_v49 = vmax.f32 %v323_v39, %v995_v25  ;;  %v903_v51 = vunpack.c.h.bf16 %v1167_v34  ;;  %v81_v53 = vmax.f32 %v838_v40, %v870_v44  ;;  %v1192_v34 = vld [vmem:[%s1484_s0 + $0x168] sm:$0xff]  }
  0x25   :  { %1220 = vst [vmem:[%s1485_s1 + $0x10] sm:$0xff] %v1121_v43   ;;  %v82_v54 = vmax.f32 %v839_v41, %v871_v45  ;;  %v934_v55 = vunpack.c.l.bf16 %v1175_v42  ;;  %v935_v56 = vunpack.c.h.bf16 %v1175_v42  ;;  %v966_v60 = vunpack.c.l.bf16 %v1183_v47  ;;  %v1208_v43 = vld [vmem:[%s1484_s0 + $0x1e8] sm:$0xff]  }
  0x26   :  { %v484_v58 = vmax.f32 %v403_v48, %v1026_v26  ;;  %v485_v59 = vmax.f32 %v404_v49, %v1027_v30  ;;  %v967_v61 = vunpack.c.h.bf16 %v1183_v47  ;;  %v162_v63 = vmax.f32 %v81_v53, %v902_v46  ;;  %v1216_v44 = vld [vmem:[%s1484_s0 + $0x228] sm:$0xff]   ;;  %v1153_v49 = vld [vmem:[%s1484_s0 + $0x30] sm:$0xff]  }
  0x27   :  { %v163_v0 = vmax.f32 %v82_v54, %v903_v51  ;;  %v998_v1 = vunpack.c.l.bf16 %v1191_v52  ;;  %v999_v2 = vunpack.c.h.bf16 %v1191_v52  ;;  %v1030_v7 = vunpack.c.l.bf16 %v1199_v57  ;;  %v1161_v54 = vld [vmem:[%s1484_s0 + $0x70] sm:$0xff]  }
  0x28   :  { %v565_v5 = vmax.f32 %v484_v58, %v1058_v31  ;;  %v566_v6 = vmax.f32 %v485_v59, %v1059_v36  ;;  %v1031_v8 = vunpack.c.h.bf16 %v1199_v57  ;;  %v243_v10 = vmax.f32 %v162_v63, %v934_v55  ;;  %v1169_v59 = vld [vmem:[%s1484_s0 + $0xb0] sm:$0xff]  }
  0x29   :  { %v244_v11 = vmax.f32 %v163_v0, %v935_v56  ;;  %v1062_v12 = vunpack.c.l.bf16 %v1207_v62  ;;  %v1063_v13 = vunpack.c.h.bf16 %v1207_v62  ;;  %v1094_v17 = vunpack.c.l.bf16 %v1215_v3  ;;  %v1177_v0 = vld [vmem:[%s1484_s0 + $0xf0] sm:$0xff]  }
  0x2a   :  { %v646_v15 = vmax.f32 %v565_v5, %v1090_v37  ;;  %v647_v16 = vmax.f32 %v566_v6, %v1091_v50  ;;  %v842_v18 = vunpack.c.l.bf16 %v1152_v4  ;;  %v324_v20 = vmax.f32 %v243_v10, %v966_v60  ;;  %v1185_v5 = vld [vmem:[%s1484_s0 + $0x130] sm:$0xff]  }
  0x2b   :  { %v325_v21 = vmax.f32 %v244_v11, %v967_v61  ;;  %v843_v22 = vunpack.c.h.bf16 %v1152_v4  ;;  %v874_v23 = vunpack.c.l.bf16 %v1160_v9  ;;  %v875_v26 = vunpack.c.h.bf16 %v1160_v9 }
  0x2c   :  { %v1126_v25 = vpack.c.bf16 %v647_v16, %v646_v15  ;;  %v906_v27 = vunpack.c.l.bf16 %v1168_v14  ;;  %v907_v28 = vunpack.c.h.bf16 %v1168_v14  ;;  %v405_v29 = vmax.f32 %v324_v20, %v998_v1  ;;  %v1193_v14 = vld [vmem:[%s1484_s0 + $0x170] sm:$0xff]  }
  0x2d   :  { %v406_v30 = vmax.f32 %v325_v21, %v999_v2  ;;  %v83_v31 = vmax.f32 %v842_v18, %v874_v23  ;;  %v938_v32 = vunpack.c.l.bf16 %v1176_v19  ;;  %v1095_v33 = vunpack.c.h.bf16 %v1215_v3 }
  0x2e   :  { %1221 = vst [vmem:[%s1485_s1 + $0x18] sm:$0xff] %v1126_v25   ;;  %v84_v36 = vmax.f32 %v843_v22, %v875_v26  ;;  %v939_v37 = vunpack.c.h.bf16 %v1176_v19  ;;  %v970_v38 = vunpack.c.l.bf16 %v1184_v24  ;;  %v486_v39 = vmax.f32 %v405_v29, %v1030_v7  ;;  %v1201_v19 = vld [vmem:[%s1484_s0 + $0x1b0] sm:$0xff]  }
  0x2f   :  { %v487_v40 = vmax.f32 %v406_v30, %v1031_v8  ;;  %v164_v41 = vmax.f32 %v83_v31, %v906_v27  ;;  %v971_v42 = vunpack.c.h.bf16 %v1184_v24  ;;  %v1002_v46 = vunpack.c.l.bf16 %v1192_v34  ;;  %v1209_v24 = vld [vmem:[%s1484_s0 + $0x1f0] sm:$0xff]  }
  0x30   :  { %v165_v45 = vmax.f32 %v84_v36, %v907_v28  ;;  %v1003_v47 = vunpack.c.h.bf16 %v1192_v34  ;;  %v1034_v48 = vunpack.c.l.bf16 %v1200_v35  ;;  %v567_v50 = vmax.f32 %v486_v39, %v1062_v12  ;;  %v1154_v28 = vld [vmem:[%s1484_s0 + $0x38] sm:$0xff]  }
  0x31   :  { %v568_v51 = vmax.f32 %v487_v40, %v1063_v13  ;;  %v245_v52 = vmax.f32 %v164_v41, %v938_v32  ;;  %v1035_v53 = vunpack.c.h.bf16 %v1200_v35  ;;  %v1066_v56 = vunpack.c.l.bf16 %v1208_v43  ;;  %v1162_v34 = vld [vmem:[%s1484_s0 + $0x78] sm:$0xff]  }
  0x32   :  { %v246_v55 = vmax.f32 %v165_v45, %v939_v37  ;;  %v1067_v57 = vunpack.c.h.bf16 %v1208_v43  ;;  %v1098_v58 = vunpack.c.l.bf16 %v1216_v44  ;;  %v648_v60 = vmax.f32 %v567_v50, %v1094_v17  ;;  %v1170_v35 = vld [vmem:[%s1484_s0 + $0xb8] sm:$0xff]  }
  0x33   :  { %v649_v61 = vmax.f32 %v568_v51, %v1095_v33  ;;  %v326_v62 = vmax.f32 %v245_v52, %v970_v38  ;;  %v846_v63 = vunpack.c.l.bf16 %v1153_v49  ;;  %v847_v2 = vunpack.c.h.bf16 %v1153_v49  ;;  %v1178_v43 = vld [vmem:[%s1484_s0 + $0xf8] sm:$0xff]  }
  0x34   :  { %v327_v1 = vmax.f32 %v246_v55, %v971_v42  ;;  %v878_v3 = vunpack.c.l.bf16 %v1161_v54  ;;  %v879_v4 = vunpack.c.h.bf16 %v1161_v54  ;;  %v910_v8 = vunpack.c.l.bf16 %v1169_v59 }
  0x35   :  { %v1131_v6 = vpack.c.bf16 %v649_v61, %v648_v60  ;;  %v407_v7 = vmax.f32 %v326_v62, %v1002_v46  ;;  %v911_v9 = vunpack.c.h.bf16 %v1169_v59  ;;  %v942_v13 = vunpack.c.l.bf16 %v1177_v0  ;;  %v1194_v62 = vld [vmem:[%s1484_s0 + $0x178] sm:$0xff]  }
  0x36   :  { %v408_v10 = vmax.f32 %v327_v1, %v1003_v47  ;;  %v85_v11 = vmax.f32 %v846_v63, %v878_v3  ;;  %v86_v12 = vmax.f32 %v847_v2, %v879_v4  ;;  %v1099_v16 = vunpack.c.h.bf16 %v1216_v44  ;;  %v1217_v44 = vld [vmem:[%s1484_s0 + $0x230] sm:$0xff]  }
  0x37   :  { %1222 = vst [vmem:[%s1485_s1 + $0x20] sm:$0xff] %v1131_v6   ;;  %v488_v15 = vmax.f32 %v407_v7, %v1034_v48  ;;  %v943_v17 = vunpack.c.h.bf16 %v1177_v0  ;;  %v974_v18 = vunpack.c.l.bf16 %v1185_v5  ;;  %v975_v23 = vunpack.c.h.bf16 %v1185_v5  ;;  %v1202_v5 = vld [vmem:[%s1484_s0 + $0x1b8] sm:$0xff]  }
  0x38   :  { %v489_v20 = vmax.f32 %v408_v10, %v1035_v53  ;;  %v166_v21 = vmax.f32 %v85_v11, %v910_v8  ;;  %v167_v22 = vmax.f32 %v86_v12, %v911_v9  ;;  %v1006_v26 = vunpack.c.l.bf16 %v1193_v14  ;;  %v1186_v53 = vld [vmem:[%s1484_s0 + $0x138] sm:$0xff]  }
  0x39   :  { %v569_v25 = vmax.f32 %v488_v15, %v1066_v56  ;;  %v1007_v27 = vunpack.c.h.bf16 %v1193_v14  ;;  %v1038_v32 = vunpack.c.l.bf16 %v1201_v19  ;;  %v1039_v36 = vunpack.c.h.bf16 %v1201_v19  ;;  %v1210_v12 = vld [vmem:[%s1484_s0 + $0x1f8] sm:$0xff]  }
  0x3a   :  { %v570_v29 = vmax.f32 %v489_v20, %v1067_v57  ;;  %v247_v30 = vmax.f32 %v166_v21, %v942_v13  ;;  %v248_v31 = vmax.f32 %v167_v22, %v943_v17  ;;  %v1070_v37 = vunpack.c.l.bf16 %v1209_v24 }
  0x3b   :  { %v650_v33 = vmax.f32 %v569_v25, %v1098_v58  ;;  %v1071_v38 = vunpack.c.h.bf16 %v1209_v24  ;;  %v850_v42 = vunpack.c.l.bf16 %v1154_v28  ;;  %v851_v45 = vunpack.c.h.bf16 %v1154_v28 }
  0x3c   :  { %v651_v39 = vmax.f32 %v570_v29, %v1099_v16  ;;  %v328_v40 = vmax.f32 %v247_v30, %v974_v18  ;;  %v329_v41 = vmax.f32 %v248_v31, %v975_v23  ;;  %v882_v46 = vunpack.c.l.bf16 %v1162_v34  ;;  %v1218_v18 = vld [vmem:[%s1484_s0 + $0x238] sm:$0xff]  }
  0x3d   :  { %v883_v47 = vunpack.c.h.bf16 %v1162_v34  ;;  %v914_v48 = vunpack.c.l.bf16 %v1170_v35  ;;  %v915_v52 = vunpack.c.h.bf16 %v1170_v35  ;;  %v946_v56 = vunpack.c.l.bf16 %v1178_v43 }
  0x3e   :  { %v1136_v49 = vpack.c.bf16 %v651_v39, %v650_v33  ;;  %v409_v50 = vmax.f32 %v328_v40, %v1006_v26  ;;  %v410_v51 = vmax.f32 %v329_v41, %v1007_v27  ;;  %v87_v54 = vmax.f32 %v850_v42, %v882_v46 }
  0x3f   :  { %v88_v55 = vmax.f32 %v851_v45, %v883_v47  ;;  %v947_v57 = vunpack.c.h.bf16 %v1178_v43  ;;  %v1102_v60 = vunpack.c.l.bf16 %v1217_v44  ;;  %v1103_v61 = vunpack.c.h.bf16 %v1217_v44 }
  0x40   :  { %1223 = vst [vmem:[%s1485_s1 + $0x28] sm:$0xff] %v1136_v49   ;;  %v490_v58 = vmax.f32 %v409_v50, %v1038_v32  ;;  %v491_v59 = vmax.f32 %v410_v51, %v1039_v36  ;;  %v168_v63 = vmax.f32 %v87_v54, %v914_v48  ;;  %v978_v1 = vunpack.c.l.bf16 %v1186_v53 }
  0x41   :  { %v169_v0 = vmax.f32 %v88_v55, %v915_v52  ;;  %v979_v2 = vunpack.c.h.bf16 %v1186_v53  ;;  %v1010_v8 = vunpack.c.l.bf16 %v1194_v62  ;;  %v1011_v9 = vunpack.c.h.bf16 %v1194_v62 }
  0x42   :  { %v571_v3 = vmax.f32 %v490_v58, %v1070_v37  ;;  %v572_v4 = vmax.f32 %v491_v59, %v1071_v38  ;;  %v249_v6 = vmax.f32 %v168_v63, %v946_v56  ;;  %v1042_v15 = vunpack.c.l.bf16 %v1202_v5 }
  0x43   :  { %v250_v7 = vmax.f32 %v169_v0, %v947_v57  ;;  %v1043_v16 = vunpack.c.h.bf16 %v1202_v5  ;;  %v1074_v21 = vunpack.c.l.bf16 %v1210_v12  ;;  %v1075_v22 = vunpack.c.h.bf16 %v1210_v12 }
  0x44   :  { %v652_v10 = vmax.f32 %v571_v3, %v1102_v60  ;;  %v653_v11 = vmax.f32 %v572_v4, %v1103_v61  ;;  %v330_v13 = vmax.f32 %v249_v6, %v978_v1  ;;  %v1106_v25 = vunpack.c.l.bf16 %v1218_v18 }
  0x45   :  { %v331_v14 = vmax.f32 %v250_v7, %v979_v2  ;;  %v1107_v26 = vunpack.c.h.bf16 %v1218_v18 }
  0x46   :  { %v1141_v17 = vpack.c.bf16 %v653_v11, %v652_v10  ;;  %v411_v19 = vmax.f32 %v330_v13, %v1010_v8 }
  0x47   :  { %v412_v20 = vmax.f32 %v331_v14, %v1011_v9 }
  0x48   :  { %1224 = vst [vmem:[%s1485_s1 + $0x30] sm:$0xff] %v1141_v17   ;;  %v492_v23 = vmax.f32 %v411_v19, %v1042_v15 }
  0x49   :  { %v493_v24 = vmax.f32 %v412_v20, %v1043_v16 }
  0x4a   :  { %v573_v27 = vmax.f32 %v492_v23, %v1074_v21 }
  0x4b   :  { %v574_v28 = vmax.f32 %v493_v24, %v1075_v22 }
  0x4c   :  { %v654_v29 = vmax.f32 %v573_v27, %v1106_v25 }
  0x4d   :  { %v655_v30 = vmax.f32 %v574_v28, %v1107_v26 }
  0x4f   :  { %v1146_v31 = vpack.c.bf16 %v655_v30, %v654_v29 }
  0x51   :  { %1225 = vst [vmem:[%s1485_s1 + $0x38] sm:$0xff] %v1146_v31  }

// kernel: resnet18_forward.24
= control target key start
LH: loop header
LB: loop body
LE: loop exit
PB: predicated region body
PF: predicated region fallthrough
CT: control target
= control target key end

     0   :  { %8 = vsyncpa [#allocation5], 0  ;;  %s2044_s0 = inlined_call_operand.vmem [shape: bf16[128,1152], index: 0, kind: input, shape index: {}]   ;;  %s2045_s1 = inlined_call_operand.hbm [shape: bf16[1152,128], index: 1, kind: input, shape index: {}]   ;;  %s2046_s2 = inlined_call_operand.hbm [shape: f32[1,128], index: 2, kind: input, shape index: {}]   ;;  %s2047_s3 = inlined_call_operand.vmem [shape: bf16[128,128], index: 3, kind: output, shape index: {}]  }
   0x1   :  { %10 = vsyncpa [#allocation5 + $0x1], 0 }
   0x2   :  { %11 = vsyncpa [#allocation7], 0  ;;  %s1709_s12 = smov 0   ;;  %s1711_s13 = smov 0  }
   0x3   :  { %s1713_s14 = smov 0   ;;  %s1715_s15 = smov 0  }
   0x4   :  { %s1717_s16 = smov 0   ;;  %s1719_s17 = smov 0  }
   0x5 LB: > { %s1144_s18 = sadd.s32 4294967295, %s1683_s17   ;;  %s29_s19 = sadd.s32 1, %s1679_s16  ;;  %s1683_s17 = sphi %s1719_s17, %s17_s17   ;;  %s1679_s16 = sphi %s1717_s16, %s2056_s16   ;;  %s1675_s15 = sphi %s1715_s15, %s2055_s15   ;;  %s1671_s14 = sphi %s1713_s14, %s2054_s14   ;;  %s1667_s13 = sphi %s1711_s13, %s2053_s13   ;;  %s1663_s12 = sphi %s1709_s12, %s2052_s12  }
   0x6   : > { %p30_p0 = scmp.ge.s32.totalorder %s29_s19, 3  ;;  %s45_s20 = sadd.s32 1, %s1671_s14 }
   0x7   : > { %p52_p1 = scmp.ne.s32.totalorder %s1671_s14, %s1667_s13  ;;  %p53_p2 = scmp.eq.s32.totalorder %s1683_s17, 0 }
   0x8   : > { %s2058_s19 = smov (%p30_p0, %s29_s19), 0  ;;  %p86_p4 = scmp.ne.s32.totalorder %s1667_s13, %s1663_s12 }
   0x9   : > { %p1745_p3 = por %p53_p2, %p52_p1  ;;  %s41_s22 = ssub.s32 %s1679_s16, %s2058_s19 }
   0xa   : > { %p1752_p5 = scmp.eq.s32.totalorder %s1144_s18, 0  ;;  %p43_p6 = scmp.eq.s32.totalorder %s41_s22, 0 }
   0xb   : > { %p1145_p7 = scmp.ge.s32.totalorder %s1683_s17, 1  ;;  %p151_p9 = scmp.lt.s32.totalorder %s1683_s17, 4 }
   0xc   : > { %p1759_p8 = por %p1752_p5, %p86_p4  ;;  %s164_s29 = sshll.u32 %s2046_s2, 4  ;;  %s165_s29 = int_to_ptr.hbm [resolvable:$true] %s164_s29 }
   0xd   : > { %s1765_s25 = scalar_select %p43_p6, %s1671_s14, %s45_s20  }
   0xe   : > { %p1767_p10 = pnand %p1145_p7, %p151_p9  ;;  %s1685_s30 = smov [#allocation6]  }
   0xf   : > { %s166_s4 = sshll.u32 %s1685_s30, 4  ;;  %p1147_p13 = scmp.ge.s32.totalorder %s1683_s17, 3  ;;  %s167_s4 = int_to_ptr.vmem [resolvable:$true] %s166_s4 }
  0x10   : > { %p1512_p11 = pneg %p1767_p10 }
  0x11   : > { %173 = sbr.rel (%p1147_p13) target bundleno = 65 (0x41), region = 20 }
  0x12   : > { %p1513_p12 = pnand %p1512_p11, %p1752_p5 }
  0x14   : > { %1515 = dma.hbm_to_vmem [thread:$0]  (!%p1513_p12), %s165_s29, 16, %s167_s4, [#allocation7]  }
  0x16   : > { %176 = sbr.rel (!%p1745_p3) target bundleno = 59 (0x3b), region = 24  ;;  %s178_s5 = sand.u32 (%p1745_p3), 1, %s1671_s14  }
  0x17   : > { %s1382_s6 = smul.u32 (%p1745_p3), 12, %s1679_s16 }
  0x18   : > { %s1503_s7 = smul.u32 (%p1745_p3), 192, %s178_s5 }
  0x19   : > { %s1786_s10 = scalar_lea.vmem (%p1745_p3), %s2044_s0, %s1382_s6 }
  0x1a   : > { %v201_v0 = vld [vmem:[%s1786_s10] sm:$0xff] (%p1745_p3)  ;;  %v205_v2 = vld [vmem:[%s1786_s10 + $0x48] sm:$0xff] (%p1745_p3)  ;;  %s1791_s11 = scalar_lea.vmem (%p1745_p3), [#allocation3], %s1503_s7  ;;  %v209_v4 = vld [vmem:[%s1786_s10 + $0x90] sm:$0xff] (%p1745_p3) }
  0x1b   : > { %v203_v1 = vld [vmem:[%s1786_s10 + $0x24] sm:$0xff]  ;;  %202 = vst [vmem:[%s1791_s11] sm:$0xff] %v201_v0  ;;  %v207_v3 = vld [vmem:[%s1786_s10 + $0x6c] sm:$0xff]  ;;  %v211_v5 = vld [vmem:[%s1786_s10 + $0xb4] sm:$0xff] }
  0x1c   : > { %204 = vst [vmem:[%s1791_s11 + $0xc] sm:$0xff] %v203_v1  ;;  %v213_v6 = vld [vmem:[%s1786_s10 + $0xd8] sm:$0xff]  ;;  %v217_v8 = vld [vmem:[%s1786_s10 + $0x120] sm:$0xff]  ;;  %v221_v10 = vld [vmem:[%s1786_s10 + $0x168] sm:$0xff] }
  0x1d   : > { %206 = vst [vmem:[%s1791_s11 + $0x18] sm:$0xff] %v205_v2  ;;  %v215_v7 = vld [vmem:[%s1786_s10 + $0xfc] sm:$0xff]  ;;  %v219_v9 = vld [vmem:[%s1786_s10 + $0x144] sm:$0xff]  ;;  %v223_v11 = vld [vmem:[%s1786_s10 + $0x18c] sm:$0xff] }
  0x1e   : > { %208 = vst [vmem:[%s1791_s11 + $0x24] sm:$0xff] %v207_v3  ;;  %v225_v12 = vld [vmem:[%s1786_s10 + $0x1b0] sm:$0xff]  ;;  %v229_v14 = vld [vmem:[%s1786_s10 + $0x1f8] sm:$0xff]  ;;  %v1149_v16 = vld [vmem:[%s1786_s10 + $0x8] sm:$0xf] }
  0x1f   : > { %210 = vst [vmem:[%s1791_s11 + $0x30] sm:$0xff] %v209_v4  ;;  %v227_v13 = vld [vmem:[%s1786_s10 + $0x1d4] sm:$0xff]  ;;  %v231_v15 = vld [vmem:[%s1786_s10 + $0x21c] sm:$0xff]  ;;  %v1151_v17 = vld [vmem:[%s1786_s10 + $0x2c] sm:$0xf] }
  0x20   : > { %212 = vst [vmem:[%s1791_s11 + $0x3c] sm:$0xff] %v211_v5  ;;  %v1153_v18 = vld [vmem:[%s1786_s10 + $0x50] sm:$0xf]  ;;  %v1155_v19 = vld [vmem:[%s1786_s10 + $0x74] sm:$0xf] }
  0x21   : > { %214 = vst [vmem:[%s1791_s11 + $0x48] sm:$0xff] %v213_v6  ;;  %v1157_v20 = vld [vmem:[%s1786_s10 + $0x98] sm:$0xf]  ;;  %v1159_v21 = vld [vmem:[%s1786_s10 + $0xbc] sm:$0xf] }
  0x22   : > { %216 = vst [vmem:[%s1791_s11 + $0x54] sm:$0xff] %v215_v7  ;;  %v1161_v22 = vld [vmem:[%s1786_s10 + $0xe0] sm:$0xf]  ;;  %v1163_v23 = vld [vmem:[%s1786_s10 + $0x104] sm:$0xf] }
  0x23   : > { %218 = vst [vmem:[%s1791_s11 + $0x60] sm:$0xff] %v217_v8  ;;  %v1165_v24 = vld [vmem:[%s1786_s10 + $0x128] sm:$0xf]  ;;  %v1167_v25 = vld [vmem:[%s1786_s10 + $0x14c] sm:$0xf] }
  0x24   : > { %220 = vst [vmem:[%s1791_s11 + $0x6c] sm:$0xff] %v219_v9  ;;  %v1169_v26 = vld [vmem:[%s1786_s10 + $0x170] sm:$0xf]  ;;  %v1171_v27 = vld [vmem:[%s1786_s10 + $0x194] sm:$0xf] }
  0x25   : > { %222 = vst [vmem:[%s1791_s11 + $0x78] sm:$0xff] %v221_v10  ;;  %v1173_v28 = vld [vmem:[%s1786_s10 + $0x1b8] sm:$0xf]  ;;  %v1175_v29 = vld [vmem:[%s1786_s10 + $0x1dc] sm:$0xf] }
  0x26   : > { %224 = vst [vmem:[%s1791_s11 + $0x84] sm:$0xff] %v223_v11  ;;  %v1177_v30 = vld [vmem:[%s1786_s10 + $0x200] sm:$0xf]  ;;  %v1179_v31 = vld [vmem:[%s1786_s10 + $0x224] sm:$0xf] }
  0x27   : > { %226 = vst [vmem:[%s1791_s11 + $0x90] sm:$0xff] %v225_v12 }
  0x28   : > { %228 = vst [vmem:[%s1791_s11 + $0x9c] sm:$0xff] %v227_v13 }
  0x29   : > { %230 = vst [vmem:[%s1791_s11 + $0xa8] sm:$0xff] %v229_v14 }
  0x2a   : > { %232 = vst [vmem:[%s1791_s11 + $0xb4] sm:$0xff] %v231_v15 }
  0x2b   : > { %1150 = vst [vmem:[%s1791_s11 + $0x8] sm:$0xf] %v1149_v16 }
  0x2c   : > { %1152 = vst [vmem:[%s1791_s11 + $0x14] sm:$0xf] %v1151_v17 }
  0x2d   : > { %1154 = vst [vmem:[%s1791_s11 + $0x20] sm:$0xf] %v1153_v18 }
  0x2e   : > { %1156 = vst [vmem:[%s1791_s11 + $0x2c] sm:$0xf] %v1155_v19 }
  0x2f   : > { %1158 = vst [vmem:[%s1791_s11 + $0x38] sm:$0xf] %v1157_v20 }
  0x30   : > { %1160 = vst [vmem:[%s1791_s11 + $0x44] sm:$0xf] %v1159_v21 }
  0x31   : > { %1162 = vst [vmem:[%s1791_s11 + $0x50] sm:$0xf] %v1161_v22 }
  0x32   : > { %1164 = vst [vmem:[%s1791_s11 + $0x5c] sm:$0xf] %v1163_v23 }
  0x33   : > { %1166 = vst [vmem:[%s1791_s11 + $0x68] sm:$0xf] %v1165_v24 }
  0x34   : > { %1168 = vst [vmem:[%s1791_s11 + $0x74] sm:$0xf] %v1167_v25 }
  0x35   : > { %1170 = vst [vmem:[%s1791_s11 + $0x80] sm:$0xf] %v1169_v26 }
  0x36   : > { %1172 = vst [vmem:[%s1791_s11 + $0x8c] sm:$0xf] %v1171_v27 }
  0x37   : > { %1174 = vst [vmem:[%s1791_s11 + $0x98] sm:$0xf] %v1173_v28 }
  0x38   : > { %1176 = vst [vmem:[%s1791_s11 + $0xa4] sm:$0xf] %v1175_v29 }
  0x39   : > { %1178 = vst [vmem:[%s1791_s11 + $0xb0] sm:$0xf] %v1177_v30 }
  0x3a   : > { %1180 = vst [vmem:[%s1791_s11 + $0xbc] sm:$0xf] %v1179_v31 }
  0x3b PF: > { %s279_s12 = sand.u32 1, %s1671_s14   ;;  %s1383_s18 = smul.u32 192, %s1679_s16 }
  0x3c   : > { %s1504_s20 = smul.u32 192, %s279_s12  ;;  %s280_s5 = scalar_lea.sflag [#allocation5], %s279_s12 }
  0x3d   : > { %s289_s28 = scalar_lea.hbm %s2045_s1, %s1383_s18  ;;  %s1686_s6 = smov 64  }
  0x3e   : > { %s290_s29 = sshll.u32 %s289_s28, 4  ;;  %s283_s30 = scalar_lea.vmem [#allocation4], %s1504_s20  ;;  %s291_s29 = int_to_ptr.hbm [resolvable:$true] %s290_s29 }
  0x3f   : > { %s292_s4 = sshll.u32 %s283_s30, 4  ;;  %s1687_s7 = smov 4   ;;  %s293_s4 = int_to_ptr.vmem [resolvable:$true] %s292_s4 }
  0x40   : > { %1508 = dma.hbm_to_vmem [thread:$0]  (%p1745_p3), %s291_s29, 3072, %s293_s4, %s280_s5, %s1686_s6, %s1686_s6, %s1687_s7  }
  0x41 PF: > { %304 = sbr.rel (%p1767_p10) target bundleno = 372 (0x174), region = 54  ;;  %s307_s8 = sand.u32 (!%p1767_p10), 1, %s1667_s13  }
  0x42   : > { %s1505_s9 = smul.u32 (!%p1767_p10), 192, %s307_s8  ;;  %s314_s11 = scalar_lea.sflag (!%p1767_p10), [#allocation5], %s307_s8 }
  0x44   : > { %s1864_s10 = scalar_lea.vmem (!%p1767_p10), [#allocation3], %s1505_s9  ;;  %s1866_s18 = scalar_lea.vmem (!%p1767_p10), [#allocation4], %s1505_s9 }
  0x46   : > { %1654 = dma.done.wait (%p1759_p8), %s314_s11, 3072  }
  0x47   : > { %1656 = vsyncadd (%p1759_p8), %s314_s11, 4294964224 }
  0x48   : > { %1658 = dma.done.wait (%p1752_p5), [#allocation7], 16  }
  0x49   : > { %1660 = vsyncadd (%p1752_p5), [#allocation7], 4294967280  ;;  %p1184_p0 = scmp.ne.s32.totalorder %s1675_s15, 0 }
  0x4b   : > { %368 = sbr.rel (%p1184_p0) target bundleno = 97 (0x61), region = 70 }
  0x50   : > { %v1688_v32 = vmov 0.0  }
  0x51   : > { %369 = vst [vmem:[#allocation2 + $0x30] sm:$0xff] %v1688_v32 }
  0x52   : > { %370 = vst [vmem:[#allocation2] sm:$0xff] %v1688_v32 }
  0x53   : > { %371 = vst [vmem:[#allocation2 + $0x58] sm:$0xff] %v1688_v32 }
  0x54   : > { %372 = vst [vmem:[#allocation2 + $0x18] sm:$0xff] %v1688_v32 }
  0x55   : > { %373 = vst [vmem:[#allocation2 + $0x50] sm:$0xff] %v1688_v32 }
  0x56   : > { %374 = vst [vmem:[#allocation2 + $0x68] sm:$0xff] %v1688_v32 }
  0x57   : > { %375 = vst [vmem:[#allocation2 + $0x8] sm:$0xff] %v1688_v32 }
  0x58   : > { %376 = vst [vmem:[#allocation2 + $0x48] sm:$0xff] %v1688_v32 }
  0x59   : > { %377 = vst [vmem:[#allocation2 + $0x40] sm:$0xff] %v1688_v32 }
  0x5a   : > { %378 = vst [vmem:[#allocation2 + $0x20] sm:$0xff] %v1688_v32 }
  0x5b   : > { %379 = vst [vmem:[#allocation2 + $0x10] sm:$0xff] %v1688_v32 }
  0x5c   : > { %380 = vst [vmem:[#allocation2 + $0x38] sm:$0xff] %v1688_v32 }
  0x5d   : > { %381 = vst [vmem:[#allocation2 + $0x60] sm:$0xff] %v1688_v32 }
  0x5e   : > { %382 = vst [vmem:[#allocation2 + $0x70] sm:$0xff] %v1688_v32 }
  0x5f   : > { %383 = vst [vmem:[#allocation2 + $0x78] sm:$0xff] %v1688_v32 }
  0x60   : > { %384 = vst [vmem:[#allocation2 + $0x28] sm:$0xff] %v1688_v32 }
  0x61 PF: > { %v1415_v33 = vld [vmem:[%s1866_s18 + $0x38] sm:$0xff]  ;;  %v1414_v36 = vld [vmem:[%s1866_s18 + $0x30] sm:$0xff]  ;;  %v1413_v39 = vld [vmem:[%s1866_s18 + $0x28] sm:$0xff]  ;;  %p1377_p1 = scmp.ne.s32.totalorder %s1675_s15, 2 }
  0x62   : > { %v1879_v34 = vld [vmem:[%s1866_s18 + $0x78] sm:$0xff]  ;;  %753 = vmatpush.bf16.msra.mxu0 %v1415_v33  ;;  %1479 = vmatpush.bf16.msra.mxu3 %v1415_v33  ;;  %v1888_v37 = vld [vmem:[%s1866_s18 + $0x70] sm:$0xff]  ;;  %v1421_v40 = vld [vmem:[%s1866_s18 + $0x68] sm:$0xff] }
  0x63   : > { %v1882_v35 = vld [vmem:[%s1866_s18 + $0xb8] sm:$0xff]  ;;  %802 = vmatpush.bf16.msra.mxu1 %v1879_v34  ;;  %v1891_v38 = vld [vmem:[%s1866_s18 + $0xb0] sm:$0xff]  ;;  %v1898_v41 = vld [vmem:[%s1866_s18 + $0xa8] sm:$0xff] }
  0x64   : > { %851 = vmatpush.bf16.msra.mxu2 %v1882_v35  ;;  %v1412_v42 = vld [vmem:[%s1866_s18 + $0x20] sm:$0xff]  ;;  %v1411_v45 = vld [vmem:[%s1866_s18 + $0x18] sm:$0xff]  ;;  %v1410_v48 = vld [vmem:[%s1866_s18 + $0x10] sm:$0xff] }
  0x65   : > { %v1420_v43 = vld [vmem:[%s1866_s18 + $0x60] sm:$0xff]  ;;  %v1419_v46 = vld [vmem:[%s1866_s18 + $0x58] sm:$0xff]  ;;  %v1418_v49 = vld [vmem:[%s1866_s18 + $0x50] sm:$0xff] }
  0x66   : > { %754 = vmatpush.bf16.msra.mxu0 %v1414_v36  ;;  %1480 = vmatpush.bf16.msra.mxu3 %v1414_v36  ;;  %v1904_v44 = vld [vmem:[%s1866_s18 + $0xa0] sm:$0xff]  ;;  %v1910_v47 = vld [vmem:[%s1866_s18 + $0x98] sm:$0xff]  ;;  %v1916_v50 = vld [vmem:[%s1866_s18 + $0x90] sm:$0xff] }
  0x67   : > { %803 = vmatpush.bf16.msra.mxu1 %v1888_v37  ;;  %v1409_v51 = vld [vmem:[%s1866_s18 + $0x8] sm:$0xff]  ;;  %v1408_v54 = vld [vmem:[%s1866_s18] sm:$0xff]  ;;  %v1259_v59 = vld [vmem:[%s1864_s10 + $0x90] sm:$0xf] }
  0x68   : > { %852 = vmatpush.bf16.msra.mxu2 %v1891_v38  ;;  %v1417_v52 = vld [vmem:[%s1866_s18 + $0x48] sm:$0xff]  ;;  %v1416_v55 = vld [vmem:[%s1866_s18 + $0x40] sm:$0xff]  ;;  %v1403_v60 = vld [vmem:[%s1864_s10 + $0x98] sm:$0xf0] }
  0x69   : > { %v1922_v53 = vld [vmem:[%s1866_s18 + $0x88] sm:$0xff]  ;;  %v1927_v56 = vld [vmem:[%s1866_s18 + $0x80] sm:$0xff]  ;;  %v1189_v62 = vld [vmem:[%s1864_s10 + $0xc] sm:$0xf0]  ;;  %v1260_v2 = vor.u32 %v1403_v60, %v1259_v59 }
  0x6a   : > { %755 = vmatpush.bf16.msra.mxu0 %v1413_v39  ;;  %1481 = vmatpush.bf16.msra.mxu3 %v1413_v39  ;;  %v1187_v57 = vld [vmem:[%s1864_s10] sm:$0xf]  ;;  %v1385_v58 = vld [vmem:[%s1864_s10 + $0x8] sm:$0xf0]  ;;  %v1384_v61 = vld [vmem:[%s1864_s10 + $0x4] sm:$0xf] }
  0x6b   : > { %804 = vmatpush.bf16.msra.mxu1 %v1421_v40  ;;  %v1195_v63 = vld [vmem:[%s1864_s10 + $0x8] sm:$0xf]  ;;  %v1386_v0 = vld [vmem:[%s1864_s10 + $0x10] sm:$0xf0]  ;;  %v1188_v1 = vor.u32 %v1385_v58, %v1187_v57  ;;  %v1192_v3 = vor.u32 %v1384_v61, %v1189_v62  ;;  %v1199_v5 = vld [vmem:[%s1864_s10 + $0x18] sm:$0xf] }
  0x6c   : > { %853 = vmatpush.bf16.msra.mxu2 %v1898_v41  ;;  %v1196_v4 = vor.u32 %v1386_v0, %v1195_v63  ;;  %v1388_v6 = vld [vmem:[%s1864_s10 + $0x20] sm:$0xf0]  ;;  %v1271_v7 = vld [vmem:[%s1864_s10 + $0xa8] sm:$0xf]  ;;  %v1406_v8 = vld [vmem:[%s1864_s10 + $0xb0] sm:$0xf0] }
  0x6d   : > { %v1387_v9 = vld [vmem:[%s1864_s10 + $0x1c] sm:$0xf]  ;;  %v1201_v10 = vld [vmem:[%s1864_s10 + $0x24] sm:$0xf0]  ;;  %v1207_v11 = vld [vmem:[%s1864_s10 + $0x20] sm:$0xf]  ;;  %v1200_v13 = vor.u32 %v1388_v6, %v1199_v5  ;;  %v1272_v14 = vor.u32 %v1406_v8, %v1271_v7 }
  0x6e   : > { %756 = vmatpush.bf16.msra.mxu0 %v1412_v42  ;;  %1482 = vmatpush.bf16.msra.mxu3 %v1412_v42  ;;  %v1389_v12 = vld [vmem:[%s1864_s10 + $0x28] sm:$0xf0]  ;;  %v1204_v15 = vor.u32 %v1387_v9, %v1201_v10  ;;  %v1211_v17 = vld [vmem:[%s1864_s10 + $0x30] sm:$0xf]  ;;  %v1391_v18 = vld [vmem:[%s1864_s10 + $0x38] sm:$0xf0] }
  0x6f   : > { %805 = vmatpush.bf16.msra.mxu1 %v1420_v43  ;;  %v1208_v16 = vor.u32 %v1389_v12, %v1207_v11  ;;  %v1390_v19 = vld [vmem:[%s1864_s10 + $0x34] sm:$0xf]  ;;  %v1261_v21 = vld [vmem:[%s1864_s10 + $0x9c] sm:$0xf0]  ;;  %v1219_v23 = vld [vmem:[%s1864_s10 + $0x38] sm:$0xf]  ;;  %v1212_v25 = vor.u32 %v1391_v18, %v1211_v17 }
  0x70   : > { %854 = vmatpush.bf16.msra.mxu2 %v1904_v44  ;;  %v1402_v20 = vld [vmem:[%s1864_s10 + $0x94] sm:$0xf]  ;;  %v1213_v22 = vld [vmem:[%s1864_s10 + $0x3c] sm:$0xf0]  ;;  %v1392_v24 = vld [vmem:[%s1864_s10 + $0x40] sm:$0xf0] }
  0x71   : > { %v1264_v26 = vor.u32 %v1402_v20, %v1261_v21  ;;  %v1216_v27 = vor.u32 %v1390_v19, %v1213_v22  ;;  %v1220_v28 = vor.u32 %v1392_v24, %v1219_v23  ;;  %v1223_v29 = vld [vmem:[%s1864_s10 + $0x48] sm:$0xf]  ;;  %v1394_v30 = vld [vmem:[%s1864_s10 + $0x50] sm:$0xf0]  ;;  %v1393_v31 = vld [vmem:[%s1864_s10 + $0x4c] sm:$0xf] }
  0x72   : > { %757 = vmatpush.bf16.msra.mxu0 %v1411_v45  ;;  %1483 = vmatpush.bf16.msra.mxu3 %v1411_v45  ;;  %v1405_v32 = vld [vmem:[%s1864_s10 + $0xac] sm:$0xf]  ;;  %v1273_v33 = vld [vmem:[%s1864_s10 + $0xb4] sm:$0xf0]  ;;  %v1395_v36 = vld [vmem:[%s1864_s10 + $0x58] sm:$0xf0] }
  0x73   : > { %806 = vmatpush.bf16.msra.mxu1 %v1419_v46  ;;  %v1276_v39 = vor.u32 %v1405_v32, %v1273_v33  ;;  %v1397_v42 = vld [vmem:[%s1864_s10 + $0x68] sm:$0xf0]  ;;  %v1404_v45 = vld [vmem:[%s1864_s10 + $0xa0] sm:$0xf0]  ;;  %v1279_v57 = vld [vmem:[%s1864_s10 + $0xb0] sm:$0xf] }
  0x74   : > { %855 = vmatpush.bf16.msra.mxu2 %v1910_v47  ;;  %v1249_v58 = vld [vmem:[%s1864_s10 + $0x84] sm:$0xf0]  ;;  %v1255_v59 = vld [vmem:[%s1864_s10 + $0x80] sm:$0xf]  ;;  %v1401_v60 = vld [vmem:[%s1864_s10 + $0x88] sm:$0xf0] }
  0x75   : > { %v1256_v0 = vor.u32 %v1401_v60, %v1255_v59  ;;  %v385_v5 = vld [vmem:[#allocation2 + $0x30] sm:$0xff]  ;;  %v387_v21 = vld [vmem:[#allocation2 + $0x58] sm:$0xff] }
  0x76   : > { %758 = vmatpush.bf16.msra.mxu0 %v1410_v48  ;;  %1484 = vmatpush.bf16.msra.mxu3 %v1410_v48  ;;  %v1398_v48 = vld [vmem:[%s1864_s10 + $0x70] sm:$0xf0] }
  0x77   : > { %807 = vmatpush.bf16.msra.mxu1 %v1418_v49 }
  0x78   : > { %856 = vmatpush.bf16.msra.mxu2 %v1916_v50 }
  0x7a   : > { %759 = vmatpush.bf16.msra.mxu0 %v1409_v51  ;;  %1485 = vmatpush.bf16.msra.mxu3 %v1409_v51 }
  0x7b   : > { %808 = vmatpush.bf16.msra.mxu1 %v1417_v52 }
  0x7c   : > { %857 = vmatpush.bf16.msra.mxu2 %v1922_v53 }
  0x7e   : > { %760 = vmatpush.bf16.msra.mxu0 %v1408_v54  ;;  %1486 = vmatpush.bf16.msra.mxu3 %v1408_v54  ;;  %v1400_v54 = vld [vmem:[%s1864_s10 + $0x80] sm:$0xf0] }
  0x7f   : > { %809 = vmatpush.bf16.msra.mxu1 %v1416_v55 }
  0x80   : > { %858 = vmatpush.bf16.msra.mxu2 %v1927_v56 }
  0x81   : > { %761 = vmatmul.bf16.vlgmr.msra.gmra.mxu0 %v1188_v1  ;;  %791 = vmatmul.bf16.vlgmr.msra.gmra.mxu3 %v1260_v2 }
  0x82   : > { %1487 = vmatpush.bf16.msrb.mxu3 %v1879_v34  ;;  %810 = vmatmul.bf16.vlgmr.msra.gmra.mxu1 %v1192_v3  ;;  %v1225_v34 = vld [vmem:[%s1864_s10 + $0x54] sm:$0xf0] }
  0x83   : > { %859 = vmatmul.bf16.vlgmr.msra.gmra.mxu2 %v1196_v4 }
  0x86   : > { %1488 = vmatpush.bf16.msrb.mxu3 %v1888_v37  ;;  %v1224_v37 = vor.u32 %v1394_v30, %v1223_v29  ;;  %v388_v29 = vld [vmem:[#allocation2 + $0x18] sm:$0xff] }
  0x8a   : > { %1489 = vmatpush.bf16.msrb.mxu3 %v1421_v40 }
  0x8e   : > { %1490 = vmatpush.bf16.msrb.mxu3 %v1420_v43  ;;  %v1396_v43 = vld [vmem:[%s1864_s10 + $0x64] sm:$0xf] }
  0x91   : > { %766 = vmatmul.bf16.gmra.mxu0 %v1200_v13  ;;  %796 = vmatmul.bf16.gmra.mxu3 %v1272_v14  ;;  %v386_v13 = vld [vmem:[#allocation2] sm:$0xff] }
  0x92   : > { %1491 = vmatpush.bf16.msrb.mxu3 %v1419_v46  ;;  %815 = vmatmul.bf16.gmra.mxu1 %v1204_v15  ;;  %v1237_v46 = vld [vmem:[%s1864_s10 + $0x6c] sm:$0xf0] }
  0x93   : > { %864 = vmatmul.bf16.gmra.mxu2 %v1208_v16  ;;  %v1240_v51 = vor.u32 %v1396_v43, %v1237_v46 }
  0x96   : > { %1492 = vmatpush.bf16.msrb.mxu3 %v1418_v49 }
  0x9a   : > { %1493 = vmatpush.bf16.msrb.mxu3 %v1417_v52 }
  0x9e   : > { %1494 = vmatpush.bf16.msrb.mxu3 %v1416_v55  ;;  %v1399_v55 = vld [vmem:[%s1864_s10 + $0x7c] sm:$0xf] }
  0x9f   : > { %v1252_v63 = vor.u32 %v1399_v55, %v1249_v58 }
  0xa1   : > { %771 = vmatmul.bf16.gmra.mxu0 %v1212_v25  ;;  %840 = vmatmul.bf16.vlgmr.msrb.gmra.mxu3 %v1264_v26 }
  0xa2   : > { %1495 = vmatpush.bf16.msra.mxu3 %v1882_v35  ;;  %820 = vmatmul.bf16.gmra.mxu1 %v1216_v27  ;;  %v1231_v35 = vld [vmem:[%s1864_s10 + $0x50] sm:$0xf] }
  0xa3   : > { %869 = vmatmul.bf16.gmra.mxu2 %v1220_v28  ;;  %v1232_v40 = vor.u32 %v1395_v36, %v1231_v35 }
  0xa6   : > { %1496 = vmatpush.bf16.msra.mxu3 %v1891_v38  ;;  %v1228_v38 = vor.u32 %v1393_v31, %v1225_v34 }
  0xaa   : > { %1497 = vmatpush.bf16.msra.mxu3 %v1898_v41  ;;  %v1235_v41 = vld [vmem:[%s1864_s10 + $0x60] sm:$0xf] }
  0xab   : > { %v1236_v49 = vor.u32 %v1397_v42, %v1235_v41 }
  0xae   : > { %1498 = vmatpush.bf16.msra.mxu3 %v1904_v44  ;;  %v1267_v44 = vld [vmem:[%s1864_s10 + $0x98] sm:$0xf] }
  0xb1   : > { %776 = vmatmul.bf16.gmra.mxu0 %v1224_v37  ;;  %845 = vmatmul.bf16.gmra.mxu3 %v1276_v39  ;;  %v389_v37 = vld [vmem:[#allocation2 + $0x50] sm:$0xff] }
  0xb2   : > { %1499 = vmatpush.bf16.msra.mxu3 %v1910_v47  ;;  %825 = vmatmul.bf16.gmra.mxu1 %v1228_v38  ;;  %v1243_v47 = vld [vmem:[%s1864_s10 + $0x68] sm:$0xf] }
  0xb3   : > { %874 = vmatmul.bf16.gmra.mxu2 %v1232_v40  ;;  %v1244_v52 = vor.u32 %v1398_v48, %v1243_v47 }
  0xb6   : > { %1500 = vmatpush.bf16.msra.mxu3 %v1916_v50  ;;  %v1268_v50 = vor.u32 %v1404_v45, %v1267_v44  ;;  %v390_v45 = vld [vmem:[#allocation2 + $0x68] sm:$0xff] }
  0xba   : > { %1501 = vmatpush.bf16.msra.mxu3 %v1922_v53  ;;  %v1247_v53 = vld [vmem:[%s1864_s10 + $0x78] sm:$0xf] }
  0xbb   : > { %v1248_v61 = vor.u32 %v1400_v54, %v1247_v53  ;;  %v391_v53 = vld [vmem:[#allocation2 + $0x8] sm:$0xff] }
  0xbe   : > { %1502 = vmatpush.bf16.msra.mxu3 %v1927_v56  ;;  %v1407_v56 = vld [vmem:[%s1864_s10 + $0xb8] sm:$0xf0] }
  0xbf   : > { %v1280_v62 = vor.u32 %v1407_v56, %v1279_v57 }
  0xc1   : > { %781 = vmatmul.bf16.gmra.mxu0 %v1236_v49  ;;  %889 = vmatmul.bf16.vlgmr.msra.gmra.mxu3 %v1268_v50 }
  0xc2   : > { %830 = vmatmul.bf16.gmra.mxu1 %v1240_v51 }
  0xc3   : > { %879 = vmatmul.bf16.gmra.mxu2 %v1244_v52 }
  0xd1   : > { %786 = vmatmul.bf16.gmra.mxu0 %v1248_v61  ;;  %894 = vmatmul.bf16.gmra.mxu3 %v1280_v62  ;;  %v392_v61 = vld [vmem:[#allocation2 + $0x48] sm:$0xff] }
  0xd2   : > { %835 = vmatmul.bf16.gmra.mxu1 %v1252_v63 }
  0xd3   : > { %884 = vmatmul.bf16.gmra.mxu2 %v1256_v0 }
  0xfe   : > { %v762_v1 = vpop.f32.mrf.mxu0 }
  0xff   : > { %v811_v2 = vpop.f32.mrf.mxu1 }
 0x100   : > { %v812_v3 = vadd.f32 %v811_v2, %v762_v1 }
 0x104   : > { %v1989_v4 = vpop.f32.mrf.mxu3 }
 0x106   : > { %v860_v6 = vpop.f32.mrf.mxu2  ;;  %v764_v8 = vpop.f32.mrf.mxu0 }
 0x107   : > { %v861_v7 = vadd.f32 %v860_v6, %v812_v3  ;;  %v813_v9 = vpop.f32.mrf.mxu1  ;;  %v397_v6 = vld [vmem:[#allocation2 + $0x60] sm:$0xff] }
 0x108   : > { %v814_v11 = vadd.f32 %v813_v9, %v764_v8  ;;  %v393_v8 = vld [vmem:[#allocation2 + $0x40] sm:$0xff] }
 0x109   : > { %v900_v10 = vadd.f32 %v861_v7, %v385_v5 }
 0x10b   : > { %916 = vst [vmem:[#allocation2 + $0x30] sm:$0xff] %v900_v10 }
 0x10c   : > { %v1991_v12 = vpop.f32.mrf.mxu3 }
 0x10e   : > { %v862_v14 = vpop.f32.mrf.mxu2  ;;  %v767_v16 = vpop.f32.mrf.mxu0 }
 0x10f   : > { %v863_v15 = vadd.f32 %v862_v14, %v814_v11  ;;  %v816_v17 = vpop.f32.mrf.mxu1 }
 0x110   : > { %v817_v19 = vadd.f32 %v816_v17, %v767_v16 }
 0x111   : > { %v901_v18 = vadd.f32 %v863_v15, %v386_v13 }
 0x113   : > { %917 = vst [vmem:[#allocation2] sm:$0xff] %v901_v18 }
 0x114   : > { %v1993_v20 = vpop.f32.mrf.mxu3 }
 0x116   : > { %v865_v22 = vpop.f32.mrf.mxu2  ;;  %v769_v24 = vpop.f32.mrf.mxu0 }
 0x117   : > { %v866_v23 = vadd.f32 %v865_v22, %v817_v19  ;;  %v818_v25 = vpop.f32.mrf.mxu1  ;;  %v398_v19 = vld [vmem:[#allocation2 + $0x70] sm:$0xff]  ;;  %v394_v22 = vld [vmem:[#allocation2 + $0x20] sm:$0xff] }
 0x118   : > { %v819_v27 = vadd.f32 %v818_v25, %v769_v24 }
 0x119   : > { %v902_v26 = vadd.f32 %v866_v23, %v387_v21 }
 0x11b   : > { %918 = vst [vmem:[#allocation2 + $0x58] sm:$0xff] %v902_v26 }
 0x11c   : > { %v1995_v28 = vpop.f32.mrf.mxu3 }
 0x11e   : > { %v867_v30 = vpop.f32.mrf.mxu2  ;;  %v772_v32 = vpop.f32.mrf.mxu0 }
 0x11f   : > { %v868_v31 = vadd.f32 %v867_v30, %v819_v27  ;;  %v821_v33 = vpop.f32.mrf.mxu1 }
 0x120   : > { %v822_v35 = vadd.f32 %v821_v33, %v772_v32  ;;  %v399_v32 = vld [vmem:[#allocation2 + $0x78] sm:$0xff] }
 0x121   : > { %v903_v34 = vadd.f32 %v868_v31, %v388_v29 }
 0x123   : > { %919 = vst [vmem:[#allocation2 + $0x18] sm:$0xff] %v903_v34  ;;  %v395_v34 = vld [vmem:[#allocation2 + $0x10] sm:$0xff] }
 0x124   : > { %v841_v36 = vpop.f32.mrf.mxu3 }
 0x125   : > { %v842_v5 = vadd.f32 %v841_v36, %v1989_v4 }
 0x126   : > { %v870_v39 = vpop.f32.mrf.mxu2  ;;  %v774_v40 = vpop.f32.mrf.mxu0 }
 0x127   : > { %v871_v38 = vadd.f32 %v870_v39, %v822_v35  ;;  %v823_v41 = vpop.f32.mrf.mxu1 }
 0x128   : > { %v824_v43 = vadd.f32 %v823_v41, %v774_v40 }
 0x129   : > { %v904_v42 = vadd.f32 %v871_v38, %v389_v37 }
 0x12b   : > { %920 = vst [vmem:[#allocation2 + $0x50] sm:$0xff] %v904_v42 }
 0x12c   : > { %v843_v44 = vpop.f32.mrf.mxu3 }
 0x12d   : > { %v844_v17 = vadd.f32 %v843_v44, %v1991_v12 }
 0x12e   : > { %v872_v46 = vpop.f32.mrf.mxu2  ;;  %v777_v48 = vpop.f32.mrf.mxu0 }
 0x12f   : > { %v873_v47 = vadd.f32 %v872_v46, %v824_v43  ;;  %v826_v49 = vpop.f32.mrf.mxu1  ;;  %v400_v43 = vld [vmem:[#allocation2 + $0x28] sm:$0xff] }
 0x130   : > { %v827_v51 = vadd.f32 %v826_v49, %v777_v48 }
 0x131   : > { %v905_v50 = vadd.f32 %v873_v47, %v390_v45  ;;  %v396_v45 = vld [vmem:[#allocation2 + $0x38] sm:$0xff] }
 0x133   : > { %921 = vst [vmem:[#allocation2 + $0x68] sm:$0xff] %v905_v50 }
 0x134   : > { %v846_v52 = vpop.f32.mrf.mxu3 }
 0x135   : > { %v847_v31 = vadd.f32 %v846_v52, %v1993_v20 }
 0x136   : > { %v875_v54 = vpop.f32.mrf.mxu2  ;;  %v779_v57 = vpop.f32.mrf.mxu0 }
 0x137   : > { %v876_v55 = vadd.f32 %v875_v54, %v827_v51  ;;  %v828_v56 = vpop.f32.mrf.mxu1 }
 0x138   : > { %v829_v59 = vadd.f32 %v828_v56, %v779_v57 }
 0x139   : > { %v906_v58 = vadd.f32 %v876_v55, %v391_v53 }
 0x13b   : > { %922 = vst [vmem:[#allocation2 + $0x8] sm:$0xff] %v906_v58 }
 0x13c   : > { %v848_v60 = vpop.f32.mrf.mxu3 }
 0x13d   : > { %v849_v41 = vadd.f32 %v848_v60, %v1995_v28 }
 0x13e   : > { %v877_v62 = vpop.f32.mrf.mxu2  ;;  %v782_v0 = vpop.f32.mrf.mxu0 }
 0x13f   : > { %v878_v63 = vadd.f32 %v877_v62, %v829_v59  ;;  %v831_v1 = vpop.f32.mrf.mxu1 }
 0x140   : > { %v832_v3 = vadd.f32 %v831_v1, %v782_v0 }
 0x141   : > { %v907_v2 = vadd.f32 %v878_v63, %v392_v61 }
 0x143   : > { %923 = vst [vmem:[#allocation2 + $0x48] sm:$0xff] %v907_v2 }
 0x144   : > { %v890_v7 = vpop.f32.mrf.mxu3 }
 0x145   : > { %v891_v10 = vadd.f32 %v890_v7, %v842_v5 }
 0x146   : > { %v880_v9 = vpop.f32.mrf.mxu2  ;;  %v784_v13 = vpop.f32.mrf.mxu0 }
 0x147   : > { %v881_v11 = vadd.f32 %v880_v9, %v832_v3  ;;  %v912_v14 = vadd.f32 %v891_v10, %v397_v6  ;;  %v833_v15 = vpop.f32.mrf.mxu1 }
 0x148   : > { %v834_v18 = vadd.f32 %v833_v15, %v784_v13 }
 0x149   : > { %v908_v16 = vadd.f32 %v881_v11, %v393_v8  ;;  %928 = vst [vmem:[#allocation2 + $0x60] sm:$0xff] %v912_v14 }
 0x14b   : > { %924 = vst [vmem:[#allocation2 + $0x40] sm:$0xff] %v908_v16 }
 0x14c   : > { %v892_v21 = vpop.f32.mrf.mxu3 }
 0x14d   : > { %v893_v4 = vadd.f32 %v892_v21, %v844_v17 }
 0x14e   : > { %v882_v23 = vpop.f32.mrf.mxu2  ;;  %v787_v26 = vpop.f32.mrf.mxu0 }
 0x14f   : > { %v883_v24 = vadd.f32 %v882_v23, %v834_v18  ;;  %v913_v25 = vadd.f32 %v893_v4, %v398_v19  ;;  %v836_v27 = vpop.f32.mrf.mxu1 }
 0x150   : > { %v837_v30 = vadd.f32 %v836_v27, %v787_v26 }
 0x151   : > { %v909_v29 = vadd.f32 %v883_v24, %v394_v22  ;;  %929 = vst [vmem:[#allocation2 + $0x70] sm:$0xff] %v913_v25 }
 0x153   : > { %925 = vst [vmem:[#allocation2 + $0x20] sm:$0xff] %v909_v29 }
 0x154   : > { %v895_v33 = vpop.f32.mrf.mxu3 }
 0x155   : > { %v896_v35 = vadd.f32 %v895_v33, %v847_v31 }
 0x156   : > { %v885_v12 = vpop.f32.mrf.mxu2  ;;  %v789_v38 = vpop.f32.mrf.mxu0 }
 0x157   : > { %v886_v36 = vadd.f32 %v885_v12, %v837_v30  ;;  %v914_v37 = vadd.f32 %v896_v35, %v399_v32  ;;  %v838_v40 = vpop.f32.mrf.mxu1 }
 0x158   : > { %v839_v42 = vadd.f32 %v838_v40, %v789_v38 }
 0x159   : > { %v910_v39 = vadd.f32 %v886_v36, %v395_v34  ;;  %930 = vst [vmem:[#allocation2 + $0x78] sm:$0xff] %v914_v37 }
 0x15b   : > { %926 = vst [vmem:[#allocation2 + $0x10] sm:$0xff] %v910_v39 }
 0x15c   : > { %v897_v44 = vpop.f32.mrf.mxu3 }
 0x15d   : > { %v898_v20 = vadd.f32 %v897_v44, %v849_v41 }
 0x15e   : > { %v887_v46 = vpop.f32.mrf.mxu2 }
 0x15f   : > { %v888_v47 = vadd.f32 %v887_v46, %v839_v42  ;;  %v915_v48 = vadd.f32 %v898_v20, %v400_v43  ;;  %935 = sbr.rel (%p1377_p1) target bundleno = 372 (0x174), region = 74 }
 0x161   : > { %v911_v49 = vadd.f32 %v888_v47, %v396_v45  ;;  %931 = vst [vmem:[#allocation2 + $0x28] sm:$0xff] %v915_v48 }
 0x163   : > { %927 = vst [vmem:[#allocation2 + $0x38] sm:$0xff] %v911_v49 }
 0x164   : > { %v936_v50 = vld [vmem:[#allocation2 + $0x30] sm:$0xff]  ;;  %v937_v51 = vld [vmem:[#allocation2] sm:$0xff]  ;;  %v938_v53 = vld [vmem:[#allocation2 + $0x58] sm:$0xff] }
 0x165   : > { %v1570_v52 = vld [vmem:[#allocation6] ss:$0 sm:$0xff]  ;;  %v939_v54 = vld [vmem:[#allocation2 + $0x18] sm:$0xff]  ;;  %v940_v28 = vld [vmem:[#allocation2 + $0x50] sm:$0xff] }
 0x166   : > { %v941_v55 = vld [vmem:[#allocation2 + $0x68] sm:$0xff]  ;;  %v956_v56 = vadd.f32 %v1570_v52, %v936_v50  ;;  %v957_v58 = vadd.f32 %v1570_v52, %v937_v51  ;;  %v958_v59 = vadd.f32 %v1570_v52, %v938_v53  ;;  %v959_v60 = vadd.f32 %v1570_v52, %v939_v54  ;;  %v944_v2 = vld [vmem:[#allocation2 + $0x40] sm:$0xff]  ;;  %v946_v9 = vld [vmem:[#allocation2 + $0x10] sm:$0xff] }
 0x167   : > { %v942_v57 = vld [vmem:[#allocation2 + $0x8] sm:$0xff]  ;;  %v960_v62 = vadd.f32 %v1570_v52, %v940_v28  ;;  %v961_v63 = vadd.f32 %v1570_v52, %v941_v55  ;;  %v945_v3 = vld [vmem:[#allocation2 + $0x20] sm:$0xff]  ;;  %v949_v17 = vld [vmem:[#allocation2 + $0x70] sm:$0xff]  ;;  %v964_v21 = vadd.f32 %v1570_v52, %v944_v2  ;;  %v966_v26 = vadd.f32 %v1570_v52, %v946_v9 }
 0x168   : > { %v943_v61 = vld [vmem:[#allocation2 + $0x48] sm:$0xff]  ;;  %v962_v0 = vadd.f32 %v1570_v52, %v942_v57  ;;  %v972_v5 = vmax.f32 %v956_v56, 0.0  ;;  %v973_v6 = vmax.f32 %v957_v58, 0.0  ;;  %v974_v7 = vmax.f32 %v958_v59, 0.0  ;;  %v948_v16 = vld [vmem:[#allocation2 + $0x60] sm:$0xff]  ;;  %v950_v23 = vld [vmem:[#allocation2 + $0x78] sm:$0xff] }
 0x169   : > { %v963_v1 = vadd.f32 %v1570_v52, %v943_v61  ;;  %v975_v8 = vmax.f32 %v959_v60, 0.0  ;;  %v976_v11 = vmax.f32 %v960_v62, 0.0  ;;  %v977_v13 = vmax.f32 %v961_v63, 0.0  ;;  %v951_v4 = vld [vmem:[#allocation2 + $0x28] sm:$0xff] }
 0x16a   : > { %v947_v10 = vld [vmem:[#allocation2 + $0x38] sm:$0xff]  ;;  %v978_v14 = vmax.f32 %v962_v0, 0.0  ;;  %v1435_v18 = vpack.c.bf16 %v973_v6, %v972_v5  ;;  %v965_v22 = vadd.f32 %v1570_v52, %v945_v3  ;;  %v980_v29 = vmax.f32 %v964_v21, 0.0 }
 0x16b   : > { %v979_v15 = vmax.f32 %v963_v1, 0.0  ;;  %v1440_v19 = vpack.c.bf16 %v975_v8, %v974_v7  ;;  %v1445_v24 = vpack.c.bf16 %v977_v13, %v976_v11  ;;  %v967_v27 = vadd.f32 %v1570_v52, %v947_v10 }
 0x16c   : > { %1436 = vst [vmem:[%s2047_s3] sm:$0xff] %v1435_v18   ;;  %v981_v30 = vmax.f32 %v965_v22, 0.0  ;;  %v968_v31 = vadd.f32 %v1570_v52, %v948_v16  ;;  %v969_v32 = vadd.f32 %v1570_v52, %v949_v17  ;;  %v982_v33 = vmax.f32 %v966_v26, 0.0 }
 0x16d   : > { %v1450_v25 = vpack.c.bf16 %v979_v15, %v978_v14  ;;  %1472 = vst [vmem:[%s2047_s3 + $0x8] sm:$0xff] %v1440_v19   ;;  %v983_v34 = vmax.f32 %v967_v27, 0.0  ;;  %v970_v12 = vadd.f32 %v1570_v52, %v950_v23  ;;  %v971_v35 = vadd.f32 %v1570_v52, %v951_v4 }
 0x16e   : > { %1473 = vst [vmem:[%s2047_s3 + $0x10] sm:$0xff] %v1445_v24   ;;  %v1455_v36 = vpack.c.bf16 %v981_v30, %v980_v29  ;;  %v984_v37 = vmax.f32 %v968_v31, 0.0  ;;  %v985_v39 = vmax.f32 %v969_v32, 0.0 }
 0x16f   : > { %1474 = vst [vmem:[%s2047_s3 + $0x18] sm:$0xff] %v1450_v25   ;;  %v1460_v38 = vpack.c.bf16 %v983_v34, %v982_v33  ;;  %v986_v40 = vmax.f32 %v970_v12, 0.0  ;;  %v987_v41 = vmax.f32 %v971_v35, 0.0 }
 0x170   : > { %1475 = vst [vmem:[%s2047_s3 + $0x20] sm:$0xff] %v1455_v36   ;;  %v1465_v42 = vpack.c.bf16 %v985_v39, %v984_v37 }
 0x171   : > { %1476 = vst [vmem:[%s2047_s3 + $0x28] sm:$0xff] %v1460_v38   ;;  %v1470_v43 = vpack.c.bf16 %v987_v41, %v986_v40 }
 0x172   : > { %1477 = vst [vmem:[%s2047_s3 + $0x30] sm:$0xff] %v1465_v42  }
 0x173   : > { %1478 = vst [vmem:[%s2047_s3 + $0x38] sm:$0xff] %v1470_v43  }
 0x174 PF: > { %s17_s17 = sadd.s32 1, %s1683_s17   ;;  %s2052_s12 = smov %s1667_s13 }
 0x175   : > { %p14_p2 = scmp.ge.s32.totalorder %s17_s17, 5   ;;  %s2053_s13 = smov %s1671_s14 }
 0x176   : > { %s2054_s14 = smov %s1765_s25  ;;  %s2055_s15 = smov %s1679_s16 }
 0x177   : > { %s2056_s16 = smov %s2058_s19  ;;  %16 = sbr.rel (!%p14_p2) target bundleno = 5 (0x5), region = 125 }
 0x17c   :  { %1048 = vsyncpa [#allocation5], 1 }
 0x17d   :  { %1050 = vsyncpa [#allocation5 + $0x1], 1 }
 0x17e   :  { %1051 = vsyncpa [#allocation7], 1 }

// kernel: resnet18_forward.25
= control target key start
LH: loop header
LB: loop body
LE: loop exit
PB: predicated region body
PF: predicated region fallthrough
CT: control target
= control target key end

     0   :  { %9 = vsyncpa [#allocation5], 0  ;;  %s2257_s0 = inlined_call_operand.vmem [shape: bf16[128,1152], index: 0, kind: input, shape index: {}]   ;;  %s2258_s1 = inlined_call_operand.hbm [shape: bf16[1152,128], index: 1, kind: input, shape index: {}]   ;;  %s2259_s2 = inlined_call_operand.hbm [shape: f32[1,128], index: 2, kind: input, shape index: {}]   ;;  %s2260_s3 = inlined_call_operand.vmem [shape: bf16[128,128], index: 3, kind: input, shape index: {}]   ;;  %s2261_s4 = inlined_call_operand.vmem [shape: bf16[128,128], index: 4, kind: output, shape index: {}]  }
   0x1   :  { %11 = vsyncpa [#allocation5 + $0x1], 0 }
   0x2   :  { %12 = vsyncpa [#allocation7], 0  ;;  %s1880_s15 = smov 0   ;;  %s1882_s16 = smov 0  }
   0x3   :  { %s1884_s17 = smov 0   ;;  %s1886_s18 = smov 0  }
   0x4   :  { %s1888_s19 = smov 0   ;;  %s1890_s20 = smov 0  }
   0x5 LB: > { %s1270_s21 = sadd.s32 4294967295, %s1849_s20   ;;  %s30_s22 = sadd.s32 1, %s1845_s19  ;;  %s1849_s20 = sphi %s1890_s20, %s18_s20   ;;  %s1845_s19 = sphi %s1888_s19, %s2270_s19   ;;  %s1841_s18 = sphi %s1886_s18, %s2269_s18   ;;  %s1837_s17 = sphi %s1884_s17, %s2268_s17   ;;  %s1833_s16 = sphi %s1882_s16, %s2267_s16   ;;  %s1829_s15 = sphi %s1880_s15, %s2266_s15  }
   0x6   : > { %p31_p0 = scmp.ge.s32.totalorder %s30_s22, 3  ;;  %s46_s23 = sadd.s32 1, %s1837_s17 }
   0x7   : > { %p53_p1 = scmp.ne.s32.totalorder %s1837_s17, %s1833_s16  ;;  %p54_p2 = scmp.eq.s32.totalorder %s1849_s20, 0 }
   0x8   : > { %s2272_s22 = smov (%p31_p0, %s30_s22), 0  ;;  %p87_p4 = scmp.ne.s32.totalorder %s1833_s16, %s1829_s15 }
   0x9   : > { %p1916_p3 = por %p54_p2, %p53_p1  ;;  %s42_s25 = ssub.s32 %s1845_s19, %s2272_s22 }
   0xa   : > { %p1923_p5 = scmp.eq.s32.totalorder %s1270_s21, 0  ;;  %p44_p6 = scmp.eq.s32.totalorder %s42_s25, 0 }
   0xb   : > { %p1271_p7 = scmp.ge.s32.totalorder %s1849_s20, 1  ;;  %p180_p9 = scmp.lt.s32.totalorder %s1849_s20, 4 }
   0xc   : > { %p1930_p8 = por %p1923_p5, %p87_p4  ;;  %s193_s6 = sshll.u32 %s2259_s2, 4  ;;  %s194_s6 = int_to_ptr.hbm [resolvable:$true] %s193_s6 }
   0xd   : > { %s1936_s28 = scalar_select %p44_p6, %s1837_s17, %s46_s23  }
   0xe   : > { %p1938_p10 = pnand %p1271_p7, %p180_p9  ;;  %s1851_s7 = smov [#allocation6]  }
   0xf   : > { %s195_s8 = sshll.u32 %s1851_s7, 4  ;;  %p1274_p13 = scmp.ge.s32.totalorder %s1849_s20, 3  ;;  %s196_s8 = int_to_ptr.vmem [resolvable:$true] %s195_s8 }
  0x10   : > { %p1678_p11 = pneg %p1938_p10 }
  0x11   : > { %214 = sbr.rel (%p1274_p13) target bundleno = 65 (0x41), region = 24 }
  0x12   : > { %p1679_p12 = pnand %p1678_p11, %p1923_p5 }
  0x14   : > { %1681 = dma.hbm_to_vmem [thread:$0]  (!%p1679_p12), %s194_s6, 16, %s196_s8, [#allocation7]  }
  0x16   : > { %217 = sbr.rel (!%p1916_p3) target bundleno = 59 (0x3b), region = 28  ;;  %s219_s9 = sand.u32 (%p1916_p3), 1, %s1837_s17  }
  0x17   : > { %s1509_s10 = smul.u32 (%p1916_p3), 12, %s1845_s19 }
  0x18   : > { %s1669_s11 = smul.u32 (%p1916_p3), 192, %s219_s9 }
  0x19   : > { %s1957_s14 = scalar_lea.vmem (%p1916_p3), %s2257_s0, %s1509_s10 }
  0x1a   : > { %v242_v0 = vld [vmem:[%s1957_s14] sm:$0xff] (%p1916_p3)  ;;  %v246_v2 = vld [vmem:[%s1957_s14 + $0x48] sm:$0xff] (%p1916_p3)  ;;  %s1962_s15 = scalar_lea.vmem (%p1916_p3), [#allocation3], %s1669_s11  ;;  %v250_v4 = vld [vmem:[%s1957_s14 + $0x90] sm:$0xff] (%p1916_p3) }
  0x1b   : > { %v244_v1 = vld [vmem:[%s1957_s14 + $0x24] sm:$0xff]  ;;  %243 = vst [vmem:[%s1962_s15] sm:$0xff] %v242_v0  ;;  %v248_v3 = vld [vmem:[%s1957_s14 + $0x6c] sm:$0xff]  ;;  %v252_v5 = vld [vmem:[%s1957_s14 + $0xb4] sm:$0xff] }
  0x1c   : > { %245 = vst [vmem:[%s1962_s15 + $0xc] sm:$0xff] %v244_v1  ;;  %v254_v6 = vld [vmem:[%s1957_s14 + $0xd8] sm:$0xff]  ;;  %v258_v8 = vld [vmem:[%s1957_s14 + $0x120] sm:$0xff]  ;;  %v262_v10 = vld [vmem:[%s1957_s14 + $0x168] sm:$0xff] }
  0x1d   : > { %247 = vst [vmem:[%s1962_s15 + $0x18] sm:$0xff] %v246_v2  ;;  %v256_v7 = vld [vmem:[%s1957_s14 + $0xfc] sm:$0xff]  ;;  %v260_v9 = vld [vmem:[%s1957_s14 + $0x144] sm:$0xff]  ;;  %v264_v11 = vld [vmem:[%s1957_s14 + $0x18c] sm:$0xff] }
  0x1e   : > { %249 = vst [vmem:[%s1962_s15 + $0x24] sm:$0xff] %v248_v3  ;;  %v266_v12 = vld [vmem:[%s1957_s14 + $0x1b0] sm:$0xff]  ;;  %v270_v14 = vld [vmem:[%s1957_s14 + $0x1f8] sm:$0xff]  ;;  %v1276_v16 = vld [vmem:[%s1957_s14 + $0x8] sm:$0xf] }
  0x1f   : > { %251 = vst [vmem:[%s1962_s15 + $0x30] sm:$0xff] %v250_v4  ;;  %v268_v13 = vld [vmem:[%s1957_s14 + $0x1d4] sm:$0xff]  ;;  %v272_v15 = vld [vmem:[%s1957_s14 + $0x21c] sm:$0xff]  ;;  %v1278_v17 = vld [vmem:[%s1957_s14 + $0x2c] sm:$0xf] }
  0x20   : > { %253 = vst [vmem:[%s1962_s15 + $0x3c] sm:$0xff] %v252_v5  ;;  %v1280_v18 = vld [vmem:[%s1957_s14 + $0x50] sm:$0xf]  ;;  %v1282_v19 = vld [vmem:[%s1957_s14 + $0x74] sm:$0xf] }
  0x21   : > { %255 = vst [vmem:[%s1962_s15 + $0x48] sm:$0xff] %v254_v6  ;;  %v1284_v20 = vld [vmem:[%s1957_s14 + $0x98] sm:$0xf]  ;;  %v1286_v21 = vld [vmem:[%s1957_s14 + $0xbc] sm:$0xf] }
  0x22   : > { %257 = vst [vmem:[%s1962_s15 + $0x54] sm:$0xff] %v256_v7  ;;  %v1288_v22 = vld [vmem:[%s1957_s14 + $0xe0] sm:$0xf]  ;;  %v1290_v23 = vld [vmem:[%s1957_s14 + $0x104] sm:$0xf] }
  0x23   : > { %259 = vst [vmem:[%s1962_s15 + $0x60] sm:$0xff] %v258_v8  ;;  %v1292_v24 = vld [vmem:[%s1957_s14 + $0x128] sm:$0xf]  ;;  %v1294_v25 = vld [vmem:[%s1957_s14 + $0x14c] sm:$0xf] }
  0x24   : > { %261 = vst [vmem:[%s1962_s15 + $0x6c] sm:$0xff] %v260_v9  ;;  %v1296_v26 = vld [vmem:[%s1957_s14 + $0x170] sm:$0xf]  ;;  %v1298_v27 = vld [vmem:[%s1957_s14 + $0x194] sm:$0xf] }
  0x25   : > { %263 = vst [vmem:[%s1962_s15 + $0x78] sm:$0xff] %v262_v10  ;;  %v1300_v28 = vld [vmem:[%s1957_s14 + $0x1b8] sm:$0xf]  ;;  %v1302_v29 = vld [vmem:[%s1957_s14 + $0x1dc] sm:$0xf] }
  0x26   : > { %265 = vst [vmem:[%s1962_s15 + $0x84] sm:$0xff] %v264_v11  ;;  %v1304_v30 = vld [vmem:[%s1957_s14 + $0x200] sm:$0xf]  ;;  %v1306_v31 = vld [vmem:[%s1957_s14 + $0x224] sm:$0xf] }
  0x27   : > { %267 = vst [vmem:[%s1962_s15 + $0x90] sm:$0xff] %v266_v12 }
  0x28   : > { %269 = vst [vmem:[%s1962_s15 + $0x9c] sm:$0xff] %v268_v13 }
  0x29   : > { %271 = vst [vmem:[%s1962_s15 + $0xa8] sm:$0xff] %v270_v14 }
  0x2a   : > { %273 = vst [vmem:[%s1962_s15 + $0xb4] sm:$0xff] %v272_v15 }
  0x2b   : > { %1277 = vst [vmem:[%s1962_s15 + $0x8] sm:$0xf] %v1276_v16 }
  0x2c   : > { %1279 = vst [vmem:[%s1962_s15 + $0x14] sm:$0xf] %v1278_v17 }
  0x2d   : > { %1281 = vst [vmem:[%s1962_s15 + $0x20] sm:$0xf] %v1280_v18 }
  0x2e   : > { %1283 = vst [vmem:[%s1962_s15 + $0x2c] sm:$0xf] %v1282_v19 }
  0x2f   : > { %1285 = vst [vmem:[%s1962_s15 + $0x38] sm:$0xf] %v1284_v20 }
  0x30   : > { %1287 = vst [vmem:[%s1962_s15 + $0x44] sm:$0xf] %v1286_v21 }
  0x31   : > { %1289 = vst [vmem:[%s1962_s15 + $0x50] sm:$0xf] %v1288_v22 }
  0x32   : > { %1291 = vst [vmem:[%s1962_s15 + $0x5c] sm:$0xf] %v1290_v23 }
  0x33   : > { %1293 = vst [vmem:[%s1962_s15 + $0x68] sm:$0xf] %v1292_v24 }
  0x34   : > { %1295 = vst [vmem:[%s1962_s15 + $0x74] sm:$0xf] %v1294_v25 }
  0x35   : > { %1297 = vst [vmem:[%s1962_s15 + $0x80] sm:$0xf] %v1296_v26 }
  0x36   : > { %1299 = vst [vmem:[%s1962_s15 + $0x8c] sm:$0xf] %v1298_v27 }
  0x37   : > { %1301 = vst [vmem:[%s1962_s15 + $0x98] sm:$0xf] %v1300_v28 }
  0x38   : > { %1303 = vst [vmem:[%s1962_s15 + $0xa4] sm:$0xf] %v1302_v29 }
  0x39   : > { %1305 = vst [vmem:[%s1962_s15 + $0xb0] sm:$0xf] %v1304_v30 }
  0x3a   : > { %1307 = vst [vmem:[%s1962_s15 + $0xbc] sm:$0xf] %v1306_v31 }
  0x3b PF: > { %s320_s21 = sand.u32 1, %s1837_s17   ;;  %s1510_s23 = smul.u32 192, %s1845_s19 }
  0x3c   : > { %s1670_s25 = smul.u32 192, %s320_s21  ;;  %s321_s10 = scalar_lea.sflag [#allocation5], %s320_s21 }
  0x3d   : > { %s330_s6 = scalar_lea.hbm %s2258_s1, %s1510_s23  ;;  %s1852_s11 = smov 64  }
  0x3e   : > { %s331_s7 = sshll.u32 %s330_s6, 4  ;;  %s324_s8 = scalar_lea.vmem [#allocation4], %s1670_s25  ;;  %s332_s7 = int_to_ptr.hbm [resolvable:$true] %s331_s7 }
  0x3f   : > { %s333_s9 = sshll.u32 %s324_s8, 4  ;;  %s1853_s12 = smov 4   ;;  %s334_s9 = int_to_ptr.vmem [resolvable:$true] %s333_s9 }
  0x40   : > { %1674 = dma.hbm_to_vmem [thread:$0]  (%p1916_p3), %s332_s7, 3072, %s334_s9, %s321_s10, %s1852_s11, %s1852_s11, %s1853_s12  }
  0x41 PF: > { %345 = sbr.rel (%p1938_p10) target bundleno = 382 (0x17e), region = 58  ;;  %s348_s13 = sand.u32 (!%p1938_p10), 1, %s1833_s16  }
  0x42   : > { %s1671_s14 = smul.u32 (!%p1938_p10), 192, %s348_s13  ;;  %s355_s23 = scalar_lea.sflag (!%p1938_p10), [#allocation5], %s348_s13 }
  0x44   : > { %s2035_s15 = scalar_lea.vmem (!%p1938_p10), [#allocation3], %s1671_s14  ;;  %s2037_s30 = scalar_lea.vmem (!%p1938_p10), [#allocation4], %s1671_s14 }
  0x46   : > { %1820 = dma.done.wait (%p1930_p8), %s355_s23, 3072  }
  0x47   : > { %1822 = vsyncadd (%p1930_p8), %s355_s23, 4294964224 }
  0x48   : > { %1824 = dma.done.wait (%p1923_p5), [#allocation7], 16  }
  0x49   : > { %1826 = vsyncadd (%p1923_p5), [#allocation7], 4294967280  ;;  %p1311_p0 = scmp.ne.s32.totalorder %s1841_s18, 0 }
  0x4b   : > { %428 = sbr.rel (%p1311_p0) target bundleno = 97 (0x61), region = 74 }
  0x50   : > { %v1854_v32 = vmov 0.0  }
  0x51   : > { %429 = vst [vmem:[#allocation2 + $0x30] sm:$0xff] %v1854_v32 }
  0x52   : > { %430 = vst [vmem:[#allocation2] sm:$0xff] %v1854_v32 }
  0x53   : > { %431 = vst [vmem:[#allocation2 + $0x58] sm:$0xff] %v1854_v32 }
  0x54   : > { %432 = vst [vmem:[#allocation2 + $0x18] sm:$0xff] %v1854_v32 }
  0x55   : > { %433 = vst [vmem:[#allocation2 + $0x50] sm:$0xff] %v1854_v32 }
  0x56   : > { %434 = vst [vmem:[#allocation2 + $0x68] sm:$0xff] %v1854_v32 }
  0x57   : > { %435 = vst [vmem:[#allocation2 + $0x8] sm:$0xff] %v1854_v32 }
  0x58   : > { %436 = vst [vmem:[#allocation2 + $0x48] sm:$0xff] %v1854_v32 }
  0x59   : > { %437 = vst [vmem:[#allocation2 + $0x40] sm:$0xff] %v1854_v32 }
  0x5a   : > { %438 = vst [vmem:[#allocation2 + $0x20] sm:$0xff] %v1854_v32 }
  0x5b   : > { %439 = vst [vmem:[#allocation2 + $0x10] sm:$0xff] %v1854_v32 }
  0x5c   : > { %440 = vst [vmem:[#allocation2 + $0x38] sm:$0xff] %v1854_v32 }
  0x5d   : > { %441 = vst [vmem:[#allocation2 + $0x60] sm:$0xff] %v1854_v32 }
  0x5e   : > { %442 = vst [vmem:[#allocation2 + $0x70] sm:$0xff] %v1854_v32 }
  0x5f   : > { %443 = vst [vmem:[#allocation2 + $0x78] sm:$0xff] %v1854_v32 }
  0x60   : > { %444 = vst [vmem:[#allocation2 + $0x28] sm:$0xff] %v1854_v32 }
  0x61 PF: > { %v1542_v33 = vld [vmem:[%s2037_s30 + $0x38] sm:$0xff]  ;;  %v1541_v36 = vld [vmem:[%s2037_s30 + $0x30] sm:$0xff]  ;;  %v1540_v39 = vld [vmem:[%s2037_s30 + $0x28] sm:$0xff]  ;;  %p1504_p1 = scmp.ne.s32.totalorder %s1841_s18, 2 }
  0x62   : > { %v2050_v34 = vld [vmem:[%s2037_s30 + $0x78] sm:$0xff]  ;;  %813 = vmatpush.bf16.msra.mxu0 %v1542_v33  ;;  %1645 = vmatpush.bf16.msra.mxu3 %v1542_v33  ;;  %v2059_v37 = vld [vmem:[%s2037_s30 + $0x70] sm:$0xff]  ;;  %v1548_v40 = vld [vmem:[%s2037_s30 + $0x68] sm:$0xff] }
  0x63   : > { %v2053_v35 = vld [vmem:[%s2037_s30 + $0xb8] sm:$0xff]  ;;  %862 = vmatpush.bf16.msra.mxu1 %v2050_v34  ;;  %v2062_v38 = vld [vmem:[%s2037_s30 + $0xb0] sm:$0xff]  ;;  %v2069_v41 = vld [vmem:[%s2037_s30 + $0xa8] sm:$0xff] }
  0x64   : > { %911 = vmatpush.bf16.msra.mxu2 %v2053_v35  ;;  %v1539_v42 = vld [vmem:[%s2037_s30 + $0x20] sm:$0xff]  ;;  %v1538_v45 = vld [vmem:[%s2037_s30 + $0x18] sm:$0xff]  ;;  %v1537_v48 = vld [vmem:[%s2037_s30 + $0x10] sm:$0xff] }
  0x65   : > { %v1547_v43 = vld [vmem:[%s2037_s30 + $0x60] sm:$0xff]  ;;  %v1546_v46 = vld [vmem:[%s2037_s30 + $0x58] sm:$0xff]  ;;  %v1545_v49 = vld [vmem:[%s2037_s30 + $0x50] sm:$0xff] }
  0x66   : > { %814 = vmatpush.bf16.msra.mxu0 %v1541_v36  ;;  %1646 = vmatpush.bf16.msra.mxu3 %v1541_v36  ;;  %v2075_v44 = vld [vmem:[%s2037_s30 + $0xa0] sm:$0xff]  ;;  %v2081_v47 = vld [vmem:[%s2037_s30 + $0x98] sm:$0xff]  ;;  %v2087_v50 = vld [vmem:[%s2037_s30 + $0x90] sm:$0xff] }
  0x67   : > { %863 = vmatpush.bf16.msra.mxu1 %v2059_v37  ;;  %v1536_v51 = vld [vmem:[%s2037_s30 + $0x8] sm:$0xff]  ;;  %v1535_v54 = vld [vmem:[%s2037_s30] sm:$0xff]  ;;  %v1386_v59 = vld [vmem:[%s2035_s15 + $0x90] sm:$0xf] }
  0x68   : > { %912 = vmatpush.bf16.msra.mxu2 %v2062_v38  ;;  %v1544_v52 = vld [vmem:[%s2037_s30 + $0x48] sm:$0xff]  ;;  %v1543_v55 = vld [vmem:[%s2037_s30 + $0x40] sm:$0xff]  ;;  %v1530_v60 = vld [vmem:[%s2035_s15 + $0x98] sm:$0xf0] }
  0x69   : > { %v2093_v53 = vld [vmem:[%s2037_s30 + $0x88] sm:$0xff]  ;;  %v2098_v56 = vld [vmem:[%s2037_s30 + $0x80] sm:$0xff]  ;;  %v1316_v62 = vld [vmem:[%s2035_s15 + $0xc] sm:$0xf0]  ;;  %v1387_v2 = vor.u32 %v1530_v60, %v1386_v59 }
  0x6a   : > { %815 = vmatpush.bf16.msra.mxu0 %v1540_v39  ;;  %1647 = vmatpush.bf16.msra.mxu3 %v1540_v39  ;;  %v1314_v57 = vld [vmem:[%s2035_s15] sm:$0xf]  ;;  %v1512_v58 = vld [vmem:[%s2035_s15 + $0x8] sm:$0xf0]  ;;  %v1511_v61 = vld [vmem:[%s2035_s15 + $0x4] sm:$0xf] }
  0x6b   : > { %864 = vmatpush.bf16.msra.mxu1 %v1548_v40  ;;  %v1322_v63 = vld [vmem:[%s2035_s15 + $0x8] sm:$0xf]  ;;  %v1513_v0 = vld [vmem:[%s2035_s15 + $0x10] sm:$0xf0]  ;;  %v1315_v1 = vor.u32 %v1512_v58, %v1314_v57  ;;  %v1319_v3 = vor.u32 %v1511_v61, %v1316_v62  ;;  %v1326_v5 = vld [vmem:[%s2035_s15 + $0x18] sm:$0xf] }
  0x6c   : > { %913 = vmatpush.bf16.msra.mxu2 %v2069_v41  ;;  %v1323_v4 = vor.u32 %v1513_v0, %v1322_v63  ;;  %v1515_v6 = vld [vmem:[%s2035_s15 + $0x20] sm:$0xf0]  ;;  %v1398_v7 = vld [vmem:[%s2035_s15 + $0xa8] sm:$0xf]  ;;  %v1533_v8 = vld [vmem:[%s2035_s15 + $0xb0] sm:$0xf0] }
  0x6d   : > { %v1514_v9 = vld [vmem:[%s2035_s15 + $0x1c] sm:$0xf]  ;;  %v1328_v10 = vld [vmem:[%s2035_s15 + $0x24] sm:$0xf0]  ;;  %v1334_v11 = vld [vmem:[%s2035_s15 + $0x20] sm:$0xf]  ;;  %v1327_v13 = vor.u32 %v1515_v6, %v1326_v5  ;;  %v1399_v14 = vor.u32 %v1533_v8, %v1398_v7 }
  0x6e   : > { %816 = vmatpush.bf16.msra.mxu0 %v1539_v42  ;;  %1648 = vmatpush.bf16.msra.mxu3 %v1539_v42  ;;  %v1516_v12 = vld [vmem:[%s2035_s15 + $0x28] sm:$0xf0]  ;;  %v1331_v15 = vor.u32 %v1514_v9, %v1328_v10  ;;  %v1338_v17 = vld [vmem:[%s2035_s15 + $0x30] sm:$0xf]  ;;  %v1518_v18 = vld [vmem:[%s2035_s15 + $0x38] sm:$0xf0] }
  0x6f   : > { %865 = vmatpush.bf16.msra.mxu1 %v1547_v43  ;;  %v1335_v16 = vor.u32 %v1516_v12, %v1334_v11  ;;  %v1517_v19 = vld [vmem:[%s2035_s15 + $0x34] sm:$0xf]  ;;  %v1388_v21 = vld [vmem:[%s2035_s15 + $0x9c] sm:$0xf0]  ;;  %v1346_v23 = vld [vmem:[%s2035_s15 + $0x38] sm:$0xf]  ;;  %v1339_v25 = vor.u32 %v1518_v18, %v1338_v17 }
  0x70   : > { %914 = vmatpush.bf16.msra.mxu2 %v2075_v44  ;;  %v1529_v20 = vld [vmem:[%s2035_s15 + $0x94] sm:$0xf]  ;;  %v1340_v22 = vld [vmem:[%s2035_s15 + $0x3c] sm:$0xf0]  ;;  %v1519_v24 = vld [vmem:[%s2035_s15 + $0x40] sm:$0xf0] }
  0x71   : > { %v1391_v26 = vor.u32 %v1529_v20, %v1388_v21  ;;  %v1343_v27 = vor.u32 %v1517_v19, %v1340_v22  ;;  %v1347_v28 = vor.u32 %v1519_v24, %v1346_v23  ;;  %v1350_v29 = vld [vmem:[%s2035_s15 + $0x48] sm:$0xf]  ;;  %v1521_v30 = vld [vmem:[%s2035_s15 + $0x50] sm:$0xf0]  ;;  %v1520_v31 = vld [vmem:[%s2035_s15 + $0x4c] sm:$0xf] }
  0x72   : > { %817 = vmatpush.bf16.msra.mxu0 %v1538_v45  ;;  %1649 = vmatpush.bf16.msra.mxu3 %v1538_v45  ;;  %v1532_v32 = vld [vmem:[%s2035_s15 + $0xac] sm:$0xf]  ;;  %v1400_v33 = vld [vmem:[%s2035_s15 + $0xb4] sm:$0xf0]  ;;  %v1522_v36 = vld [vmem:[%s2035_s15 + $0x58] sm:$0xf0] }
  0x73   : > { %866 = vmatpush.bf16.msra.mxu1 %v1546_v46  ;;  %v1403_v39 = vor.u32 %v1532_v32, %v1400_v33  ;;  %v1524_v42 = vld [vmem:[%s2035_s15 + $0x68] sm:$0xf0]  ;;  %v1531_v45 = vld [vmem:[%s2035_s15 + $0xa0] sm:$0xf0]  ;;  %v1406_v57 = vld [vmem:[%s2035_s15 + $0xb0] sm:$0xf] }
  0x74   : > { %915 = vmatpush.bf16.msra.mxu2 %v2081_v47  ;;  %v1376_v58 = vld [vmem:[%s2035_s15 + $0x84] sm:$0xf0]  ;;  %v1382_v59 = vld [vmem:[%s2035_s15 + $0x80] sm:$0xf]  ;;  %v1528_v60 = vld [vmem:[%s2035_s15 + $0x88] sm:$0xf0] }
  0x75   : > { %v1383_v0 = vor.u32 %v1528_v60, %v1382_v59  ;;  %v445_v5 = vld [vmem:[#allocation2 + $0x30] sm:$0xff]  ;;  %v447_v21 = vld [vmem:[#allocation2 + $0x58] sm:$0xff] }
  0x76   : > { %818 = vmatpush.bf16.msra.mxu0 %v1537_v48  ;;  %1650 = vmatpush.bf16.msra.mxu3 %v1537_v48  ;;  %v1525_v48 = vld [vmem:[%s2035_s15 + $0x70] sm:$0xf0] }
  0x77   : > { %867 = vmatpush.bf16.msra.mxu1 %v1545_v49 }
  0x78   : > { %916 = vmatpush.bf16.msra.mxu2 %v2087_v50 }
  0x7a   : > { %819 = vmatpush.bf16.msra.mxu0 %v1536_v51  ;;  %1651 = vmatpush.bf16.msra.mxu3 %v1536_v51 }
  0x7b   : > { %868 = vmatpush.bf16.msra.mxu1 %v1544_v52 }
  0x7c   : > { %917 = vmatpush.bf16.msra.mxu2 %v2093_v53 }
  0x7e   : > { %820 = vmatpush.bf16.msra.mxu0 %v1535_v54  ;;  %1652 = vmatpush.bf16.msra.mxu3 %v1535_v54  ;;  %v1527_v54 = vld [vmem:[%s2035_s15 + $0x80] sm:$0xf0] }
  0x7f   : > { %869 = vmatpush.bf16.msra.mxu1 %v1543_v55 }
  0x80   : > { %918 = vmatpush.bf16.msra.mxu2 %v2098_v56 }
  0x81   : > { %821 = vmatmul.bf16.vlgmr.msra.gmra.mxu0 %v1315_v1  ;;  %851 = vmatmul.bf16.vlgmr.msra.gmra.mxu3 %v1387_v2 }
  0x82   : > { %1653 = vmatpush.bf16.msrb.mxu3 %v2050_v34  ;;  %870 = vmatmul.bf16.vlgmr.msra.gmra.mxu1 %v1319_v3  ;;  %v1352_v34 = vld [vmem:[%s2035_s15 + $0x54] sm:$0xf0] }
  0x83   : > { %919 = vmatmul.bf16.vlgmr.msra.gmra.mxu2 %v1323_v4 }
  0x86   : > { %1654 = vmatpush.bf16.msrb.mxu3 %v2059_v37  ;;  %v1351_v37 = vor.u32 %v1521_v30, %v1350_v29  ;;  %v448_v29 = vld [vmem:[#allocation2 + $0x18] sm:$0xff] }
  0x8a   : > { %1655 = vmatpush.bf16.msrb.mxu3 %v1548_v40 }
  0x8e   : > { %1656 = vmatpush.bf16.msrb.mxu3 %v1547_v43  ;;  %v1523_v43 = vld [vmem:[%s2035_s15 + $0x64] sm:$0xf] }
  0x91   : > { %826 = vmatmul.bf16.gmra.mxu0 %v1327_v13  ;;  %856 = vmatmul.bf16.gmra.mxu3 %v1399_v14  ;;  %v446_v13 = vld [vmem:[#allocation2] sm:$0xff] }
  0x92   : > { %1657 = vmatpush.bf16.msrb.mxu3 %v1546_v46  ;;  %875 = vmatmul.bf16.gmra.mxu1 %v1331_v15  ;;  %v1364_v46 = vld [vmem:[%s2035_s15 + $0x6c] sm:$0xf0] }
  0x93   : > { %924 = vmatmul.bf16.gmra.mxu2 %v1335_v16  ;;  %v1367_v51 = vor.u32 %v1523_v43, %v1364_v46 }
  0x96   : > { %1658 = vmatpush.bf16.msrb.mxu3 %v1545_v49 }
  0x9a   : > { %1659 = vmatpush.bf16.msrb.mxu3 %v1544_v52 }
  0x9e   : > { %1660 = vmatpush.bf16.msrb.mxu3 %v1543_v55  ;;  %v1526_v55 = vld [vmem:[%s2035_s15 + $0x7c] sm:$0xf] }
  0x9f   : > { %v1379_v63 = vor.u32 %v1526_v55, %v1376_v58 }
  0xa1   : > { %831 = vmatmul.bf16.gmra.mxu0 %v1339_v25  ;;  %900 = vmatmul.bf16.vlgmr.msrb.gmra.mxu3 %v1391_v26 }
  0xa2   : > { %1661 = vmatpush.bf16.msra.mxu3 %v2053_v35  ;;  %880 = vmatmul.bf16.gmra.mxu1 %v1343_v27  ;;  %v1358_v35 = vld [vmem:[%s2035_s15 + $0x50] sm:$0xf] }
  0xa3   : > { %929 = vmatmul.bf16.gmra.mxu2 %v1347_v28  ;;  %v1359_v40 = vor.u32 %v1522_v36, %v1358_v35 }
  0xa6   : > { %1662 = vmatpush.bf16.msra.mxu3 %v2062_v38  ;;  %v1355_v38 = vor.u32 %v1520_v31, %v1352_v34 }
  0xaa   : > { %1663 = vmatpush.bf16.msra.mxu3 %v2069_v41  ;;  %v1362_v41 = vld [vmem:[%s2035_s15 + $0x60] sm:$0xf] }
  0xab   : > { %v1363_v49 = vor.u32 %v1524_v42, %v1362_v41 }
  0xae   : > { %1664 = vmatpush.bf16.msra.mxu3 %v2075_v44  ;;  %v1394_v44 = vld [vmem:[%s2035_s15 + $0x98] sm:$0xf] }
  0xb1   : > { %836 = vmatmul.bf16.gmra.mxu0 %v1351_v37  ;;  %905 = vmatmul.bf16.gmra.mxu3 %v1403_v39  ;;  %v449_v37 = vld [vmem:[#allocation2 + $0x50] sm:$0xff] }
  0xb2   : > { %1665 = vmatpush.bf16.msra.mxu3 %v2081_v47  ;;  %885 = vmatmul.bf16.gmra.mxu1 %v1355_v38  ;;  %v1370_v47 = vld [vmem:[%s2035_s15 + $0x68] sm:$0xf] }
  0xb3   : > { %934 = vmatmul.bf16.gmra.mxu2 %v1359_v40  ;;  %v1371_v52 = vor.u32 %v1525_v48, %v1370_v47 }
  0xb6   : > { %1666 = vmatpush.bf16.msra.mxu3 %v2087_v50  ;;  %v1395_v50 = vor.u32 %v1531_v45, %v1394_v44  ;;  %v450_v45 = vld [vmem:[#allocation2 + $0x68] sm:$0xff] }
  0xba   : > { %1667 = vmatpush.bf16.msra.mxu3 %v2093_v53  ;;  %v1374_v53 = vld [vmem:[%s2035_s15 + $0x78] sm:$0xf] }
  0xbb   : > { %v1375_v61 = vor.u32 %v1527_v54, %v1374_v53  ;;  %v451_v53 = vld [vmem:[#allocation2 + $0x8] sm:$0xff] }
  0xbe   : > { %1668 = vmatpush.bf16.msra.mxu3 %v2098_v56  ;;  %v1534_v56 = vld [vmem:[%s2035_s15 + $0xb8] sm:$0xf0] }
  0xbf   : > { %v1407_v62 = vor.u32 %v1534_v56, %v1406_v57 }
  0xc1   : > { %841 = vmatmul.bf16.gmra.mxu0 %v1363_v49  ;;  %949 = vmatmul.bf16.vlgmr.msra.gmra.mxu3 %v1395_v50 }
  0xc2   : > { %890 = vmatmul.bf16.gmra.mxu1 %v1367_v51 }
  0xc3   : > { %939 = vmatmul.bf16.gmra.mxu2 %v1371_v52 }
  0xd1   : > { %846 = vmatmul.bf16.gmra.mxu0 %v1375_v61  ;;  %954 = vmatmul.bf16.gmra.mxu3 %v1407_v62  ;;  %v452_v61 = vld [vmem:[#allocation2 + $0x48] sm:$0xff] }
  0xd2   : > { %895 = vmatmul.bf16.gmra.mxu1 %v1379_v63 }
  0xd3   : > { %944 = vmatmul.bf16.gmra.mxu2 %v1383_v0 }
  0xfe   : > { %v822_v1 = vpop.f32.mrf.mxu0 }
  0xff   : > { %v871_v2 = vpop.f32.mrf.mxu1 }
 0x100   : > { %v872_v3 = vadd.f32 %v871_v2, %v822_v1 }
 0x104   : > { %v2160_v4 = vpop.f32.mrf.mxu3 }
 0x106   : > { %v920_v6 = vpop.f32.mrf.mxu2  ;;  %v824_v8 = vpop.f32.mrf.mxu0 }
 0x107   : > { %v921_v7 = vadd.f32 %v920_v6, %v872_v3  ;;  %v873_v9 = vpop.f32.mrf.mxu1  ;;  %v457_v6 = vld [vmem:[#allocation2 + $0x60] sm:$0xff] }
 0x108   : > { %v874_v11 = vadd.f32 %v873_v9, %v824_v8  ;;  %v453_v8 = vld [vmem:[#allocation2 + $0x40] sm:$0xff] }
 0x109   : > { %v960_v10 = vadd.f32 %v921_v7, %v445_v5 }
 0x10b   : > { %976 = vst [vmem:[#allocation2 + $0x30] sm:$0xff] %v960_v10 }
 0x10c   : > { %v2162_v12 = vpop.f32.mrf.mxu3 }
 0x10e   : > { %v922_v14 = vpop.f32.mrf.mxu2  ;;  %v827_v16 = vpop.f32.mrf.mxu0 }
 0x10f   : > { %v923_v15 = vadd.f32 %v922_v14, %v874_v11  ;;  %v876_v17 = vpop.f32.mrf.mxu1 }
 0x110   : > { %v877_v19 = vadd.f32 %v876_v17, %v827_v16 }
 0x111   : > { %v961_v18 = vadd.f32 %v923_v15, %v446_v13 }
 0x113   : > { %977 = vst [vmem:[#allocation2] sm:$0xff] %v961_v18 }
 0x114   : > { %v2164_v20 = vpop.f32.mrf.mxu3 }
 0x116   : > { %v925_v22 = vpop.f32.mrf.mxu2  ;;  %v829_v24 = vpop.f32.mrf.mxu0 }
 0x117   : > { %v926_v23 = vadd.f32 %v925_v22, %v877_v19  ;;  %v878_v25 = vpop.f32.mrf.mxu1  ;;  %v458_v19 = vld [vmem:[#allocation2 + $0x70] sm:$0xff]  ;;  %v454_v22 = vld [vmem:[#allocation2 + $0x20] sm:$0xff] }
 0x118   : > { %v879_v27 = vadd.f32 %v878_v25, %v829_v24 }
 0x119   : > { %v962_v26 = vadd.f32 %v926_v23, %v447_v21 }
 0x11b   : > { %978 = vst [vmem:[#allocation2 + $0x58] sm:$0xff] %v962_v26 }
 0x11c   : > { %v2166_v28 = vpop.f32.mrf.mxu3 }
 0x11e   : > { %v927_v30 = vpop.f32.mrf.mxu2  ;;  %v832_v32 = vpop.f32.mrf.mxu0 }
 0x11f   : > { %v928_v31 = vadd.f32 %v927_v30, %v879_v27  ;;  %v881_v33 = vpop.f32.mrf.mxu1 }
 0x120   : > { %v882_v35 = vadd.f32 %v881_v33, %v832_v32  ;;  %v459_v32 = vld [vmem:[#allocation2 + $0x78] sm:$0xff] }
 0x121   : > { %v963_v34 = vadd.f32 %v928_v31, %v448_v29 }
 0x123   : > { %979 = vst [vmem:[#allocation2 + $0x18] sm:$0xff] %v963_v34  ;;  %v455_v34 = vld [vmem:[#allocation2 + $0x10] sm:$0xff] }
 0x124   : > { %v901_v36 = vpop.f32.mrf.mxu3 }
 0x125   : > { %v902_v5 = vadd.f32 %v901_v36, %v2160_v4 }
 0x126   : > { %v930_v39 = vpop.f32.mrf.mxu2  ;;  %v834_v40 = vpop.f32.mrf.mxu0 }
 0x127   : > { %v931_v38 = vadd.f32 %v930_v39, %v882_v35  ;;  %v883_v41 = vpop.f32.mrf.mxu1 }
 0x128   : > { %v884_v43 = vadd.f32 %v883_v41, %v834_v40 }
 0x129   : > { %v964_v42 = vadd.f32 %v931_v38, %v449_v37 }
 0x12b   : > { %980 = vst [vmem:[#allocation2 + $0x50] sm:$0xff] %v964_v42 }
 0x12c   : > { %v903_v44 = vpop.f32.mrf.mxu3 }
 0x12d   : > { %v904_v17 = vadd.f32 %v903_v44, %v2162_v12 }
 0x12e   : > { %v932_v46 = vpop.f32.mrf.mxu2  ;;  %v837_v48 = vpop.f32.mrf.mxu0 }
 0x12f   : > { %v933_v47 = vadd.f32 %v932_v46, %v884_v43  ;;  %v886_v49 = vpop.f32.mrf.mxu1  ;;  %v460_v43 = vld [vmem:[#allocation2 + $0x28] sm:$0xff] }
 0x130   : > { %v887_v51 = vadd.f32 %v886_v49, %v837_v48 }
 0x131   : > { %v965_v50 = vadd.f32 %v933_v47, %v450_v45  ;;  %v456_v45 = vld [vmem:[#allocation2 + $0x38] sm:$0xff] }
 0x133   : > { %981 = vst [vmem:[#allocation2 + $0x68] sm:$0xff] %v965_v50 }
 0x134   : > { %v906_v52 = vpop.f32.mrf.mxu3 }
 0x135   : > { %v907_v31 = vadd.f32 %v906_v52, %v2164_v20 }
 0x136   : > { %v935_v54 = vpop.f32.mrf.mxu2  ;;  %v839_v57 = vpop.f32.mrf.mxu0 }
 0x137   : > { %v936_v55 = vadd.f32 %v935_v54, %v887_v51  ;;  %v888_v56 = vpop.f32.mrf.mxu1 }
 0x138   : > { %v889_v59 = vadd.f32 %v888_v56, %v839_v57 }
 0x139   : > { %v966_v58 = vadd.f32 %v936_v55, %v451_v53 }
 0x13b   : > { %982 = vst [vmem:[#allocation2 + $0x8] sm:$0xff] %v966_v58 }
 0x13c   : > { %v908_v60 = vpop.f32.mrf.mxu3 }
 0x13d   : > { %v909_v41 = vadd.f32 %v908_v60, %v2166_v28 }
 0x13e   : > { %v937_v62 = vpop.f32.mrf.mxu2  ;;  %v842_v0 = vpop.f32.mrf.mxu0 }
 0x13f   : > { %v938_v63 = vadd.f32 %v937_v62, %v889_v59  ;;  %v891_v1 = vpop.f32.mrf.mxu1 }
 0x140   : > { %v892_v3 = vadd.f32 %v891_v1, %v842_v0 }
 0x141   : > { %v967_v2 = vadd.f32 %v938_v63, %v452_v61 }
 0x143   : > { %983 = vst [vmem:[#allocation2 + $0x48] sm:$0xff] %v967_v2 }
 0x144   : > { %v950_v7 = vpop.f32.mrf.mxu3 }
 0x145   : > { %v951_v10 = vadd.f32 %v950_v7, %v902_v5 }
 0x146   : > { %v940_v9 = vpop.f32.mrf.mxu2  ;;  %v844_v13 = vpop.f32.mrf.mxu0 }
 0x147   : > { %v941_v11 = vadd.f32 %v940_v9, %v892_v3  ;;  %v972_v14 = vadd.f32 %v951_v10, %v457_v6  ;;  %v893_v15 = vpop.f32.mrf.mxu1 }
 0x148   : > { %v894_v18 = vadd.f32 %v893_v15, %v844_v13 }
 0x149   : > { %v968_v16 = vadd.f32 %v941_v11, %v453_v8  ;;  %988 = vst [vmem:[#allocation2 + $0x60] sm:$0xff] %v972_v14 }
 0x14b   : > { %984 = vst [vmem:[#allocation2 + $0x40] sm:$0xff] %v968_v16 }
 0x14c   : > { %v952_v21 = vpop.f32.mrf.mxu3 }
 0x14d   : > { %v953_v4 = vadd.f32 %v952_v21, %v904_v17 }
 0x14e   : > { %v942_v23 = vpop.f32.mrf.mxu2  ;;  %v847_v26 = vpop.f32.mrf.mxu0 }
 0x14f   : > { %v943_v24 = vadd.f32 %v942_v23, %v894_v18  ;;  %v973_v25 = vadd.f32 %v953_v4, %v458_v19  ;;  %v896_v27 = vpop.f32.mrf.mxu1 }
 0x150   : > { %v897_v30 = vadd.f32 %v896_v27, %v847_v26 }
 0x151   : > { %v969_v29 = vadd.f32 %v943_v24, %v454_v22  ;;  %989 = vst [vmem:[#allocation2 + $0x70] sm:$0xff] %v973_v25 }
 0x153   : > { %985 = vst [vmem:[#allocation2 + $0x20] sm:$0xff] %v969_v29 }
 0x154   : > { %v955_v33 = vpop.f32.mrf.mxu3 }
 0x155   : > { %v956_v35 = vadd.f32 %v955_v33, %v907_v31 }
 0x156   : > { %v945_v12 = vpop.f32.mrf.mxu2  ;;  %v849_v38 = vpop.f32.mrf.mxu0 }
 0x157   : > { %v946_v36 = vadd.f32 %v945_v12, %v897_v30  ;;  %v974_v37 = vadd.f32 %v956_v35, %v459_v32  ;;  %v898_v40 = vpop.f32.mrf.mxu1 }
 0x158   : > { %v899_v42 = vadd.f32 %v898_v40, %v849_v38 }
 0x159   : > { %v970_v39 = vadd.f32 %v946_v36, %v455_v34  ;;  %990 = vst [vmem:[#allocation2 + $0x78] sm:$0xff] %v974_v37 }
 0x15b   : > { %986 = vst [vmem:[#allocation2 + $0x10] sm:$0xff] %v970_v39 }
 0x15c   : > { %v957_v44 = vpop.f32.mrf.mxu3 }
 0x15d   : > { %v958_v20 = vadd.f32 %v957_v44, %v909_v41 }
 0x15e   : > { %v947_v46 = vpop.f32.mrf.mxu2 }
 0x15f   : > { %v948_v47 = vadd.f32 %v947_v46, %v899_v42  ;;  %v975_v48 = vadd.f32 %v958_v20, %v460_v43  ;;  %995 = sbr.rel (%p1504_p1) target bundleno = 382 (0x17e), region = 78 }
 0x161   : > { %v971_v49 = vadd.f32 %v948_v47, %v456_v45  ;;  %991 = vst [vmem:[#allocation2 + $0x28] sm:$0xff] %v975_v48 }
 0x163   : > { %987 = vst [vmem:[#allocation2 + $0x38] sm:$0xff] %v971_v49 }
 0x164   : > { %v996_v50 = vld [vmem:[#allocation2 + $0x30] sm:$0xff]  ;;  %v997_v51 = vld [vmem:[#allocation2] sm:$0xff]  ;;  %v998_v53 = vld [vmem:[#allocation2 + $0x58] sm:$0xff] }
 0x165   : > { %v2173_v52 = vld [vmem:[#allocation6] ss:$0 sm:$0xff]  ;;  %v999_v57 = vld [vmem:[#allocation2 + $0x18] sm:$0xff]  ;;  %v1631_v56 = vld [vmem:[%s2260_s3 + $0x8] sm:$0xff]  }
 0x166   : > { %v1560_v28 = vld [vmem:[%s2260_s3] sm:$0xff]   ;;  %v1000_v58 = vld [vmem:[#allocation2 + $0x50] sm:$0xff]  ;;  %v1016_v59 = vadd.f32 %v2173_v52, %v996_v50  ;;  %v1017_v60 = vadd.f32 %v2173_v52, %v997_v51  ;;  %v1018_v61 = vadd.f32 %v2173_v52, %v998_v53  ;;  %v1019_v62 = vadd.f32 %v2173_v52, %v999_v57  ;;  %v1001_v63 = vld [vmem:[#allocation2 + $0x68] sm:$0xff] }
 0x167   : > { %v1561_v54 = vunpack.c.l.bf16 %v1560_v28  ;;  %v1562_v55 = vunpack.c.h.bf16 %v1560_v28  ;;  %v1632_v0 = vld [vmem:[%s2260_s3 + $0x10] sm:$0xff]   ;;  %v1002_v1 = vld [vmem:[#allocation2 + $0x8] sm:$0xff]  ;;  %v1565_v2 = vunpack.c.l.bf16 %v1631_v56  ;;  %v1566_v3 = vunpack.c.h.bf16 %v1631_v56  ;;  %v1633_v13 = vld [vmem:[%s2260_s3 + $0x18] sm:$0xff]  }
 0x168   : > { %v1020_v5 = vadd.f32 %v2173_v52, %v1000_v58  ;;  %v1021_v6 = vadd.f32 %v2173_v52, %v1001_v63  ;;  %v1003_v7 = vld [vmem:[#allocation2 + $0x48] sm:$0xff]  ;;  %v1569_v10 = vunpack.c.l.bf16 %v1632_v0  ;;  %v1570_v11 = vunpack.c.h.bf16 %v1632_v0  ;;  %v1004_v18 = vld [vmem:[#allocation2 + $0x40] sm:$0xff]  ;;  %v1006_v30 = vld [vmem:[#allocation2 + $0x10] sm:$0xff] }
 0x169   : > { %v1064_v8 = vadd.f32 %v1561_v54, %v1016_v59  ;;  %v1065_v9 = vadd.f32 %v1562_v55, %v1017_v60  ;;  %v1066_v14 = vadd.f32 %v1565_v2, %v1018_v61  ;;  %v1067_v15 = vadd.f32 %v1566_v3, %v1019_v62  ;;  %v1005_v4 = vld [vmem:[#allocation2 + $0x20] sm:$0xff]  ;;  %v1635_v35 = vld [vmem:[%s2260_s3 + $0x28] sm:$0xff]   ;;  %v1009_v45 = vld [vmem:[#allocation2 + $0x70] sm:$0xff] }
 0x16a   : > { %v1022_v16 = vadd.f32 %v2173_v52, %v1002_v1  ;;  %v1023_v17 = vadd.f32 %v2173_v52, %v1003_v7  ;;  %v1068_v22 = vadd.f32 %v1569_v10, %v1020_v5  ;;  %v1069_v23 = vadd.f32 %v1570_v11, %v1021_v6  ;;  %v1634_v29 = vld [vmem:[%s2260_s3 + $0x20] sm:$0xff]   ;;  %v1007_v12 = vld [vmem:[#allocation2 + $0x38] sm:$0xff]  ;;  %v1636_v46 = vld [vmem:[%s2260_s3 + $0x30] sm:$0xff]  }
 0x16b   : > { %v1080_v19 = vmax.f32 %v1064_v8, 0.0  ;;  %v1081_v21 = vmax.f32 %v1065_v9, 0.0  ;;  %v1082_v24 = vmax.f32 %v1066_v14, 0.0  ;;  %v1083_v25 = vmax.f32 %v1067_v15, 0.0  ;;  %v1008_v40 = vld [vmem:[#allocation2 + $0x60] sm:$0xff]  ;;  %v1010_v54 = vld [vmem:[#allocation2 + $0x78] sm:$0xff] }
 0x16c   : > { %v1573_v26 = vunpack.c.l.bf16 %v1633_v13  ;;  %v1574_v27 = vunpack.c.h.bf16 %v1633_v13  ;;  %v1084_v32 = vmax.f32 %v1068_v22, 0.0  ;;  %v1085_v33 = vmax.f32 %v1069_v23, 0.0  ;;  %v1011_v55 = vld [vmem:[#allocation2 + $0x28] sm:$0xff]  ;;  %v1637_v60 = vld [vmem:[%s2260_s3 + $0x38] sm:$0xff]  }
 0x16d   : > { %v1594_v31 = vpack.c.bf16 %v1081_v21, %v1080_v19  ;;  %v1024_v34 = vadd.f32 %v2173_v52, %v1004_v18  ;;  %v1599_v36 = vpack.c.bf16 %v1083_v25, %v1082_v24  ;;  %v1025_v38 = vadd.f32 %v2173_v52, %v1005_v4 }
 0x16e   : > { %v1070_v37 = vadd.f32 %v1573_v26, %v1022_v16  ;;  %v1071_v39 = vadd.f32 %v1574_v27, %v1023_v17  ;;  %v1604_v41 = vpack.c.bf16 %v1085_v33, %v1084_v32  ;;  %v1577_v42 = vunpack.c.l.bf16 %v1634_v29 }
 0x16f   : > { %1595 = vst [vmem:[%s2261_s4] sm:$0xff] %v1594_v31   ;;  %v1578_v43 = vunpack.c.h.bf16 %v1634_v29  ;;  %v1026_v44 = vadd.f32 %v2173_v52, %v1006_v30  ;;  %v1027_v48 = vadd.f32 %v2173_v52, %v1007_v12  ;;  %v1581_v49 = vunpack.c.l.bf16 %v1635_v35 }
 0x170   : > { %1638 = vst [vmem:[%s2261_s4 + $0x8] sm:$0xff] %v1599_v36   ;;  %v1086_v20 = vmax.f32 %v1070_v37, 0.0  ;;  %v1087_v47 = vmax.f32 %v1071_v39, 0.0  ;;  %v1072_v50 = vadd.f32 %v1577_v42, %v1024_v34  ;;  %v1582_v28 = vunpack.c.h.bf16 %v1635_v35 }
 0x171   : > { %1639 = vst [vmem:[%s2261_s4 + $0x10] sm:$0xff] %v1604_v41   ;;  %v1073_v51 = vadd.f32 %v1578_v43, %v1025_v38  ;;  %v1028_v53 = vadd.f32 %v2173_v52, %v1008_v40  ;;  %v1074_v56 = vadd.f32 %v1581_v49, %v1026_v44  ;;  %v1029_v58 = vadd.f32 %v2173_v52, %v1009_v45 }
 0x172   : > { %v1609_v57 = vpack.c.bf16 %v1087_v47, %v1086_v20  ;;  %v1585_v59 = vunpack.c.l.bf16 %v1636_v46  ;;  %v1088_v61 = vmax.f32 %v1072_v50, 0.0  ;;  %v1075_v63 = vadd.f32 %v1582_v28, %v1027_v48 }
 0x173   : > { %v1089_v62 = vmax.f32 %v1073_v51, 0.0  ;;  %v1586_v0 = vunpack.c.h.bf16 %v1636_v46  ;;  %v1090_v1 = vmax.f32 %v1074_v56, 0.0  ;;  %v1030_v3 = vadd.f32 %v2173_v52, %v1010_v54 }
 0x174   : > { %1640 = vst [vmem:[%s2261_s4 + $0x18] sm:$0xff] %v1609_v57   ;;  %v1076_v2 = vadd.f32 %v1585_v59, %v1028_v53  ;;  %v1031_v5 = vadd.f32 %v2173_v52, %v1011_v55  ;;  %v1091_v7 = vmax.f32 %v1075_v63, 0.0  ;;  %v1589_v9 = vunpack.c.l.bf16 %v1637_v60 }
 0x175   : > { %v1614_v6 = vpack.c.bf16 %v1089_v62, %v1088_v61  ;;  %v1077_v8 = vadd.f32 %v1586_v0, %v1029_v58  ;;  %v1590_v11 = vunpack.c.h.bf16 %v1637_v60 }
 0x176   : > { %v1092_v10 = vmax.f32 %v1076_v2, 0.0  ;;  %v1619_v13 = vpack.c.bf16 %v1091_v7, %v1090_v1  ;;  %v1078_v15 = vadd.f32 %v1589_v9, %v1030_v3 }
 0x177   : > { %1641 = vst [vmem:[%s2261_s4 + $0x20] sm:$0xff] %v1614_v6   ;;  %v1093_v14 = vmax.f32 %v1077_v8, 0.0  ;;  %v1079_v16 = vadd.f32 %v1590_v11, %v1031_v5 }
 0x178   : > { %1642 = vst [vmem:[%s2261_s4 + $0x28] sm:$0xff] %v1619_v13   ;;  %v1094_v52 = vmax.f32 %v1078_v15, 0.0 }
 0x179   : > { %v1624_v17 = vpack.c.bf16 %v1093_v14, %v1092_v10  ;;  %v1095_v18 = vmax.f32 %v1079_v16, 0.0 }
 0x17b   : > { %1643 = vst [vmem:[%s2261_s4 + $0x30] sm:$0xff] %v1624_v17   ;;  %v1629_v19 = vpack.c.bf16 %v1095_v18, %v1094_v52 }
 0x17d   : > { %1644 = vst [vmem:[%s2261_s4 + $0x38] sm:$0xff] %v1629_v19  }
 0x17e PF: > { %s18_s20 = sadd.s32 1, %s1849_s20   ;;  %s2266_s15 = smov %s1833_s16 }
 0x17f   : > { %p15_p2 = scmp.ge.s32.totalorder %s18_s20, 5   ;;  %s2267_s16 = smov %s1837_s17 }
 0x180   : > { %s2268_s17 = smov %s1936_s28  ;;  %s2269_s18 = smov %s1845_s19 }
 0x181   : > { %s2270_s19 = smov %s2272_s22  ;;  %17 = sbr.rel (!%p15_p2) target bundleno = 5 (0x5), region = 132 }
 0x186   :  { %1156 = vsyncpa [#allocation5], 1 }
 0x187   :  { %1158 = vsyncpa [#allocation5 + $0x1], 1 }
 0x188   :  { %1159 = vsyncpa [#allocation7], 1 }

// kernel: resnet18_forward.28
= control target key start
LH: loop header
LB: loop body
LE: loop exit
PB: predicated region body
PF: predicated region fallthrough
CT: control target
= control target key end

     0   :  { %8 = vsyncpa [#allocation5], 0  ;;  %s1100_s12 = smov 0   ;;  %s1102_s13 = smov 0   ;;  %s1241_s0 = inlined_call_operand.vmem [shape: bf16[32,1152], index: 0, kind: input, shape index: {}]   ;;  %s1242_s1 = inlined_call_operand.vmem [shape: bf16[1152,128], index: 1, kind: input, shape index: {}]   ;;  %s1243_s2 = inlined_call_operand.hbm [shape: f32[1,128], index: 2, kind: input, shape index: {}]   ;;  %s1244_s3 = inlined_call_operand.vmem [shape: bf16[32,128], index: 3, kind: output, shape index: {}]  }
   0x1   :  { %s1104_s14 = smov 0   ;;  %s1106_s15 = smov 0  }
   0x2   :  { %s1108_s16 = smov 0  }
   0x3 LB: > { %s757_s17 = sadd.s32 4294967295, %s1076_s16   ;;  %s26_s18 = sadd.s32 1, %s1072_s15  ;;  %s1076_s16 = sphi %s1108_s16, %s14_s16   ;;  %s1072_s15 = sphi %s1106_s15, %s1251_s15   ;;  %s1068_s14 = sphi %s1104_s14, %s1250_s14   ;;  %s1064_s13 = sphi %s1102_s13, %s1249_s13   ;;  %s1060_s12 = sphi %s1100_s12, %s1248_s12  }
   0x4   : > { %p27_p0 = scmp.ge.s32.totalorder %s26_s18, 3  ;;  %s42_s19 = sadd.s32 1, %s1064_s13 }
   0x5   : > { %p49_p1 = scmp.ne.s32.totalorder %s1064_s13, %s1060_s12  ;;  %p50_p2 = scmp.eq.s32.totalorder %s1076_s16, 0 }
   0x6   : > { %s1253_s18 = smov (%p27_p0, %s26_s18), 0  ;;  %p758_p4 = scmp.ge.s32.totalorder %s1076_s16, 1 }
   0x7   : > { %p1133_p3 = por %p50_p2, %p49_p1  ;;  %s38_s21 = ssub.s32 %s1072_s15, %s1253_s18 }
   0x8   : > { %p148_p5 = scmp.lt.s32.totalorder %s1076_s16, 4  ;;  %p40_p6 = scmp.eq.s32.totalorder %s38_s21, 0 }
   0x9   : > { %p1145_p8 = scmp.eq.s32.totalorder %s757_s17, 0  ;;  %s161_s27 = sshll.u32 %s1243_s2, 4  ;;  %s162_s27 = int_to_ptr.hbm [resolvable:$true] %s161_s27 }
   0xa   : > { %p1141_p7 = pnand %p758_p4, %p148_p5  ;;  %s1078_s28 = smov [#allocation4]  }
   0xb   : > { %s1150_s24 = scalar_select %p40_p6, %s1064_s13, %s42_s19  }
   0xc   : > { %p955_p9 = pneg %p1141_p7  ;;  %s163_s29 = sshll.u32 %s1078_s28, 4  ;;  %s164_s29 = int_to_ptr.vmem [resolvable:$true] %s163_s29 }
   0xd   : > { %p760_p11 = scmp.ge.s32.totalorder %s1076_s16, 3 }
   0xe   : > { %p956_p10 = pnand %p1145_p8, %p955_p9 }
   0xf   : > { %170 = sbr.rel (%p760_p11) target bundleno = 33 (0x21), region = 20 }
  0x10   : > { %958 = dma.hbm_to_vmem [thread:$0]  (!%p956_p10), %s162_s27, 16, %s164_s29, [#allocation5]  }
  0x14   : > { %173 = sbr.rel (!%p1133_p3) target bundleno = 33 (0x21), region = 24  ;;  %s175_s30 = sand.u32 (%p1133_p3), 1, %s1064_s13  }
  0x15   : > { %s899_s4 = smul.u32 (%p1133_p3), 12, %s1072_s15 }
  0x16   : > { %s949_s5 = smul.u32 (%p1133_p3), 48, %s175_s30 }
  0x17   : > { %s183_s8 = scalar_lea.vmem (%p1133_p3), %s1241_s0, %s899_s4 }
  0x18   : > { %v198_v0 = vld [vmem:[%s183_s8] sm:$0xff] (%p1133_p3)  ;;  %v202_v2 = vld [vmem:[%s183_s8 + $0x48] sm:$0xff] (%p1133_p3)  ;;  %s177_s9 = scalar_lea.vmem (%p1133_p3), [#allocation3], %s949_s5  ;;  %v766_v6 = vld [vmem:[%s183_s8 + $0x50] sm:$0xf] (%p1133_p3) }
  0x19   : > { %v200_v1 = vld [vmem:[%s183_s8 + $0x24] sm:$0xff]  ;;  %199 = vst [vmem:[%s177_s9] sm:$0xff] %v198_v0  ;;  %v204_v3 = vld [vmem:[%s183_s8 + $0x6c] sm:$0xff]  ;;  %v768_v7 = vld [vmem:[%s183_s8 + $0x74] sm:$0xf] }
  0x1a   : > { %201 = vst [vmem:[%s177_s9 + $0xc] sm:$0xff] %v200_v1  ;;  %v762_v4 = vld [vmem:[%s183_s8 + $0x8] sm:$0xf]  ;;  %v764_v5 = vld [vmem:[%s183_s8 + $0x2c] sm:$0xf] }
  0x1b   : > { %203 = vst [vmem:[%s177_s9 + $0x18] sm:$0xff] %v202_v2 }
  0x1c   : > { %205 = vst [vmem:[%s177_s9 + $0x24] sm:$0xff] %v204_v3 }
  0x1d   : > { %763 = vst [vmem:[%s177_s9 + $0x8] sm:$0xf] %v762_v4 }
  0x1e   : > { %765 = vst [vmem:[%s177_s9 + $0x14] sm:$0xf] %v764_v5 }
  0x1f   : > { %767 = vst [vmem:[%s177_s9 + $0x20] sm:$0xf] %v766_v6 }
  0x20   : > { %769 = vst [vmem:[%s177_s9 + $0x2c] sm:$0xf] %v768_v7 }
  0x21 PF: > { %242 = sbr.rel (%p1141_p7) target bundleno = 260 (0x104), region = 54  ;;  %s245_s10 = sand.u32 (!%p1141_p7), 1, %s1060_s12  }
  0x22   : > { %s950_s11 = smul.u32 (!%p1141_p7), 48, %s245_s10 }
  0x24   : > { %s1170_s17 = scalar_lea.vmem (!%p1141_p7), [#allocation3], %s950_s11 }
  0x26   : > { %1055 = dma.done.wait (%p1145_p8), [#allocation5], 16  }
  0x27   : > { %1057 = vsyncadd (%p1145_p8), [#allocation5], 4294967280  ;;  %s286_s19 = smul.u32 48, %s1068_s14  ;;  %p773_p13 = scmp.ne.s32.totalorder %s1068_s14, 0 }
  0x29   : > { %p287_p12 = scmp.lt.s32.totalorder %s286_s19, 143  ;;  %307 = sbr.rel (%p773_p13) target bundleno = 51 (0x33), region = 66 }
  0x2b   : > { %s1255_s19 = smov (!%p287_p12, %s286_s19), 143 }
  0x2c   : > { %s772_s20 = sshll.u32 %s1255_s19, 2 }
  0x2d   : > { %s1180_s22 = scalar_lea.vmem %s1242_s1, %s772_s20 }
  0x2e   : > { %v1079_v8 = vmov 0.0  }
  0x2f   : > { %308 = vst [vmem:[#allocation2 + $0x10] sm:$0xff] %v1079_v8 }
  0x30   : > { %309 = vst [vmem:[#allocation2] sm:$0xff] %v1079_v8 }
  0x31   : > { %310 = vst [vmem:[#allocation2 + $0x18] sm:$0xff] %v1079_v8 }
  0x32   : > { %311 = vst [vmem:[#allocation2 + $0x8] sm:$0xff] %v1079_v8 }
  0x33 PF: > { %v913_v9 = vld [vmem:[%s1180_s22 + $0x38] sm:$0xff]  ;;  %v912_v12 = vld [vmem:[%s1180_s22 + $0x30] sm:$0xff]  ;;  %v911_v15 = vld [vmem:[%s1180_s22 + $0x28] sm:$0xff]  ;;  %p894_p0 = scmp.ne.s32.totalorder %s1068_s14, 2 }
  0x34   : > { %v921_v10 = vld [vmem:[%s1180_s22 + $0x78] sm:$0xff]  ;;  %548 = vmatpush.bf16.msra.mxu0 %v913_v9  ;;  %v920_v13 = vld [vmem:[%s1180_s22 + $0x70] sm:$0xff]  ;;  %941 = vmatpush.bf16.msra.mxu3 %v913_v9  ;;  %v919_v16 = vld [vmem:[%s1180_s22 + $0x68] sm:$0xff] }
  0x35   : > { %v929_v11 = vld [vmem:[%s1180_s22 + $0xb8] sm:$0xff]  ;;  %567 = vmatpush.bf16.msra.mxu1 %v921_v10  ;;  %v928_v14 = vld [vmem:[%s1180_s22 + $0xb0] sm:$0xff]  ;;  %v927_v17 = vld [vmem:[%s1180_s22 + $0xa8] sm:$0xff] }
  0x36   : > { %586 = vmatpush.bf16.msra.mxu2 %v929_v11  ;;  %v910_v18 = vld [vmem:[%s1180_s22 + $0x20] sm:$0xff]  ;;  %v909_v21 = vld [vmem:[%s1180_s22 + $0x18] sm:$0xff]  ;;  %v908_v24 = vld [vmem:[%s1180_s22 + $0x10] sm:$0xff] }
  0x37   : > { %v918_v19 = vld [vmem:[%s1180_s22 + $0x60] sm:$0xff]  ;;  %v917_v22 = vld [vmem:[%s1180_s22 + $0x58] sm:$0xff]  ;;  %v916_v25 = vld [vmem:[%s1180_s22 + $0x50] sm:$0xff] }
  0x38   : > { %549 = vmatpush.bf16.msra.mxu0 %v912_v12  ;;  %942 = vmatpush.bf16.msra.mxu3 %v912_v12  ;;  %v926_v20 = vld [vmem:[%s1180_s22 + $0xa0] sm:$0xff]  ;;  %v925_v23 = vld [vmem:[%s1180_s22 + $0x98] sm:$0xff]  ;;  %v924_v26 = vld [vmem:[%s1180_s22 + $0x90] sm:$0xff] }
  0x39   : > { %568 = vmatpush.bf16.msra.mxu1 %v920_v13  ;;  %v907_v27 = vld [vmem:[%s1180_s22 + $0x8] sm:$0xff]  ;;  %v906_v30 = vld [vmem:[%s1180_s22] sm:$0xff]  ;;  %v312_v54 = vld [vmem:[#allocation2 + $0x10] sm:$0xff] }
  0x3a   : > { %587 = vmatpush.bf16.msra.mxu2 %v928_v14  ;;  %v915_v28 = vld [vmem:[%s1180_s22 + $0x48] sm:$0xff]  ;;  %v914_v31 = vld [vmem:[%s1180_s22 + $0x40] sm:$0xff]  ;;  %v314_v4 = vld [vmem:[#allocation2 + $0x18] sm:$0xff] }
  0x3b   : > { %v923_v29 = vld [vmem:[%s1180_s22 + $0x88] sm:$0xff]  ;;  %v922_v32 = vld [vmem:[%s1180_s22 + $0x80] sm:$0xff] }
  0x3c   : > { %550 = vmatpush.bf16.msra.mxu0 %v911_v15  ;;  %943 = vmatpush.bf16.msra.mxu3 %v911_v15  ;;  %v776_v33 = vld [vmem:[%s1170_s17] sm:$0xf]  ;;  %v901_v34 = vld [vmem:[%s1170_s17 + $0x8] sm:$0xf0]  ;;  %v900_v35 = vld [vmem:[%s1170_s17 + $0x4] sm:$0xf] }
  0x3d   : > { %569 = vmatpush.bf16.msra.mxu1 %v919_v16  ;;  %v778_v36 = vld [vmem:[%s1170_s17 + $0xc] sm:$0xf0]  ;;  %v784_v37 = vld [vmem:[%s1170_s17 + $0x8] sm:$0xf]  ;;  %v902_v38 = vld [vmem:[%s1170_s17 + $0x10] sm:$0xf0]  ;;  %v777_v41 = vor.u32 %v901_v34, %v776_v33 }
  0x3e   : > { %588 = vmatpush.bf16.msra.mxu2 %v927_v17  ;;  %v788_v39 = vld [vmem:[%s1170_s17 + $0x18] sm:$0xf]  ;;  %v904_v40 = vld [vmem:[%s1170_s17 + $0x20] sm:$0xf0]  ;;  %v781_v42 = vor.u32 %v900_v35, %v778_v36  ;;  %v785_v43 = vor.u32 %v902_v38, %v784_v37  ;;  %v903_v45 = vld [vmem:[%s1170_s17 + $0x1c] sm:$0xf] }
  0x3f   : > { %v789_v44 = vor.u32 %v904_v40, %v788_v39  ;;  %v790_v46 = vld [vmem:[%s1170_s17 + $0x24] sm:$0xf0]  ;;  %v796_v47 = vld [vmem:[%s1170_s17 + $0x20] sm:$0xf]  ;;  %v905_v48 = vld [vmem:[%s1170_s17 + $0x28] sm:$0xf0] }
  0x40   : > { %551 = vmatpush.bf16.msra.mxu0 %v910_v18  ;;  %944 = vmatpush.bf16.msra.mxu3 %v910_v18  ;;  %v793_v49 = vor.u32 %v903_v45, %v790_v46  ;;  %v797_v50 = vor.u32 %v905_v48, %v796_v47  ;;  %v313_v61 = vld [vmem:[#allocation2] sm:$0xff]  ;;  %v315_v11 = vld [vmem:[#allocation2 + $0x8] sm:$0xff] }
  0x41   : > { %570 = vmatpush.bf16.msra.mxu1 %v918_v19 }
  0x42   : > { %589 = vmatpush.bf16.msra.mxu2 %v926_v20 }
  0x44   : > { %552 = vmatpush.bf16.msra.mxu0 %v909_v21  ;;  %945 = vmatpush.bf16.msra.mxu3 %v909_v21 }
  0x45   : > { %571 = vmatpush.bf16.msra.mxu1 %v917_v22 }
  0x46   : > { %590 = vmatpush.bf16.msra.mxu2 %v925_v23 }
  0x48   : > { %553 = vmatpush.bf16.msra.mxu0 %v908_v24  ;;  %946 = vmatpush.bf16.msra.mxu3 %v908_v24 }
  0x49   : > { %572 = vmatpush.bf16.msra.mxu1 %v916_v25 }
  0x4a   : > { %591 = vmatpush.bf16.msra.mxu2 %v924_v26 }
  0x4c   : > { %554 = vmatpush.bf16.msra.mxu0 %v907_v27  ;;  %947 = vmatpush.bf16.msra.mxu3 %v907_v27 }
  0x4d   : > { %573 = vmatpush.bf16.msra.mxu1 %v915_v28 }
  0x4e   : > { %592 = vmatpush.bf16.msra.mxu2 %v923_v29 }
  0x50   : > { %555 = vmatpush.bf16.msra.mxu0 %v906_v30  ;;  %948 = vmatpush.bf16.msra.mxu3 %v906_v30 }
  0x51   : > { %574 = vmatpush.bf16.msra.mxu1 %v914_v31 }
  0x52   : > { %593 = vmatpush.bf16.msra.mxu2 %v922_v32 }
  0x53   : > { %556 = vmatmul.bf16.vlgmr.msra.gmra.mxu0 %v777_v41  ;;  %561 = vmatmul.bf16.vlgmr.msra.gmra.mxu3 %v789_v44 }
  0x54   : > { %575 = vmatmul.bf16.vlgmr.msra.gmra.mxu1 %v781_v42 }
  0x55   : > { %594 = vmatmul.bf16.vlgmr.msra.gmra.mxu2 %v785_v43 }
  0x64   : > { %580 = vmatmul.bf16.gmra.mxu1 %v793_v49 }
  0x65   : > { %599 = vmatmul.bf16.gmra.mxu2 %v797_v50 }
  0xd0   : > { %v557_v52 = vpop.f32.mrf.mxu0 }
  0xd1   : > { %v576_v51 = vpop.f32.mrf.mxu1 }
  0xd2   : > { %v577_v53 = vadd.f32 %v576_v51, %v557_v52 }
  0xd6   : > { %v562_v2 = vpop.f32.mrf.mxu3 }
  0xd8   : > { %v595_v55 = vpop.f32.mrf.mxu2  ;;  %v559_v59 = vpop.f32.mrf.mxu0 }
  0xd9   : > { %v596_v56 = vadd.f32 %v595_v55, %v577_v53  ;;  %v578_v57 = vpop.f32.mrf.mxu1 }
  0xda   : > { %v579_v60 = vadd.f32 %v578_v57, %v559_v59 }
  0xdb   : > { %v605_v58 = vadd.f32 %v596_v56, %v312_v54 }
  0xdd   : > { %609 = vst [vmem:[#allocation2 + $0x10] sm:$0xff] %v605_v58 }
  0xde   : > { %v564_v9 = vpop.f32.mrf.mxu3 }
  0xe0   : > { %v597_v62 = vpop.f32.mrf.mxu2 }
  0xe1   : > { %v598_v63 = vadd.f32 %v597_v62, %v579_v60  ;;  %v581_v0 = vpop.f32.mrf.mxu1 }
  0xe2   : > { %v582_v3 = vadd.f32 %v581_v0, %v562_v2 }
  0xe3   : > { %v606_v1 = vadd.f32 %v598_v63, %v313_v61 }
  0xe5   : > { %610 = vst [vmem:[#allocation2] sm:$0xff] %v606_v1 }
  0xe8   : > { %v600_v5 = vpop.f32.mrf.mxu2 }
  0xe9   : > { %v601_v6 = vadd.f32 %v600_v5, %v582_v3  ;;  %v583_v8 = vpop.f32.mrf.mxu1 }
  0xea   : > { %v584_v10 = vadd.f32 %v583_v8, %v564_v9 }
  0xeb   : > { %v607_v7 = vadd.f32 %v601_v6, %v314_v4 }
  0xed   : > { %611 = vst [vmem:[#allocation2 + $0x18] sm:$0xff] %v607_v7 }
  0xf0   : > { %v602_v12 = vpop.f32.mrf.mxu2 }
  0xf1   : > { %v603_v13 = vadd.f32 %v602_v12, %v584_v10  ;;  %616 = sbr.rel (%p894_p0) target bundleno = 260 (0x104), region = 70 }
  0xf3   : > { %v608_v14 = vadd.f32 %v603_v13, %v315_v11 }
  0xf5   : > { %612 = vst [vmem:[#allocation2 + $0x8] sm:$0xff] %v608_v14 }
  0xf6   : > { %v617_v15 = vld [vmem:[#allocation2 + $0x10] sm:$0xff]  ;;  %v618_v16 = vld [vmem:[#allocation2] sm:$0xff]  ;;  %v619_v18 = vld [vmem:[#allocation2 + $0x18] sm:$0xff] }
  0xf7   : > { %v1003_v17 = vld [vmem:[#allocation4] ss:$0 sm:$0xff] }
  0xf8   : > { %v625_v20 = vadd.f32 %v1003_v17, %v617_v15  ;;  %v626_v21 = vadd.f32 %v1003_v17, %v618_v16  ;;  %v627_v22 = vadd.f32 %v1003_v17, %v619_v18 }
  0xfa   : > { %v629_v24 = vmax.f32 %v625_v20, 0.0  ;;  %v630_v25 = vmax.f32 %v626_v21, 0.0  ;;  %v631_v26 = vmax.f32 %v627_v22, 0.0 }
  0xfc   : > { %v620_v19 = vld [vmem:[#allocation2 + $0x8] sm:$0xff]  ;;  %v933_v28 = vpack.c.bf16 %v630_v25, %v629_v24 }
  0xfd   : > { %v628_v23 = vadd.f32 %v1003_v17, %v620_v19 }
  0xfe   : > { %934 = vst [vmem:[%s1244_s3] sm:$0xff] %v933_v28  }
  0xff   : > { %v632_v27 = vmax.f32 %v628_v23, 0.0 }
 0x101   : > { %v938_v29 = vpack.c.bf16 %v632_v27, %v631_v26 }
 0x103   : > { %940 = vst [vmem:[%s1244_s3 + $0x8] sm:$0xff] %v938_v29  }
 0x104 PF: > { %s14_s16 = sadd.s32 1, %s1076_s16   ;;  %s1248_s12 = smov %s1064_s13 }
 0x105   : > { %p11_p1 = scmp.ge.s32.totalorder %s14_s16, 5   ;;  %s1249_s13 = smov %s1150_s24 }
 0x106   : > { %s1250_s14 = smov %s1072_s15  ;;  %s1251_s15 = smov %s1253_s18 }
 0x107   :  { %13 = sbr.rel (!%p11_p1) target bundleno = 3 (0x3), region = 116 }
 0x10c   :  { %669 = vsyncpa [#allocation5], 1 }
 0x10d   :  { %671 = vsyncpa [#allocation5 + $0x1], 1 }

// kernel: resnet18_forward.29
= control target key start
LH: loop header
LB: loop body
LE: loop exit
PB: predicated region body
PF: predicated region fallthrough
CT: control target
= control target key end

     0   :  { %8 = vsyncpa [#allocation4], 0  ;;  %s272_s15 = smov [#allocation3]   ;;  %s332_s0 = inlined_call_operand.vmem [shape: bf16[32,128], index: 0, kind: input, shape index: {}]   ;;  %s333_s1 = inlined_call_operand.vmem [shape: bf16[128,128], index: 1, kind: input, shape index: {}]   ;;  %s334_s2 = inlined_call_operand.hbm [shape: f32[1,128], index: 2, kind: input, shape index: {}]   ;;  %s335_s3 = inlined_call_operand.vmem [shape: bf16[32,128], index: 3, kind: output, shape index: {}]  }
   0x1   :  { %s18_s14 = sshll.u32 %s334_s2, 4  ;;  %s20_s16 = sshll.u32 %s272_s15, 4  ;;  %s19_s14 = int_to_ptr.hbm [resolvable:$true] %s18_s14  ;;  %s21_s16 = int_to_ptr.vmem [resolvable:$true] %s20_s16 }
   0x2   :  { %23 = dma.hbm_to_vmem [thread:$0]  %s19_s14, 16, %s21_s16, [#allocation4]  }
   0x3   :  { %270 = dma.done.wait [#allocation4], 16  }
   0x4   :  { %271 = vsyncadd [#allocation4], 4294967280  ;;  %v224_v0 = vld [vmem:[%s333_s1 + $0x38] sm:$0xff]  ;;  %v223_v1 = vld [vmem:[%s333_s1 + $0x30] sm:$0xff] }
   0x5   :  { %120 = vmatpush.bf16.msra.mxu0 %v224_v0  ;;  %236 = vmatpush.bf16.msra.mxu1 %v224_v0  ;;  %v222_v2 = vld [vmem:[%s333_s1 + $0x28] sm:$0xff]  ;;  %v221_v3 = vld [vmem:[%s333_s1 + $0x20] sm:$0xff]  ;;  %v220_v4 = vld [vmem:[%s333_s1 + $0x18] sm:$0xff] }
   0x6   :  { %v219_v5 = vld [vmem:[%s333_s1 + $0x10] sm:$0xff]  ;;  %v218_v6 = vld [vmem:[%s333_s1 + $0x8] sm:$0xff]  ;;  %v217_v7 = vld [vmem:[%s333_s1] sm:$0xff] }
   0x7   :  { %v215_v8 = vld [vmem:[%s332_s0] sm:$0xff]  ;;  %v216_v9 = vld [vmem:[%s332_s0 + $0x8] sm:$0xff] }
   0x8   :  { %v245_v12 = vld [vmem:[#allocation3] ss:$0 sm:$0xff] }
   0x9   :  { %121 = vmatpush.bf16.msra.mxu0 %v223_v1  ;;  %237 = vmatpush.bf16.msra.mxu1 %v223_v1 }
   0xd   :  { %122 = vmatpush.bf16.msra.mxu0 %v222_v2  ;;  %238 = vmatpush.bf16.msra.mxu1 %v222_v2 }
  0x11   :  { %123 = vmatpush.bf16.msra.mxu0 %v221_v3  ;;  %239 = vmatpush.bf16.msra.mxu1 %v221_v3 }
  0x15   :  { %124 = vmatpush.bf16.msra.mxu0 %v220_v4  ;;  %240 = vmatpush.bf16.msra.mxu1 %v220_v4 }
  0x19   :  { %125 = vmatpush.bf16.msra.mxu0 %v219_v5  ;;  %241 = vmatpush.bf16.msra.mxu1 %v219_v5 }
  0x1d   :  { %126 = vmatpush.bf16.msra.mxu0 %v218_v6  ;;  %242 = vmatpush.bf16.msra.mxu1 %v218_v6 }
  0x21   :  { %127 = vmatpush.bf16.msra.mxu0 %v217_v7  ;;  %243 = vmatpush.bf16.msra.mxu1 %v217_v7 }
  0x24   :  { %128 = vmatmul.bf16.vlgmr.msra.gmra.mxu0 %v215_v8  ;;  %133 = vmatmul.bf16.vlgmr.msra.gmra.mxu1 %v216_v9 }
  0xa1   :  { %v129_v10 = vpop.f32.mrf.mxu0  ;;  %v134_v11 = vpop.f32.mrf.mxu1 }
  0xa2   :  { %v158_v15 = vadd.f32 %v245_v12, %v129_v10  ;;  %v160_v16 = vadd.f32 %v245_v12, %v134_v11 }
  0xa9   :  { %v131_v13 = vpop.f32.mrf.mxu0  ;;  %v136_v14 = vpop.f32.mrf.mxu1 }
  0xaa   :  { %v159_v17 = vadd.f32 %v245_v12, %v131_v13  ;;  %v161_v18 = vadd.f32 %v245_v12, %v136_v14 }
  0xac   :  { %v228_v19 = vpack.c.bf16 %v159_v17, %v158_v15  ;;  %v233_v20 = vpack.c.bf16 %v161_v18, %v160_v16 }
  0xae   :  { %229 = vst [vmem:[%s335_s3] sm:$0xff] %v228_v19  }
  0xaf   :  { %235 = vst [vmem:[%s335_s3 + $0x8] sm:$0xff] %v233_v20  }
  0xb0   :  { %174 = vsyncpa [#allocation4], 1 }

// kernel: resnet18_forward.30
= control target key start
LH: loop header
LB: loop body
LE: loop exit
PB: predicated region body
PF: predicated region fallthrough
CT: control target
= control target key end

     0   :  { %9 = vsyncpa [#allocation5], 0  ;;  %s1205_s15 = smov 0   ;;  %s1207_s16 = smov 0   ;;  %s1352_s0 = inlined_call_operand.vmem [shape: bf16[32,1152], index: 0, kind: input, shape index: {}]   ;;  %s1353_s1 = inlined_call_operand.vmem [shape: bf16[1152,128], index: 1, kind: input, shape index: {}]   ;;  %s1354_s2 = inlined_call_operand.hbm [shape: f32[1,128], index: 2, kind: input, shape index: {}]   ;;  %s1355_s3 = inlined_call_operand.vmem [shape: bf16[32,128], index: 3, kind: input, shape index: {}]   ;;  %s1356_s4 = inlined_call_operand.vmem [shape: bf16[32,128], index: 4, kind: output, shape index: {}]  }
   0x1   :  { %s1209_s17 = smov 0   ;;  %s1211_s18 = smov 0  }
   0x2   :  { %s1213_s19 = smov 0  }
   0x3 LB: > { %s847_s20 = sadd.s32 4294967295, %s1176_s19   ;;  %s27_s21 = sadd.s32 1, %s1172_s18  ;;  %s1176_s19 = sphi %s1213_s19, %s15_s19   ;;  %s1172_s18 = sphi %s1211_s18, %s1363_s18   ;;  %s1168_s17 = sphi %s1209_s17, %s1362_s17   ;;  %s1164_s16 = sphi %s1207_s16, %s1361_s16   ;;  %s1160_s15 = sphi %s1205_s15, %s1360_s15  }
   0x4   : > { %p28_p0 = scmp.ge.s32.totalorder %s27_s21, 3  ;;  %s43_s22 = sadd.s32 1, %s1164_s16 }
   0x5   : > { %p50_p1 = scmp.ne.s32.totalorder %s1164_s16, %s1160_s15  ;;  %p51_p2 = scmp.eq.s32.totalorder %s1176_s19, 0 }
   0x6   : > { %s1365_s21 = smov (%p28_p0, %s27_s21), 0  ;;  %p848_p4 = scmp.ge.s32.totalorder %s1176_s19, 1 }
   0x7   : > { %p1238_p3 = por %p51_p2, %p50_p1  ;;  %s39_s24 = ssub.s32 %s1172_s18, %s1365_s21 }
   0x8   : > { %p177_p5 = scmp.lt.s32.totalorder %s1176_s19, 4  ;;  %p41_p6 = scmp.eq.s32.totalorder %s39_s24, 0 }
   0x9   : > { %p1250_p8 = scmp.eq.s32.totalorder %s847_s20, 0  ;;  %s190_s30 = sshll.u32 %s1354_s2, 4  ;;  %s191_s30 = int_to_ptr.hbm [resolvable:$true] %s190_s30 }
   0xa   : > { %p1246_p7 = pnand %p848_p4, %p177_p5  ;;  %s1178_s5 = smov [#allocation4]  }
   0xb   : > { %s1255_s27 = scalar_select %p41_p6, %s1164_s16, %s43_s22  }
   0xc   : > { %p1055_p9 = pneg %p1246_p7  ;;  %s192_s6 = sshll.u32 %s1178_s5, 4  ;;  %s193_s6 = int_to_ptr.vmem [resolvable:$true] %s192_s6 }
   0xd   : > { %p851_p11 = scmp.ge.s32.totalorder %s1176_s19, 3 }
   0xe   : > { %p1056_p10 = pnand %p1250_p8, %p1055_p9 }
   0xf   : > { %211 = sbr.rel (%p851_p11) target bundleno = 33 (0x21), region = 24 }
  0x10   : > { %1058 = dma.hbm_to_vmem [thread:$0]  (!%p1056_p10), %s191_s30, 16, %s193_s6, [#allocation5]  }
  0x14   : > { %214 = sbr.rel (!%p1238_p3) target bundleno = 33 (0x21), region = 28  ;;  %s216_s7 = sand.u32 (%p1238_p3), 1, %s1164_s16  }
  0x15   : > { %s990_s8 = smul.u32 (%p1238_p3), 12, %s1172_s18 }
  0x16   : > { %s1049_s9 = smul.u32 (%p1238_p3), 48, %s216_s7 }
  0x17   : > { %s224_s12 = scalar_lea.vmem (%p1238_p3), %s1352_s0, %s990_s8 }
  0x18   : > { %v239_v0 = vld [vmem:[%s224_s12] sm:$0xff] (%p1238_p3)  ;;  %v243_v2 = vld [vmem:[%s224_s12 + $0x48] sm:$0xff] (%p1238_p3)  ;;  %s218_s13 = scalar_lea.vmem (%p1238_p3), [#allocation3], %s1049_s9  ;;  %v857_v6 = vld [vmem:[%s224_s12 + $0x50] sm:$0xf] (%p1238_p3) }
  0x19   : > { %v241_v1 = vld [vmem:[%s224_s12 + $0x24] sm:$0xff]  ;;  %240 = vst [vmem:[%s218_s13] sm:$0xff] %v239_v0  ;;  %v245_v3 = vld [vmem:[%s224_s12 + $0x6c] sm:$0xff]  ;;  %v859_v7 = vld [vmem:[%s224_s12 + $0x74] sm:$0xf] }
  0x1a   : > { %242 = vst [vmem:[%s218_s13 + $0xc] sm:$0xff] %v241_v1  ;;  %v853_v4 = vld [vmem:[%s224_s12 + $0x8] sm:$0xf]  ;;  %v855_v5 = vld [vmem:[%s224_s12 + $0x2c] sm:$0xf] }
  0x1b   : > { %244 = vst [vmem:[%s218_s13 + $0x18] sm:$0xff] %v243_v2 }
  0x1c   : > { %246 = vst [vmem:[%s218_s13 + $0x24] sm:$0xff] %v245_v3 }
  0x1d   : > { %854 = vst [vmem:[%s218_s13 + $0x8] sm:$0xf] %v853_v4 }
  0x1e   : > { %856 = vst [vmem:[%s218_s13 + $0x14] sm:$0xf] %v855_v5 }
  0x1f   : > { %858 = vst [vmem:[%s218_s13 + $0x20] sm:$0xf] %v857_v6 }
  0x20   : > { %860 = vst [vmem:[%s218_s13 + $0x2c] sm:$0xf] %v859_v7 }
  0x21 PF: > { %283 = sbr.rel (%p1246_p7) target bundleno = 262 (0x106), region = 58  ;;  %s286_s14 = sand.u32 (!%p1246_p7), 1, %s1160_s15  }
  0x22   : > { %s1050_s20 = smul.u32 (!%p1246_p7), 48, %s286_s14 }
  0x24   : > { %s1275_s22 = scalar_lea.vmem (!%p1246_p7), [#allocation3], %s1050_s20 }
  0x26   : > { %1155 = dma.done.wait (%p1250_p8), [#allocation5], 16  }
  0x27   : > { %1157 = vsyncadd (%p1250_p8), [#allocation5], 4294967280  ;;  %s337_s23 = smul.u32 48, %s1168_s17  ;;  %p864_p13 = scmp.ne.s32.totalorder %s1168_s17, 0 }
  0x29   : > { %p338_p12 = scmp.lt.s32.totalorder %s337_s23, 143  ;;  %367 = sbr.rel (%p864_p13) target bundleno = 51 (0x33), region = 70 }
  0x2b   : > { %s1367_s23 = smov (!%p338_p12, %s337_s23), 143 }
  0x2c   : > { %s863_s24 = sshll.u32 %s1367_s23, 2 }
  0x2d   : > { %s1285_s25 = scalar_lea.vmem %s1353_s1, %s863_s24 }
  0x2e   : > { %v1179_v8 = vmov 0.0  }
  0x2f   : > { %368 = vst [vmem:[#allocation2 + $0x10] sm:$0xff] %v1179_v8 }
  0x30   : > { %369 = vst [vmem:[#allocation2] sm:$0xff] %v1179_v8 }
  0x31   : > { %370 = vst [vmem:[#allocation2 + $0x18] sm:$0xff] %v1179_v8 }
  0x32   : > { %371 = vst [vmem:[#allocation2 + $0x8] sm:$0xff] %v1179_v8 }
  0x33 PF: > { %v1004_v9 = vld [vmem:[%s1285_s25 + $0x38] sm:$0xff]  ;;  %v1003_v12 = vld [vmem:[%s1285_s25 + $0x30] sm:$0xff]  ;;  %v1002_v15 = vld [vmem:[%s1285_s25 + $0x28] sm:$0xff]  ;;  %p985_p0 = scmp.ne.s32.totalorder %s1168_s17, 2 }
  0x34   : > { %v1012_v10 = vld [vmem:[%s1285_s25 + $0x78] sm:$0xff]  ;;  %608 = vmatpush.bf16.msra.mxu0 %v1004_v9  ;;  %v1011_v13 = vld [vmem:[%s1285_s25 + $0x70] sm:$0xff]  ;;  %1041 = vmatpush.bf16.msra.mxu3 %v1004_v9  ;;  %v1010_v16 = vld [vmem:[%s1285_s25 + $0x68] sm:$0xff] }
  0x35   : > { %v1020_v11 = vld [vmem:[%s1285_s25 + $0xb8] sm:$0xff]  ;;  %627 = vmatpush.bf16.msra.mxu1 %v1012_v10  ;;  %v1019_v14 = vld [vmem:[%s1285_s25 + $0xb0] sm:$0xff]  ;;  %v1018_v17 = vld [vmem:[%s1285_s25 + $0xa8] sm:$0xff] }
  0x36   : > { %646 = vmatpush.bf16.msra.mxu2 %v1020_v11  ;;  %v1001_v18 = vld [vmem:[%s1285_s25 + $0x20] sm:$0xff]  ;;  %v1000_v21 = vld [vmem:[%s1285_s25 + $0x18] sm:$0xff]  ;;  %v999_v24 = vld [vmem:[%s1285_s25 + $0x10] sm:$0xff] }
  0x37   : > { %v1009_v19 = vld [vmem:[%s1285_s25 + $0x60] sm:$0xff]  ;;  %v1008_v22 = vld [vmem:[%s1285_s25 + $0x58] sm:$0xff]  ;;  %v1007_v25 = vld [vmem:[%s1285_s25 + $0x50] sm:$0xff] }
  0x38   : > { %609 = vmatpush.bf16.msra.mxu0 %v1003_v12  ;;  %1042 = vmatpush.bf16.msra.mxu3 %v1003_v12  ;;  %v1017_v20 = vld [vmem:[%s1285_s25 + $0xa0] sm:$0xff]  ;;  %v1016_v23 = vld [vmem:[%s1285_s25 + $0x98] sm:$0xff]  ;;  %v1015_v26 = vld [vmem:[%s1285_s25 + $0x90] sm:$0xff] }
  0x39   : > { %628 = vmatpush.bf16.msra.mxu1 %v1011_v13  ;;  %v998_v27 = vld [vmem:[%s1285_s25 + $0x8] sm:$0xff]  ;;  %v997_v30 = vld [vmem:[%s1285_s25] sm:$0xff]  ;;  %v372_v54 = vld [vmem:[#allocation2 + $0x10] sm:$0xff] }
  0x3a   : > { %647 = vmatpush.bf16.msra.mxu2 %v1019_v14  ;;  %v1006_v28 = vld [vmem:[%s1285_s25 + $0x48] sm:$0xff]  ;;  %v1005_v31 = vld [vmem:[%s1285_s25 + $0x40] sm:$0xff]  ;;  %v374_v4 = vld [vmem:[#allocation2 + $0x18] sm:$0xff] }
  0x3b   : > { %v1014_v29 = vld [vmem:[%s1285_s25 + $0x88] sm:$0xff]  ;;  %v1013_v32 = vld [vmem:[%s1285_s25 + $0x80] sm:$0xff] }
  0x3c   : > { %610 = vmatpush.bf16.msra.mxu0 %v1002_v15  ;;  %1043 = vmatpush.bf16.msra.mxu3 %v1002_v15  ;;  %v867_v33 = vld [vmem:[%s1275_s22] sm:$0xf]  ;;  %v992_v34 = vld [vmem:[%s1275_s22 + $0x8] sm:$0xf0]  ;;  %v991_v35 = vld [vmem:[%s1275_s22 + $0x4] sm:$0xf] }
  0x3d   : > { %629 = vmatpush.bf16.msra.mxu1 %v1010_v16  ;;  %v869_v36 = vld [vmem:[%s1275_s22 + $0xc] sm:$0xf0]  ;;  %v875_v37 = vld [vmem:[%s1275_s22 + $0x8] sm:$0xf]  ;;  %v993_v38 = vld [vmem:[%s1275_s22 + $0x10] sm:$0xf0]  ;;  %v868_v41 = vor.u32 %v992_v34, %v867_v33 }
  0x3e   : > { %648 = vmatpush.bf16.msra.mxu2 %v1018_v17  ;;  %v879_v39 = vld [vmem:[%s1275_s22 + $0x18] sm:$0xf]  ;;  %v995_v40 = vld [vmem:[%s1275_s22 + $0x20] sm:$0xf0]  ;;  %v872_v42 = vor.u32 %v991_v35, %v869_v36  ;;  %v876_v43 = vor.u32 %v993_v38, %v875_v37  ;;  %v994_v45 = vld [vmem:[%s1275_s22 + $0x1c] sm:$0xf] }
  0x3f   : > { %v880_v44 = vor.u32 %v995_v40, %v879_v39  ;;  %v881_v46 = vld [vmem:[%s1275_s22 + $0x24] sm:$0xf0]  ;;  %v887_v47 = vld [vmem:[%s1275_s22 + $0x20] sm:$0xf]  ;;  %v996_v48 = vld [vmem:[%s1275_s22 + $0x28] sm:$0xf0] }
  0x40   : > { %611 = vmatpush.bf16.msra.mxu0 %v1001_v18  ;;  %1044 = vmatpush.bf16.msra.mxu3 %v1001_v18  ;;  %v884_v49 = vor.u32 %v994_v45, %v881_v46  ;;  %v888_v50 = vor.u32 %v996_v48, %v887_v47  ;;  %v373_v61 = vld [vmem:[#allocation2] sm:$0xff]  ;;  %v375_v11 = vld [vmem:[#allocation2 + $0x8] sm:$0xff] }
  0x41   : > { %630 = vmatpush.bf16.msra.mxu1 %v1009_v19 }
  0x42   : > { %649 = vmatpush.bf16.msra.mxu2 %v1017_v20 }
  0x44   : > { %612 = vmatpush.bf16.msra.mxu0 %v1000_v21  ;;  %1045 = vmatpush.bf16.msra.mxu3 %v1000_v21 }
  0x45   : > { %631 = vmatpush.bf16.msra.mxu1 %v1008_v22 }
  0x46   : > { %650 = vmatpush.bf16.msra.mxu2 %v1016_v23 }
  0x48   : > { %613 = vmatpush.bf16.msra.mxu0 %v999_v24  ;;  %1046 = vmatpush.bf16.msra.mxu3 %v999_v24 }
  0x49   : > { %632 = vmatpush.bf16.msra.mxu1 %v1007_v25 }
  0x4a   : > { %651 = vmatpush.bf16.msra.mxu2 %v1015_v26 }
  0x4c   : > { %614 = vmatpush.bf16.msra.mxu0 %v998_v27  ;;  %1047 = vmatpush.bf16.msra.mxu3 %v998_v27 }
  0x4d   : > { %633 = vmatpush.bf16.msra.mxu1 %v1006_v28 }
  0x4e   : > { %652 = vmatpush.bf16.msra.mxu2 %v1014_v29 }
  0x50   : > { %615 = vmatpush.bf16.msra.mxu0 %v997_v30  ;;  %1048 = vmatpush.bf16.msra.mxu3 %v997_v30 }
  0x51   : > { %634 = vmatpush.bf16.msra.mxu1 %v1005_v31 }
  0x52   : > { %653 = vmatpush.bf16.msra.mxu2 %v1013_v32 }
  0x53   : > { %616 = vmatmul.bf16.vlgmr.msra.gmra.mxu0 %v868_v41  ;;  %621 = vmatmul.bf16.vlgmr.msra.gmra.mxu3 %v880_v44 }
  0x54   : > { %635 = vmatmul.bf16.vlgmr.msra.gmra.mxu1 %v872_v42 }
  0x55   : > { %654 = vmatmul.bf16.vlgmr.msra.gmra.mxu2 %v876_v43 }
  0x64   : > { %640 = vmatmul.bf16.gmra.mxu1 %v884_v49 }
  0x65   : > { %659 = vmatmul.bf16.gmra.mxu2 %v888_v50 }
  0xd0   : > { %v617_v52 = vpop.f32.mrf.mxu0 }
  0xd1   : > { %v636_v51 = vpop.f32.mrf.mxu1 }
  0xd2   : > { %v637_v53 = vadd.f32 %v636_v51, %v617_v52 }
  0xd6   : > { %v622_v2 = vpop.f32.mrf.mxu3 }
  0xd8   : > { %v655_v55 = vpop.f32.mrf.mxu2  ;;  %v619_v59 = vpop.f32.mrf.mxu0 }
  0xd9   : > { %v656_v56 = vadd.f32 %v655_v55, %v637_v53  ;;  %v638_v57 = vpop.f32.mrf.mxu1 }
  0xda   : > { %v639_v60 = vadd.f32 %v638_v57, %v619_v59 }
  0xdb   : > { %v665_v58 = vadd.f32 %v656_v56, %v372_v54 }
  0xdd   : > { %669 = vst [vmem:[#allocation2 + $0x10] sm:$0xff] %v665_v58 }
  0xde   : > { %v624_v9 = vpop.f32.mrf.mxu3 }
  0xe0   : > { %v657_v62 = vpop.f32.mrf.mxu2 }
  0xe1   : > { %v658_v63 = vadd.f32 %v657_v62, %v639_v60  ;;  %v641_v0 = vpop.f32.mrf.mxu1 }
  0xe2   : > { %v642_v3 = vadd.f32 %v641_v0, %v622_v2 }
  0xe3   : > { %v666_v1 = vadd.f32 %v658_v63, %v373_v61 }
  0xe5   : > { %670 = vst [vmem:[#allocation2] sm:$0xff] %v666_v1 }
  0xe8   : > { %v660_v5 = vpop.f32.mrf.mxu2 }
  0xe9   : > { %v661_v6 = vadd.f32 %v660_v5, %v642_v3  ;;  %v643_v8 = vpop.f32.mrf.mxu1 }
  0xea   : > { %v644_v10 = vadd.f32 %v643_v8, %v624_v9 }
  0xeb   : > { %v667_v7 = vadd.f32 %v661_v6, %v374_v4 }
  0xed   : > { %671 = vst [vmem:[#allocation2 + $0x18] sm:$0xff] %v667_v7 }
  0xf0   : > { %v662_v12 = vpop.f32.mrf.mxu2 }
  0xf1   : > { %v663_v13 = vadd.f32 %v662_v12, %v644_v10  ;;  %676 = sbr.rel (%p985_p0) target bundleno = 262 (0x106), region = 74 }
  0xf3   : > { %v668_v14 = vadd.f32 %v663_v13, %v375_v11 }
  0xf5   : > { %672 = vst [vmem:[#allocation2 + $0x8] sm:$0xff] %v668_v14 }
  0xf6   : > { %v677_v15 = vld [vmem:[#allocation2 + $0x10] sm:$0xff]  ;;  %v678_v16 = vld [vmem:[#allocation2] sm:$0xff]  ;;  %v679_v19 = vld [vmem:[#allocation2 + $0x18] sm:$0xff] }
  0xf7   : > { %v1103_v17 = vld [vmem:[#allocation4] ss:$0 sm:$0xff]  ;;  %v1039_v23 = vld [vmem:[%s1355_s3 + $0x8] sm:$0xff]  }
  0xf8   : > { %v1022_v18 = vld [vmem:[%s1355_s3] sm:$0xff]   ;;  %v685_v24 = vadd.f32 %v1103_v17, %v677_v15  ;;  %v686_v25 = vadd.f32 %v1103_v17, %v678_v16  ;;  %v687_v26 = vadd.f32 %v1103_v17, %v679_v19  ;;  %v1027_v28 = vunpack.c.l.bf16 %v1039_v23 }
  0xf9   : > { %v1023_v20 = vunpack.c.l.bf16 %v1022_v18  ;;  %v1024_v21 = vunpack.c.h.bf16 %v1022_v18  ;;  %v1028_v29 = vunpack.c.h.bf16 %v1039_v23 }
  0xfa   : > { %v699_v32 = vadd.f32 %v1027_v28, %v687_v26 }
  0xfb   : > { %v697_v30 = vadd.f32 %v1023_v20, %v685_v24  ;;  %v698_v31 = vadd.f32 %v1024_v21, %v686_v25 }
  0xfc   : > { %v680_v22 = vld [vmem:[#allocation2 + $0x8] sm:$0xff]  ;;  %v703_v36 = vmax.f32 %v699_v32, 0.0 }
  0xfd   : > { %v688_v27 = vadd.f32 %v1103_v17, %v680_v22  ;;  %v701_v34 = vmax.f32 %v697_v30, 0.0  ;;  %v702_v35 = vmax.f32 %v698_v31, 0.0 }
  0xff   : > { %v700_v33 = vadd.f32 %v1028_v29, %v688_v27  ;;  %v1032_v38 = vpack.c.bf16 %v702_v35, %v701_v34 }
 0x101   : > { %v704_v37 = vmax.f32 %v700_v33, 0.0  ;;  %1033 = vst [vmem:[%s1356_s4] sm:$0xff] %v1032_v38  }
 0x103   : > { %v1037_v39 = vpack.c.bf16 %v704_v37, %v703_v36 }
 0x105   : > { %1040 = vst [vmem:[%s1356_s4 + $0x8] sm:$0xff] %v1037_v39  }
 0x106 PF: > { %s15_s19 = sadd.s32 1, %s1176_s19   ;;  %s1360_s15 = smov %s1164_s16 }
 0x107   : > { %p12_p1 = scmp.ge.s32.totalorder %s15_s19, 5   ;;  %s1361_s16 = smov %s1255_s27 }
 0x108   : > { %s1362_s17 = smov %s1172_s18  ;;  %s1363_s18 = smov %s1365_s21 }
 0x109   :  { %14 = sbr.rel (!%p12_p1) target bundleno = 3 (0x3), region = 123 }
 0x10e   :  { %741 = vsyncpa [#allocation5], 1 }
 0x10f   :  { %743 = vsyncpa [#allocation5 + $0x1], 1 }

// kernel: resnet18_forward.33
= control target key start
LH: loop header
LB: loop body
LE: loop exit
PB: predicated region body
PF: predicated region fallthrough
CT: control target
= control target key end

     0   :  { %8 = vsyncpa [#allocation4], 0  ;;  %s1181_s12 = smov 0   ;;  %s1183_s13 = smov 0   ;;  %s1333_s0 = inlined_call_operand.vmem [shape: bf16[8,1152], index: 0, kind: input, shape index: {}]   ;;  %s1334_s1 = inlined_call_operand.vmem [shape: bf16[1152,256], index: 1, kind: input, shape index: {}]   ;;  %s1335_s2 = inlined_call_operand.hbm [shape: f32[1,256], index: 2, kind: input, shape index: {}]   ;;  %s1336_s3 = inlined_call_operand.vmem [shape: bf16[8,256], index: 3, kind: output, shape index: {}]  }
   0x1   :  { %s1185_s14 = smov 0  }
   0x2 LB: > { %s809_s15 = sadd.s32 4294967295, %s1157_s14   ;;  %s26_s16 = sadd.s32 1, %s1153_s13  ;;  %s1157_s14 = sphi %s1185_s14, %s14_s14   ;;  %s1153_s13 = sphi %s1183_s13, %s1338_s13   ;;  %s1149_s12 = sphi %s1181_s12, %s1337_s12  }
   0x3   : > { %p27_p0 = scmp.ge.s32.totalorder %s26_s16, 3  ;;  %p810_p1 = scmp.ge.s32.totalorder %s1157_s14, 1 }
   0x4   : > { %p148_p2 = scmp.lt.s32.totalorder %s1157_s14, 4  ;;  %p1073_p4 = scmp.eq.s32.totalorder %s809_s15, 0 }
   0x5   : > { %s1340_s16 = smov (%p27_p0, %s26_s16), 0  ;;  %s162_s19 = sshll.u32 %s1335_s2, 4  ;;  %s163_s19 = int_to_ptr.hbm [resolvable:$true] %s162_s19 }
   0x6   : > { %p149_p3 = pnand %p810_p1, %p148_p2  ;;  %s1159_s20 = smov [#allocation3]  }
   0x7   : > { %s164_s21 = sshll.u32 %s1159_s20, 4  ;;  %s165_s21 = int_to_ptr.vmem [resolvable:$true] %s164_s21 }
   0x8   : > { %p1069_p5 = pneg %p149_p3  ;;  %205 = sbr.rel (%p149_p3) target bundleno = 238 (0xee), region = 32 }
   0xa   : > { %p1070_p6 = pnand %p1073_p4, %p1069_p5 }
   0xc   : > { %1072 = dma.hbm_to_vmem [thread:$0]  (!%p1070_p6), %s163_s19, 32, %s165_s21, [#allocation4]  }
   0xd   : > { %1144 = dma.done.wait (%p1073_p4), [#allocation4], 32  }
   0xe   : > { %1146 = vsyncadd (%p1073_p4), [#allocation4], 4294967264  ;;  %s248_s22 = smul.u32 3, %s1149_s12  ;;  %p818_p9 = scmp.ne.s32.totalorder %s1149_s12, 0 }
   0xf   : > { %s258_s23 = smul.u32 48, %s1149_s12 }
  0x10   : > { %p251_p7 = scmp.lt.s32.totalorder %s248_s22, 8 }
  0x11   : > { %p260_p8 = scmp.lt.s32.totalorder %s258_s23, 143  ;;  %284 = sbr.rel (%p818_p9) target bundleno = 25 (0x19), region = 40 }
  0x12   : > { %s1342_s22 = smov (!%p251_p7, %s248_s22), 8 }
  0x13   : > { %s1344_s23 = smov (!%p260_p8, %s258_s23), 143  ;;  %s815_s24 = sshll.u32 %s1342_s22, 2 }
  0x14   : > { %s1210_s27 = scalar_lea.vmem %s1333_s0, %s815_s24  ;;  %s1016_s28 = sshll.u32 %s1344_s23, 3 }
  0x15   : > { %s1215_s4 = scalar_lea.vmem %s1334_s1, %s1016_s28 }
  0x16   : > { %v1160_v0 = vmov 0.0  }
  0x17   : > { %285 = vst [vmem:[#allocation2] sm:$0xff] %v1160_v0 }
  0x18   : > { %286 = vst [vmem:[#allocation2 + $0x8] sm:$0xff] %v1160_v0 }
  0x19 PF: > { %v877_v1 = vld [vmem:[%s1215_s4 + $0x70] sm:$0xf]  ;;  %v1032_v2 = vld [vmem:[%s1215_s4 + $0x74] sm:$0xf0]  ;;  %v869_v6 = vld [vmem:[%s1215_s4 + $0x60] sm:$0xf] }
  0x1a   : > { %v941_v3 = vld [vmem:[%s1215_s4 + $0xf0] sm:$0xf]  ;;  %v878_v4 = vor.u32 %v1032_v2, %v877_v1  ;;  %v1048_v5 = vld [vmem:[%s1215_s4 + $0xf4] sm:$0xf0]  ;;  %v1030_v7 = vld [vmem:[%s1215_s4 + $0x64] sm:$0xf0] }
  0x1b   : > { %v942_v8 = vor.u32 %v1048_v5, %v941_v3  ;;  %v933_v9 = vld [vmem:[%s1215_s4 + $0xe0] sm:$0xf]  ;;  %v1046_v10 = vld [vmem:[%s1215_s4 + $0xe4] sm:$0xf0]  ;;  %v870_v11 = vor.u32 %v1030_v7, %v869_v6  ;;  %v861_v12 = vld [vmem:[%s1215_s4 + $0x50] sm:$0xf] }
  0x1c   : > { %590 = vmatpush.bf16.msra.mxu0 %v878_v4  ;;  %v934_v13 = vor.u32 %v1046_v10, %v933_v9  ;;  %v1028_v14 = vld [vmem:[%s1215_s4 + $0x54] sm:$0xf0]  ;;  %v1005_v15 = vld [vmem:[%s1215_s4 + $0x170] sm:$0xf]  ;;  %v997_v20 = vld [vmem:[%s1215_s4 + $0x160] sm:$0xf] }
  0x1d   : > { %603 = vmatpush.bf16.msra.mxu1 %v942_v8  ;;  %v1064_v16 = vld [vmem:[%s1215_s4 + $0x174] sm:$0xf0]  ;;  %v925_v17 = vld [vmem:[%s1215_s4 + $0xd0] sm:$0xf]  ;;  %v1062_v21 = vld [vmem:[%s1215_s4 + $0x164] sm:$0xf0]  ;;  %v862_v23 = vor.u32 %v1028_v14, %v861_v12 }
  0x1e   : > { %v1044_v18 = vld [vmem:[%s1215_s4 + $0xd4] sm:$0xf0]  ;;  %v1006_v19 = vor.u32 %v1064_v16, %v1005_v15  ;;  %v1031_v22 = vld [vmem:[%s1215_s4 + $0x74] sm:$0xf]  ;;  %v853_v24 = vld [vmem:[%s1215_s4 + $0x40] sm:$0xf]  ;;  %v998_v26 = vor.u32 %v1062_v21, %v997_v20 }
  0x1f   : > { %v1026_v25 = vld [vmem:[%s1215_s4 + $0x44] sm:$0xf0]  ;;  %v879_v27 = vld [vmem:[%s1215_s4 + $0x78] sm:$0xf0]  ;;  %v926_v28 = vor.u32 %v1044_v18, %v925_v17  ;;  %v917_v29 = vld [vmem:[%s1215_s4 + $0xc0] sm:$0xf] }
  0x20   : > { %591 = vmatpush.bf16.msra.mxu0 %v870_v11  ;;  %616 = vmatpush.bf16.msra.mxu2 %v1006_v19  ;;  %v1042_v30 = vld [vmem:[%s1215_s4 + $0xc4] sm:$0xf0]  ;;  %v882_v31 = vor.u32 %v1031_v22, %v879_v27  ;;  %v989_v32 = vld [vmem:[%s1215_s4 + $0x150] sm:$0xf]  ;;  %v1060_v33 = vld [vmem:[%s1215_s4 + $0x154] sm:$0xf0]  ;;  %v854_v37 = vor.u32 %v1026_v25, %v853_v24 }
  0x21   : > { %604 = vmatpush.bf16.msra.mxu1 %v934_v13  ;;  %v1029_v34 = vld [vmem:[%s1215_s4 + $0x64] sm:$0xf]  ;;  %v871_v35 = vld [vmem:[%s1215_s4 + $0x68] sm:$0xf0]  ;;  %v845_v38 = vld [vmem:[%s1215_s4 + $0x30] sm:$0xf]  ;;  %v990_v40 = vor.u32 %v1060_v33, %v989_v32  ;;  %v918_v42 = vor.u32 %v1042_v30, %v917_v29 }
  0x22   : > { %629 = vmatpush.bf16.msra.mxu3 %v882_v31  ;;  %v874_v36 = vor.u32 %v1029_v34, %v871_v35  ;;  %v1024_v39 = vld [vmem:[%s1215_s4 + $0x34] sm:$0xf0]  ;;  %v981_v41 = vld [vmem:[%s1215_s4 + $0x140] sm:$0xf]  ;;  %v1058_v43 = vld [vmem:[%s1215_s4 + $0x144] sm:$0xf0] }
  0x23   : > { %v1027_v44 = vld [vmem:[%s1215_s4 + $0x54] sm:$0xf]  ;;  %v863_v45 = vld [vmem:[%s1215_s4 + $0x58] sm:$0xf0]  ;;  %v909_v46 = vld [vmem:[%s1215_s4 + $0xb0] sm:$0xf]  ;;  %v846_v49 = vor.u32 %v1024_v39, %v845_v38  ;;  %v982_v51 = vor.u32 %v1058_v43, %v981_v41 }
  0x24   : > { %592 = vmatpush.bf16.msra.mxu0 %v862_v23  ;;  %617 = vmatpush.bf16.msra.mxu2 %v998_v26  ;;  %v1040_v47 = vld [vmem:[%s1215_s4 + $0xb4] sm:$0xf0]  ;;  %v866_v48 = vor.u32 %v1027_v44, %v863_v45  ;;  %v837_v50 = vld [vmem:[%s1215_s4 + $0x20] sm:$0xf]  ;;  %v1025_v52 = vld [vmem:[%s1215_s4 + $0x44] sm:$0xf] }
  0x25   : > { %605 = vmatpush.bf16.msra.mxu1 %v926_v28  ;;  %v855_v53 = vld [vmem:[%s1215_s4 + $0x48] sm:$0xf0]  ;;  %v910_v54 = vor.u32 %v1040_v47, %v909_v46  ;;  %v1022_v55 = vld [vmem:[%s1215_s4 + $0x24] sm:$0xf0]  ;;  %v973_v56 = vld [vmem:[%s1215_s4 + $0x130] sm:$0xf] }
  0x26   : > { %630 = vmatpush.bf16.msra.mxu3 %v874_v36  ;;  %v1056_v57 = vld [vmem:[%s1215_s4 + $0x134] sm:$0xf0]  ;;  %v901_v58 = vld [vmem:[%s1215_s4 + $0xa0] sm:$0xf]  ;;  %v1038_v59 = vld [vmem:[%s1215_s4 + $0xa4] sm:$0xf0]  ;;  %v858_v60 = vor.u32 %v1025_v52, %v855_v53  ;;  %v838_v61 = vor.u32 %v1022_v55, %v837_v50 }
  0x27   : > { %v829_v62 = vld [vmem:[%s1215_s4 + $0x10] sm:$0xf]  ;;  %v974_v63 = vor.u32 %v1056_v57, %v973_v56  ;;  %v1023_v0 = vld [vmem:[%s1215_s4 + $0x34] sm:$0xf]  ;;  %v847_v1 = vld [vmem:[%s1215_s4 + $0x38] sm:$0xf0]  ;;  %v902_v2 = vor.u32 %v1038_v59, %v901_v58 }
  0x28   : > { %593 = vmatpush.bf16.msra.mxu0 %v854_v37  ;;  %618 = vmatpush.bf16.msra.mxu2 %v990_v40  ;;  %v1020_v3 = vld [vmem:[%s1215_s4 + $0x14] sm:$0xf0]  ;;  %v965_v4 = vld [vmem:[%s1215_s4 + $0x120] sm:$0xf]  ;;  %v1054_v5 = vld [vmem:[%s1215_s4 + $0x124] sm:$0xf0]  ;;  %v850_v10 = vor.u32 %v1023_v0, %v847_v1 }
  0x29   : > { %606 = vmatpush.bf16.msra.mxu1 %v918_v42  ;;  %v893_v6 = vld [vmem:[%s1215_s4 + $0x90] sm:$0xf]  ;;  %v1036_v7 = vld [vmem:[%s1215_s4 + $0x94] sm:$0xf0]  ;;  %v821_v8 = vld [vmem:[%s1215_s4] sm:$0xf]  ;;  %v830_v11 = vor.u32 %v1020_v3, %v829_v62  ;;  %v966_v12 = vor.u32 %v1054_v5, %v965_v4 }
  0x2a   : > { %631 = vmatpush.bf16.msra.mxu3 %v866_v48  ;;  %v1018_v9 = vld [vmem:[%s1215_s4 + $0x4] sm:$0xf0]  ;;  %v1021_v13 = vld [vmem:[%s1215_s4 + $0x24] sm:$0xf]  ;;  %v839_v14 = vld [vmem:[%s1215_s4 + $0x28] sm:$0xf0]  ;;  %v894_v16 = vor.u32 %v1036_v7, %v893_v6 }
  0x2b   : > { %v289_v15 = vld [vmem:[%s1210_s27] sm:$0xff]  ;;  %v957_v18 = vld [vmem:[%s1215_s4 + $0x110] sm:$0xf]  ;;  %v1052_v19 = vld [vmem:[%s1215_s4 + $0x114] sm:$0xf0]  ;;  %v842_v25 = vor.u32 %v1021_v13, %v839_v14  ;;  %v822_v27 = vor.u32 %v1018_v9, %v821_v8  ;;  %p1011_p10 = scmp.ne.s32.totalorder %s1149_s12, 2 }
  0x2c   : > { %594 = vmatpush.bf16.msra.mxu0 %v846_v49  ;;  %619 = vmatpush.bf16.msra.mxu2 %v982_v51  ;;  %v885_v17 = vld [vmem:[%s1215_s4 + $0x80] sm:$0xf]  ;;  %v1034_v20 = vld [vmem:[%s1215_s4 + $0x84] sm:$0xf0]  ;;  %v1047_v21 = vld [vmem:[%s1215_s4 + $0xf4] sm:$0xf]  ;;  %v341_v26 = vunpack.c.l.b16 %v289_v15  ;;  %v958_v28 = vor.u32 %v1052_v19, %v957_v18  ;;  %v342_v29 = vunpack.c.h.b16 %v289_v15 }
  0x2d   : > { %607 = vmatpush.bf16.msra.mxu1 %v910_v54  ;;  %v943_v22 = vld [vmem:[%s1215_s4 + $0xf8] sm:$0xf0]  ;;  %v1063_v23 = vld [vmem:[%s1215_s4 + $0x174] sm:$0xf]  ;;  %v290_v32 = vld [vmem:[%s1210_s27 + $0x8] sm:$0xf]  ;;  %v886_v33 = vor.u32 %v1034_v20, %v885_v17 }
  0x2e   : > { %632 = vmatpush.bf16.msra.mxu3 %v858_v60  ;;  %v1007_v24 = vld [vmem:[%s1215_s4 + $0x178] sm:$0xf0]  ;;  %v1019_v30 = vld [vmem:[%s1215_s4 + $0x14] sm:$0xf]  ;;  %v946_v34 = vor.u32 %v1047_v21, %v943_v22  ;;  %v949_v35 = vld [vmem:[%s1215_s4 + $0x100] sm:$0xf]  ;;  %v344_v42 = vpack.c.b16 %v341_v26, %v341_v26  ;;  %v343_v44 = vunpack.c.l.b16 %v290_v32  ;;  %v1290_v45 = vpack.c.b16 %v342_v29, %v342_v29 }
  0x2f   : > { %v831_v31 = vld [vmem:[%s1215_s4 + $0x18] sm:$0xf0]  ;;  %v1050_v36 = vld [vmem:[%s1215_s4 + $0x104] sm:$0xf0]  ;;  %v1010_v37 = vor.u32 %v1063_v23, %v1007_v24  ;;  %v1045_v38 = vld [vmem:[%s1215_s4 + $0xe4] sm:$0xf] }
  0x30   : > { %595 = vmatpush.bf16.msra.mxu0 %v838_v61  ;;  %620 = vmatpush.bf16.msra.mxu2 %v974_v63  ;;  %v935_v39 = vld [vmem:[%s1215_s4 + $0xe8] sm:$0xf0]  ;;  %v1061_v40 = vld [vmem:[%s1215_s4 + $0x164] sm:$0xf]  ;;  %v834_v43 = vor.u32 %v1019_v30, %v831_v31  ;;  %v950_v46 = vor.u32 %v1050_v36, %v949_v35  ;;  %v1043_v51 = vld [vmem:[%s1215_s4 + $0xd4] sm:$0xf]  ;;  %v346_v55 = vpack.c.b16 %v343_v44, %v343_v44 }
  0x31   : > { %608 = vmatpush.bf16.msra.mxu1 %v902_v2  ;;  %v999_v41 = vld [vmem:[%s1215_s4 + $0x168] sm:$0xf0]  ;;  %v1017_v47 = vld [vmem:[%s1215_s4 + $0x4] sm:$0xf]  ;;  %v938_v49 = vor.u32 %v1045_v38, %v935_v39  ;;  %v927_v52 = vld [vmem:[%s1215_s4 + $0xd8] sm:$0xf0] }
  0x32   : > { %633 = vmatpush.bf16.msra.mxu3 %v850_v10  ;;  %v823_v48 = vld [vmem:[%s1215_s4 + $0x8] sm:$0xf0]  ;;  %v1002_v50 = vor.u32 %v1061_v40, %v999_v41  ;;  %v1059_v53 = vld [vmem:[%s1215_s4 + $0x154] sm:$0xf]  ;;  %v991_v54 = vld [vmem:[%s1215_s4 + $0x158] sm:$0xf0]  ;;  %v930_v57 = vor.u32 %v1043_v51, %v927_v52 }
  0x33   : > { %v826_v56 = vor.u32 %v1017_v47, %v823_v48  ;;  %v994_v58 = vor.u32 %v1059_v53, %v991_v54  ;;  %v1041_v59 = vld [vmem:[%s1215_s4 + $0xc4] sm:$0xf]  ;;  %v919_v60 = vld [vmem:[%s1215_s4 + $0xc8] sm:$0xf0]  ;;  %v1039_v1 = vld [vmem:[%s1215_s4 + $0xb4] sm:$0xf] }
  0x34   : > { %596 = vmatpush.bf16.msra.mxu0 %v830_v11  ;;  %621 = vmatpush.bf16.msra.mxu2 %v966_v12  ;;  %v1057_v61 = vld [vmem:[%s1215_s4 + $0x144] sm:$0xf]  ;;  %v983_v62 = vld [vmem:[%s1215_s4 + $0x148] sm:$0xf0]  ;;  %v922_v63 = vor.u32 %v1041_v59, %v919_v60  ;;  %v911_v2 = vld [vmem:[%s1215_s4 + $0xb8] sm:$0xf0] }
  0x35   : > { %609 = vmatpush.bf16.msra.mxu1 %v894_v16  ;;  %v986_v0 = vor.u32 %v1057_v61, %v983_v62  ;;  %v1055_v3 = vld [vmem:[%s1215_s4 + $0x134] sm:$0xf]  ;;  %v975_v4 = vld [vmem:[%s1215_s4 + $0x138] sm:$0xf0]  ;;  %v914_v5 = vor.u32 %v1039_v1, %v911_v2  ;;  %v1037_v7 = vld [vmem:[%s1215_s4 + $0xa4] sm:$0xf] }
  0x36   : > { %634 = vmatpush.bf16.msra.mxu3 %v842_v25  ;;  %v978_v6 = vor.u32 %v1055_v3, %v975_v4  ;;  %v903_v8 = vld [vmem:[%s1215_s4 + $0xa8] sm:$0xf0]  ;;  %v1053_v9 = vld [vmem:[%s1215_s4 + $0x124] sm:$0xf]  ;;  %v1035_v13 = vld [vmem:[%s1215_s4 + $0x94] sm:$0xf] }
  0x37   : > { %v967_v10 = vld [vmem:[%s1215_s4 + $0x128] sm:$0xf0]  ;;  %v906_v11 = vor.u32 %v1037_v7, %v903_v8  ;;  %v895_v14 = vld [vmem:[%s1215_s4 + $0x98] sm:$0xf0]  ;;  %v1051_v15 = vld [vmem:[%s1215_s4 + $0x114] sm:$0xf] }
  0x38   : > { %597 = vmatpush.bf16.msra.mxu0 %v822_v27  ;;  %622 = vmatpush.bf16.msra.mxu2 %v958_v28  ;;  %v970_v12 = vor.u32 %v1053_v9, %v967_v10  ;;  %v959_v16 = vld [vmem:[%s1215_s4 + $0x118] sm:$0xf0]  ;;  %v898_v17 = vor.u32 %v1035_v13, %v895_v14  ;;  %v1033_v19 = vld [vmem:[%s1215_s4 + $0x84] sm:$0xf]  ;;  %v887_v20 = vld [vmem:[%s1215_s4 + $0x88] sm:$0xf0] }
  0x39   : > { %610 = vmatpush.bf16.msra.mxu1 %v886_v33  ;;  %v962_v18 = vor.u32 %v1051_v15, %v959_v16  ;;  %v1049_v21 = vld [vmem:[%s1215_s4 + $0x104] sm:$0xf]  ;;  %v951_v22 = vld [vmem:[%s1215_s4 + $0x108] sm:$0xf0]  ;;  %v890_v23 = vor.u32 %v1033_v19, %v887_v20 }
  0x3a   : > { %635 = vmatpush.bf16.msra.mxu3 %v834_v43  ;;  %v954_v24 = vor.u32 %v1049_v21, %v951_v22  ;;  %v287_v30 = vld [vmem:[#allocation2] sm:$0xff]  ;;  %v288_v40 = vld [vmem:[#allocation2 + $0x8] sm:$0xff] }
  0x3b   : > { %598 = vmatmul.bf16.vlgmr.msra.gmra.mxu0 %v344_v42 }
  0x3c   : > { %642 = vmatpush.bf16.msrb.mxu0 %v946_v34  ;;  %611 = vmatmul.bf16.vlgmr.msra.gmra.mxu1 %v1290_v45 }
  0x3d   : > { %655 = vmatpush.bf16.msrb.mxu1 %v1010_v37  ;;  %623 = vmatpush.bf16.msra.mxu2 %v950_v46 }
  0x3e   : > { %636 = vmatpush.bf16.msra.mxu3 %v826_v56 }
  0x40   : > { %643 = vmatpush.bf16.msrb.mxu0 %v938_v49  ;;  %624 = vmatmul.bf16.vlgmr.msra.gmra.mxu2 %v346_v55 }
  0x41   : > { %656 = vmatpush.bf16.msrb.mxu1 %v1002_v50  ;;  %637 = vmatmul.bf16.vlgmr.msra.gmra.mxu3 %v344_v42 }
  0x44   : > { %644 = vmatpush.bf16.msrb.mxu0 %v930_v57 }
  0x45   : > { %657 = vmatpush.bf16.msrb.mxu1 %v994_v58 }
  0x48   : > { %645 = vmatpush.bf16.msrb.mxu0 %v922_v63 }
  0x49   : > { %658 = vmatpush.bf16.msrb.mxu1 %v986_v0 }
  0x4c   : > { %646 = vmatpush.bf16.msrb.mxu0 %v914_v5 }
  0x4d   : > { %659 = vmatpush.bf16.msrb.mxu1 %v978_v6 }
  0x50   : > { %647 = vmatpush.bf16.msrb.mxu0 %v906_v11 }
  0x51   : > { %660 = vmatpush.bf16.msrb.mxu1 %v970_v12 }
  0x54   : > { %648 = vmatpush.bf16.msrb.mxu0 %v898_v17 }
  0x55   : > { %661 = vmatpush.bf16.msrb.mxu1 %v962_v18 }
  0x58   : > { %649 = vmatpush.bf16.msrb.mxu0 %v890_v23 }
  0x59   : > { %662 = vmatpush.bf16.msrb.mxu1 %v954_v24 }
  0x5b   : > { %650 = vmatmul.bf16.vlgmr.msrb.gmra.mxu0 %v1290_v45 }
  0x5c   : > { %663 = vmatmul.bf16.vlgmr.msrb.gmra.mxu1 %v346_v55 }
  0xb8   : > { %v599_v25 = vpop.f32.mrf.mxu0 }
  0xb9   : > { %v612_v26 = vpop.f32.mrf.mxu1 }
  0xba   : > { %v613_v27 = vadd.f32 %v612_v26, %v599_v25 }
  0xc0   : > { %v601_v28 = vpop.f32.mrf.mxu0 }
  0xc1   : > { %v614_v29 = vpop.f32.mrf.mxu1 }
  0xc3   : > { %v625_v31 = vpop.f32.mrf.mxu2 }
  0xc4   : > { %v626_v32 = vadd.f32 %v625_v31, %v613_v27  ;;  %v638_v34 = vpop.f32.mrf.mxu3 }
  0xc6   : > { %v668_v33 = vadd.f32 %v626_v32, %v287_v30 }
  0xc8   : > { %670 = vst [vmem:[#allocation2] sm:$0xff] %v668_v33 }
  0xcb   : > { %v627_v35 = vpop.f32.mrf.mxu2 }
  0xcc   : > { %v640_v36 = vpop.f32.mrf.mxu3 }
  0xd8   : > { %v651_v37 = vpop.f32.mrf.mxu0 }
  0xd9   : > { %v652_v38 = vadd.f32 %v651_v37, %v638_v34  ;;  %v664_v39 = vpop.f32.mrf.mxu1 }
  0xdb   : > { %v665_v41 = vadd.f32 %v664_v39, %v652_v38 }
  0xdd   : > { %v669_v42 = vadd.f32 %v665_v41, %v288_v40  ;;  %675 = sbr.rel (%p1011_p10) target bundleno = 238 (0xee), region = 44 }
  0xdf   : > { %671 = vst [vmem:[#allocation2 + $0x8] sm:$0xff] %v669_v42 }
  0xe0   : > { %v653_v43 = vpop.f32.mrf.mxu0 }
  0xe1   : > { %v666_v44 = vpop.f32.mrf.mxu1 }
  0xe2   : > { %v676_v45 = vld [vmem:[#allocation2] sm:$0xff]  ;;  %v678_v47 = vld [vmem:[#allocation3] sm:$0x3] }
  0xe3   : > { %v680_v48 = vperm.slane %v678_v47, 0  ;;  %v681_v49 = vperm.slane %v678_v47, 1 }
  0xe5   : > { %v684_v50 = vadd.f32 %v680_v48, %v676_v45 }
  0xe6   : > { %v677_v46 = vld [vmem:[#allocation2 + $0x8] sm:$0xff] }
  0xe7   : > { %v685_v51 = vadd.f32 %v681_v49, %v677_v46  ;;  %v686_v52 = vmax.f32 %v684_v50, 0.0 }
  0xe9   : > { %v687_v53 = vmax.f32 %v685_v51, 0.0 }
  0xeb   : > { %v688_v54 = vpack.c.bf16 %v687_v53, %v686_v52 }
  0xed   : > { %689 = vst [vmem:[%s1336_s3] sm:$0xff] %v688_v54 }
  0xee PF: > { %s14_s14 = sadd.s32 1, %s1157_s14   ;;  %s1337_s12 = smov %s1153_s13 }
  0xef   : > { %p11_p11 = scmp.ge.s32.totalorder %s14_s14, 5   ;;  %s1338_s13 = smov %s1340_s16 }
  0xf1   :  { %13 = sbr.rel (!%p11_p11) target bundleno = 2 (0x2), region = 79 }
  0xf6   :  { %720 = vsyncpa [#allocation4], 1 }
  0xf7   :  { %722 = vsyncpa [#allocation4 + $0x1], 1 }

// kernel: resnet18_forward.34
= control target key start
LH: loop header
LB: loop body
LE: loop exit
PB: predicated region body
PF: predicated region fallthrough
CT: control target
= control target key end

     0   :  { %8 = vsyncpa [#allocation4], 0  ;;  %s290_s15 = smov [#allocation3]   ;;  %s416_s0 = inlined_call_operand.vmem [shape: bf16[8,128], index: 0, kind: input, shape index: {}]   ;;  %s417_s1 = inlined_call_operand.vmem [shape: bf16[128,256], index: 1, kind: input, shape index: {}]   ;;  %s418_s2 = inlined_call_operand.hbm [shape: f32[1,256], index: 2, kind: input, shape index: {}]   ;;  %s419_s3 = inlined_call_operand.vmem [shape: bf16[8,256], index: 3, kind: output, shape index: {}]  }
   0x1   :  { %s18_s14 = sshll.u32 %s418_s2, 4  ;;  %s20_s16 = sshll.u32 %s290_s15, 4  ;;  %s19_s14 = int_to_ptr.hbm [resolvable:$true] %s18_s14  ;;  %s21_s16 = int_to_ptr.vmem [resolvable:$true] %s20_s16 }
   0x2   :  { %23 = dma.hbm_to_vmem [thread:$0]  %s19_s14, 32, %s21_s16, [#allocation4]  }
   0x3   :  { %288 = dma.done.wait [#allocation4], 32  }
   0x4   :  { %289 = vsyncadd [#allocation4], 4294967264  ;;  %v241_v0 = vld [vmem:[%s417_s1 + $0x70] sm:$0xf]  ;;  %v262_v1 = vld [vmem:[%s417_s1 + $0x74] sm:$0xf0] }
   0x5   :  { %v261_v2 = vld [vmem:[%s417_s1 + $0x74] sm:$0xf]  ;;  %v242_v3 = vor.u32 %v262_v1, %v241_v0  ;;  %v243_v4 = vld [vmem:[%s417_s1 + $0x78] sm:$0xf0]  ;;  %v233_v5 = vld [vmem:[%s417_s1 + $0x60] sm:$0xf] }
   0x6   :  { %v260_v6 = vld [vmem:[%s417_s1 + $0x64] sm:$0xf0]  ;;  %v246_v7 = vor.u32 %v261_v2, %v243_v4  ;;  %v259_v8 = vld [vmem:[%s417_s1 + $0x64] sm:$0xf]  ;;  %v235_v9 = vld [vmem:[%s417_s1 + $0x68] sm:$0xf0] }
   0x7   :  { %133 = vmatpush.bf16.msra.mxu0 %v242_v3  ;;  %v234_v10 = vor.u32 %v260_v6, %v233_v5  ;;  %v238_v11 = vor.u32 %v259_v8, %v235_v9  ;;  %v225_v12 = vld [vmem:[%s417_s1 + $0x50] sm:$0xf]  ;;  %v258_v13 = vld [vmem:[%s417_s1 + $0x54] sm:$0xf0]  ;;  %v257_v14 = vld [vmem:[%s417_s1 + $0x54] sm:$0xf] }
   0x8   :  { %146 = vmatpush.bf16.msra.mxu1 %v246_v7  ;;  %v227_v15 = vld [vmem:[%s417_s1 + $0x58] sm:$0xf0]  ;;  %v226_v16 = vor.u32 %v258_v13, %v225_v12  ;;  %v217_v18 = vld [vmem:[%s417_s1 + $0x40] sm:$0xf]  ;;  %v256_v19 = vld [vmem:[%s417_s1 + $0x44] sm:$0xf0] }
   0x9   :  { %v230_v17 = vor.u32 %v257_v14, %v227_v15  ;;  %v255_v20 = vld [vmem:[%s417_s1 + $0x44] sm:$0xf]  ;;  %v219_v21 = vld [vmem:[%s417_s1 + $0x48] sm:$0xf0]  ;;  %v218_v22 = vor.u32 %v256_v19, %v217_v18  ;;  %v209_v24 = vld [vmem:[%s417_s1 + $0x30] sm:$0xf] }
   0xa   :  { %v222_v23 = vor.u32 %v255_v20, %v219_v21  ;;  %v254_v25 = vld [vmem:[%s417_s1 + $0x34] sm:$0xf0]  ;;  %v253_v26 = vld [vmem:[%s417_s1 + $0x34] sm:$0xf]  ;;  %v211_v27 = vld [vmem:[%s417_s1 + $0x38] sm:$0xf0] }
   0xb   :  { %134 = vmatpush.bf16.msra.mxu0 %v234_v10  ;;  %v210_v28 = vor.u32 %v254_v25, %v209_v24  ;;  %v214_v29 = vor.u32 %v253_v26, %v211_v27  ;;  %v201_v30 = vld [vmem:[%s417_s1 + $0x20] sm:$0xf]  ;;  %v252_v31 = vld [vmem:[%s417_s1 + $0x24] sm:$0xf0]  ;;  %v251_v32 = vld [vmem:[%s417_s1 + $0x24] sm:$0xf] }
   0xc   :  { %147 = vmatpush.bf16.msra.mxu1 %v238_v11  ;;  %v203_v33 = vld [vmem:[%s417_s1 + $0x28] sm:$0xf0]  ;;  %v202_v34 = vor.u32 %v252_v31, %v201_v30  ;;  %v193_v36 = vld [vmem:[%s417_s1 + $0x10] sm:$0xf]  ;;  %v250_v37 = vld [vmem:[%s417_s1 + $0x14] sm:$0xf0] }
   0xd   :  { %v206_v35 = vor.u32 %v251_v32, %v203_v33  ;;  %v249_v38 = vld [vmem:[%s417_s1 + $0x14] sm:$0xf]  ;;  %v195_v39 = vld [vmem:[%s417_s1 + $0x18] sm:$0xf0]  ;;  %v194_v40 = vor.u32 %v250_v37, %v193_v36  ;;  %v185_v42 = vld [vmem:[%s417_s1] sm:$0xf] }
   0xe   :  { %v198_v41 = vor.u32 %v249_v38, %v195_v39  ;;  %v248_v43 = vld [vmem:[%s417_s1 + $0x4] sm:$0xf0]  ;;  %v247_v44 = vld [vmem:[%s417_s1 + $0x4] sm:$0xf]  ;;  %v187_v45 = vld [vmem:[%s417_s1 + $0x8] sm:$0xf0] }
   0xf   :  { %135 = vmatpush.bf16.msra.mxu0 %v226_v16  ;;  %v186_v46 = vor.u32 %v248_v43, %v185_v42  ;;  %v190_v47 = vor.u32 %v247_v44, %v187_v45  ;;  %v36_v48 = vld [vmem:[%s416_s0] sm:$0xf] }
  0x10   :  { %148 = vmatpush.bf16.msra.mxu1 %v230_v17  ;;  %v168_v49 = vld [vmem:[#allocation3] sm:$0x3] }
  0x11   :  { %v170_v50 = vperm.slane %v168_v49, 0  ;;  %v171_v51 = vperm.slane %v168_v49, 1 }
  0x13   :  { %136 = vmatpush.bf16.msra.mxu0 %v218_v22 }
  0x14   :  { %149 = vmatpush.bf16.msra.mxu1 %v222_v23 }
  0x17   :  { %137 = vmatpush.bf16.msra.mxu0 %v210_v28 }
  0x18   :  { %150 = vmatpush.bf16.msra.mxu1 %v214_v29 }
  0x1b   :  { %138 = vmatpush.bf16.msra.mxu0 %v202_v34 }
  0x1c   :  { %151 = vmatpush.bf16.msra.mxu1 %v206_v35 }
  0x1f   :  { %139 = vmatpush.bf16.msra.mxu0 %v194_v40 }
  0x20   :  { %152 = vmatpush.bf16.msra.mxu1 %v198_v41 }
  0x23   :  { %140 = vmatpush.bf16.msra.mxu0 %v186_v46 }
  0x24   :  { %153 = vmatpush.bf16.msra.mxu1 %v190_v47 }
  0x26   :  { %141 = vmatmul.bf16.vlgmr.msra.gmra.mxu0 %v36_v48 }
  0x27   :  { %154 = vmatmul.bf16.vlgmr.msra.gmra.mxu1 %v36_v48 }
  0xa3   :  { %v142_v52 = vpop.f32.mrf.mxu0 }
  0xa4   :  { %v174_v53 = vadd.f32 %v170_v50, %v142_v52  ;;  %v155_v54 = vpop.f32.mrf.mxu1 }
  0xa5   :  { %v175_v55 = vadd.f32 %v171_v51, %v155_v54 }
  0xa7   :  { %v176_v56 = vpack.c.bf16 %v175_v55, %v174_v53 }
  0xa9   :  { %177 = vst [vmem:[%s419_s3] sm:$0xff] %v176_v56 }
  0xab   :  { %v144_v57 = vpop.f32.mrf.mxu0 }
  0xac   :  { %v157_v58 = vpop.f32.mrf.mxu1 }
  0xad   :  { %182 = vsyncpa [#allocation4], 1 }

// kernel: resnet18_forward.35
= control target key start
LH: loop header
LB: loop body
LE: loop exit
PB: predicated region body
PF: predicated region fallthrough
CT: control target
= control target key end

     0   :  { %9 = vsyncpa [#allocation4], 0  ;;  %s1893_s15 = smov 0   ;;  %s1895_s16 = smov 0   ;;  %s2165_s0 = inlined_call_operand.vmem [shape: bf16[8,2304], index: 0, kind: input, shape index: {}]   ;;  %s2166_s1 = inlined_call_operand.vmem [shape: bf16[2304,256], index: 1, kind: input, shape index: {}]   ;;  %s2167_s2 = inlined_call_operand.hbm [shape: f32[1,256], index: 2, kind: input, shape index: {}]   ;;  %s2168_s3 = inlined_call_operand.vmem [shape: bf16[8,256], index: 3, kind: input, shape index: {}]   ;;  %s2169_s4 = inlined_call_operand.vmem [shape: bf16[8,256], index: 4, kind: output, shape index: {}]  }
   0x1   :  { %s1897_s17 = smov 0  }
   0x2 LB: > { %s1275_s18 = sadd.s32 4294967295, %s1864_s17   ;;  %s27_s19 = sadd.s32 1, %s1860_s16  ;;  %s1864_s17 = sphi %s1897_s17, %s15_s17   ;;  %s1860_s16 = sphi %s1895_s16, %s2171_s16   ;;  %s1856_s15 = sphi %s1893_s15, %s2170_s15  }
   0x3   : > { %p28_p0 = scmp.ge.s32.totalorder %s27_s19, 3  ;;  %p1276_p1 = scmp.ge.s32.totalorder %s1864_s17, 1 }
   0x4   : > { %p177_p2 = scmp.lt.s32.totalorder %s1864_s17, 4  ;;  %p1780_p4 = scmp.eq.s32.totalorder %s1275_s18, 0 }
   0x5   : > { %s2173_s19 = smov (%p28_p0, %s27_s19), 0  ;;  %s191_s22 = sshll.u32 %s2167_s2, 4  ;;  %s192_s22 = int_to_ptr.hbm [resolvable:$true] %s191_s22 }
   0x6   : > { %p178_p3 = pnand %p1276_p1, %p177_p2  ;;  %s1866_s23 = smov [#allocation3]  }
   0x7   : > { %s193_s24 = sshll.u32 %s1866_s23, 4  ;;  %s194_s24 = int_to_ptr.vmem [resolvable:$true] %s193_s24 }
   0x8   : > { %p1776_p5 = pneg %p178_p3  ;;  %247 = sbr.rel (%p178_p3) target bundleno = 280 (0x118), region = 36 }
   0xa   : > { %p1777_p6 = pnand %p1780_p4, %p1776_p5 }
   0xc   : > { %1779 = dma.hbm_to_vmem [thread:$0]  (!%p1777_p6), %s192_s22, 32, %s194_s24, [#allocation4]  }
   0xd   : > { %1851 = dma.done.wait (%p1780_p4), [#allocation4], 32  }
   0xe   : > { %1853 = vsyncadd (%p1780_p4), [#allocation4], 4294967264  ;;  %s301_s25 = smul.u32 6, %s1856_s15  ;;  %p1285_p9 = scmp.ne.s32.totalorder %s1856_s15, 0 }
   0xf   : > { %s311_s26 = smul.u32 96, %s1856_s15 }
  0x10   : > { %p304_p7 = scmp.lt.s32.totalorder %s301_s25, 17 }
  0x11   : > { %p313_p8 = scmp.lt.s32.totalorder %s311_s26, 287  ;;  %347 = sbr.rel (%p1285_p9) target bundleno = 25 (0x19), region = 44 }
  0x12   : > { %s2175_s25 = smov (!%p304_p7, %s301_s25), 17 }
  0x13   : > { %s2177_s26 = smov (!%p313_p8, %s311_s26), 287  ;;  %s1282_s27 = sshll.u32 %s2175_s25, 2 }
  0x14   : > { %s1922_s30 = scalar_lea.vmem %s2165_s0, %s1282_s27  ;;  %s1675_s5 = sshll.u32 %s2177_s26, 3 }
  0x15   : > { %s1927_s8 = scalar_lea.vmem %s2166_s1, %s1675_s5 }
  0x16   : > { %v1867_v0 = vmov 0.0  }
  0x17   : > { %348 = vst [vmem:[#allocation2] sm:$0xff] %v1867_v0 }
  0x18   : > { %349 = vst [vmem:[#allocation2 + $0x8] sm:$0xff] %v1867_v0 }
  0x19 PF: > { %v1344_v1 = vld [vmem:[%s1927_s8 + $0x70] sm:$0xf]  ;;  %v1691_v2 = vld [vmem:[%s1927_s8 + $0x74] sm:$0xf0]  ;;  %v1336_v12 = vld [vmem:[%s1927_s8 + $0x60] sm:$0xf] }
  0x1a   : > { %v1408_v3 = vld [vmem:[%s1927_s8 + $0xf0] sm:$0xf]  ;;  %v1345_v4 = vor.u32 %v1691_v2, %v1344_v1  ;;  %v1707_v5 = vld [vmem:[%s1927_s8 + $0xf4] sm:$0xf0]  ;;  %v1689_v14 = vld [vmem:[%s1927_s8 + $0x64] sm:$0xf0] }
  0x1b   : > { %v1472_v6 = vld [vmem:[%s1927_s8 + $0x170] sm:$0xf]  ;;  %v1723_v7 = vld [vmem:[%s1927_s8 + $0x174] sm:$0xf0]  ;;  %v1409_v8 = vor.u32 %v1707_v5, %v1408_v3  ;;  %v1400_v15 = vld [vmem:[%s1927_s8 + $0xe0] sm:$0xf]  ;;  %v1337_v17 = vor.u32 %v1689_v14, %v1336_v12 }
  0x1c   : > { %v1473_v9 = vor.u32 %v1723_v7, %v1472_v6  ;;  %v1536_v10 = vld [vmem:[%s1927_s8 + $0x1f0] sm:$0xf]  ;;  %v1739_v11 = vld [vmem:[%s1927_s8 + $0x1f4] sm:$0xf0]  ;;  %952 = vmatpush.bf16.msra.mxu0 %v1345_v4  ;;  %v1705_v16 = vld [vmem:[%s1927_s8 + $0xe4] sm:$0xf0] }
  0x1d   : > { %v1537_v13 = vor.u32 %v1739_v11, %v1536_v10  ;;  %965 = vmatpush.bf16.msra.mxu1 %v1409_v8  ;;  %v1401_v18 = vor.u32 %v1705_v16, %v1400_v15  ;;  %v1464_v19 = vld [vmem:[%s1927_s8 + $0x160] sm:$0xf]  ;;  %v1721_v20 = vld [vmem:[%s1927_s8 + $0x164] sm:$0xf0]  ;;  %v1328_v24 = vld [vmem:[%s1927_s8 + $0x50] sm:$0xf] }
  0x1e   : > { %978 = vmatpush.bf16.msra.mxu2 %v1473_v9  ;;  %v1528_v21 = vld [vmem:[%s1927_s8 + $0x1e0] sm:$0xf]  ;;  %v1465_v22 = vor.u32 %v1721_v20, %v1464_v19  ;;  %v1737_v23 = vld [vmem:[%s1927_s8 + $0x1e4] sm:$0xf0]  ;;  %v1687_v25 = vld [vmem:[%s1927_s8 + $0x54] sm:$0xf0] }
  0x1f   : > { %991 = vmatpush.bf16.msra.mxu3 %v1537_v13  ;;  %v1529_v26 = vor.u32 %v1737_v23, %v1528_v21  ;;  %v1392_v27 = vld [vmem:[%s1927_s8 + $0xd0] sm:$0xf]  ;;  %v1703_v28 = vld [vmem:[%s1927_s8 + $0xd4] sm:$0xf0]  ;;  %v1329_v30 = vor.u32 %v1687_v25, %v1328_v24  ;;  %v1320_v36 = vld [vmem:[%s1927_s8 + $0x40] sm:$0xf] }
  0x20   : > { %v1456_v29 = vld [vmem:[%s1927_s8 + $0x150] sm:$0xf]  ;;  %953 = vmatpush.bf16.msra.mxu0 %v1337_v17  ;;  %v1719_v31 = vld [vmem:[%s1927_s8 + $0x154] sm:$0xf0]  ;;  %v1393_v34 = vor.u32 %v1703_v28, %v1392_v27  ;;  %v1685_v37 = vld [vmem:[%s1927_s8 + $0x44] sm:$0xf0] }
  0x21   : > { %v1520_v32 = vld [vmem:[%s1927_s8 + $0x1d0] sm:$0xf]  ;;  %v1735_v33 = vld [vmem:[%s1927_s8 + $0x1d4] sm:$0xf0]  ;;  %966 = vmatpush.bf16.msra.mxu1 %v1401_v18  ;;  %v1457_v35 = vor.u32 %v1719_v31, %v1456_v29  ;;  %v1384_v38 = vld [vmem:[%s1927_s8 + $0xc0] sm:$0xf]  ;;  %v1321_v45 = vor.u32 %v1685_v37, %v1320_v36 }
  0x22   : > { %979 = vmatpush.bf16.msra.mxu2 %v1465_v22  ;;  %v1521_v39 = vor.u32 %v1735_v33, %v1520_v32  ;;  %v1701_v40 = vld [vmem:[%s1927_s8 + $0xc4] sm:$0xf0]  ;;  %v1448_v41 = vld [vmem:[%s1927_s8 + $0x140] sm:$0xf]  ;;  %v1312_v48 = vld [vmem:[%s1927_s8 + $0x30] sm:$0xf] }
  0x23   : > { %992 = vmatpush.bf16.msra.mxu3 %v1529_v26  ;;  %v1717_v42 = vld [vmem:[%s1927_s8 + $0x144] sm:$0xf0]  ;;  %v1512_v43 = vld [vmem:[%s1927_s8 + $0x1c0] sm:$0xf]  ;;  %v1385_v46 = vor.u32 %v1701_v40, %v1384_v38  ;;  %v1683_v49 = vld [vmem:[%s1927_s8 + $0x34] sm:$0xf0] }
  0x24   : > { %v1733_v44 = vld [vmem:[%s1927_s8 + $0x1c4] sm:$0xf0]  ;;  %954 = vmatpush.bf16.msra.mxu0 %v1329_v30  ;;  %v1449_v47 = vor.u32 %v1717_v42, %v1448_v41  ;;  %v1376_v50 = vld [vmem:[%s1927_s8 + $0xb0] sm:$0xf]  ;;  %v1699_v52 = vld [vmem:[%s1927_s8 + $0xb4] sm:$0xf0]  ;;  %v1313_v57 = vor.u32 %v1683_v49, %v1312_v48 }
  0x25   : > { %967 = vmatpush.bf16.msra.mxu1 %v1393_v34  ;;  %v1513_v51 = vor.u32 %v1733_v44, %v1512_v43  ;;  %v1440_v53 = vld [vmem:[%s1927_s8 + $0x130] sm:$0xf]  ;;  %v1715_v54 = vld [vmem:[%s1927_s8 + $0x134] sm:$0xf0]  ;;  %v1377_v58 = vor.u32 %v1699_v52, %v1376_v50  ;;  %v1304_v60 = vld [vmem:[%s1927_s8 + $0x20] sm:$0xf] }
  0x26   : > { %980 = vmatpush.bf16.msra.mxu2 %v1457_v35  ;;  %v1504_v55 = vld [vmem:[%s1927_s8 + $0x1b0] sm:$0xf]  ;;  %v1731_v56 = vld [vmem:[%s1927_s8 + $0x1b4] sm:$0xf0]  ;;  %v1441_v59 = vor.u32 %v1715_v54, %v1440_v53  ;;  %v1681_v61 = vld [vmem:[%s1927_s8 + $0x24] sm:$0xf0] }
  0x27   : > { %993 = vmatpush.bf16.msra.mxu3 %v1521_v39  ;;  %v1368_v62 = vld [vmem:[%s1927_s8 + $0xa0] sm:$0xf]  ;;  %v1505_v63 = vor.u32 %v1731_v56, %v1504_v55  ;;  %v1697_v0 = vld [vmem:[%s1927_s8 + $0xa4] sm:$0xf0]  ;;  %v1305_v5 = vor.u32 %v1681_v61, %v1304_v60  ;;  %v1296_v8 = vld [vmem:[%s1927_s8 + $0x10] sm:$0xf] }
  0x28   : > { %955 = vmatpush.bf16.msra.mxu0 %v1321_v45  ;;  %v1432_v1 = vld [vmem:[%s1927_s8 + $0x120] sm:$0xf]  ;;  %v1713_v2 = vld [vmem:[%s1927_s8 + $0x124] sm:$0xf0]  ;;  %v1369_v6 = vor.u32 %v1697_v0, %v1368_v62  ;;  %v1679_v9 = vld [vmem:[%s1927_s8 + $0x14] sm:$0xf0] }
  0x29   : > { %968 = vmatpush.bf16.msra.mxu1 %v1385_v46  ;;  %v1496_v3 = vld [vmem:[%s1927_s8 + $0x1a0] sm:$0xf]  ;;  %v1729_v4 = vld [vmem:[%s1927_s8 + $0x1a4] sm:$0xf0]  ;;  %v1433_v7 = vor.u32 %v1713_v2, %v1432_v1  ;;  %v1360_v10 = vld [vmem:[%s1927_s8 + $0x90] sm:$0xf]  ;;  %v1297_v17 = vor.u32 %v1679_v9, %v1296_v8 }
  0x2a   : > { %981 = vmatpush.bf16.msra.mxu2 %v1449_v47  ;;  %v1497_v11 = vor.u32 %v1729_v4, %v1496_v3  ;;  %v1695_v12 = vld [vmem:[%s1927_s8 + $0x94] sm:$0xf0]  ;;  %v1424_v13 = vld [vmem:[%s1927_s8 + $0x110] sm:$0xf]  ;;  %v1288_v18 = vld [vmem:[%s1927_s8] sm:$0xf] }
  0x2b   : > { %994 = vmatpush.bf16.msra.mxu3 %v1513_v51  ;;  %v1711_v14 = vld [vmem:[%s1927_s8 + $0x114] sm:$0xf0]  ;;  %v1488_v15 = vld [vmem:[%s1927_s8 + $0x190] sm:$0xf]  ;;  %v1677_v19 = vld [vmem:[%s1927_s8 + $0x4] sm:$0xf0]  ;;  %v1361_v20 = vor.u32 %v1695_v12, %v1360_v10 }
  0x2c   : > { %956 = vmatpush.bf16.msra.mxu0 %v1313_v57  ;;  %v1727_v16 = vld [vmem:[%s1927_s8 + $0x194] sm:$0xf0]  ;;  %v1425_v21 = vor.u32 %v1711_v14, %v1424_v13  ;;  %v1352_v22 = vld [vmem:[%s1927_s8 + $0x80] sm:$0xf]  ;;  %v1693_v23 = vld [vmem:[%s1927_s8 + $0x84] sm:$0xf0]  ;;  %v1289_v32 = vor.u32 %v1677_v19, %v1288_v18 }
  0x2d   : > { %969 = vmatpush.bf16.msra.mxu1 %v1377_v58  ;;  %v1416_v24 = vld [vmem:[%s1927_s8 + $0x100] sm:$0xf]  ;;  %v1489_v25 = vor.u32 %v1727_v16, %v1488_v15  ;;  %v1709_v26 = vld [vmem:[%s1927_s8 + $0x104] sm:$0xf0]  ;;  %v1600_v29 = vld [vmem:[%s1927_s8 + $0x270] sm:$0xf]  ;;  %v1353_v36 = vor.u32 %v1693_v23, %v1352_v22 }
  0x2e   : > { %982 = vmatpush.bf16.msra.mxu2 %v1441_v59  ;;  %v1480_v27 = vld [vmem:[%s1927_s8 + $0x180] sm:$0xf]  ;;  %v1725_v28 = vld [vmem:[%s1927_s8 + $0x184] sm:$0xf0]  ;;  %v1755_v30 = vld [vmem:[%s1927_s8 + $0x274] sm:$0xf0]  ;;  %v1417_v37 = vor.u32 %v1709_v26, %v1416_v24 }
  0x2f   : > { %995 = vmatpush.bf16.msra.mxu3 %v1505_v63  ;;  %v1664_v31 = vld [vmem:[%s1927_s8 + $0x2f0] sm:$0xf]  ;;  %v1771_v33 = vld [vmem:[%s1927_s8 + $0x2f4] sm:$0xf0]  ;;  %v1690_v34 = vld [vmem:[%s1927_s8 + $0x74] sm:$0xf]  ;;  %v1481_v40 = vor.u32 %v1725_v28, %v1480_v27  ;;  %v1601_v41 = vor.u32 %v1755_v30, %v1600_v29 }
  0x30   : > { %957 = vmatpush.bf16.msra.mxu0 %v1305_v5  ;;  %v1346_v35 = vld [vmem:[%s1927_s8 + $0x78] sm:$0xf0]  ;;  %v1706_v38 = vld [vmem:[%s1927_s8 + $0xf4] sm:$0xf]  ;;  %v1665_v42 = vor.u32 %v1771_v33, %v1664_v31  ;;  %v1592_v44 = vld [vmem:[%s1927_s8 + $0x260] sm:$0xf] }
  0x31   : > { %970 = vmatpush.bf16.msra.mxu1 %v1369_v6  ;;  %v1410_v39 = vld [vmem:[%s1927_s8 + $0xf8] sm:$0xf0]  ;;  %v1349_v43 = vor.u32 %v1690_v34, %v1346_v35  ;;  %v1753_v45 = vld [vmem:[%s1927_s8 + $0x264] sm:$0xf0]  ;;  %v1656_v46 = vld [vmem:[%s1927_s8 + $0x2e0] sm:$0xf] }
  0x32   : > { %983 = vmatpush.bf16.msra.mxu2 %v1433_v7  ;;  %v1413_v47 = vor.u32 %v1706_v38, %v1410_v39  ;;  %v1769_v48 = vld [vmem:[%s1927_s8 + $0x2e4] sm:$0xf0]  ;;  %v1688_v49 = vld [vmem:[%s1927_s8 + $0x64] sm:$0xf]  ;;  %v1338_v50 = vld [vmem:[%s1927_s8 + $0x68] sm:$0xf0]  ;;  %v1593_v53 = vor.u32 %v1753_v45, %v1592_v44 }
  0x33   : > { %996 = vmatpush.bf16.msra.mxu3 %v1497_v11  ;;  %v1704_v51 = vld [vmem:[%s1927_s8 + $0xe4] sm:$0xf]  ;;  %v1402_v52 = vld [vmem:[%s1927_s8 + $0xe8] sm:$0xf0]  ;;  %v1584_v54 = vld [vmem:[%s1927_s8 + $0x250] sm:$0xf]  ;;  %v1657_v56 = vor.u32 %v1769_v48, %v1656_v46  ;;  %v1341_v57 = vor.u32 %v1688_v49, %v1338_v50 }
  0x34   : > { %958 = vmatpush.bf16.msra.mxu0 %v1297_v17  ;;  %v1751_v55 = vld [vmem:[%s1927_s8 + $0x254] sm:$0xf0]  ;;  %v1648_v58 = vld [vmem:[%s1927_s8 + $0x2d0] sm:$0xf]  ;;  %v352_v60 = vld [vmem:[%s1922_s30] sm:$0xff]  ;;  %v1405_v61 = vor.u32 %v1704_v51, %v1402_v52  ;;  %p1670_p10 = scmp.ne.s32.totalorder %s1856_s15, 2 }
  0x35   : > { %971 = vmatpush.bf16.msra.mxu1 %v1361_v20  ;;  %v1767_v59 = vld [vmem:[%s1927_s8 + $0x2d4] sm:$0xf0]  ;;  %v1686_v62 = vld [vmem:[%s1927_s8 + $0x54] sm:$0xf]  ;;  %v1330_v63 = vld [vmem:[%s1927_s8 + $0x58] sm:$0xf0]  ;;  %v454_v0 = vunpack.c.l.b16 %v352_v60  ;;  %v455_v2 = vunpack.c.h.b16 %v352_v60  ;;  %v1585_v7 = vor.u32 %v1751_v55, %v1584_v54 }
  0x36   : > { %984 = vmatpush.bf16.msra.mxu2 %v1425_v21  ;;  %v353_v1 = vld [vmem:[%s1922_s30 + $0x8] sm:$0xff]  ;;  %v1702_v3 = vld [vmem:[%s1927_s8 + $0xd4] sm:$0xf]  ;;  %v1394_v4 = vld [vmem:[%s1927_s8 + $0xd8] sm:$0xf0]  ;;  %v1649_v8 = vor.u32 %v1767_v59, %v1648_v58  ;;  %v1333_v11 = vor.u32 %v1686_v62, %v1330_v63 }
  0x37   : > { %997 = vmatpush.bf16.msra.mxu3 %v1489_v25  ;;  %v456_v5 = vunpack.c.l.b16 %v353_v1  ;;  %v457_v6 = vunpack.c.h.b16 %v353_v1  ;;  %v2020_v9 = vpack.c.b16 %v454_v0, %v454_v0  ;;  %v2022_v10 = vpack.c.b16 %v455_v2, %v455_v2  ;;  %v1576_v12 = vld [vmem:[%s1927_s8 + $0x240] sm:$0xf]  ;;  %v1749_v13 = vld [vmem:[%s1927_s8 + $0x244] sm:$0xf0]  ;;  %v1684_v19 = vld [vmem:[%s1927_s8 + $0x44] sm:$0xf] }
  0x38   : > { %959 = vmatpush.bf16.msra.mxu0 %v1289_v32  ;;  %v1640_v14 = vld [vmem:[%s1927_s8 + $0x2c0] sm:$0xf]  ;;  %v1397_v17 = vor.u32 %v1702_v3, %v1394_v4  ;;  %v1765_v18 = vld [vmem:[%s1927_s8 + $0x2c4] sm:$0xf0]  ;;  %v1322_v20 = vld [vmem:[%s1927_s8 + $0x48] sm:$0xf0]  ;;  %v1577_v23 = vor.u32 %v1749_v13, %v1576_v12 }
  0x39   : > { %972 = vmatpush.bf16.msra.mxu1 %v1353_v36  ;;  %v2027_v15 = vpack.c.b16 %v456_v5, %v456_v5  ;;  %v2029_v16 = vpack.c.b16 %v457_v6, %v457_v6  ;;  %v1700_v21 = vld [vmem:[%s1927_s8 + $0xc4] sm:$0xf]  ;;  %v1386_v22 = vld [vmem:[%s1927_s8 + $0xc8] sm:$0xf0]  ;;  %v1641_v24 = vor.u32 %v1765_v18, %v1640_v14  ;;  %v1325_v25 = vor.u32 %v1684_v19, %v1322_v20  ;;  %v1568_v26 = vld [vmem:[%s1927_s8 + $0x230] sm:$0xf] }
  0x3a   : > { %985 = vmatpush.bf16.msra.mxu2 %v1417_v37  ;;  %v1747_v27 = vld [vmem:[%s1927_s8 + $0x234] sm:$0xf0]  ;;  %v1632_v28 = vld [vmem:[%s1927_s8 + $0x2b0] sm:$0xf]  ;;  %v1389_v29 = vor.u32 %v1700_v21, %v1386_v22  ;;  %v1682_v31 = vld [vmem:[%s1927_s8 + $0x34] sm:$0xf] }
  0x3b   : > { %998 = vmatpush.bf16.msra.mxu3 %v1481_v40  ;;  %960 = vmatmul.bf16.vlgmr.msra.gmra.mxu0 %v2020_v9  ;;  %v1763_v30 = vld [vmem:[%s1927_s8 + $0x2b4] sm:$0xf0]  ;;  %v1314_v32 = vld [vmem:[%s1927_s8 + $0x38] sm:$0xf0]  ;;  %v1698_v33 = vld [vmem:[%s1927_s8 + $0xb4] sm:$0xf]  ;;  %v1569_v35 = vor.u32 %v1747_v27, %v1568_v26 }
  0x3c   : > { %1004 = vmatpush.bf16.msrb.mxu0 %v1601_v41  ;;  %973 = vmatmul.bf16.vlgmr.msra.gmra.mxu1 %v2022_v10  ;;  %v1378_v34 = vld [vmem:[%s1927_s8 + $0xb8] sm:$0xf0]  ;;  %v1633_v36 = vor.u32 %v1763_v30, %v1632_v28  ;;  %v1317_v37 = vor.u32 %v1682_v31, %v1314_v32  ;;  %v1560_v38 = vld [vmem:[%s1927_s8 + $0x220] sm:$0xf]  ;;  %v1745_v39 = vld [vmem:[%s1927_s8 + $0x224] sm:$0xf0] }
  0x3d   : > { %1017 = vmatpush.bf16.msrb.mxu1 %v1665_v42  ;;  %986 = vmatmul.bf16.vlgmr.msra.gmra.mxu2 %v2027_v15  ;;  %v1624_v40 = vld [vmem:[%s1927_s8 + $0x2a0] sm:$0xf]  ;;  %v1381_v41 = vor.u32 %v1698_v33, %v1378_v34  ;;  %v1761_v42 = vld [vmem:[%s1927_s8 + $0x2a4] sm:$0xf0]  ;;  %v1306_v44 = vld [vmem:[%s1927_s8 + $0x28] sm:$0xf0] }
  0x3e   : > { %1030 = vmatpush.bf16.msrb.mxu2 %v1349_v43  ;;  %999 = vmatmul.bf16.vlgmr.msra.gmra.mxu3 %v2029_v16  ;;  %v1680_v43 = vld [vmem:[%s1927_s8 + $0x24] sm:$0xf]  ;;  %v1370_v46 = vld [vmem:[%s1927_s8 + $0xa8] sm:$0xf0]  ;;  %v1625_v48 = vor.u32 %v1761_v42, %v1624_v40  ;;  %v1552_v50 = vld [vmem:[%s1927_s8 + $0x210] sm:$0xf] }
  0x3f   : > { %1043 = vmatpush.bf16.msrb.mxu3 %v1413_v47  ;;  %v1696_v45 = vld [vmem:[%s1927_s8 + $0xa4] sm:$0xf]  ;;  %v1561_v47 = vor.u32 %v1745_v39, %v1560_v38  ;;  %v1309_v49 = vor.u32 %v1680_v43, %v1306_v44  ;;  %v1743_v51 = vld [vmem:[%s1927_s8 + $0x214] sm:$0xf0]  ;;  %v1616_v52 = vld [vmem:[%s1927_s8 + $0x290] sm:$0xf] }
  0x40   : > { %1005 = vmatpush.bf16.msrb.mxu0 %v1593_v53  ;;  %v1373_v53 = vor.u32 %v1696_v45, %v1370_v46  ;;  %v1759_v54 = vld [vmem:[%s1927_s8 + $0x294] sm:$0xf0]  ;;  %v1678_v55 = vld [vmem:[%s1927_s8 + $0x14] sm:$0xf]  ;;  %v1362_v58 = vld [vmem:[%s1927_s8 + $0x98] sm:$0xf0]  ;;  %v1553_v59 = vor.u32 %v1743_v51, %v1552_v50 }
  0x41   : > { %1018 = vmatpush.bf16.msrb.mxu1 %v1657_v56  ;;  %v1298_v56 = vld [vmem:[%s1927_s8 + $0x18] sm:$0xf0]  ;;  %v1544_v60 = vld [vmem:[%s1927_s8 + $0x200] sm:$0xf]  ;;  %v1617_v63 = vor.u32 %v1759_v54, %v1616_v52  ;;  %v1757_v1 = vld [vmem:[%s1927_s8 + $0x284] sm:$0xf0] }
  0x42   : > { %1031 = vmatpush.bf16.msrb.mxu2 %v1341_v57  ;;  %v1694_v57 = vld [vmem:[%s1927_s8 + $0x94] sm:$0xf]  ;;  %v1608_v62 = vld [vmem:[%s1927_s8 + $0x280] sm:$0xf]  ;;  %v1301_v0 = vor.u32 %v1678_v55, %v1298_v56  ;;  %v1676_v2 = vld [vmem:[%s1927_s8 + $0x4] sm:$0xf] }
  0x43   : > { %1044 = vmatpush.bf16.msrb.mxu3 %v1405_v61  ;;  %v1741_v61 = vld [vmem:[%s1927_s8 + $0x204] sm:$0xf0]  ;;  %v354_v3 = vld [vmem:[%s1922_s30 + $0x10] sm:$0xff]  ;;  %v1365_v4 = vor.u32 %v1694_v57, %v1362_v58  ;;  %v1290_v5 = vld [vmem:[%s1927_s8 + $0x8] sm:$0xf0]  ;;  %v1609_v20 = vor.u32 %v1757_v1, %v1608_v62 }
  0x44   : > { %1006 = vmatpush.bf16.msrb.mxu0 %v1585_v7  ;;  %v1692_v6 = vld [vmem:[%s1927_s8 + $0x84] sm:$0xf]  ;;  %v1354_v7 = vld [vmem:[%s1927_s8 + $0x88] sm:$0xf0]  ;;  %v1738_v12 = vld [vmem:[%s1927_s8 + $0x1f4] sm:$0xf]  ;;  %v1545_v13 = vor.u32 %v1741_v61, %v1544_v60  ;;  %v458_v19 = vunpack.c.l.b16 %v354_v3  ;;  %v1293_v21 = vor.u32 %v1676_v2, %v1290_v5  ;;  %v459_v26 = vunpack.c.h.b16 %v354_v3 }
  0x45   : > { %1019 = vmatpush.bf16.msrb.mxu1 %v1649_v8  ;;  %v1722_v8 = vld [vmem:[%s1927_s8 + $0x174] sm:$0xf]  ;;  %v1538_v14 = vld [vmem:[%s1927_s8 + $0x1f8] sm:$0xf0]  ;;  %v1466_v30 = vld [vmem:[%s1927_s8 + $0x168] sm:$0xf0] }
  0x46   : > { %1032 = vmatpush.bf16.msrb.mxu2 %v1333_v11  ;;  %v1474_v11 = vld [vmem:[%s1927_s8 + $0x178] sm:$0xf0]  ;;  %v1770_v22 = vld [vmem:[%s1927_s8 + $0x2f4] sm:$0xf]  ;;  %v1541_v27 = vor.u32 %v1738_v12, %v1538_v14  ;;  %v1736_v31 = vld [vmem:[%s1927_s8 + $0x1e4] sm:$0xf]  ;;  %v2091_v40 = vpack.c.b16 %v459_v26, %v459_v26 }
  0x47   : > { %1045 = vmatpush.bf16.msrb.mxu3 %v1397_v17  ;;  %v1754_v17 = vld [vmem:[%s1927_s8 + $0x274] sm:$0xf]  ;;  %v1602_v18 = vld [vmem:[%s1927_s8 + $0x278] sm:$0xf0]  ;;  %v1530_v33 = vld [vmem:[%s1927_s8 + $0x1e8] sm:$0xf0] }
  0x48   : > { %1007 = vmatpush.bf16.msrb.mxu0 %v1577_v23  ;;  %v1666_v23 = vld [vmem:[%s1927_s8 + $0x2f8] sm:$0xf0]  ;;  %v1605_v28 = vor.u32 %v1754_v17, %v1602_v18  ;;  %v1752_v34 = vld [vmem:[%s1927_s8 + $0x264] sm:$0xf]  ;;  %v1658_v38 = vld [vmem:[%s1927_s8 + $0x2e8] sm:$0xf0] }
  0x49   : > { %1020 = vmatpush.bf16.msrb.mxu1 %v1641_v24  ;;  %v1357_v24 = vor.u32 %v1692_v6, %v1354_v7  ;;  %v1669_v32 = vor.u32 %v1770_v22, %v1666_v23  ;;  %v1718_v43 = vld [vmem:[%s1927_s8 + $0x154] sm:$0xf]  ;;  %v1458_v44 = vld [vmem:[%s1927_s8 + $0x158] sm:$0xf0]  ;;  %v1716_v55 = vld [vmem:[%s1927_s8 + $0x144] sm:$0xf] }
  0x4a   : > { %1033 = vmatpush.bf16.msrb.mxu2 %v1325_v25  ;;  %v1477_v25 = vor.u32 %v1722_v8, %v1474_v11  ;;  %v1734_v45 = vld [vmem:[%s1927_s8 + $0x1d4] sm:$0xf]  ;;  %v1650_v51 = vld [vmem:[%s1927_s8 + $0x2d8] sm:$0xf0]  ;;  %v1461_v52 = vor.u32 %v1718_v43, %v1458_v44  ;;  %v1732_v56 = vld [vmem:[%s1927_s8 + $0x1c4] sm:$0xf] }
  0x4b   : > { %1046 = vmatpush.bf16.msrb.mxu3 %v1389_v29  ;;  %v1720_v29 = vld [vmem:[%s1927_s8 + $0x164] sm:$0xf]  ;;  %v1766_v50 = vld [vmem:[%s1927_s8 + $0x2d4] sm:$0xf]  ;;  %v1514_v57 = vld [vmem:[%s1927_s8 + $0x1c8] sm:$0xf0] }
  0x4c   : > { %1008 = vmatpush.bf16.msrb.mxu0 %v1569_v35  ;;  %v1594_v35 = vld [vmem:[%s1927_s8 + $0x268] sm:$0xf0]  ;;  %v1469_v39 = vor.u32 %v1720_v29, %v1466_v30  ;;  %v1748_v58 = vld [vmem:[%s1927_s8 + $0x244] sm:$0xf]  ;;  %v1714_v1 = vld [vmem:[%s1927_s8 + $0x134] sm:$0xf] }
  0x4d   : > { %1021 = vmatpush.bf16.msrb.mxu1 %v1633_v36  ;;  %v2087_v36 = vpack.c.b16 %v458_v19, %v458_v19  ;;  %v1597_v42 = vor.u32 %v1752_v34, %v1594_v35  ;;  %v1764_v60 = vld [vmem:[%s1927_s8 + $0x2c4] sm:$0xf]  ;;  %v1642_v61 = vld [vmem:[%s1927_s8 + $0x2c8] sm:$0xf0]  ;;  %v1442_v2 = vld [vmem:[%s1927_s8 + $0x138] sm:$0xf0] }
  0x4e   : > { %1034 = vmatpush.bf16.msrb.mxu2 %v1317_v37  ;;  %v1768_v37 = vld [vmem:[%s1927_s8 + $0x2e4] sm:$0xf]  ;;  %v1730_v3 = vld [vmem:[%s1927_s8 + $0x1b4] sm:$0xf]  ;;  %v1506_v5 = vld [vmem:[%s1927_s8 + $0x1b8] sm:$0xf0]  ;;  %v1445_v12 = vor.u32 %v1714_v1, %v1442_v2 }
  0x4f   : > { %1047 = vmatpush.bf16.msrb.mxu3 %v1381_v41  ;;  %v1533_v41 = vor.u32 %v1736_v31, %v1530_v33  ;;  %v1661_v46 = vor.u32 %v1768_v37, %v1658_v38  ;;  %v1746_v6 = vld [vmem:[%s1927_s8 + $0x234] sm:$0xf]  ;;  %v1570_v7 = vld [vmem:[%s1927_s8 + $0x238] sm:$0xf0]  ;;  %v1712_v17 = vld [vmem:[%s1927_s8 + $0x124] sm:$0xf] }
  0x50   : > { %1009 = vmatpush.bf16.msrb.mxu0 %v1561_v47  ;;  %v1522_v47 = vld [vmem:[%s1927_s8 + $0x1d8] sm:$0xf0]  ;;  %v1762_v8 = vld [vmem:[%s1927_s8 + $0x2b4] sm:$0xf]  ;;  %v1573_v14 = vor.u32 %v1746_v6, %v1570_v7  ;;  %v1434_v18 = vld [vmem:[%s1927_s8 + $0x128] sm:$0xf0] }
  0x51   : > { %1022 = vmatpush.bf16.msrb.mxu1 %v1625_v48  ;;  %v1750_v48 = vld [vmem:[%s1927_s8 + $0x254] sm:$0xf]  ;;  %v1634_v11 = vld [vmem:[%s1927_s8 + $0x2b8] sm:$0xf0]  ;;  %v1728_v19 = vld [vmem:[%s1927_s8 + $0x1a4] sm:$0xf]  ;;  %v1437_v26 = vor.u32 %v1712_v17, %v1434_v18 }
  0x52   : > { %1035 = vmatpush.bf16.msrb.mxu2 %v1309_v49  ;;  %v1586_v49 = vld [vmem:[%s1927_s8 + $0x258] sm:$0xf0]  ;;  %v1744_v22 = vld [vmem:[%s1927_s8 + $0x224] sm:$0xf]  ;;  %v1562_v23 = vld [vmem:[%s1927_s8 + $0x228] sm:$0xf0] }
  0x53   : > { %1048 = vmatpush.bf16.msrb.mxu3 %v1373_v53  ;;  %v1525_v53 = vor.u32 %v1734_v45, %v1522_v47  ;;  %v1589_v54 = vor.u32 %v1750_v48, %v1586_v49  ;;  %v1710_v29 = vld [vmem:[%s1927_s8 + $0x114] sm:$0xf]  ;;  %v1426_v30 = vld [vmem:[%s1927_s8 + $0x118] sm:$0xf0]  ;;  %v1708_v43 = vld [vmem:[%s1927_s8 + $0x104] sm:$0xf] }
  0x54   : > { %1010 = vmatpush.bf16.msrb.mxu0 %v1553_v59  ;;  %v1578_v59 = vld [vmem:[%s1927_s8 + $0x248] sm:$0xf0]  ;;  %v1726_v31 = vld [vmem:[%s1927_s8 + $0x194] sm:$0xf]  ;;  %v1490_v33 = vld [vmem:[%s1927_s8 + $0x198] sm:$0xf0] }
  0x55   : > { %1023 = vmatpush.bf16.msrb.mxu1 %v1617_v63  ;;  %v1517_v63 = vor.u32 %v1732_v56, %v1514_v57  ;;  %v1742_v34 = vld [vmem:[%s1927_s8 + $0x214] sm:$0xf]  ;;  %v1554_v35 = vld [vmem:[%s1927_s8 + $0x218] sm:$0xf0]  ;;  %v1418_v44 = vld [vmem:[%s1927_s8 + $0x108] sm:$0xf0] }
  0x56   : > { %1036 = vmatpush.bf16.msrb.mxu2 %v1301_v0  ;;  %v1581_v0 = vor.u32 %v1748_v58, %v1578_v59  ;;  %v1758_v37 = vld [vmem:[%s1927_s8 + $0x294] sm:$0xf]  ;;  %v1618_v38 = vld [vmem:[%s1927_s8 + $0x298] sm:$0xf0]  ;;  %v1724_v45 = vld [vmem:[%s1927_s8 + $0x184] sm:$0xf] }
  0x57   : > { %1049 = vmatpush.bf16.msrb.mxu3 %v1365_v4  ;;  %v1645_v4 = vor.u32 %v1764_v60, %v1642_v61  ;;  %v1482_v47 = vld [vmem:[%s1927_s8 + $0x188] sm:$0xf0]  ;;  %v1740_v48 = vld [vmem:[%s1927_s8 + $0x204] sm:$0xf] }
  0x58   : > { %1011 = vmatpush.bf16.msrb.mxu0 %v1545_v13  ;;  %v1509_v13 = vor.u32 %v1730_v3, %v1506_v5  ;;  %v1546_v49 = vld [vmem:[%s1927_s8 + $0x208] sm:$0xf0] }
  0x59   : > { %1024 = vmatpush.bf16.msrb.mxu1 %v1609_v20  ;;  %v1637_v20 = vor.u32 %v1762_v8, %v1634_v11 }
  0x5a   : > { %1037 = vmatpush.bf16.msrb.mxu2 %v1293_v21  ;;  %v1498_v21 = vld [vmem:[%s1927_s8 + $0x1a8] sm:$0xf0] }
  0x5b   : > { %1050 = vmatpush.bf16.msrb.mxu3 %v1357_v24  ;;  %1012 = vmatmul.bf16.vlgmr.msrb.gmra.mxu0 %v2087_v36  ;;  %v1760_v24 = vld [vmem:[%s1927_s8 + $0x2a4] sm:$0xf] }
  0x5c   : > { %1056 = vmatpush.bf16.msra.mxu0 %v1477_v25  ;;  %1025 = vmatmul.bf16.vlgmr.msrb.gmra.mxu1 %v2091_v40  ;;  %v1626_v25 = vld [vmem:[%s1927_s8 + $0x2a8] sm:$0xf0] }
  0x5d   : > { %1069 = vmatpush.bf16.msra.mxu1 %v1541_v27  ;;  %1038 = vmatmul.bf16.vlgmr.msrb.gmra.mxu2 %v2020_v9  ;;  %v1450_v9 = vld [vmem:[%s1927_s8 + $0x148] sm:$0xf0]  ;;  %v1501_v27 = vor.u32 %v1728_v19, %v1498_v21 }
  0x5e   : > { %1082 = vmatpush.bf16.msra.mxu2 %v1605_v28  ;;  %1051 = vmatmul.bf16.vlgmr.msrb.gmra.mxu3 %v2022_v10  ;;  %v1653_v10 = vor.u32 %v1766_v50, %v1650_v51  ;;  %v1453_v62 = vor.u32 %v1716_v55, %v1450_v9  ;;  %v1565_v28 = vor.u32 %v1744_v22, %v1562_v23  ;;  %v1756_v50 = vld [vmem:[%s1927_s8 + $0x284] sm:$0xf]  ;;  %v1610_v51 = vld [vmem:[%s1927_s8 + $0x288] sm:$0xf0] }
  0x5f   : > { %1095 = vmatpush.bf16.msra.mxu3 %v1669_v32  ;;  %v1629_v32 = vor.u32 %v1760_v24, %v1626_v25  ;;  %v1613_v55 = vor.u32 %v1756_v50, %v1610_v51  ;;  %v351_v22 = vld [vmem:[#allocation2 + $0x8] sm:$0xff] }
  0x60   : > { %1057 = vmatpush.bf16.msra.mxu0 %v1469_v39  ;;  %v1429_v39 = vor.u32 %v1710_v29, %v1426_v30 }
  0x61   : > { %1070 = vmatpush.bf16.msra.mxu1 %v1533_v41  ;;  %v1493_v41 = vor.u32 %v1726_v31, %v1490_v33 }
  0x62   : > { %1083 = vmatpush.bf16.msra.mxu2 %v1597_v42  ;;  %v1557_v42 = vor.u32 %v1742_v34, %v1554_v35 }
  0x63   : > { %1096 = vmatpush.bf16.msra.mxu3 %v1661_v46  ;;  %v1621_v46 = vor.u32 %v1758_v37, %v1618_v38 }
  0x64   : > { %1058 = vmatpush.bf16.msra.mxu0 %v1461_v52  ;;  %v1421_v52 = vor.u32 %v1708_v43, %v1418_v44 }
  0x65   : > { %1071 = vmatpush.bf16.msra.mxu1 %v1525_v53  ;;  %v1485_v53 = vor.u32 %v1724_v45, %v1482_v47 }
  0x66   : > { %1084 = vmatpush.bf16.msra.mxu2 %v1589_v54  ;;  %v1549_v54 = vor.u32 %v1740_v48, %v1546_v49 }
  0x67   : > { %1097 = vmatpush.bf16.msra.mxu3 %v1653_v10 }
  0x68   : > { %1059 = vmatpush.bf16.msra.mxu0 %v1453_v62 }
  0x69   : > { %1072 = vmatpush.bf16.msra.mxu1 %v1517_v63 }
  0x6a   : > { %1085 = vmatpush.bf16.msra.mxu2 %v1581_v0 }
  0x6b   : > { %1098 = vmatpush.bf16.msra.mxu3 %v1645_v4 }
  0x6c   : > { %1060 = vmatpush.bf16.msra.mxu0 %v1445_v12 }
  0x6d   : > { %1073 = vmatpush.bf16.msra.mxu1 %v1509_v13 }
  0x6e   : > { %1086 = vmatpush.bf16.msra.mxu2 %v1573_v14 }
  0x6f   : > { %1099 = vmatpush.bf16.msra.mxu3 %v1637_v20 }
  0x70   : > { %1061 = vmatpush.bf16.msra.mxu0 %v1437_v26 }
  0x71   : > { %1074 = vmatpush.bf16.msra.mxu1 %v1501_v27 }
  0x72   : > { %1087 = vmatpush.bf16.msra.mxu2 %v1565_v28 }
  0x73   : > { %1100 = vmatpush.bf16.msra.mxu3 %v1629_v32 }
  0x74   : > { %1062 = vmatpush.bf16.msra.mxu0 %v1429_v39 }
  0x75   : > { %1075 = vmatpush.bf16.msra.mxu1 %v1493_v41 }
  0x76   : > { %1088 = vmatpush.bf16.msra.mxu2 %v1557_v42 }
  0x77   : > { %1101 = vmatpush.bf16.msra.mxu3 %v1621_v46 }
  0x78   : > { %1063 = vmatpush.bf16.msra.mxu0 %v1421_v52 }
  0x79   : > { %1076 = vmatpush.bf16.msra.mxu1 %v1485_v53 }
  0x7a   : > { %1089 = vmatpush.bf16.msra.mxu2 %v1549_v54 }
  0x7b   : > { %1102 = vmatpush.bf16.msra.mxu3 %v1613_v55  ;;  %1064 = vmatmul.bf16.vlgmr.msra.gmra.mxu0 %v2027_v15  ;;  %v350_v15 = vld [vmem:[#allocation2] sm:$0xff] }
  0x7c   : > { %1077 = vmatmul.bf16.vlgmr.msra.gmra.mxu1 %v2029_v16 }
  0x7d   : > { %1090 = vmatmul.bf16.vlgmr.msra.gmra.mxu2 %v2087_v36 }
  0x7e   : > { %1103 = vmatmul.bf16.vlgmr.msra.gmra.mxu3 %v2091_v40 }
  0xb8   : > { %v961_v9 = vpop.f32.mrf.mxu0 }
  0xb9   : > { %v974_v56 = vpop.f32.mrf.mxu1 }
  0xba   : > { %v975_v60 = vadd.f32 %v974_v56, %v961_v9 }
  0xc0   : > { %v987_v10 = vpop.f32.mrf.mxu2  ;;  %v963_v58 = vpop.f32.mrf.mxu0 }
  0xc1   : > { %v1000_v57 = vpop.f32.mrf.mxu3  ;;  %v976_v59 = vpop.f32.mrf.mxu1  ;;  %v988_v63 = vadd.f32 %v987_v10, %v975_v60 }
  0xc3   : > { %v1001_v0 = vadd.f32 %v1000_v57, %v988_v63 }
  0xc8   : > { %v989_v61 = vpop.f32.mrf.mxu2 }
  0xc9   : > { %v1002_v62 = vpop.f32.mrf.mxu3 }
  0xd8   : > { %v1013_v1 = vpop.f32.mrf.mxu0 }
  0xd9   : > { %v1014_v2 = vadd.f32 %v1013_v1, %v1001_v0  ;;  %v1026_v3 = vpop.f32.mrf.mxu1 }
  0xdb   : > { %v1027_v16 = vadd.f32 %v1026_v3, %v1014_v2 }
  0xdd   : > { %v1108_v4 = vadd.f32 %v1027_v16, %v350_v15 }
  0xdf   : > { %1110 = vst [vmem:[#allocation2] sm:$0xff] %v1108_v4 }
  0xe0   : > { %v1039_v36 = vpop.f32.mrf.mxu2  ;;  %v1015_v5 = vpop.f32.mrf.mxu0 }
  0xe1   : > { %v1052_v40 = vpop.f32.mrf.mxu3  ;;  %v1028_v6 = vpop.f32.mrf.mxu1 }
  0xe2   : > { %v1053_v11 = vadd.f32 %v1052_v40, %v1039_v36 }
  0xe8   : > { %v1041_v7 = vpop.f32.mrf.mxu2 }
  0xe9   : > { %v1054_v8 = vpop.f32.mrf.mxu3 }
  0xf8   : > { %v1065_v12 = vpop.f32.mrf.mxu0 }
  0xf9   : > { %v1078_v13 = vpop.f32.mrf.mxu1  ;;  %v1066_v14 = vadd.f32 %v1065_v12, %v1053_v11 }
  0xfb   : > { %v1079_v17 = vadd.f32 %v1078_v13, %v1066_v14 }
 0x100   : > { %v1091_v18 = vpop.f32.mrf.mxu2  ;;  %v1067_v21 = vpop.f32.mrf.mxu0 }
 0x101   : > { %v1092_v19 = vadd.f32 %v1091_v18, %v1079_v17  ;;  %v1104_v20 = vpop.f32.mrf.mxu3  ;;  %v1080_v23 = vpop.f32.mrf.mxu1 }
 0x103   : > { %v1105_v24 = vadd.f32 %v1104_v20, %v1092_v19 }
 0x105   : > { %v1109_v25 = vadd.f32 %v1105_v24, %v351_v22  ;;  %1115 = sbr.rel (%p1670_p10) target bundleno = 280 (0x118), region = 48 }
 0x107   : > { %1111 = vst [vmem:[#allocation2 + $0x8] sm:$0xff] %v1109_v25 }
 0x108   : > { %v1093_v26 = vpop.f32.mrf.mxu2 }
 0x109   : > { %v1106_v27 = vpop.f32.mrf.mxu3 }
 0x10a   : > { %v1116_v28 = vld [vmem:[#allocation2] sm:$0xff]  ;;  %v1118_v30 = vld [vmem:[#allocation3] sm:$0x3] }
 0x10b   : > { %v1120_v31 = vperm.slane %v1118_v30, 0  ;;  %v1121_v32 = vperm.slane %v1118_v30, 1  ;;  %v1126_v33 = vld [vmem:[%s2168_s3] sm:$0xff] }
 0x10c   : > { %v1127_v34 = vunpack.c.l.bf16 %v1126_v33  ;;  %v1128_v35 = vunpack.c.h.bf16 %v1126_v33 }
 0x10d   : > { %v1124_v37 = vadd.f32 %v1120_v31, %v1116_v28 }
 0x10e   : > { %v1117_v29 = vld [vmem:[#allocation2 + $0x8] sm:$0xff] }
 0x10f   : > { %v1125_v38 = vadd.f32 %v1121_v32, %v1117_v29  ;;  %v1129_v39 = vadd.f32 %v1127_v34, %v1124_v37 }
 0x111   : > { %v1130_v41 = vadd.f32 %v1128_v35, %v1125_v38  ;;  %v1131_v42 = vmax.f32 %v1129_v39, 0.0 }
 0x113   : > { %v1132_v43 = vmax.f32 %v1130_v41, 0.0 }
 0x115   : > { %v1133_v44 = vpack.c.bf16 %v1132_v43, %v1131_v42 }
 0x117   : > { %1134 = vst [vmem:[%s2169_s4] sm:$0xff] %v1133_v44 }
 0x118 PF: > { %s15_s17 = sadd.s32 1, %s1864_s17   ;;  %s2170_s15 = smov %s1860_s16 }
 0x119   : > { %p12_p11 = scmp.ge.s32.totalorder %s15_s17, 5   ;;  %s2171_s16 = smov %s2173_s19 }
 0x11b   :  { %14 = sbr.rel (!%p12_p11) target bundleno = 2 (0x2), region = 86 }
 0x120   :  { %1165 = vsyncpa [#allocation4], 1 }
 0x121   :  { %1167 = vsyncpa [#allocation4 + $0x1], 1 }

// kernel: resnet18_forward.36
= control target key start
LH: loop header
LB: loop body
LE: loop exit
PB: predicated region body
PF: predicated region fallthrough
CT: control target
= control target key end

     0   :  { %8 = vsyncpa [#allocation4], 0  ;;  %s1798_s12 = smov 0   ;;  %s1800_s13 = smov 0   ;;  %s2067_s0 = inlined_call_operand.vmem [shape: bf16[8,2304], index: 0, kind: input, shape index: {}]   ;;  %s2068_s1 = inlined_call_operand.vmem [shape: bf16[2304,256], index: 1, kind: input, shape index: {}]   ;;  %s2069_s2 = inlined_call_operand.hbm [shape: f32[1,256], index: 2, kind: input, shape index: {}]   ;;  %s2070_s3 = inlined_call_operand.vmem [shape: bf16[8,256], index: 3, kind: output, shape index: {}]  }
   0x1   :  { %s1802_s14 = smov 0  }
   0x2 LB: > { %s1186_s15 = sadd.s32 4294967295, %s1774_s14   ;;  %s26_s16 = sadd.s32 1, %s1770_s13  ;;  %s1774_s14 = sphi %s1802_s14, %s14_s14   ;;  %s1770_s13 = sphi %s1800_s13, %s2072_s13   ;;  %s1766_s12 = sphi %s1798_s12, %s2071_s12  }
   0x3   : > { %p27_p0 = scmp.ge.s32.totalorder %s26_s16, 3  ;;  %p1187_p1 = scmp.ge.s32.totalorder %s1774_s14, 1 }
   0x4   : > { %p148_p2 = scmp.lt.s32.totalorder %s1774_s14, 4  ;;  %p1690_p4 = scmp.eq.s32.totalorder %s1186_s15, 0 }
   0x5   : > { %s2074_s16 = smov (%p27_p0, %s26_s16), 0  ;;  %s162_s19 = sshll.u32 %s2069_s2, 4  ;;  %s163_s19 = int_to_ptr.hbm [resolvable:$true] %s162_s19 }
   0x6   : > { %p149_p3 = pnand %p1187_p1, %p148_p2  ;;  %s1776_s20 = smov [#allocation3]  }
   0x7   : > { %s164_s21 = sshll.u32 %s1776_s20, 4  ;;  %s165_s21 = int_to_ptr.vmem [resolvable:$true] %s164_s21 }
   0x8   : > { %p1686_p5 = pneg %p149_p3  ;;  %205 = sbr.rel (%p149_p3) target bundleno = 278 (0x116), region = 32 }
   0xa   : > { %p1687_p6 = pnand %p1690_p4, %p1686_p5 }
   0xc   : > { %1689 = dma.hbm_to_vmem [thread:$0]  (!%p1687_p6), %s163_s19, 32, %s165_s21, [#allocation4]  }
   0xd   : > { %1761 = dma.done.wait (%p1690_p4), [#allocation4], 32  }
   0xe   : > { %1763 = vsyncadd (%p1690_p4), [#allocation4], 4294967264  ;;  %s248_s22 = smul.u32 6, %s1766_s12  ;;  %p1195_p9 = scmp.ne.s32.totalorder %s1766_s12, 0 }
   0xf   : > { %s258_s23 = smul.u32 96, %s1766_s12 }
  0x10   : > { %p251_p7 = scmp.lt.s32.totalorder %s248_s22, 17 }
  0x11   : > { %p260_p8 = scmp.lt.s32.totalorder %s258_s23, 287  ;;  %284 = sbr.rel (%p1195_p9) target bundleno = 25 (0x19), region = 40 }
  0x12   : > { %s2076_s22 = smov (!%p251_p7, %s248_s22), 17 }
  0x13   : > { %s2078_s23 = smov (!%p260_p8, %s258_s23), 287  ;;  %s1192_s24 = sshll.u32 %s2076_s22, 2 }
  0x14   : > { %s1827_s27 = scalar_lea.vmem %s2067_s0, %s1192_s24  ;;  %s1585_s28 = sshll.u32 %s2078_s23, 3 }
  0x15   : > { %s1832_s4 = scalar_lea.vmem %s2068_s1, %s1585_s28 }
  0x16   : > { %v1777_v0 = vmov 0.0  }
  0x17   : > { %285 = vst [vmem:[#allocation2] sm:$0xff] %v1777_v0 }
  0x18   : > { %286 = vst [vmem:[#allocation2 + $0x8] sm:$0xff] %v1777_v0 }
  0x19 PF: > { %v1254_v1 = vld [vmem:[%s1832_s4 + $0x70] sm:$0xf]  ;;  %v1601_v2 = vld [vmem:[%s1832_s4 + $0x74] sm:$0xf0]  ;;  %v1246_v12 = vld [vmem:[%s1832_s4 + $0x60] sm:$0xf] }
  0x1a   : > { %v1318_v3 = vld [vmem:[%s1832_s4 + $0xf0] sm:$0xf]  ;;  %v1255_v4 = vor.u32 %v1601_v2, %v1254_v1  ;;  %v1617_v5 = vld [vmem:[%s1832_s4 + $0xf4] sm:$0xf0]  ;;  %v1599_v14 = vld [vmem:[%s1832_s4 + $0x64] sm:$0xf0] }
  0x1b   : > { %v1382_v6 = vld [vmem:[%s1832_s4 + $0x170] sm:$0xf]  ;;  %v1633_v7 = vld [vmem:[%s1832_s4 + $0x174] sm:$0xf0]  ;;  %v1319_v8 = vor.u32 %v1617_v5, %v1318_v3  ;;  %v1310_v15 = vld [vmem:[%s1832_s4 + $0xe0] sm:$0xf]  ;;  %v1247_v17 = vor.u32 %v1599_v14, %v1246_v12 }
  0x1c   : > { %v1383_v9 = vor.u32 %v1633_v7, %v1382_v6  ;;  %v1446_v10 = vld [vmem:[%s1832_s4 + $0x1f0] sm:$0xf]  ;;  %v1649_v11 = vld [vmem:[%s1832_s4 + $0x1f4] sm:$0xf0]  ;;  %889 = vmatpush.bf16.msra.mxu0 %v1255_v4  ;;  %v1615_v16 = vld [vmem:[%s1832_s4 + $0xe4] sm:$0xf0] }
  0x1d   : > { %v1447_v13 = vor.u32 %v1649_v11, %v1446_v10  ;;  %902 = vmatpush.bf16.msra.mxu1 %v1319_v8  ;;  %v1311_v18 = vor.u32 %v1615_v16, %v1310_v15  ;;  %v1374_v19 = vld [vmem:[%s1832_s4 + $0x160] sm:$0xf]  ;;  %v1631_v20 = vld [vmem:[%s1832_s4 + $0x164] sm:$0xf0]  ;;  %v1238_v24 = vld [vmem:[%s1832_s4 + $0x50] sm:$0xf] }
  0x1e   : > { %915 = vmatpush.bf16.msra.mxu2 %v1383_v9  ;;  %v1438_v21 = vld [vmem:[%s1832_s4 + $0x1e0] sm:$0xf]  ;;  %v1375_v22 = vor.u32 %v1631_v20, %v1374_v19  ;;  %v1647_v23 = vld [vmem:[%s1832_s4 + $0x1e4] sm:$0xf0]  ;;  %v1597_v25 = vld [vmem:[%s1832_s4 + $0x54] sm:$0xf0] }
  0x1f   : > { %928 = vmatpush.bf16.msra.mxu3 %v1447_v13  ;;  %v1439_v26 = vor.u32 %v1647_v23, %v1438_v21  ;;  %v1302_v27 = vld [vmem:[%s1832_s4 + $0xd0] sm:$0xf]  ;;  %v1613_v28 = vld [vmem:[%s1832_s4 + $0xd4] sm:$0xf0]  ;;  %v1239_v30 = vor.u32 %v1597_v25, %v1238_v24  ;;  %v1230_v36 = vld [vmem:[%s1832_s4 + $0x40] sm:$0xf] }
  0x20   : > { %v1366_v29 = vld [vmem:[%s1832_s4 + $0x150] sm:$0xf]  ;;  %890 = vmatpush.bf16.msra.mxu0 %v1247_v17  ;;  %v1629_v31 = vld [vmem:[%s1832_s4 + $0x154] sm:$0xf0]  ;;  %v1303_v34 = vor.u32 %v1613_v28, %v1302_v27  ;;  %v1595_v37 = vld [vmem:[%s1832_s4 + $0x44] sm:$0xf0] }
  0x21   : > { %v1430_v32 = vld [vmem:[%s1832_s4 + $0x1d0] sm:$0xf]  ;;  %v1645_v33 = vld [vmem:[%s1832_s4 + $0x1d4] sm:$0xf0]  ;;  %903 = vmatpush.bf16.msra.mxu1 %v1311_v18  ;;  %v1367_v35 = vor.u32 %v1629_v31, %v1366_v29  ;;  %v1294_v38 = vld [vmem:[%s1832_s4 + $0xc0] sm:$0xf]  ;;  %v1231_v45 = vor.u32 %v1595_v37, %v1230_v36 }
  0x22   : > { %916 = vmatpush.bf16.msra.mxu2 %v1375_v22  ;;  %v1431_v39 = vor.u32 %v1645_v33, %v1430_v32  ;;  %v1611_v40 = vld [vmem:[%s1832_s4 + $0xc4] sm:$0xf0]  ;;  %v1358_v41 = vld [vmem:[%s1832_s4 + $0x140] sm:$0xf]  ;;  %v1222_v48 = vld [vmem:[%s1832_s4 + $0x30] sm:$0xf] }
  0x23   : > { %929 = vmatpush.bf16.msra.mxu3 %v1439_v26  ;;  %v1627_v42 = vld [vmem:[%s1832_s4 + $0x144] sm:$0xf0]  ;;  %v1422_v43 = vld [vmem:[%s1832_s4 + $0x1c0] sm:$0xf]  ;;  %v1295_v46 = vor.u32 %v1611_v40, %v1294_v38  ;;  %v1593_v49 = vld [vmem:[%s1832_s4 + $0x34] sm:$0xf0] }
  0x24   : > { %v1643_v44 = vld [vmem:[%s1832_s4 + $0x1c4] sm:$0xf0]  ;;  %891 = vmatpush.bf16.msra.mxu0 %v1239_v30  ;;  %v1359_v47 = vor.u32 %v1627_v42, %v1358_v41  ;;  %v1286_v50 = vld [vmem:[%s1832_s4 + $0xb0] sm:$0xf]  ;;  %v1609_v52 = vld [vmem:[%s1832_s4 + $0xb4] sm:$0xf0]  ;;  %v1223_v57 = vor.u32 %v1593_v49, %v1222_v48 }
  0x25   : > { %904 = vmatpush.bf16.msra.mxu1 %v1303_v34  ;;  %v1423_v51 = vor.u32 %v1643_v44, %v1422_v43  ;;  %v1350_v53 = vld [vmem:[%s1832_s4 + $0x130] sm:$0xf]  ;;  %v1625_v54 = vld [vmem:[%s1832_s4 + $0x134] sm:$0xf0]  ;;  %v1287_v58 = vor.u32 %v1609_v52, %v1286_v50  ;;  %v1214_v60 = vld [vmem:[%s1832_s4 + $0x20] sm:$0xf] }
  0x26   : > { %917 = vmatpush.bf16.msra.mxu2 %v1367_v35  ;;  %v1414_v55 = vld [vmem:[%s1832_s4 + $0x1b0] sm:$0xf]  ;;  %v1641_v56 = vld [vmem:[%s1832_s4 + $0x1b4] sm:$0xf0]  ;;  %v1351_v59 = vor.u32 %v1625_v54, %v1350_v53  ;;  %v1591_v61 = vld [vmem:[%s1832_s4 + $0x24] sm:$0xf0] }
  0x27   : > { %930 = vmatpush.bf16.msra.mxu3 %v1431_v39  ;;  %v1278_v62 = vld [vmem:[%s1832_s4 + $0xa0] sm:$0xf]  ;;  %v1415_v63 = vor.u32 %v1641_v56, %v1414_v55  ;;  %v1607_v0 = vld [vmem:[%s1832_s4 + $0xa4] sm:$0xf0]  ;;  %v1215_v5 = vor.u32 %v1591_v61, %v1214_v60  ;;  %v1206_v8 = vld [vmem:[%s1832_s4 + $0x10] sm:$0xf] }
  0x28   : > { %892 = vmatpush.bf16.msra.mxu0 %v1231_v45  ;;  %v1342_v1 = vld [vmem:[%s1832_s4 + $0x120] sm:$0xf]  ;;  %v1623_v2 = vld [vmem:[%s1832_s4 + $0x124] sm:$0xf0]  ;;  %v1279_v6 = vor.u32 %v1607_v0, %v1278_v62  ;;  %v1589_v9 = vld [vmem:[%s1832_s4 + $0x14] sm:$0xf0] }
  0x29   : > { %905 = vmatpush.bf16.msra.mxu1 %v1295_v46  ;;  %v1406_v3 = vld [vmem:[%s1832_s4 + $0x1a0] sm:$0xf]  ;;  %v1639_v4 = vld [vmem:[%s1832_s4 + $0x1a4] sm:$0xf0]  ;;  %v1343_v7 = vor.u32 %v1623_v2, %v1342_v1  ;;  %v1270_v10 = vld [vmem:[%s1832_s4 + $0x90] sm:$0xf]  ;;  %v1207_v17 = vor.u32 %v1589_v9, %v1206_v8 }
  0x2a   : > { %918 = vmatpush.bf16.msra.mxu2 %v1359_v47  ;;  %v1407_v11 = vor.u32 %v1639_v4, %v1406_v3  ;;  %v1605_v12 = vld [vmem:[%s1832_s4 + $0x94] sm:$0xf0]  ;;  %v1334_v13 = vld [vmem:[%s1832_s4 + $0x110] sm:$0xf]  ;;  %v1198_v18 = vld [vmem:[%s1832_s4] sm:$0xf] }
  0x2b   : > { %931 = vmatpush.bf16.msra.mxu3 %v1423_v51  ;;  %v1621_v14 = vld [vmem:[%s1832_s4 + $0x114] sm:$0xf0]  ;;  %v1398_v15 = vld [vmem:[%s1832_s4 + $0x190] sm:$0xf]  ;;  %v1587_v19 = vld [vmem:[%s1832_s4 + $0x4] sm:$0xf0]  ;;  %v1271_v20 = vor.u32 %v1605_v12, %v1270_v10 }
  0x2c   : > { %893 = vmatpush.bf16.msra.mxu0 %v1223_v57  ;;  %v1637_v16 = vld [vmem:[%s1832_s4 + $0x194] sm:$0xf0]  ;;  %v1335_v21 = vor.u32 %v1621_v14, %v1334_v13  ;;  %v1262_v22 = vld [vmem:[%s1832_s4 + $0x80] sm:$0xf]  ;;  %v1603_v23 = vld [vmem:[%s1832_s4 + $0x84] sm:$0xf0]  ;;  %v1199_v32 = vor.u32 %v1587_v19, %v1198_v18 }
  0x2d   : > { %906 = vmatpush.bf16.msra.mxu1 %v1287_v58  ;;  %v1326_v24 = vld [vmem:[%s1832_s4 + $0x100] sm:$0xf]  ;;  %v1399_v25 = vor.u32 %v1637_v16, %v1398_v15  ;;  %v1619_v26 = vld [vmem:[%s1832_s4 + $0x104] sm:$0xf0]  ;;  %v1510_v29 = vld [vmem:[%s1832_s4 + $0x270] sm:$0xf]  ;;  %v1263_v36 = vor.u32 %v1603_v23, %v1262_v22 }
  0x2e   : > { %919 = vmatpush.bf16.msra.mxu2 %v1351_v59  ;;  %v1390_v27 = vld [vmem:[%s1832_s4 + $0x180] sm:$0xf]  ;;  %v1635_v28 = vld [vmem:[%s1832_s4 + $0x184] sm:$0xf0]  ;;  %v1665_v30 = vld [vmem:[%s1832_s4 + $0x274] sm:$0xf0]  ;;  %v1327_v37 = vor.u32 %v1619_v26, %v1326_v24 }
  0x2f   : > { %932 = vmatpush.bf16.msra.mxu3 %v1415_v63  ;;  %v1574_v31 = vld [vmem:[%s1832_s4 + $0x2f0] sm:$0xf]  ;;  %v1681_v33 = vld [vmem:[%s1832_s4 + $0x2f4] sm:$0xf0]  ;;  %v1600_v34 = vld [vmem:[%s1832_s4 + $0x74] sm:$0xf]  ;;  %v1391_v40 = vor.u32 %v1635_v28, %v1390_v27  ;;  %v1511_v41 = vor.u32 %v1665_v30, %v1510_v29 }
  0x30   : > { %894 = vmatpush.bf16.msra.mxu0 %v1215_v5  ;;  %v1256_v35 = vld [vmem:[%s1832_s4 + $0x78] sm:$0xf0]  ;;  %v1616_v38 = vld [vmem:[%s1832_s4 + $0xf4] sm:$0xf]  ;;  %v1575_v42 = vor.u32 %v1681_v33, %v1574_v31  ;;  %v1502_v44 = vld [vmem:[%s1832_s4 + $0x260] sm:$0xf] }
  0x31   : > { %907 = vmatpush.bf16.msra.mxu1 %v1279_v6  ;;  %v1320_v39 = vld [vmem:[%s1832_s4 + $0xf8] sm:$0xf0]  ;;  %v1259_v43 = vor.u32 %v1600_v34, %v1256_v35  ;;  %v1663_v45 = vld [vmem:[%s1832_s4 + $0x264] sm:$0xf0]  ;;  %v1566_v46 = vld [vmem:[%s1832_s4 + $0x2e0] sm:$0xf] }
  0x32   : > { %920 = vmatpush.bf16.msra.mxu2 %v1343_v7  ;;  %v1323_v47 = vor.u32 %v1616_v38, %v1320_v39  ;;  %v1679_v48 = vld [vmem:[%s1832_s4 + $0x2e4] sm:$0xf0]  ;;  %v1598_v49 = vld [vmem:[%s1832_s4 + $0x64] sm:$0xf]  ;;  %v1248_v50 = vld [vmem:[%s1832_s4 + $0x68] sm:$0xf0]  ;;  %v1503_v53 = vor.u32 %v1663_v45, %v1502_v44 }
  0x33   : > { %933 = vmatpush.bf16.msra.mxu3 %v1407_v11  ;;  %v1614_v51 = vld [vmem:[%s1832_s4 + $0xe4] sm:$0xf]  ;;  %v1312_v52 = vld [vmem:[%s1832_s4 + $0xe8] sm:$0xf0]  ;;  %v1494_v54 = vld [vmem:[%s1832_s4 + $0x250] sm:$0xf]  ;;  %v1567_v56 = vor.u32 %v1679_v48, %v1566_v46  ;;  %v1251_v57 = vor.u32 %v1598_v49, %v1248_v50 }
  0x34   : > { %895 = vmatpush.bf16.msra.mxu0 %v1207_v17  ;;  %v1661_v55 = vld [vmem:[%s1832_s4 + $0x254] sm:$0xf0]  ;;  %v1558_v58 = vld [vmem:[%s1832_s4 + $0x2d0] sm:$0xf]  ;;  %v289_v60 = vld [vmem:[%s1827_s27] sm:$0xff]  ;;  %v1315_v61 = vor.u32 %v1614_v51, %v1312_v52  ;;  %p1580_p10 = scmp.ne.s32.totalorder %s1766_s12, 2 }
  0x35   : > { %908 = vmatpush.bf16.msra.mxu1 %v1271_v20  ;;  %v1677_v59 = vld [vmem:[%s1832_s4 + $0x2d4] sm:$0xf0]  ;;  %v1596_v62 = vld [vmem:[%s1832_s4 + $0x54] sm:$0xf]  ;;  %v1240_v63 = vld [vmem:[%s1832_s4 + $0x58] sm:$0xf0]  ;;  %v391_v0 = vunpack.c.l.b16 %v289_v60  ;;  %v392_v2 = vunpack.c.h.b16 %v289_v60  ;;  %v1495_v7 = vor.u32 %v1661_v55, %v1494_v54 }
  0x36   : > { %921 = vmatpush.bf16.msra.mxu2 %v1335_v21  ;;  %v290_v1 = vld [vmem:[%s1827_s27 + $0x8] sm:$0xff]  ;;  %v1612_v3 = vld [vmem:[%s1832_s4 + $0xd4] sm:$0xf]  ;;  %v1304_v4 = vld [vmem:[%s1832_s4 + $0xd8] sm:$0xf0]  ;;  %v1559_v8 = vor.u32 %v1677_v59, %v1558_v58  ;;  %v1243_v11 = vor.u32 %v1596_v62, %v1240_v63 }
  0x37   : > { %934 = vmatpush.bf16.msra.mxu3 %v1399_v25  ;;  %v393_v5 = vunpack.c.l.b16 %v290_v1  ;;  %v394_v6 = vunpack.c.h.b16 %v290_v1  ;;  %v1925_v9 = vpack.c.b16 %v391_v0, %v391_v0  ;;  %v1927_v10 = vpack.c.b16 %v392_v2, %v392_v2  ;;  %v1486_v12 = vld [vmem:[%s1832_s4 + $0x240] sm:$0xf]  ;;  %v1659_v13 = vld [vmem:[%s1832_s4 + $0x244] sm:$0xf0]  ;;  %v1594_v19 = vld [vmem:[%s1832_s4 + $0x44] sm:$0xf] }
  0x38   : > { %896 = vmatpush.bf16.msra.mxu0 %v1199_v32  ;;  %v1550_v14 = vld [vmem:[%s1832_s4 + $0x2c0] sm:$0xf]  ;;  %v1307_v17 = vor.u32 %v1612_v3, %v1304_v4  ;;  %v1675_v18 = vld [vmem:[%s1832_s4 + $0x2c4] sm:$0xf0]  ;;  %v1232_v20 = vld [vmem:[%s1832_s4 + $0x48] sm:$0xf0]  ;;  %v1487_v23 = vor.u32 %v1659_v13, %v1486_v12 }
  0x39   : > { %909 = vmatpush.bf16.msra.mxu1 %v1263_v36  ;;  %v1932_v15 = vpack.c.b16 %v393_v5, %v393_v5  ;;  %v1934_v16 = vpack.c.b16 %v394_v6, %v394_v6  ;;  %v1610_v21 = vld [vmem:[%s1832_s4 + $0xc4] sm:$0xf]  ;;  %v1296_v22 = vld [vmem:[%s1832_s4 + $0xc8] sm:$0xf0]  ;;  %v1551_v24 = vor.u32 %v1675_v18, %v1550_v14  ;;  %v1235_v25 = vor.u32 %v1594_v19, %v1232_v20  ;;  %v1478_v26 = vld [vmem:[%s1832_s4 + $0x230] sm:$0xf] }
  0x3a   : > { %922 = vmatpush.bf16.msra.mxu2 %v1327_v37  ;;  %v1657_v27 = vld [vmem:[%s1832_s4 + $0x234] sm:$0xf0]  ;;  %v1542_v28 = vld [vmem:[%s1832_s4 + $0x2b0] sm:$0xf]  ;;  %v1299_v29 = vor.u32 %v1610_v21, %v1296_v22  ;;  %v1592_v31 = vld [vmem:[%s1832_s4 + $0x34] sm:$0xf] }
  0x3b   : > { %935 = vmatpush.bf16.msra.mxu3 %v1391_v40  ;;  %897 = vmatmul.bf16.vlgmr.msra.gmra.mxu0 %v1925_v9  ;;  %v1673_v30 = vld [vmem:[%s1832_s4 + $0x2b4] sm:$0xf0]  ;;  %v1224_v32 = vld [vmem:[%s1832_s4 + $0x38] sm:$0xf0]  ;;  %v1608_v33 = vld [vmem:[%s1832_s4 + $0xb4] sm:$0xf]  ;;  %v1479_v35 = vor.u32 %v1657_v27, %v1478_v26 }
  0x3c   : > { %941 = vmatpush.bf16.msrb.mxu0 %v1511_v41  ;;  %910 = vmatmul.bf16.vlgmr.msra.gmra.mxu1 %v1927_v10  ;;  %v1288_v34 = vld [vmem:[%s1832_s4 + $0xb8] sm:$0xf0]  ;;  %v1543_v36 = vor.u32 %v1673_v30, %v1542_v28  ;;  %v1227_v37 = vor.u32 %v1592_v31, %v1224_v32  ;;  %v1470_v38 = vld [vmem:[%s1832_s4 + $0x220] sm:$0xf]  ;;  %v1655_v39 = vld [vmem:[%s1832_s4 + $0x224] sm:$0xf0] }
  0x3d   : > { %954 = vmatpush.bf16.msrb.mxu1 %v1575_v42  ;;  %923 = vmatmul.bf16.vlgmr.msra.gmra.mxu2 %v1932_v15  ;;  %v1534_v40 = vld [vmem:[%s1832_s4 + $0x2a0] sm:$0xf]  ;;  %v1291_v41 = vor.u32 %v1608_v33, %v1288_v34  ;;  %v1671_v42 = vld [vmem:[%s1832_s4 + $0x2a4] sm:$0xf0]  ;;  %v1216_v44 = vld [vmem:[%s1832_s4 + $0x28] sm:$0xf0] }
  0x3e   : > { %967 = vmatpush.bf16.msrb.mxu2 %v1259_v43  ;;  %936 = vmatmul.bf16.vlgmr.msra.gmra.mxu3 %v1934_v16  ;;  %v1590_v43 = vld [vmem:[%s1832_s4 + $0x24] sm:$0xf]  ;;  %v1280_v46 = vld [vmem:[%s1832_s4 + $0xa8] sm:$0xf0]  ;;  %v1535_v48 = vor.u32 %v1671_v42, %v1534_v40  ;;  %v1462_v50 = vld [vmem:[%s1832_s4 + $0x210] sm:$0xf] }
  0x3f   : > { %980 = vmatpush.bf16.msrb.mxu3 %v1323_v47  ;;  %v1606_v45 = vld [vmem:[%s1832_s4 + $0xa4] sm:$0xf]  ;;  %v1471_v47 = vor.u32 %v1655_v39, %v1470_v38  ;;  %v1219_v49 = vor.u32 %v1590_v43, %v1216_v44  ;;  %v1653_v51 = vld [vmem:[%s1832_s4 + $0x214] sm:$0xf0]  ;;  %v1526_v52 = vld [vmem:[%s1832_s4 + $0x290] sm:$0xf] }
  0x40   : > { %942 = vmatpush.bf16.msrb.mxu0 %v1503_v53  ;;  %v1283_v53 = vor.u32 %v1606_v45, %v1280_v46  ;;  %v1669_v54 = vld [vmem:[%s1832_s4 + $0x294] sm:$0xf0]  ;;  %v1588_v55 = vld [vmem:[%s1832_s4 + $0x14] sm:$0xf]  ;;  %v1272_v58 = vld [vmem:[%s1832_s4 + $0x98] sm:$0xf0]  ;;  %v1463_v59 = vor.u32 %v1653_v51, %v1462_v50 }
  0x41   : > { %955 = vmatpush.bf16.msrb.mxu1 %v1567_v56  ;;  %v1208_v56 = vld [vmem:[%s1832_s4 + $0x18] sm:$0xf0]  ;;  %v1454_v60 = vld [vmem:[%s1832_s4 + $0x200] sm:$0xf]  ;;  %v1527_v63 = vor.u32 %v1669_v54, %v1526_v52  ;;  %v1667_v1 = vld [vmem:[%s1832_s4 + $0x284] sm:$0xf0] }
  0x42   : > { %968 = vmatpush.bf16.msrb.mxu2 %v1251_v57  ;;  %v1604_v57 = vld [vmem:[%s1832_s4 + $0x94] sm:$0xf]  ;;  %v1518_v62 = vld [vmem:[%s1832_s4 + $0x280] sm:$0xf]  ;;  %v1211_v0 = vor.u32 %v1588_v55, %v1208_v56  ;;  %v1586_v2 = vld [vmem:[%s1832_s4 + $0x4] sm:$0xf] }
  0x43   : > { %981 = vmatpush.bf16.msrb.mxu3 %v1315_v61  ;;  %v1651_v61 = vld [vmem:[%s1832_s4 + $0x204] sm:$0xf0]  ;;  %v291_v3 = vld [vmem:[%s1827_s27 + $0x10] sm:$0xff]  ;;  %v1275_v4 = vor.u32 %v1604_v57, %v1272_v58  ;;  %v1200_v5 = vld [vmem:[%s1832_s4 + $0x8] sm:$0xf0]  ;;  %v1519_v20 = vor.u32 %v1667_v1, %v1518_v62 }
  0x44   : > { %943 = vmatpush.bf16.msrb.mxu0 %v1495_v7  ;;  %v1602_v6 = vld [vmem:[%s1832_s4 + $0x84] sm:$0xf]  ;;  %v1264_v7 = vld [vmem:[%s1832_s4 + $0x88] sm:$0xf0]  ;;  %v1648_v12 = vld [vmem:[%s1832_s4 + $0x1f4] sm:$0xf]  ;;  %v1455_v13 = vor.u32 %v1651_v61, %v1454_v60  ;;  %v395_v19 = vunpack.c.l.b16 %v291_v3  ;;  %v1203_v21 = vor.u32 %v1586_v2, %v1200_v5  ;;  %v396_v26 = vunpack.c.h.b16 %v291_v3 }
  0x45   : > { %956 = vmatpush.bf16.msrb.mxu1 %v1559_v8  ;;  %v1632_v8 = vld [vmem:[%s1832_s4 + $0x174] sm:$0xf]  ;;  %v1448_v14 = vld [vmem:[%s1832_s4 + $0x1f8] sm:$0xf0]  ;;  %v1376_v30 = vld [vmem:[%s1832_s4 + $0x168] sm:$0xf0] }
  0x46   : > { %969 = vmatpush.bf16.msrb.mxu2 %v1243_v11  ;;  %v1384_v11 = vld [vmem:[%s1832_s4 + $0x178] sm:$0xf0]  ;;  %v1680_v22 = vld [vmem:[%s1832_s4 + $0x2f4] sm:$0xf]  ;;  %v1451_v27 = vor.u32 %v1648_v12, %v1448_v14  ;;  %v1646_v31 = vld [vmem:[%s1832_s4 + $0x1e4] sm:$0xf]  ;;  %v1996_v40 = vpack.c.b16 %v396_v26, %v396_v26 }
  0x47   : > { %982 = vmatpush.bf16.msrb.mxu3 %v1307_v17  ;;  %v1664_v17 = vld [vmem:[%s1832_s4 + $0x274] sm:$0xf]  ;;  %v1512_v18 = vld [vmem:[%s1832_s4 + $0x278] sm:$0xf0]  ;;  %v1440_v33 = vld [vmem:[%s1832_s4 + $0x1e8] sm:$0xf0] }
  0x48   : > { %944 = vmatpush.bf16.msrb.mxu0 %v1487_v23  ;;  %v1576_v23 = vld [vmem:[%s1832_s4 + $0x2f8] sm:$0xf0]  ;;  %v1515_v28 = vor.u32 %v1664_v17, %v1512_v18  ;;  %v1662_v34 = vld [vmem:[%s1832_s4 + $0x264] sm:$0xf]  ;;  %v1568_v38 = vld [vmem:[%s1832_s4 + $0x2e8] sm:$0xf0] }
  0x49   : > { %957 = vmatpush.bf16.msrb.mxu1 %v1551_v24  ;;  %v1267_v24 = vor.u32 %v1602_v6, %v1264_v7  ;;  %v1579_v32 = vor.u32 %v1680_v22, %v1576_v23  ;;  %v1628_v43 = vld [vmem:[%s1832_s4 + $0x154] sm:$0xf]  ;;  %v1368_v44 = vld [vmem:[%s1832_s4 + $0x158] sm:$0xf0]  ;;  %v1626_v55 = vld [vmem:[%s1832_s4 + $0x144] sm:$0xf] }
  0x4a   : > { %970 = vmatpush.bf16.msrb.mxu2 %v1235_v25  ;;  %v1387_v25 = vor.u32 %v1632_v8, %v1384_v11  ;;  %v1644_v45 = vld [vmem:[%s1832_s4 + $0x1d4] sm:$0xf]  ;;  %v1560_v51 = vld [vmem:[%s1832_s4 + $0x2d8] sm:$0xf0]  ;;  %v1371_v52 = vor.u32 %v1628_v43, %v1368_v44  ;;  %v1642_v56 = vld [vmem:[%s1832_s4 + $0x1c4] sm:$0xf] }
  0x4b   : > { %983 = vmatpush.bf16.msrb.mxu3 %v1299_v29  ;;  %v1630_v29 = vld [vmem:[%s1832_s4 + $0x164] sm:$0xf]  ;;  %v1676_v50 = vld [vmem:[%s1832_s4 + $0x2d4] sm:$0xf]  ;;  %v1424_v57 = vld [vmem:[%s1832_s4 + $0x1c8] sm:$0xf0] }
  0x4c   : > { %945 = vmatpush.bf16.msrb.mxu0 %v1479_v35  ;;  %v1504_v35 = vld [vmem:[%s1832_s4 + $0x268] sm:$0xf0]  ;;  %v1379_v39 = vor.u32 %v1630_v29, %v1376_v30  ;;  %v1658_v58 = vld [vmem:[%s1832_s4 + $0x244] sm:$0xf]  ;;  %v1624_v1 = vld [vmem:[%s1832_s4 + $0x134] sm:$0xf] }
  0x4d   : > { %958 = vmatpush.bf16.msrb.mxu1 %v1543_v36  ;;  %v1992_v36 = vpack.c.b16 %v395_v19, %v395_v19  ;;  %v1507_v42 = vor.u32 %v1662_v34, %v1504_v35  ;;  %v1674_v60 = vld [vmem:[%s1832_s4 + $0x2c4] sm:$0xf]  ;;  %v1552_v61 = vld [vmem:[%s1832_s4 + $0x2c8] sm:$0xf0]  ;;  %v1352_v2 = vld [vmem:[%s1832_s4 + $0x138] sm:$0xf0] }
  0x4e   : > { %971 = vmatpush.bf16.msrb.mxu2 %v1227_v37  ;;  %v1678_v37 = vld [vmem:[%s1832_s4 + $0x2e4] sm:$0xf]  ;;  %v1640_v3 = vld [vmem:[%s1832_s4 + $0x1b4] sm:$0xf]  ;;  %v1416_v5 = vld [vmem:[%s1832_s4 + $0x1b8] sm:$0xf0]  ;;  %v1355_v12 = vor.u32 %v1624_v1, %v1352_v2 }
  0x4f   : > { %984 = vmatpush.bf16.msrb.mxu3 %v1291_v41  ;;  %v1443_v41 = vor.u32 %v1646_v31, %v1440_v33  ;;  %v1571_v46 = vor.u32 %v1678_v37, %v1568_v38  ;;  %v1656_v6 = vld [vmem:[%s1832_s4 + $0x234] sm:$0xf]  ;;  %v1480_v7 = vld [vmem:[%s1832_s4 + $0x238] sm:$0xf0]  ;;  %v1622_v17 = vld [vmem:[%s1832_s4 + $0x124] sm:$0xf] }
  0x50   : > { %946 = vmatpush.bf16.msrb.mxu0 %v1471_v47  ;;  %v1432_v47 = vld [vmem:[%s1832_s4 + $0x1d8] sm:$0xf0]  ;;  %v1672_v8 = vld [vmem:[%s1832_s4 + $0x2b4] sm:$0xf]  ;;  %v1483_v14 = vor.u32 %v1656_v6, %v1480_v7  ;;  %v1344_v18 = vld [vmem:[%s1832_s4 + $0x128] sm:$0xf0] }
  0x51   : > { %959 = vmatpush.bf16.msrb.mxu1 %v1535_v48  ;;  %v1660_v48 = vld [vmem:[%s1832_s4 + $0x254] sm:$0xf]  ;;  %v1544_v11 = vld [vmem:[%s1832_s4 + $0x2b8] sm:$0xf0]  ;;  %v1638_v19 = vld [vmem:[%s1832_s4 + $0x1a4] sm:$0xf]  ;;  %v1347_v26 = vor.u32 %v1622_v17, %v1344_v18 }
  0x52   : > { %972 = vmatpush.bf16.msrb.mxu2 %v1219_v49  ;;  %v1496_v49 = vld [vmem:[%s1832_s4 + $0x258] sm:$0xf0]  ;;  %v1654_v22 = vld [vmem:[%s1832_s4 + $0x224] sm:$0xf]  ;;  %v1472_v23 = vld [vmem:[%s1832_s4 + $0x228] sm:$0xf0] }
  0x53   : > { %985 = vmatpush.bf16.msrb.mxu3 %v1283_v53  ;;  %v1435_v53 = vor.u32 %v1644_v45, %v1432_v47  ;;  %v1499_v54 = vor.u32 %v1660_v48, %v1496_v49  ;;  %v1620_v29 = vld [vmem:[%s1832_s4 + $0x114] sm:$0xf]  ;;  %v1336_v30 = vld [vmem:[%s1832_s4 + $0x118] sm:$0xf0]  ;;  %v1618_v43 = vld [vmem:[%s1832_s4 + $0x104] sm:$0xf] }
  0x54   : > { %947 = vmatpush.bf16.msrb.mxu0 %v1463_v59  ;;  %v1488_v59 = vld [vmem:[%s1832_s4 + $0x248] sm:$0xf0]  ;;  %v1636_v31 = vld [vmem:[%s1832_s4 + $0x194] sm:$0xf]  ;;  %v1400_v33 = vld [vmem:[%s1832_s4 + $0x198] sm:$0xf0] }
  0x55   : > { %960 = vmatpush.bf16.msrb.mxu1 %v1527_v63  ;;  %v1427_v63 = vor.u32 %v1642_v56, %v1424_v57  ;;  %v1652_v34 = vld [vmem:[%s1832_s4 + $0x214] sm:$0xf]  ;;  %v1464_v35 = vld [vmem:[%s1832_s4 + $0x218] sm:$0xf0]  ;;  %v1328_v44 = vld [vmem:[%s1832_s4 + $0x108] sm:$0xf0] }
  0x56   : > { %973 = vmatpush.bf16.msrb.mxu2 %v1211_v0  ;;  %v1491_v0 = vor.u32 %v1658_v58, %v1488_v59  ;;  %v1668_v37 = vld [vmem:[%s1832_s4 + $0x294] sm:$0xf]  ;;  %v1528_v38 = vld [vmem:[%s1832_s4 + $0x298] sm:$0xf0]  ;;  %v1634_v45 = vld [vmem:[%s1832_s4 + $0x184] sm:$0xf] }
  0x57   : > { %986 = vmatpush.bf16.msrb.mxu3 %v1275_v4  ;;  %v1555_v4 = vor.u32 %v1674_v60, %v1552_v61  ;;  %v1392_v47 = vld [vmem:[%s1832_s4 + $0x188] sm:$0xf0]  ;;  %v1650_v48 = vld [vmem:[%s1832_s4 + $0x204] sm:$0xf] }
  0x58   : > { %948 = vmatpush.bf16.msrb.mxu0 %v1455_v13  ;;  %v1419_v13 = vor.u32 %v1640_v3, %v1416_v5  ;;  %v1456_v49 = vld [vmem:[%s1832_s4 + $0x208] sm:$0xf0] }
  0x59   : > { %961 = vmatpush.bf16.msrb.mxu1 %v1519_v20  ;;  %v1547_v20 = vor.u32 %v1672_v8, %v1544_v11 }
  0x5a   : > { %974 = vmatpush.bf16.msrb.mxu2 %v1203_v21  ;;  %v1408_v21 = vld [vmem:[%s1832_s4 + $0x1a8] sm:$0xf0] }
  0x5b   : > { %987 = vmatpush.bf16.msrb.mxu3 %v1267_v24  ;;  %949 = vmatmul.bf16.vlgmr.msrb.gmra.mxu0 %v1992_v36  ;;  %v1670_v24 = vld [vmem:[%s1832_s4 + $0x2a4] sm:$0xf] }
  0x5c   : > { %993 = vmatpush.bf16.msra.mxu0 %v1387_v25  ;;  %962 = vmatmul.bf16.vlgmr.msrb.gmra.mxu1 %v1996_v40  ;;  %v1536_v25 = vld [vmem:[%s1832_s4 + $0x2a8] sm:$0xf0] }
  0x5d   : > { %1006 = vmatpush.bf16.msra.mxu1 %v1451_v27  ;;  %975 = vmatmul.bf16.vlgmr.msrb.gmra.mxu2 %v1925_v9  ;;  %v1360_v9 = vld [vmem:[%s1832_s4 + $0x148] sm:$0xf0]  ;;  %v1411_v27 = vor.u32 %v1638_v19, %v1408_v21 }
  0x5e   : > { %1019 = vmatpush.bf16.msra.mxu2 %v1515_v28  ;;  %988 = vmatmul.bf16.vlgmr.msrb.gmra.mxu3 %v1927_v10  ;;  %v1563_v10 = vor.u32 %v1676_v50, %v1560_v51  ;;  %v1363_v62 = vor.u32 %v1626_v55, %v1360_v9  ;;  %v1475_v28 = vor.u32 %v1654_v22, %v1472_v23  ;;  %v1666_v50 = vld [vmem:[%s1832_s4 + $0x284] sm:$0xf]  ;;  %v1520_v51 = vld [vmem:[%s1832_s4 + $0x288] sm:$0xf0] }
  0x5f   : > { %1032 = vmatpush.bf16.msra.mxu3 %v1579_v32  ;;  %v1539_v32 = vor.u32 %v1670_v24, %v1536_v25  ;;  %v1523_v55 = vor.u32 %v1666_v50, %v1520_v51  ;;  %v288_v22 = vld [vmem:[#allocation2 + $0x8] sm:$0xff] }
  0x60   : > { %994 = vmatpush.bf16.msra.mxu0 %v1379_v39  ;;  %v1339_v39 = vor.u32 %v1620_v29, %v1336_v30 }
  0x61   : > { %1007 = vmatpush.bf16.msra.mxu1 %v1443_v41  ;;  %v1403_v41 = vor.u32 %v1636_v31, %v1400_v33 }
  0x62   : > { %1020 = vmatpush.bf16.msra.mxu2 %v1507_v42  ;;  %v1467_v42 = vor.u32 %v1652_v34, %v1464_v35 }
  0x63   : > { %1033 = vmatpush.bf16.msra.mxu3 %v1571_v46  ;;  %v1531_v46 = vor.u32 %v1668_v37, %v1528_v38 }
  0x64   : > { %995 = vmatpush.bf16.msra.mxu0 %v1371_v52  ;;  %v1331_v52 = vor.u32 %v1618_v43, %v1328_v44 }
  0x65   : > { %1008 = vmatpush.bf16.msra.mxu1 %v1435_v53  ;;  %v1395_v53 = vor.u32 %v1634_v45, %v1392_v47 }
  0x66   : > { %1021 = vmatpush.bf16.msra.mxu2 %v1499_v54  ;;  %v1459_v54 = vor.u32 %v1650_v48, %v1456_v49 }
  0x67   : > { %1034 = vmatpush.bf16.msra.mxu3 %v1563_v10 }
  0x68   : > { %996 = vmatpush.bf16.msra.mxu0 %v1363_v62 }
  0x69   : > { %1009 = vmatpush.bf16.msra.mxu1 %v1427_v63 }
  0x6a   : > { %1022 = vmatpush.bf16.msra.mxu2 %v1491_v0 }
  0x6b   : > { %1035 = vmatpush.bf16.msra.mxu3 %v1555_v4 }
  0x6c   : > { %997 = vmatpush.bf16.msra.mxu0 %v1355_v12 }
  0x6d   : > { %1010 = vmatpush.bf16.msra.mxu1 %v1419_v13 }
  0x6e   : > { %1023 = vmatpush.bf16.msra.mxu2 %v1483_v14 }
  0x6f   : > { %1036 = vmatpush.bf16.msra.mxu3 %v1547_v20 }
  0x70   : > { %998 = vmatpush.bf16.msra.mxu0 %v1347_v26 }
  0x71   : > { %1011 = vmatpush.bf16.msra.mxu1 %v1411_v27 }
  0x72   : > { %1024 = vmatpush.bf16.msra.mxu2 %v1475_v28 }
  0x73   : > { %1037 = vmatpush.bf16.msra.mxu3 %v1539_v32 }
  0x74   : > { %999 = vmatpush.bf16.msra.mxu0 %v1339_v39 }
  0x75   : > { %1012 = vmatpush.bf16.msra.mxu1 %v1403_v41 }
  0x76   : > { %1025 = vmatpush.bf16.msra.mxu2 %v1467_v42 }
  0x77   : > { %1038 = vmatpush.bf16.msra.mxu3 %v1531_v46 }
  0x78   : > { %1000 = vmatpush.bf16.msra.mxu0 %v1331_v52 }
  0x79   : > { %1013 = vmatpush.bf16.msra.mxu1 %v1395_v53 }
  0x7a   : > { %1026 = vmatpush.bf16.msra.mxu2 %v1459_v54 }
  0x7b   : > { %1039 = vmatpush.bf16.msra.mxu3 %v1523_v55  ;;  %1001 = vmatmul.bf16.vlgmr.msra.gmra.mxu0 %v1932_v15  ;;  %v287_v15 = vld [vmem:[#allocation2] sm:$0xff] }
  0x7c   : > { %1014 = vmatmul.bf16.vlgmr.msra.gmra.mxu1 %v1934_v16 }
  0x7d   : > { %1027 = vmatmul.bf16.vlgmr.msra.gmra.mxu2 %v1992_v36 }
  0x7e   : > { %1040 = vmatmul.bf16.vlgmr.msra.gmra.mxu3 %v1996_v40 }
  0xb8   : > { %v898_v9 = vpop.f32.mrf.mxu0 }
  0xb9   : > { %v911_v56 = vpop.f32.mrf.mxu1 }
  0xba   : > { %v912_v60 = vadd.f32 %v911_v56, %v898_v9 }
  0xc0   : > { %v924_v10 = vpop.f32.mrf.mxu2  ;;  %v900_v58 = vpop.f32.mrf.mxu0 }
  0xc1   : > { %v937_v57 = vpop.f32.mrf.mxu3  ;;  %v913_v59 = vpop.f32.mrf.mxu1  ;;  %v925_v63 = vadd.f32 %v924_v10, %v912_v60 }
  0xc3   : > { %v938_v0 = vadd.f32 %v937_v57, %v925_v63 }
  0xc8   : > { %v926_v61 = vpop.f32.mrf.mxu2 }
  0xc9   : > { %v939_v62 = vpop.f32.mrf.mxu3 }
  0xd8   : > { %v950_v1 = vpop.f32.mrf.mxu0 }
  0xd9   : > { %v951_v2 = vadd.f32 %v950_v1, %v938_v0  ;;  %v963_v3 = vpop.f32.mrf.mxu1 }
  0xdb   : > { %v964_v16 = vadd.f32 %v963_v3, %v951_v2 }
  0xdd   : > { %v1045_v4 = vadd.f32 %v964_v16, %v287_v15 }
  0xdf   : > { %1047 = vst [vmem:[#allocation2] sm:$0xff] %v1045_v4 }
  0xe0   : > { %v976_v36 = vpop.f32.mrf.mxu2  ;;  %v952_v5 = vpop.f32.mrf.mxu0 }
  0xe1   : > { %v989_v40 = vpop.f32.mrf.mxu3  ;;  %v965_v6 = vpop.f32.mrf.mxu1 }
  0xe2   : > { %v990_v11 = vadd.f32 %v989_v40, %v976_v36 }
  0xe8   : > { %v978_v7 = vpop.f32.mrf.mxu2 }
  0xe9   : > { %v991_v8 = vpop.f32.mrf.mxu3 }
  0xf8   : > { %v1002_v12 = vpop.f32.mrf.mxu0 }
  0xf9   : > { %v1015_v13 = vpop.f32.mrf.mxu1  ;;  %v1003_v14 = vadd.f32 %v1002_v12, %v990_v11 }
  0xfb   : > { %v1016_v17 = vadd.f32 %v1015_v13, %v1003_v14 }
 0x100   : > { %v1028_v18 = vpop.f32.mrf.mxu2  ;;  %v1004_v21 = vpop.f32.mrf.mxu0 }
 0x101   : > { %v1029_v19 = vadd.f32 %v1028_v18, %v1016_v17  ;;  %v1041_v20 = vpop.f32.mrf.mxu3  ;;  %v1017_v23 = vpop.f32.mrf.mxu1 }
 0x103   : > { %v1042_v24 = vadd.f32 %v1041_v20, %v1029_v19 }
 0x105   : > { %v1046_v25 = vadd.f32 %v1042_v24, %v288_v22  ;;  %1052 = sbr.rel (%p1580_p10) target bundleno = 278 (0x116), region = 44 }
 0x107   : > { %1048 = vst [vmem:[#allocation2 + $0x8] sm:$0xff] %v1046_v25 }
 0x108   : > { %v1030_v26 = vpop.f32.mrf.mxu2 }
 0x109   : > { %v1043_v27 = vpop.f32.mrf.mxu3 }
 0x10a   : > { %v1053_v28 = vld [vmem:[#allocation2] sm:$0xff]  ;;  %v1055_v30 = vld [vmem:[#allocation3] sm:$0x3] }
 0x10b   : > { %v1057_v31 = vperm.slane %v1055_v30, 0  ;;  %v1058_v32 = vperm.slane %v1055_v30, 1 }
 0x10d   : > { %v1061_v33 = vadd.f32 %v1057_v31, %v1053_v28 }
 0x10e   : > { %v1054_v29 = vld [vmem:[#allocation2 + $0x8] sm:$0xff] }
 0x10f   : > { %v1062_v34 = vadd.f32 %v1058_v32, %v1054_v29  ;;  %v1063_v35 = vmax.f32 %v1061_v33, 0.0 }
 0x111   : > { %v1064_v37 = vmax.f32 %v1062_v34, 0.0 }
 0x113   : > { %v1065_v38 = vpack.c.bf16 %v1064_v37, %v1063_v35 }
 0x115   : > { %1066 = vst [vmem:[%s2070_s3] sm:$0xff] %v1065_v38 }
 0x116 PF: > { %s14_s14 = sadd.s32 1, %s1774_s14   ;;  %s2071_s12 = smov %s1770_s13 }
 0x117   : > { %p11_p11 = scmp.ge.s32.totalorder %s14_s14, 5   ;;  %s2072_s13 = smov %s2074_s16 }
 0x119   :  { %13 = sbr.rel (!%p11_p11) target bundleno = 2 (0x2), region = 79 }
 0x11e   :  { %1097 = vsyncpa [#allocation4], 1 }
 0x11f   :  { %1099 = vsyncpa [#allocation4 + $0x1], 1 }

// kernel: resnet18_forward.39
= control target key start
LH: loop header
LB: loop body
LE: loop exit
PB: predicated region body
PF: predicated region fallthrough
CT: control target
= control target key end

     0   :  { %8 = vsyncpa [#allocation4], 0  ;;  %s1288_s0 = inlined_call_operand.vmem [shape: bf16[8,256], index: 0, kind: input, shape index: {}]   ;;  %s1289_s1 = inlined_call_operand.hbm [shape: bf16[256,512], index: 1, kind: input, shape index: {}]   ;;  %s1290_s2 = inlined_call_operand.hbm [shape: f32[1,512], index: 2, kind: input, shape index: {}]   ;;  %s1291_s3 = inlined_call_operand.vmem [shape: bf16[8,512], index: 3, kind: output, shape index: {}]  }
   0x1   :  { %10 = vsyncpa [#allocation4 + $0x1], 0 }
   0x2   :  { %11 = vsyncpa [#allocation6], 0 }
   0x3   :  { %13 = vsyncpa [#allocation6 + $0x1], 0  ;;  %s1107_s12 = smov 0   ;;  %s1109_s13 = smov 0  }
   0x4   :  { %s1111_s14 = smov 0   ;;  %s1113_s15 = smov 0  }
   0x5   :  { %s1115_s16 = smov 0   ;;  %s1117_s17 = smov 0  }
   0x6 LB: > { %s727_s18 = sadd.s32 4294967295, %s1082_s17   ;;  %s34_s19 = sadd.s32 1, %s1078_s16  ;;  %s1082_s17 = sphi %s1117_s17, %s19_s17   ;;  %s1078_s16 = sphi %s1115_s16, %s1299_s16   ;;  %s1074_s15 = sphi %s1113_s15, %s1298_s15   ;;  %s1070_s14 = sphi %s1111_s14, %s1297_s14   ;;  %s1066_s13 = sphi %s1109_s13, %s1296_s13   ;;  %s1062_s12 = sphi %s1107_s12, %s1295_s12  }
   0x7   : > { %p36_p0 = scmp.ge.s32.totalorder %s34_s19, 2  ;;  %s75_s20 = sadd.s32 1, %s1070_s14 }
   0x8   : > { %p82_p1 = scmp.ne.s32.totalorder %s1070_s14, %s1066_s13  ;;  %p83_p2 = scmp.eq.s32.totalorder %s1082_s17, 0 }
   0x9   : > { %s1301_s19 = smov (%p36_p0, %s34_s19), 0  ;;  %p88_p4 = scmp.ne.s32.totalorder %s1066_s13, %s1062_s12 }
   0xa   : > { %p1143_p3 = por %p83_p2, %p82_p1  ;;  %s71_s22 = ssub.s32 %s1078_s16, %s1301_s19 }
   0xb   : > { %p89_p5 = scmp.eq.s32.totalorder %s727_s18, 0  ;;  %p73_p6 = scmp.eq.s32.totalorder %s71_s22, 0 }
   0xc   : > { %p916_p8 = scmp.lt.s32.totalorder %s1082_s17, 2  ;;  %s1159_s25 = sand.u32 1, %s1070_s14  }
   0xd   : > { %p1150_p7 = por %p89_p5, %p88_p4  ;;  %s872_s26 = sshll.u32 %s1078_s16, 3 }
   0xe   : > { %s1156_s24 = scalar_select %p73_p6, %s1070_s14, %s75_s20  }
   0xf   : > { %s732_s27 = sshll.u32 %s1159_s25, 8  ;;  %s191_s30 = scalar_lea.hbm %s1289_s1, %s872_s26 }
  0x10   : > { %s192_s4 = sshll.u32 %s191_s30, 4  ;;  %s183_s5 = scalar_lea.vmem [#allocation3], %s732_s27  ;;  %s193_s4 = int_to_ptr.hbm [resolvable:$true] %s192_s4 }
  0x11   : > { %s194_s6 = sshll.u32 %s183_s5, 4  ;;  %p1168_p9 = pnand %p916_p8, %p1143_p3  ;;  %s195_s6 = int_to_ptr.vmem [resolvable:$true] %s194_s6 }
  0x12   : > { %p737_p10 = scmp.ge.s32.totalorder %s1082_s17, 1  ;;  %s180_s8 = scalar_lea.sflag [#allocation4], %s1159_s25 }
  0x13   : > { %s1084_s9 = smov 256   ;;  %s1085_s10 = smov 128  }
  0x14   : > { %s1086_s11 = smov 8   ;;  %p221_p11 = scmp.lt.s32.totalorder %s1082_s17, 3 }
  0x15   : > { %912 = dma.hbm_to_vmem [thread:$0]  (!%p1168_p9), %s193_s4, 4096, %s195_s6, %s180_s8, %s1084_s9, %s1085_s10, %s1086_s11  }
  0x16   : > { %s735_s12 = sshll.u32 %s1159_s25, 1  ;;  %s736_s18 = sshll.u32 %s1078_s16, 1 }
  0x17   : > { %p222_p12 = pnand %p737_p10, %p221_p11  ;;  %s212_s22 = scalar_lea.hbm %s1290_s2, %s736_s18 }
  0x18   : > { %s208_s26 = scalar_lea.vmem [#allocation5], %s735_s12  ;;  %s214_s28 = sshll.u32 %s212_s22, 4  ;;  %s215_s28 = int_to_ptr.hbm [resolvable:$true] %s214_s28 }
  0x19   : > { %s216_s27 = sshll.u32 %s208_s26, 4  ;;  %s205_s29 = scalar_lea.sflag [#allocation6], %s1159_s25  ;;  %s217_s27 = int_to_ptr.vmem [resolvable:$true] %s216_s27 }
  0x1a   : > { %915 = dma.hbm_to_vmem [thread:$0]  (!%p1168_p9), %s215_s28, 32, %s217_s27, %s205_s29  }
  0x1b   : > { %225 = sbr.rel (%p222_p12) target bundleno = 213 (0xd5), region = 32  ;;  %s227_s30 = sand.u32 (!%p222_p12), 1, %s1066_s13  }
  0x1c   : > { %s738_s4 = sshll.u32 (!%p222_p12), %s227_s30, 8  ;;  %s228_s5 = scalar_lea.sflag (!%p222_p12), [#allocation4], %s227_s30 }
  0x1d   : > { %s1186_s6 = scalar_lea.vmem (!%p222_p12), [#allocation3], %s738_s4 }
  0x20   : > { %1053 = dma.done.wait (%p1150_p7), %s228_s5, 4096  }
  0x21   : > { %1055 = vsyncadd (%p1150_p7), %s228_s5, 4294963200  ;;  %s739_s8 = sshll.u32 %s227_s30, 1  ;;  %s238_s9 = scalar_lea.sflag [#allocation6], %s227_s30 }
  0x22   : > { %s1192_s10 = scalar_lea.vmem [#allocation5], %s739_s8 }
  0x23   : > { %1057 = dma.done.wait (%p1150_p7), %s238_s9, 32  }
  0x24   : > { %1059 = vsyncadd (%p1150_p7), %s238_s9, 4294967264  ;;  %v800_v0 = vld [vmem:[%s1186_s6 + $0x70] sm:$0xf]  ;;  %v888_v1 = vld [vmem:[%s1186_s6 + $0x74] sm:$0xf0]  ;;  %s740_s7 = sshll.u32 %s1074_s15, 1 }
  0x25   : > { %v864_v2 = vld [vmem:[%s1186_s6 + $0xf0] sm:$0xf]  ;;  %v801_v3 = vor.u32 %v888_v1, %v800_v0  ;;  %v904_v4 = vld [vmem:[%s1186_s6 + $0xf4] sm:$0xf0]  ;;  %v887_v5 = vld [vmem:[%s1186_s6 + $0x74] sm:$0xf] }
  0x26   : > { %v802_v6 = vld [vmem:[%s1186_s6 + $0x78] sm:$0xf0]  ;;  %v865_v7 = vor.u32 %v904_v4, %v864_v2  ;;  %v903_v9 = vld [vmem:[%s1186_s6 + $0xf4] sm:$0xf]  ;;  %v792_v11 = vld [vmem:[%s1186_s6 + $0x60] sm:$0xf] }
  0x27   : > { %v805_v8 = vor.u32 %v887_v5, %v802_v6  ;;  %v866_v10 = vld [vmem:[%s1186_s6 + $0xf8] sm:$0xf0]  ;;  %514 = vmatpush.bf16.msra.mxu0 %v801_v3  ;;  %v886_v13 = vld [vmem:[%s1186_s6 + $0x64] sm:$0xf0]  ;;  %v856_v14 = vld [vmem:[%s1186_s6 + $0xe0] sm:$0xf] }
  0x28   : > { %v869_v12 = vor.u32 %v903_v9, %v866_v10  ;;  %v902_v15 = vld [vmem:[%s1186_s6 + $0xe4] sm:$0xf0]  ;;  %527 = vmatpush.bf16.msra.mxu1 %v865_v7  ;;  %v793_v16 = vor.u32 %v886_v13, %v792_v11  ;;  %v885_v18 = vld [vmem:[%s1186_s6 + $0x64] sm:$0xf]  ;;  %v794_v19 = vld [vmem:[%s1186_s6 + $0x68] sm:$0xf0] }
  0x29   : > { %540 = vmatpush.bf16.msra.mxu2 %v805_v8  ;;  %v857_v17 = vor.u32 %v902_v15, %v856_v14  ;;  %v901_v20 = vld [vmem:[%s1186_s6 + $0xe4] sm:$0xf]  ;;  %v797_v21 = vor.u32 %v885_v18, %v794_v19  ;;  %v858_v22 = vld [vmem:[%s1186_s6 + $0xe8] sm:$0xf0]  ;;  %v784_v23 = vld [vmem:[%s1186_s6 + $0x50] sm:$0xf] }
  0x2a   : > { %553 = vmatpush.bf16.msra.mxu3 %v869_v12  ;;  %v884_v24 = vld [vmem:[%s1186_s6 + $0x54] sm:$0xf0]  ;;  %v861_v25 = vor.u32 %v901_v20, %v858_v22  ;;  %v848_v26 = vld [vmem:[%s1186_s6 + $0xd0] sm:$0xf]  ;;  %v883_v28 = vld [vmem:[%s1186_s6 + $0x54] sm:$0xf] }
  0x2b   : > { %v900_v27 = vld [vmem:[%s1186_s6 + $0xd4] sm:$0xf0]  ;;  %515 = vmatpush.bf16.msra.mxu0 %v793_v16  ;;  %v785_v29 = vor.u32 %v884_v24, %v784_v23  ;;  %v786_v30 = vld [vmem:[%s1186_s6 + $0x58] sm:$0xf0]  ;;  %v899_v31 = vld [vmem:[%s1186_s6 + $0xd4] sm:$0xf] }
  0x2c   : > { %v850_v32 = vld [vmem:[%s1186_s6 + $0xd8] sm:$0xf0]  ;;  %528 = vmatpush.bf16.msra.mxu1 %v857_v17  ;;  %v849_v33 = vor.u32 %v900_v27, %v848_v26  ;;  %v789_v34 = vor.u32 %v883_v28, %v786_v30  ;;  %v776_v35 = vld [vmem:[%s1186_s6 + $0x40] sm:$0xf]  ;;  %v882_v36 = vld [vmem:[%s1186_s6 + $0x44] sm:$0xf0] }
  0x2d   : > { %541 = vmatpush.bf16.msra.mxu2 %v797_v21  ;;  %v840_v37 = vld [vmem:[%s1186_s6 + $0xc0] sm:$0xf]  ;;  %v853_v38 = vor.u32 %v899_v31, %v850_v32  ;;  %v898_v39 = vld [vmem:[%s1186_s6 + $0xc4] sm:$0xf0]  ;;  %v881_v40 = vld [vmem:[%s1186_s6 + $0x44] sm:$0xf]  ;;  %v777_v44 = vor.u32 %v882_v36, %v776_v35 }
  0x2e   : > { %554 = vmatpush.bf16.msra.mxu3 %v861_v25  ;;  %v778_v41 = vld [vmem:[%s1186_s6 + $0x48] sm:$0xf0]  ;;  %v897_v42 = vld [vmem:[%s1186_s6 + $0xc4] sm:$0xf]  ;;  %v841_v45 = vor.u32 %v898_v39, %v840_v37  ;;  %v768_v47 = vld [vmem:[%s1186_s6 + $0x30] sm:$0xf] }
  0x2f   : > { %v842_v43 = vld [vmem:[%s1186_s6 + $0xc8] sm:$0xf0]  ;;  %516 = vmatpush.bf16.msra.mxu0 %v785_v29  ;;  %v781_v46 = vor.u32 %v881_v40, %v778_v41  ;;  %v880_v48 = vld [vmem:[%s1186_s6 + $0x34] sm:$0xf0]  ;;  %v832_v49 = vld [vmem:[%s1186_s6 + $0xb0] sm:$0xf] }
  0x30   : > { %529 = vmatpush.bf16.msra.mxu1 %v849_v33  ;;  %v845_v50 = vor.u32 %v897_v42, %v842_v43  ;;  %v896_v51 = vld [vmem:[%s1186_s6 + $0xb4] sm:$0xf0]  ;;  %v879_v52 = vld [vmem:[%s1186_s6 + $0x34] sm:$0xf]  ;;  %v770_v53 = vld [vmem:[%s1186_s6 + $0x38] sm:$0xf0]  ;;  %v769_v56 = vor.u32 %v880_v48, %v768_v47 }
  0x31   : > { %542 = vmatpush.bf16.msra.mxu2 %v789_v34  ;;  %v895_v54 = vld [vmem:[%s1186_s6 + $0xb4] sm:$0xf]  ;;  %v834_v55 = vld [vmem:[%s1186_s6 + $0xb8] sm:$0xf0]  ;;  %v833_v57 = vor.u32 %v896_v51, %v832_v49  ;;  %v773_v58 = vor.u32 %v879_v52, %v770_v53  ;;  %v760_v59 = vld [vmem:[%s1186_s6 + $0x20] sm:$0xf] }
  0x32   : > { %555 = vmatpush.bf16.msra.mxu3 %v853_v38  ;;  %v878_v60 = vld [vmem:[%s1186_s6 + $0x24] sm:$0xf0]  ;;  %v824_v61 = vld [vmem:[%s1186_s6 + $0xa0] sm:$0xf]  ;;  %v837_v62 = vor.u32 %v895_v54, %v834_v55  ;;  %v877_v0 = vld [vmem:[%s1186_s6 + $0x24] sm:$0xf] }
  0x33   : > { %517 = vmatpush.bf16.msra.mxu0 %v777_v44  ;;  %v894_v63 = vld [vmem:[%s1186_s6 + $0xa4] sm:$0xf0]  ;;  %v762_v1 = vld [vmem:[%s1186_s6 + $0x28] sm:$0xf0]  ;;  %v893_v2 = vld [vmem:[%s1186_s6 + $0xa4] sm:$0xf]  ;;  %v761_v4 = vor.u32 %v878_v60, %v760_v59 }
  0x34   : > { %530 = vmatpush.bf16.msra.mxu1 %v841_v45  ;;  %v826_v3 = vld [vmem:[%s1186_s6 + $0xa8] sm:$0xf0]  ;;  %v825_v5 = vor.u32 %v894_v63, %v824_v61  ;;  %v765_v6 = vor.u32 %v877_v0, %v762_v1  ;;  %v752_v7 = vld [vmem:[%s1186_s6 + $0x10] sm:$0xf]  ;;  %v876_v8 = vld [vmem:[%s1186_s6 + $0x14] sm:$0xf0] }
  0x35   : > { %543 = vmatpush.bf16.msra.mxu2 %v781_v46  ;;  %v816_v9 = vld [vmem:[%s1186_s6 + $0x90] sm:$0xf]  ;;  %v829_v10 = vor.u32 %v893_v2, %v826_v3  ;;  %v892_v11 = vld [vmem:[%s1186_s6 + $0x94] sm:$0xf0]  ;;  %v875_v12 = vld [vmem:[%s1186_s6 + $0x14] sm:$0xf]  ;;  %v753_v16 = vor.u32 %v876_v8, %v752_v7 }
  0x36   : > { %556 = vmatpush.bf16.msra.mxu3 %v845_v50  ;;  %v754_v13 = vld [vmem:[%s1186_s6 + $0x18] sm:$0xf0]  ;;  %v891_v14 = vld [vmem:[%s1186_s6 + $0x94] sm:$0xf]  ;;  %v314_v17 = vld [vmem:[%s1288_s0] sm:$0xff]  ;;  %v817_v18 = vor.u32 %v892_v11, %v816_v9  ;;  %p299_p13 = scmp.lt.s32.totalorder %s740_s7, 3 }
  0x37   : > { %518 = vmatpush.bf16.msra.mxu0 %v769_v56  ;;  %v818_v15 = vld [vmem:[%s1186_s6 + $0x98] sm:$0xf0]  ;;  %v757_v19 = vor.u32 %v875_v12, %v754_v13  ;;  %v744_v20 = vld [vmem:[%s1186_s6] sm:$0xf]  ;;  %v874_v21 = vld [vmem:[%s1186_s6 + $0x4] sm:$0xf0]  ;;  %v348_v29 = vunpack.c.l.b16 %v314_v17  ;;  %v349_v31 = vunpack.c.h.b16 %v314_v17 }
  0x38   : > { %531 = vmatpush.bf16.msra.mxu1 %v833_v57  ;;  %v808_v22 = vld [vmem:[%s1186_s6 + $0x80] sm:$0xf]  ;;  %v821_v23 = vor.u32 %v891_v14, %v818_v15  ;;  %v890_v24 = vld [vmem:[%s1186_s6 + $0x84] sm:$0xf0]  ;;  %v873_v25 = vld [vmem:[%s1186_s6 + $0x4] sm:$0xf]  ;;  %v745_v30 = vor.u32 %v874_v21, %v744_v20 }
  0x39   : > { %544 = vmatpush.bf16.msra.mxu2 %v773_v58  ;;  %v746_v26 = vld [vmem:[%s1186_s6 + $0x8] sm:$0xf0]  ;;  %v889_v27 = vld [vmem:[%s1186_s6 + $0x84] sm:$0xf]  ;;  %v809_v32 = vor.u32 %v890_v24, %v808_v22  ;;  %v350_v35 = vpack.c.b16 %v348_v29, %v348_v29  ;;  %v351_v36 = vpack.c.b16 %v349_v31, %v349_v31  ;;  %v575_v39 = vld [vmem:[%s1192_s10] sm:$0x3] }
  0x3a   : > { %557 = vmatpush.bf16.msra.mxu3 %v837_v62  ;;  %v810_v28 = vld [vmem:[%s1186_s6 + $0x88] sm:$0xf0]  ;;  %v749_v33 = vor.u32 %v873_v25, %v746_v26  ;;  %v577_v41 = vperm.slane %v575_v39, 0  ;;  %s1303_s7 = smov (!%p299_p13, %s740_s7), 3  ;;  %v578_v43 = vperm.slane %v575_v39, 1 }
  0x3b   : > { %519 = vmatpush.bf16.msra.mxu0 %v761_v4  ;;  %v813_v34 = vor.u32 %v889_v27, %v810_v28  ;;  %s741_s11 = sshll.u32 %s1303_s7, 2 }
  0x3c   : > { %532 = vmatpush.bf16.msra.mxu1 %v825_v5  ;;  %s304_s15 = scalar_lea.vmem %s1291_s3, %s741_s11 }
  0x3d   : > { %545 = vmatpush.bf16.msra.mxu2 %v765_v6 }
  0x3e   : > { %558 = vmatpush.bf16.msra.mxu3 %v829_v10 }
  0x3f   : > { %520 = vmatpush.bf16.msra.mxu0 %v753_v16 }
  0x40   : > { %533 = vmatpush.bf16.msra.mxu1 %v817_v18 }
  0x41   : > { %546 = vmatpush.bf16.msra.mxu2 %v757_v19 }
  0x42   : > { %559 = vmatpush.bf16.msra.mxu3 %v821_v23 }
  0x43   : > { %521 = vmatpush.bf16.msra.mxu0 %v745_v30 }
  0x44   : > { %534 = vmatpush.bf16.msra.mxu1 %v809_v32 }
  0x45   : > { %547 = vmatpush.bf16.msra.mxu2 %v749_v33 }
  0x46   : > { %560 = vmatpush.bf16.msra.mxu3 %v813_v34  ;;  %522 = vmatmul.bf16.vlgmr.msra.gmra.mxu0 %v350_v35 }
  0x47   : > { %535 = vmatmul.bf16.vlgmr.msra.gmra.mxu1 %v351_v36 }
  0x48   : > { %548 = vmatmul.bf16.vlgmr.msra.gmra.mxu2 %v350_v35 }
  0x49   : > { %561 = vmatmul.bf16.vlgmr.msra.gmra.mxu3 %v351_v36 }
  0xc3   : > { %v523_v37 = vpop.f32.mrf.mxu0 }
  0xc4   : > { %v536_v38 = vpop.f32.mrf.mxu1 }
  0xc5   : > { %v537_v40 = vadd.f32 %v536_v38, %v523_v37 }
  0xc7   : > { %v581_v46 = vadd.f32 %v577_v41, %v537_v40 }
  0xcb   : > { %v549_v42 = vpop.f32.mrf.mxu2  ;;  %v525_v45 = vpop.f32.mrf.mxu0 }
  0xcc   : > { %v562_v44 = vpop.f32.mrf.mxu3  ;;  %v538_v48 = vpop.f32.mrf.mxu1 }
  0xcd   : > { %v563_v47 = vadd.f32 %v562_v44, %v549_v42 }
  0xcf   : > { %v582_v49 = vadd.f32 %v578_v43, %v563_v47 }
  0xd1   : > { %v583_v50 = vpack.c.bf16 %v582_v49, %v581_v46 }
  0xd3   : > { %584 = vst [vmem:[%s304_s15] sm:$0xff] %v583_v50  ;;  %v551_v51 = vpop.f32.mrf.mxu2 }
  0xd4   : > { %v564_v52 = vpop.f32.mrf.mxu3 }
  0xd5 PF: > { %s19_s17 = sadd.s32 1, %s1082_s17   ;;  %s1295_s12 = smov %s1066_s13 }
  0xd6   : > { %p16_p0 = scmp.ge.s32.totalorder %s19_s17, 4   ;;  %s1296_s13 = smov %s1070_s14 }
  0xd7   : > { %s1297_s14 = smov %s1156_s24  ;;  %s1298_s15 = smov %s1078_s16 }
  0xd8   : > { %s1299_s16 = smov %s1301_s19  ;;  %18 = sbr.rel (!%p16_p0) target bundleno = 6 (0x6), region = 96 }
  0xdd   :  { %615 = vsyncpa [#allocation4], 1 }
  0xde   :  { %617 = vsyncpa [#allocation4 + $0x1], 1 }
  0xdf   :  { %618 = vsyncpa [#allocation6], 1 }
  0xe0   :  { %620 = vsyncpa [#allocation6 + $0x1], 1 }

// kernel: resnet18_forward.38
= control target key start
LH: loop header
LB: loop body
LE: loop exit
PB: predicated region body
PF: predicated region fallthrough
CT: control target
= control target key end

     0   :  { %8 = vsyncpa [#allocation5], 0  ;;  %s2920_s0 = inlined_call_operand.vmem [shape: bf16[8,2304], index: 0, kind: input, shape index: {}]   ;;  %s2921_s1 = inlined_call_operand.vmem [shape: bf16[2304,512], index: 1, kind: input, shape index: {}]   ;;  %s2922_s2 = inlined_call_operand.hbm [shape: f32[1,512], index: 2, kind: input, shape index: {}]   ;;  %s2923_s3 = inlined_call_operand.vmem [shape: bf16[8,512], index: 3, kind: output, shape index: {}]  }
   0x1   :  { %10 = vsyncpa [#allocation5 + $0x1], 0  ;;  %s2340_s12 = smov 0   ;;  %s2342_s13 = smov 0  }
   0x2   :  { %s2344_s14 = smov 0   ;;  %s2346_s15 = smov 0  }
   0x3   :  { %s2348_s16 = smov 0   ;;  %s2350_s17 = smov 0  }
   0x4   :  { %s2352_s18 = smov 0   ;;  %s2354_s19 = smov 0  }
   0x5   :  { %s2356_s20 = smov 0   ;;  %s2358_s21 = smov 0  }
   0x6 LB: > { %s1623_s22 = sadd.s32 4294967295, %s2317_s21   ;;  %s28_s23 = sadd.s32 1, %s2309_s19  ;;  %s2317_s21 = sphi %s2358_s21, %s16_s21   ;;  %s2313_s20 = sphi %s2356_s20, %s2935_s20   ;;  %s2309_s19 = sphi %s2354_s19, %s2934_s19   ;;  %s2305_s18 = sphi %s2352_s18, %s2933_s18   ;;  %s2301_s17 = sphi %s2350_s17, %s2932_s17   ;;  %s2297_s16 = sphi %s2348_s16, %s2931_s16   ;;  %s2293_s15 = sphi %s2346_s15, %s2930_s15   ;;  %s2289_s14 = sphi %s2344_s14, %s2929_s14   ;;  %s2285_s13 = sphi %s2342_s13, %s2928_s13   ;;  %s2281_s12 = sphi %s2340_s12, %s2927_s12  }
   0x7   : > { %p29_p0 = scmp.ge.s32.totalorder %s28_s23, 3  ;;  %s31_s24 = sadd.s32 1, %s2313_s20 }
   0x8   : > { %s72_s25 = sadd.s32 1, %s2297_s16  ;;  %p79_p1 = scmp.ne.s32.totalorder %s2297_s16, %s2293_s15 }
   0x9   : > { %s2937_s23 = smov (%p29_p0, %s28_s23), 0  ;;  %s2939_s24 = smov (!%p29_p0, %s31_s24), %s2313_s20 }
   0xa   : > { %s67_s26 = ssub.s32 %s2309_s19, %s2937_s23  ;;  %p80_p2 = scmp.eq.s32.totalorder %s2317_s21, 0 }
   0xb   : > { %p33_p3 = scmp.ge.s32.totalorder %s2939_s24, 2  ;;  %s98_s27 = sadd.s32 1, %s2289_s14 }
   0xc   : > { %p2403_p4 = por %p80_p2, %p79_p1  ;;  %p105_p5 = scmp.ne.s32.totalorder %s2289_s14, %s2285_s13 }
   0xd   : > { %s2941_s24 = smov (%p33_p3, %s2939_s24), 0  ;;  %p111_p7 = scmp.ne.s32.totalorder %s2285_s13, %s2281_s12 }
   0xe   : > { %p2411_p6 = por %p105_p5, %p80_p2  ;;  %s68_s30 = ssub.s32 %s2313_s20, %s2941_s24 }
   0xf   : > { %p112_p8 = scmp.eq.s32.totalorder %s1623_s22, 0  ;;  %s69_s4 = sor.u32 %s68_s30, %s67_s26 }
  0x10   : > { %p96_p9 = scmp.eq.s32.totalorder %s68_s30, 0  ;;  %p70_p10 = scmp.eq.s32.totalorder %s69_s4, 0 }
  0x11   : > { %p2419_p11 = por %p112_p8, %p111_p7  ;;  %p1626_p12 = scmp.ge.s32.totalorder %s2317_s21, 6 }
  0x12   : > { %s2424_s6 = scalar_select %p96_p9, %s2289_s14, %s98_s27  }
  0x13   : > { %s2427_s7 = scalar_select %p70_p10, %s2297_s16, %s72_s25  }
  0x14   : > { %159 = sbr.rel (%p1626_p12) target bundleno = 134 (0x86), region = 16 }
  0x19   : > { %175 = sbr.rel (!%p2403_p4) target bundleno = 129 (0x81), region = 24  ;;  %s177_s8 = sand.u32 (%p2403_p4), 1, %s2297_s16  }
  0x1a   : > { %s2122_s9 = smul.u32 (%p2403_p4), 768, %s177_s8  ;;  %s1627_s10 = sshll.u32 (%p2403_p4), %s2313_s20, 1 }
  0x1b   : > { %s2025_s11 = smul.u32 (%p2403_p4), 384, %s2309_s19 }
  0x1c   : > { %s2443_s28 = scalar_lea.vmem (%p2403_p4), [#allocation3], %s2122_s9 }
  0x1d   : > { %s183_s12 = sadd.s32 (%p2403_p4), %s2025_s11, %s1627_s10 }
  0x1e   : > { %s1629_s22 = sshll.u32 %s183_s12, 2 }
  0x1f   : > { %s2438_s25 = scalar_lea.vmem %s2921_s1, %s1629_s22 }
  0x20   : > { %v404_v0 = vld [vmem:[%s2438_s25] sm:$0xff]  ;;  %v406_v1 = vld [vmem:[%s2438_s25 + $0x10] sm:$0xff] }
  0x21   : > { %v408_v2 = vld [vmem:[%s2438_s25 + $0x20] sm:$0xff]  ;;  %405 = vst [vmem:[%s2443_s28] sm:$0xff] %v404_v0  ;;  %v410_v3 = vld [vmem:[%s2438_s25 + $0x30] sm:$0xff] }
  0x22   : > { %407 = vst [vmem:[%s2443_s28 + $0x8] sm:$0xff] %v406_v1  ;;  %v412_v4 = vld [vmem:[%s2438_s25 + $0x40] sm:$0xff]  ;;  %v414_v5 = vld [vmem:[%s2438_s25 + $0x50] sm:$0xff] }
  0x23   : > { %409 = vst [vmem:[%s2443_s28 + $0x10] sm:$0xff] %v408_v2  ;;  %v416_v6 = vld [vmem:[%s2438_s25 + $0x60] sm:$0xff]  ;;  %v418_v7 = vld [vmem:[%s2438_s25 + $0x70] sm:$0xff] }
  0x24   : > { %411 = vst [vmem:[%s2443_s28 + $0x18] sm:$0xff] %v410_v3  ;;  %v420_v8 = vld [vmem:[%s2438_s25 + $0x80] sm:$0xff]  ;;  %v422_v9 = vld [vmem:[%s2438_s25 + $0x90] sm:$0xff] }
  0x25   : > { %413 = vst [vmem:[%s2443_s28 + $0x20] sm:$0xff] %v412_v4  ;;  %v424_v10 = vld [vmem:[%s2438_s25 + $0xa0] sm:$0xff]  ;;  %v426_v11 = vld [vmem:[%s2438_s25 + $0xb0] sm:$0xff] }
  0x26   : > { %415 = vst [vmem:[%s2443_s28 + $0x28] sm:$0xff] %v414_v5  ;;  %v428_v12 = vld [vmem:[%s2438_s25 + $0xc0] sm:$0xff]  ;;  %v430_v13 = vld [vmem:[%s2438_s25 + $0xd0] sm:$0xff] }
  0x27   : > { %417 = vst [vmem:[%s2443_s28 + $0x30] sm:$0xff] %v416_v6  ;;  %v432_v14 = vld [vmem:[%s2438_s25 + $0xe0] sm:$0xff]  ;;  %v434_v15 = vld [vmem:[%s2438_s25 + $0xf0] sm:$0xff] }
  0x28   : > { %419 = vst [vmem:[%s2443_s28 + $0x38] sm:$0xff] %v418_v7  ;;  %v436_v16 = vld [vmem:[%s2438_s25 + $0x100] sm:$0xff]  ;;  %v438_v17 = vld [vmem:[%s2438_s25 + $0x110] sm:$0xff] }
  0x29   : > { %421 = vst [vmem:[%s2443_s28 + $0x40] sm:$0xff] %v420_v8  ;;  %v440_v18 = vld [vmem:[%s2438_s25 + $0x120] sm:$0xff]  ;;  %v442_v19 = vld [vmem:[%s2438_s25 + $0x130] sm:$0xff] }
  0x2a   : > { %423 = vst [vmem:[%s2443_s28 + $0x48] sm:$0xff] %v422_v9  ;;  %v444_v20 = vld [vmem:[%s2438_s25 + $0x140] sm:$0xff]  ;;  %v446_v21 = vld [vmem:[%s2438_s25 + $0x150] sm:$0xff] }
  0x2b   : > { %425 = vst [vmem:[%s2443_s28 + $0x50] sm:$0xff] %v424_v10  ;;  %v448_v22 = vld [vmem:[%s2438_s25 + $0x160] sm:$0xff]  ;;  %v450_v23 = vld [vmem:[%s2438_s25 + $0x170] sm:$0xff] }
  0x2c   : > { %427 = vst [vmem:[%s2443_s28 + $0x58] sm:$0xff] %v426_v11  ;;  %v452_v24 = vld [vmem:[%s2438_s25 + $0x180] sm:$0xff]  ;;  %v454_v25 = vld [vmem:[%s2438_s25 + $0x190] sm:$0xff] }
  0x2d   : > { %429 = vst [vmem:[%s2443_s28 + $0x60] sm:$0xff] %v428_v12  ;;  %v456_v26 = vld [vmem:[%s2438_s25 + $0x1a0] sm:$0xff]  ;;  %v458_v27 = vld [vmem:[%s2438_s25 + $0x1b0] sm:$0xff] }
  0x2e   : > { %431 = vst [vmem:[%s2443_s28 + $0x68] sm:$0xff] %v430_v13  ;;  %v460_v28 = vld [vmem:[%s2438_s25 + $0x1c0] sm:$0xff]  ;;  %v462_v29 = vld [vmem:[%s2438_s25 + $0x1d0] sm:$0xff] }
  0x2f   : > { %433 = vst [vmem:[%s2443_s28 + $0x70] sm:$0xff] %v432_v14  ;;  %v464_v30 = vld [vmem:[%s2438_s25 + $0x1e0] sm:$0xff]  ;;  %v466_v31 = vld [vmem:[%s2438_s25 + $0x1f0] sm:$0xff] }
  0x30   : > { %435 = vst [vmem:[%s2443_s28 + $0x78] sm:$0xff] %v434_v15  ;;  %v468_v32 = vld [vmem:[%s2438_s25 + $0x200] sm:$0xff]  ;;  %v470_v33 = vld [vmem:[%s2438_s25 + $0x210] sm:$0xff] }
  0x31   : > { %437 = vst [vmem:[%s2443_s28 + $0x80] sm:$0xff] %v436_v16  ;;  %v472_v34 = vld [vmem:[%s2438_s25 + $0x220] sm:$0xff]  ;;  %v474_v35 = vld [vmem:[%s2438_s25 + $0x230] sm:$0xff] }
  0x32   : > { %439 = vst [vmem:[%s2443_s28 + $0x88] sm:$0xff] %v438_v17  ;;  %v476_v36 = vld [vmem:[%s2438_s25 + $0x240] sm:$0xff]  ;;  %v478_v37 = vld [vmem:[%s2438_s25 + $0x250] sm:$0xff] }
  0x33   : > { %441 = vst [vmem:[%s2443_s28 + $0x90] sm:$0xff] %v440_v18  ;;  %v480_v38 = vld [vmem:[%s2438_s25 + $0x260] sm:$0xff]  ;;  %v482_v39 = vld [vmem:[%s2438_s25 + $0x270] sm:$0xff] }
  0x34   : > { %443 = vst [vmem:[%s2443_s28 + $0x98] sm:$0xff] %v442_v19  ;;  %v484_v40 = vld [vmem:[%s2438_s25 + $0x280] sm:$0xff]  ;;  %v486_v41 = vld [vmem:[%s2438_s25 + $0x290] sm:$0xff] }
  0x35   : > { %445 = vst [vmem:[%s2443_s28 + $0xa0] sm:$0xff] %v444_v20  ;;  %v488_v42 = vld [vmem:[%s2438_s25 + $0x2a0] sm:$0xff]  ;;  %v490_v43 = vld [vmem:[%s2438_s25 + $0x2b0] sm:$0xff] }
  0x36   : > { %447 = vst [vmem:[%s2443_s28 + $0xa8] sm:$0xff] %v446_v21  ;;  %v492_v44 = vld [vmem:[%s2438_s25 + $0x2c0] sm:$0xff]  ;;  %v494_v45 = vld [vmem:[%s2438_s25 + $0x2d0] sm:$0xff] }
  0x37   : > { %449 = vst [vmem:[%s2443_s28 + $0xb0] sm:$0xff] %v448_v22  ;;  %v496_v46 = vld [vmem:[%s2438_s25 + $0x2e0] sm:$0xff]  ;;  %v498_v47 = vld [vmem:[%s2438_s25 + $0x2f0] sm:$0xff] }
  0x38   : > { %451 = vst [vmem:[%s2443_s28 + $0xb8] sm:$0xff] %v450_v23  ;;  %v500_v48 = vld [vmem:[%s2438_s25 + $0x300] sm:$0xff]  ;;  %v502_v49 = vld [vmem:[%s2438_s25 + $0x310] sm:$0xff] }
  0x39   : > { %453 = vst [vmem:[%s2443_s28 + $0xc0] sm:$0xff] %v452_v24  ;;  %v504_v50 = vld [vmem:[%s2438_s25 + $0x320] sm:$0xff]  ;;  %v506_v51 = vld [vmem:[%s2438_s25 + $0x330] sm:$0xff] }
  0x3a   : > { %455 = vst [vmem:[%s2443_s28 + $0xc8] sm:$0xff] %v454_v25  ;;  %v508_v52 = vld [vmem:[%s2438_s25 + $0x340] sm:$0xff]  ;;  %v510_v53 = vld [vmem:[%s2438_s25 + $0x350] sm:$0xff] }
  0x3b   : > { %457 = vst [vmem:[%s2443_s28 + $0xd0] sm:$0xff] %v456_v26  ;;  %v512_v54 = vld [vmem:[%s2438_s25 + $0x360] sm:$0xff]  ;;  %v514_v55 = vld [vmem:[%s2438_s25 + $0x370] sm:$0xff] }
  0x3c   : > { %459 = vst [vmem:[%s2443_s28 + $0xd8] sm:$0xff] %v458_v27  ;;  %v516_v56 = vld [vmem:[%s2438_s25 + $0x380] sm:$0xff]  ;;  %v518_v57 = vld [vmem:[%s2438_s25 + $0x390] sm:$0xff] }
  0x3d   : > { %461 = vst [vmem:[%s2443_s28 + $0xe0] sm:$0xff] %v460_v28  ;;  %v520_v58 = vld [vmem:[%s2438_s25 + $0x3a0] sm:$0xff]  ;;  %v522_v59 = vld [vmem:[%s2438_s25 + $0x3b0] sm:$0xff] }
  0x3e   : > { %463 = vst [vmem:[%s2443_s28 + $0xe8] sm:$0xff] %v462_v29  ;;  %v524_v60 = vld [vmem:[%s2438_s25 + $0x3c0] sm:$0xff]  ;;  %v526_v61 = vld [vmem:[%s2438_s25 + $0x3d0] sm:$0xff] }
  0x3f   : > { %465 = vst [vmem:[%s2443_s28 + $0xf0] sm:$0xff] %v464_v30  ;;  %v528_v62 = vld [vmem:[%s2438_s25 + $0x3e0] sm:$0xff]  ;;  %v530_v63 = vld [vmem:[%s2438_s25 + $0x3f0] sm:$0xff] }
  0x40   : > { %467 = vst [vmem:[%s2443_s28 + $0xf8] sm:$0xff] %v466_v31  ;;  %v532_v0 = vld [vmem:[%s2438_s25 + $0x400] sm:$0xff]  ;;  %v534_v1 = vld [vmem:[%s2438_s25 + $0x410] sm:$0xff] }
  0x41   : > { %469 = vst [vmem:[%s2443_s28 + $0x100] sm:$0xff] %v468_v32  ;;  %v536_v2 = vld [vmem:[%s2438_s25 + $0x420] sm:$0xff]  ;;  %v538_v3 = vld [vmem:[%s2438_s25 + $0x430] sm:$0xff] }
  0x42   : > { %471 = vst [vmem:[%s2443_s28 + $0x108] sm:$0xff] %v470_v33  ;;  %v540_v4 = vld [vmem:[%s2438_s25 + $0x440] sm:$0xff]  ;;  %v542_v5 = vld [vmem:[%s2438_s25 + $0x450] sm:$0xff] }
  0x43   : > { %473 = vst [vmem:[%s2443_s28 + $0x110] sm:$0xff] %v472_v34  ;;  %v544_v6 = vld [vmem:[%s2438_s25 + $0x460] sm:$0xff]  ;;  %v546_v7 = vld [vmem:[%s2438_s25 + $0x470] sm:$0xff] }
  0x44   : > { %475 = vst [vmem:[%s2443_s28 + $0x118] sm:$0xff] %v474_v35  ;;  %v548_v8 = vld [vmem:[%s2438_s25 + $0x480] sm:$0xff]  ;;  %v550_v9 = vld [vmem:[%s2438_s25 + $0x490] sm:$0xff] }
  0x45   : > { %477 = vst [vmem:[%s2443_s28 + $0x120] sm:$0xff] %v476_v36  ;;  %v552_v10 = vld [vmem:[%s2438_s25 + $0x4a0] sm:$0xff]  ;;  %v554_v11 = vld [vmem:[%s2438_s25 + $0x4b0] sm:$0xff] }
  0x46   : > { %479 = vst [vmem:[%s2443_s28 + $0x128] sm:$0xff] %v478_v37  ;;  %v556_v12 = vld [vmem:[%s2438_s25 + $0x4c0] sm:$0xff]  ;;  %v558_v13 = vld [vmem:[%s2438_s25 + $0x4d0] sm:$0xff] }
  0x47   : > { %481 = vst [vmem:[%s2443_s28 + $0x130] sm:$0xff] %v480_v38  ;;  %v560_v14 = vld [vmem:[%s2438_s25 + $0x4e0] sm:$0xff]  ;;  %v562_v15 = vld [vmem:[%s2438_s25 + $0x4f0] sm:$0xff] }
  0x48   : > { %483 = vst [vmem:[%s2443_s28 + $0x138] sm:$0xff] %v482_v39  ;;  %v564_v16 = vld [vmem:[%s2438_s25 + $0x500] sm:$0xff]  ;;  %v566_v17 = vld [vmem:[%s2438_s25 + $0x510] sm:$0xff] }
  0x49   : > { %485 = vst [vmem:[%s2443_s28 + $0x140] sm:$0xff] %v484_v40  ;;  %v568_v18 = vld [vmem:[%s2438_s25 + $0x520] sm:$0xff]  ;;  %v570_v19 = vld [vmem:[%s2438_s25 + $0x530] sm:$0xff] }
  0x4a   : > { %487 = vst [vmem:[%s2443_s28 + $0x148] sm:$0xff] %v486_v41  ;;  %v572_v20 = vld [vmem:[%s2438_s25 + $0x540] sm:$0xff]  ;;  %v574_v21 = vld [vmem:[%s2438_s25 + $0x550] sm:$0xff] }
  0x4b   : > { %489 = vst [vmem:[%s2443_s28 + $0x150] sm:$0xff] %v488_v42  ;;  %v576_v22 = vld [vmem:[%s2438_s25 + $0x560] sm:$0xff]  ;;  %v578_v23 = vld [vmem:[%s2438_s25 + $0x570] sm:$0xff] }
  0x4c   : > { %491 = vst [vmem:[%s2443_s28 + $0x158] sm:$0xff] %v490_v43  ;;  %v580_v24 = vld [vmem:[%s2438_s25 + $0x580] sm:$0xff]  ;;  %v582_v25 = vld [vmem:[%s2438_s25 + $0x590] sm:$0xff] }
  0x4d   : > { %493 = vst [vmem:[%s2443_s28 + $0x160] sm:$0xff] %v492_v44  ;;  %v584_v26 = vld [vmem:[%s2438_s25 + $0x5a0] sm:$0xff]  ;;  %v586_v27 = vld [vmem:[%s2438_s25 + $0x5b0] sm:$0xff] }
  0x4e   : > { %495 = vst [vmem:[%s2443_s28 + $0x168] sm:$0xff] %v494_v45  ;;  %v588_v28 = vld [vmem:[%s2438_s25 + $0x5c0] sm:$0xff]  ;;  %v590_v29 = vld [vmem:[%s2438_s25 + $0x5d0] sm:$0xff] }
  0x4f   : > { %497 = vst [vmem:[%s2443_s28 + $0x170] sm:$0xff] %v496_v46  ;;  %v592_v30 = vld [vmem:[%s2438_s25 + $0x5e0] sm:$0xff]  ;;  %v594_v31 = vld [vmem:[%s2438_s25 + $0x5f0] sm:$0xff] }
  0x50   : > { %499 = vst [vmem:[%s2443_s28 + $0x178] sm:$0xff] %v498_v47 }
  0x51   : > { %501 = vst [vmem:[%s2443_s28 + $0x180] sm:$0xff] %v500_v48 }
  0x52   : > { %503 = vst [vmem:[%s2443_s28 + $0x188] sm:$0xff] %v502_v49 }
  0x53   : > { %505 = vst [vmem:[%s2443_s28 + $0x190] sm:$0xff] %v504_v50 }
  0x54   : > { %507 = vst [vmem:[%s2443_s28 + $0x198] sm:$0xff] %v506_v51 }
  0x55   : > { %509 = vst [vmem:[%s2443_s28 + $0x1a0] sm:$0xff] %v508_v52 }
  0x56   : > { %511 = vst [vmem:[%s2443_s28 + $0x1a8] sm:$0xff] %v510_v53 }
  0x57   : > { %513 = vst [vmem:[%s2443_s28 + $0x1b0] sm:$0xff] %v512_v54 }
  0x58   : > { %515 = vst [vmem:[%s2443_s28 + $0x1b8] sm:$0xff] %v514_v55 }
  0x59   : > { %517 = vst [vmem:[%s2443_s28 + $0x1c0] sm:$0xff] %v516_v56 }
  0x5a   : > { %519 = vst [vmem:[%s2443_s28 + $0x1c8] sm:$0xff] %v518_v57 }
  0x5b   : > { %521 = vst [vmem:[%s2443_s28 + $0x1d0] sm:$0xff] %v520_v58 }
  0x5c   : > { %523 = vst [vmem:[%s2443_s28 + $0x1d8] sm:$0xff] %v522_v59 }
  0x5d   : > { %525 = vst [vmem:[%s2443_s28 + $0x1e0] sm:$0xff] %v524_v60 }
  0x5e   : > { %527 = vst [vmem:[%s2443_s28 + $0x1e8] sm:$0xff] %v526_v61 }
  0x5f   : > { %529 = vst [vmem:[%s2443_s28 + $0x1f0] sm:$0xff] %v528_v62 }
  0x60   : > { %531 = vst [vmem:[%s2443_s28 + $0x1f8] sm:$0xff] %v530_v63 }
  0x61   : > { %533 = vst [vmem:[%s2443_s28 + $0x200] sm:$0xff] %v532_v0 }
  0x62   : > { %535 = vst [vmem:[%s2443_s28 + $0x208] sm:$0xff] %v534_v1 }
  0x63   : > { %537 = vst [vmem:[%s2443_s28 + $0x210] sm:$0xff] %v536_v2 }
  0x64   : > { %539 = vst [vmem:[%s2443_s28 + $0x218] sm:$0xff] %v538_v3 }
  0x65   : > { %541 = vst [vmem:[%s2443_s28 + $0x220] sm:$0xff] %v540_v4 }
  0x66   : > { %543 = vst [vmem:[%s2443_s28 + $0x228] sm:$0xff] %v542_v5 }
  0x67   : > { %545 = vst [vmem:[%s2443_s28 + $0x230] sm:$0xff] %v544_v6 }
  0x68   : > { %547 = vst [vmem:[%s2443_s28 + $0x238] sm:$0xff] %v546_v7 }
  0x69   : > { %549 = vst [vmem:[%s2443_s28 + $0x240] sm:$0xff] %v548_v8 }
  0x6a   : > { %551 = vst [vmem:[%s2443_s28 + $0x248] sm:$0xff] %v550_v9 }
  0x6b   : > { %553 = vst [vmem:[%s2443_s28 + $0x250] sm:$0xff] %v552_v10 }
  0x6c   : > { %555 = vst [vmem:[%s2443_s28 + $0x258] sm:$0xff] %v554_v11 }
  0x6d   : > { %557 = vst [vmem:[%s2443_s28 + $0x260] sm:$0xff] %v556_v12 }
  0x6e   : > { %559 = vst [vmem:[%s2443_s28 + $0x268] sm:$0xff] %v558_v13 }
  0x6f   : > { %561 = vst [vmem:[%s2443_s28 + $0x270] sm:$0xff] %v560_v14 }
  0x70   : > { %563 = vst [vmem:[%s2443_s28 + $0x278] sm:$0xff] %v562_v15 }
  0x71   : > { %565 = vst [vmem:[%s2443_s28 + $0x280] sm:$0xff] %v564_v16 }
  0x72   : > { %567 = vst [vmem:[%s2443_s28 + $0x288] sm:$0xff] %v566_v17 }
  0x73   : > { %569 = vst [vmem:[%s2443_s28 + $0x290] sm:$0xff] %v568_v18 }
  0x74   : > { %571 = vst [vmem:[%s2443_s28 + $0x298] sm:$0xff] %v570_v19 }
  0x75   : > { %573 = vst [vmem:[%s2443_s28 + $0x2a0] sm:$0xff] %v572_v20 }
  0x76   : > { %575 = vst [vmem:[%s2443_s28 + $0x2a8] sm:$0xff] %v574_v21 }
  0x77   : > { %577 = vst [vmem:[%s2443_s28 + $0x2b0] sm:$0xff] %v576_v22 }
  0x78   : > { %579 = vst [vmem:[%s2443_s28 + $0x2b8] sm:$0xff] %v578_v23 }
  0x79   : > { %581 = vst [vmem:[%s2443_s28 + $0x2c0] sm:$0xff] %v580_v24 }
  0x7a   : > { %583 = vst [vmem:[%s2443_s28 + $0x2c8] sm:$0xff] %v582_v25 }
  0x7b   : > { %585 = vst [vmem:[%s2443_s28 + $0x2d0] sm:$0xff] %v584_v26 }
  0x7c   : > { %587 = vst [vmem:[%s2443_s28 + $0x2d8] sm:$0xff] %v586_v27 }
  0x7d   : > { %589 = vst [vmem:[%s2443_s28 + $0x2e0] sm:$0xff] %v588_v28 }
  0x7e   : > { %591 = vst [vmem:[%s2443_s28 + $0x2e8] sm:$0xff] %v590_v29 }
  0x7f   : > { %593 = vst [vmem:[%s2443_s28 + $0x2f0] sm:$0xff] %v592_v30 }
  0x80   : > { %595 = vst [vmem:[%s2443_s28 + $0x2f8] sm:$0xff] %v594_v31 }
  0x81 PF: > { %s602_s30 = sand.u32 1, %s2289_s14   ;;  %s1631_s4 = sshll.u32 %s2313_s20, 1 }
  0x82   : > { %s1630_s8 = sshll.u32 %s602_s30, 1  ;;  %s610_s11 = scalar_lea.hbm %s2922_s2, %s1631_s4 }
  0x83   : > { %s612_s12 = sshll.u32 %s610_s11, 4  ;;  %s606_s22 = scalar_lea.vmem [#allocation4], %s1630_s8  ;;  %s613_s12 = int_to_ptr.hbm [resolvable:$true] %s612_s12 }
  0x84   : > { %s614_s26 = sshll.u32 %s606_s22, 4  ;;  %s603_s27 = scalar_lea.sflag [#allocation5], %s602_s30  ;;  %s615_s26 = int_to_ptr.vmem [resolvable:$true] %s614_s26 }
  0x85   : > { %2124 = dma.hbm_to_vmem [thread:$0]  (%p2411_p6), %s613_s12, 32, %s615_s26, %s603_s27  }
  0x86 PF: > { %p1632_p13 = scmp.ge.s32.totalorder %s2317_s21, 1  ;;  %p619_p0 = scmp.lt.s32.totalorder %s2317_s21, 7 }
  0x88   : > { %p620_p1 = pnand %p1632_p13, %p619_p0 }
  0x89   : > { %s626_s25 = sand.u32 (!%p620_p1), 1, %s2293_s15   ;;  %s632_s28 = sand.u32 (!%p620_p1), 1, %s2285_s13  }
  0x8a   : > { %623 = sbr.rel (%p620_p1) target bundleno = 408 (0x198), region = 66  ;;  %s2645_s8 = sshll.u32 (!%p620_p1), %s632_s28, 1 }
  0x8b   : > { %s2123_s4 = smul.u32 (!%p620_p1), 768, %s626_s25  ;;  %s633_s29 = scalar_lea.sflag (!%p620_p1), [#allocation5], %s632_s28 }
  0x8c   : > { %s636_s30 = scalar_lea.vmem (!%p620_p1), [#allocation4], %s2645_s8 }
  0x8d   : > { %s2647_s9 = scalar_lea.vmem (!%p620_p1), [#allocation3], %s2123_s4 }
  0x8f   : > { %2276 = dma.done.wait (%p2419_p11), %s633_s29, 32  }
  0x90   : > { %2278 = vsyncadd (%p2419_p11), %s633_s29, 4294967264  ;;  %s677_s10 = smul.u32 6, %s2301_s17  ;;  %s1635_s11 = sshll.u32 %s2305_s18, 1 }
  0x91   : > { %p693_p2 = scmp.lt.s32.totalorder %s1635_s11, 3  ;;  %p1637_p4 = scmp.ne.s32.totalorder %s2301_s17, 0 }
  0x92   : > { %p680_p3 = scmp.lt.s32.totalorder %s677_s10, 17 }
  0x93   : > { %s2943_s11 = smov (!%p693_p2, %s1635_s11), 3  ;;  %703 = sbr.rel (%p1637_p4) target bundleno = 155 (0x9b), region = 78 }
  0x94   : > { %s2945_s10 = smov (!%p680_p3, %s677_s10), 17  ;;  %s1636_s15 = sshll.u32 %s2943_s11, 2 }
  0x95   : > { %s1634_s12 = sshll.u32 %s2945_s10, 2  ;;  %s2659_s27 = scalar_lea.vmem %s2923_s3, %s1636_s15 }
  0x96   : > { %s2664_s5 = scalar_lea.vmem %s2920_s0, %s1634_s12 }
  0x98   : > { %v2319_v32 = vmov 0.0  }
  0x99   : > { %704 = vst [vmem:[#allocation2] sm:$0xff] %v2319_v32 }
  0x9a   : > { %705 = vst [vmem:[#allocation2 + $0x8] sm:$0xff] %v2319_v32 }
  0x9b PF: > { %v1696_v33 = vld [vmem:[%s2647_s9 + $0x70] sm:$0xf]  ;;  %v2041_v34 = vld [vmem:[%s2647_s9 + $0x74] sm:$0xf0]  ;;  %v1688_v44 = vld [vmem:[%s2647_s9 + $0x60] sm:$0xf] }
  0x9c   : > { %v1760_v35 = vld [vmem:[%s2647_s9 + $0xf0] sm:$0xf]  ;;  %v1697_v36 = vor.u32 %v2041_v34, %v1696_v33  ;;  %v2057_v37 = vld [vmem:[%s2647_s9 + $0xf4] sm:$0xf0]  ;;  %v2039_v46 = vld [vmem:[%s2647_s9 + $0x64] sm:$0xf0] }
  0x9d   : > { %v1824_v38 = vld [vmem:[%s2647_s9 + $0x170] sm:$0xf]  ;;  %v2073_v39 = vld [vmem:[%s2647_s9 + $0x174] sm:$0xf0]  ;;  %v1761_v40 = vor.u32 %v2057_v37, %v1760_v35  ;;  %v1752_v47 = vld [vmem:[%s2647_s9 + $0xe0] sm:$0xf]  ;;  %v1689_v49 = vor.u32 %v2039_v46, %v1688_v44 }
  0x9e   : > { %v1825_v41 = vor.u32 %v2073_v39, %v1824_v38  ;;  %v1888_v42 = vld [vmem:[%s2647_s9 + $0x1f0] sm:$0xf]  ;;  %v2089_v43 = vld [vmem:[%s2647_s9 + $0x1f4] sm:$0xf0]  ;;  %1308 = vmatpush.bf16.msra.mxu0 %v1697_v36  ;;  %v2055_v48 = vld [vmem:[%s2647_s9 + $0xe4] sm:$0xf0] }
  0x9f   : > { %v1889_v45 = vor.u32 %v2089_v43, %v1888_v42  ;;  %1321 = vmatpush.bf16.msra.mxu1 %v1761_v40  ;;  %v1753_v50 = vor.u32 %v2055_v48, %v1752_v47  ;;  %v1816_v51 = vld [vmem:[%s2647_s9 + $0x160] sm:$0xf]  ;;  %v2071_v52 = vld [vmem:[%s2647_s9 + $0x164] sm:$0xf0]  ;;  %v1680_v56 = vld [vmem:[%s2647_s9 + $0x50] sm:$0xf] }
  0xa0   : > { %1334 = vmatpush.bf16.msra.mxu2 %v1825_v41  ;;  %v1880_v53 = vld [vmem:[%s2647_s9 + $0x1e0] sm:$0xf]  ;;  %v1817_v54 = vor.u32 %v2071_v52, %v1816_v51  ;;  %v2087_v55 = vld [vmem:[%s2647_s9 + $0x1e4] sm:$0xf0]  ;;  %v2037_v57 = vld [vmem:[%s2647_s9 + $0x54] sm:$0xf0] }
  0xa1   : > { %1347 = vmatpush.bf16.msra.mxu3 %v1889_v45  ;;  %v1881_v58 = vor.u32 %v2087_v55, %v1880_v53  ;;  %v1744_v59 = vld [vmem:[%s2647_s9 + $0xd0] sm:$0xf]  ;;  %v2053_v60 = vld [vmem:[%s2647_s9 + $0xd4] sm:$0xf0]  ;;  %v1681_v62 = vor.u32 %v2037_v57, %v1680_v56  ;;  %v1672_v4 = vld [vmem:[%s2647_s9 + $0x40] sm:$0xf] }
  0xa2   : > { %v1808_v61 = vld [vmem:[%s2647_s9 + $0x150] sm:$0xf]  ;;  %1309 = vmatpush.bf16.msra.mxu0 %v1689_v49  ;;  %v2069_v63 = vld [vmem:[%s2647_s9 + $0x154] sm:$0xf0]  ;;  %v1745_v2 = vor.u32 %v2053_v60, %v1744_v59  ;;  %v2035_v5 = vld [vmem:[%s2647_s9 + $0x44] sm:$0xf0] }
  0xa3   : > { %v1872_v0 = vld [vmem:[%s2647_s9 + $0x1d0] sm:$0xf]  ;;  %v2085_v1 = vld [vmem:[%s2647_s9 + $0x1d4] sm:$0xf0]  ;;  %1322 = vmatpush.bf16.msra.mxu1 %v1753_v50  ;;  %v1809_v3 = vor.u32 %v2069_v63, %v1808_v61  ;;  %v1736_v6 = vld [vmem:[%s2647_s9 + $0xc0] sm:$0xf]  ;;  %v1673_v13 = vor.u32 %v2035_v5, %v1672_v4 }
  0xa4   : > { %1335 = vmatpush.bf16.msra.mxu2 %v1817_v54  ;;  %v1873_v7 = vor.u32 %v2085_v1, %v1872_v0  ;;  %v2051_v8 = vld [vmem:[%s2647_s9 + $0xc4] sm:$0xf0]  ;;  %v1800_v9 = vld [vmem:[%s2647_s9 + $0x140] sm:$0xf]  ;;  %v1664_v16 = vld [vmem:[%s2647_s9 + $0x30] sm:$0xf] }
  0xa5   : > { %1348 = vmatpush.bf16.msra.mxu3 %v1881_v58  ;;  %v2067_v10 = vld [vmem:[%s2647_s9 + $0x144] sm:$0xf0]  ;;  %v1864_v11 = vld [vmem:[%s2647_s9 + $0x1c0] sm:$0xf]  ;;  %v1737_v14 = vor.u32 %v2051_v8, %v1736_v6  ;;  %v2033_v17 = vld [vmem:[%s2647_s9 + $0x34] sm:$0xf0] }
  0xa6   : > { %v2083_v12 = vld [vmem:[%s2647_s9 + $0x1c4] sm:$0xf0]  ;;  %1310 = vmatpush.bf16.msra.mxu0 %v1681_v62  ;;  %v1801_v15 = vor.u32 %v2067_v10, %v1800_v9  ;;  %v1728_v18 = vld [vmem:[%s2647_s9 + $0xb0] sm:$0xf]  ;;  %v2049_v20 = vld [vmem:[%s2647_s9 + $0xb4] sm:$0xf0]  ;;  %v1665_v25 = vor.u32 %v2033_v17, %v1664_v16 }
  0xa7   : > { %1323 = vmatpush.bf16.msra.mxu1 %v1745_v2  ;;  %v1865_v19 = vor.u32 %v2083_v12, %v1864_v11  ;;  %v1792_v21 = vld [vmem:[%s2647_s9 + $0x130] sm:$0xf]  ;;  %v2065_v22 = vld [vmem:[%s2647_s9 + $0x134] sm:$0xf0]  ;;  %v1729_v26 = vor.u32 %v2049_v20, %v1728_v18  ;;  %v1656_v28 = vld [vmem:[%s2647_s9 + $0x20] sm:$0xf] }
  0xa8   : > { %1336 = vmatpush.bf16.msra.mxu2 %v1809_v3  ;;  %v1856_v23 = vld [vmem:[%s2647_s9 + $0x1b0] sm:$0xf]  ;;  %v2081_v24 = vld [vmem:[%s2647_s9 + $0x1b4] sm:$0xf0]  ;;  %v1793_v27 = vor.u32 %v2065_v22, %v1792_v21  ;;  %v2031_v29 = vld [vmem:[%s2647_s9 + $0x24] sm:$0xf0] }
  0xa9   : > { %1349 = vmatpush.bf16.msra.mxu3 %v1873_v7  ;;  %v1720_v30 = vld [vmem:[%s2647_s9 + $0xa0] sm:$0xf]  ;;  %v1857_v31 = vor.u32 %v2081_v24, %v1856_v23  ;;  %v2047_v32 = vld [vmem:[%s2647_s9 + $0xa4] sm:$0xf0]  ;;  %v1657_v37 = vor.u32 %v2031_v29, %v1656_v28  ;;  %v1648_v40 = vld [vmem:[%s2647_s9 + $0x10] sm:$0xf] }
  0xaa   : > { %1311 = vmatpush.bf16.msra.mxu0 %v1673_v13  ;;  %v1784_v33 = vld [vmem:[%s2647_s9 + $0x120] sm:$0xf]  ;;  %v2063_v34 = vld [vmem:[%s2647_s9 + $0x124] sm:$0xf0]  ;;  %v1721_v38 = vor.u32 %v2047_v32, %v1720_v30  ;;  %v2029_v41 = vld [vmem:[%s2647_s9 + $0x14] sm:$0xf0] }
  0xab   : > { %1324 = vmatpush.bf16.msra.mxu1 %v1737_v14  ;;  %v1848_v35 = vld [vmem:[%s2647_s9 + $0x1a0] sm:$0xf]  ;;  %v2079_v36 = vld [vmem:[%s2647_s9 + $0x1a4] sm:$0xf0]  ;;  %v1785_v39 = vor.u32 %v2063_v34, %v1784_v33  ;;  %v1712_v42 = vld [vmem:[%s2647_s9 + $0x90] sm:$0xf]  ;;  %v1649_v49 = vor.u32 %v2029_v41, %v1648_v40 }
  0xac   : > { %1337 = vmatpush.bf16.msra.mxu2 %v1801_v15  ;;  %v1849_v43 = vor.u32 %v2079_v36, %v1848_v35  ;;  %v2045_v44 = vld [vmem:[%s2647_s9 + $0x94] sm:$0xf0]  ;;  %v1776_v45 = vld [vmem:[%s2647_s9 + $0x110] sm:$0xf]  ;;  %v1640_v50 = vld [vmem:[%s2647_s9] sm:$0xf] }
  0xad   : > { %1350 = vmatpush.bf16.msra.mxu3 %v1865_v19  ;;  %v2061_v46 = vld [vmem:[%s2647_s9 + $0x114] sm:$0xf0]  ;;  %v1840_v47 = vld [vmem:[%s2647_s9 + $0x190] sm:$0xf]  ;;  %v2027_v51 = vld [vmem:[%s2647_s9 + $0x4] sm:$0xf0]  ;;  %v1713_v52 = vor.u32 %v2045_v44, %v1712_v42 }
  0xae   : > { %1312 = vmatpush.bf16.msra.mxu0 %v1665_v25  ;;  %v2077_v48 = vld [vmem:[%s2647_s9 + $0x194] sm:$0xf0]  ;;  %v1777_v53 = vor.u32 %v2061_v46, %v1776_v45  ;;  %v1704_v54 = vld [vmem:[%s2647_s9 + $0x80] sm:$0xf]  ;;  %v2043_v55 = vld [vmem:[%s2647_s9 + $0x84] sm:$0xf0]  ;;  %v1641_v0 = vor.u32 %v2027_v51, %v1640_v50 }
  0xaf   : > { %1325 = vmatpush.bf16.msra.mxu1 %v1729_v26  ;;  %v1768_v56 = vld [vmem:[%s2647_s9 + $0x100] sm:$0xf]  ;;  %v1841_v57 = vor.u32 %v2077_v48, %v1840_v47  ;;  %v2059_v58 = vld [vmem:[%s2647_s9 + $0x104] sm:$0xf0]  ;;  %v1952_v61 = vld [vmem:[%s2647_s9 + $0x270] sm:$0xf]  ;;  %v1705_v4 = vor.u32 %v2043_v55, %v1704_v54 }
  0xb0   : > { %1338 = vmatpush.bf16.msra.mxu2 %v1793_v27  ;;  %v1832_v59 = vld [vmem:[%s2647_s9 + $0x180] sm:$0xf]  ;;  %v2075_v60 = vld [vmem:[%s2647_s9 + $0x184] sm:$0xf0]  ;;  %v2105_v62 = vld [vmem:[%s2647_s9 + $0x274] sm:$0xf0]  ;;  %v1769_v5 = vor.u32 %v2059_v58, %v1768_v56 }
  0xb1   : > { %1351 = vmatpush.bf16.msra.mxu3 %v1857_v31  ;;  %v2016_v63 = vld [vmem:[%s2647_s9 + $0x2f0] sm:$0xf]  ;;  %v2121_v1 = vld [vmem:[%s2647_s9 + $0x2f4] sm:$0xf0]  ;;  %v2040_v2 = vld [vmem:[%s2647_s9 + $0x74] sm:$0xf]  ;;  %v1833_v8 = vor.u32 %v2075_v60, %v1832_v59  ;;  %v1953_v9 = vor.u32 %v2105_v62, %v1952_v61 }
  0xb2   : > { %1313 = vmatpush.bf16.msra.mxu0 %v1657_v37  ;;  %v1698_v3 = vld [vmem:[%s2647_s9 + $0x78] sm:$0xf0]  ;;  %v2056_v6 = vld [vmem:[%s2647_s9 + $0xf4] sm:$0xf]  ;;  %v2017_v10 = vor.u32 %v2121_v1, %v2016_v63  ;;  %v1944_v12 = vld [vmem:[%s2647_s9 + $0x260] sm:$0xf] }
  0xb3   : > { %1326 = vmatpush.bf16.msra.mxu1 %v1721_v38  ;;  %v1762_v7 = vld [vmem:[%s2647_s9 + $0xf8] sm:$0xf0]  ;;  %v1701_v11 = vor.u32 %v2040_v2, %v1698_v3  ;;  %v2103_v13 = vld [vmem:[%s2647_s9 + $0x264] sm:$0xf0]  ;;  %v2008_v14 = vld [vmem:[%s2647_s9 + $0x2e0] sm:$0xf] }
  0xb4   : > { %1339 = vmatpush.bf16.msra.mxu2 %v1785_v39  ;;  %v1765_v15 = vor.u32 %v2056_v6, %v1762_v7  ;;  %v2119_v16 = vld [vmem:[%s2647_s9 + $0x2e4] sm:$0xf0]  ;;  %v2038_v17 = vld [vmem:[%s2647_s9 + $0x64] sm:$0xf]  ;;  %v1690_v18 = vld [vmem:[%s2647_s9 + $0x68] sm:$0xf0]  ;;  %v1945_v21 = vor.u32 %v2103_v13, %v1944_v12 }
  0xb5   : > { %1352 = vmatpush.bf16.msra.mxu3 %v1849_v43  ;;  %v2054_v19 = vld [vmem:[%s2647_s9 + $0xe4] sm:$0xf]  ;;  %v1754_v20 = vld [vmem:[%s2647_s9 + $0xe8] sm:$0xf0]  ;;  %v1936_v22 = vld [vmem:[%s2647_s9 + $0x250] sm:$0xf]  ;;  %v2009_v24 = vor.u32 %v2119_v16, %v2008_v14  ;;  %v1693_v25 = vor.u32 %v2038_v17, %v1690_v18 }
  0xb6   : > { %1314 = vmatpush.bf16.msra.mxu0 %v1649_v49  ;;  %v2101_v23 = vld [vmem:[%s2647_s9 + $0x254] sm:$0xf0]  ;;  %v2000_v26 = vld [vmem:[%s2647_s9 + $0x2d0] sm:$0xf]  ;;  %v1757_v29 = vor.u32 %v2054_v19, %v1754_v20  ;;  %v2036_v30 = vld [vmem:[%s2647_s9 + $0x54] sm:$0xf] }
  0xb7   : > { %1327 = vmatpush.bf16.msra.mxu1 %v1713_v52  ;;  %v2117_v27 = vld [vmem:[%s2647_s9 + $0x2d4] sm:$0xf0]  ;;  %v708_v28 = vld [vmem:[%s2664_s5] sm:$0xff]  ;;  %v1682_v31 = vld [vmem:[%s2647_s9 + $0x58] sm:$0xf0]  ;;  %v1937_v39 = vor.u32 %v2101_v23, %v1936_v22  ;;  %p2022_p5 = scmp.ne.s32.totalorder %s2301_s17, 2 }
  0xb8   : > { %1340 = vmatpush.bf16.msra.mxu2 %v1777_v53  ;;  %v810_v32 = vunpack.c.l.b16 %v708_v28  ;;  %v709_v33 = vld [vmem:[%s2664_s5 + $0x8] sm:$0xff]  ;;  %v811_v34 = vunpack.c.h.b16 %v708_v28  ;;  %v2052_v35 = vld [vmem:[%s2647_s9 + $0xd4] sm:$0xf]  ;;  %v2001_v40 = vor.u32 %v2117_v27, %v2000_v26  ;;  %v1685_v43 = vor.u32 %v2036_v30, %v1682_v31  ;;  %v1928_v44 = vld [vmem:[%s2647_s9 + $0x240] sm:$0xf] }
  0xb9   : > { %1353 = vmatpush.bf16.msra.mxu3 %v1841_v57  ;;  %v1746_v36 = vld [vmem:[%s2647_s9 + $0xd8] sm:$0xf0]  ;;  %v812_v37 = vunpack.c.l.b16 %v709_v33  ;;  %v813_v38 = vunpack.c.h.b16 %v709_v33  ;;  %v2099_v45 = vld [vmem:[%s2647_s9 + $0x244] sm:$0xf0]  ;;  %v1992_v46 = vld [vmem:[%s2647_s9 + $0x2c0] sm:$0xf] }
  0xba   : > { %1315 = vmatpush.bf16.msra.mxu0 %v1641_v0  ;;  %v2757_v41 = vpack.c.b16 %v810_v32, %v810_v32  ;;  %v2759_v42 = vpack.c.b16 %v811_v34, %v811_v34  ;;  %v1749_v49 = vor.u32 %v2052_v35, %v1746_v36  ;;  %v2115_v50 = vld [vmem:[%s2647_s9 + $0x2c4] sm:$0xf0]  ;;  %v2034_v51 = vld [vmem:[%s2647_s9 + $0x44] sm:$0xf]  ;;  %v1674_v52 = vld [vmem:[%s2647_s9 + $0x48] sm:$0xf0]  ;;  %v1929_v55 = vor.u32 %v2099_v45, %v1928_v44 }
  0xbb   : > { %1328 = vmatpush.bf16.msra.mxu1 %v1705_v4  ;;  %v2764_v47 = vpack.c.b16 %v812_v37, %v812_v37  ;;  %v2766_v48 = vpack.c.b16 %v813_v38, %v813_v38  ;;  %v2050_v53 = vld [vmem:[%s2647_s9 + $0xc4] sm:$0xf]  ;;  %v1738_v54 = vld [vmem:[%s2647_s9 + $0xc8] sm:$0xf0]  ;;  %v1993_v56 = vor.u32 %v2115_v50, %v1992_v46  ;;  %v1677_v57 = vor.u32 %v2034_v51, %v1674_v52  ;;  %v1920_v58 = vld [vmem:[%s2647_s9 + $0x230] sm:$0xf] }
  0xbc   : > { %1341 = vmatpush.bf16.msra.mxu2 %v1769_v5  ;;  %v2097_v59 = vld [vmem:[%s2647_s9 + $0x234] sm:$0xf0]  ;;  %v1984_v60 = vld [vmem:[%s2647_s9 + $0x2b0] sm:$0xf]  ;;  %v1741_v61 = vor.u32 %v2050_v53, %v1738_v54  ;;  %v2032_v63 = vld [vmem:[%s2647_s9 + $0x34] sm:$0xf] }
  0xbd   : > { %1354 = vmatpush.bf16.msra.mxu3 %v1833_v8  ;;  %1316 = vmatmul.bf16.vlgmr.msra.gmra.mxu0 %v2757_v41  ;;  %v2113_v62 = vld [vmem:[%s2647_s9 + $0x2b4] sm:$0xf0]  ;;  %v1666_v0 = vld [vmem:[%s2647_s9 + $0x38] sm:$0xf0]  ;;  %v2048_v1 = vld [vmem:[%s2647_s9 + $0xb4] sm:$0xf]  ;;  %v1921_v3 = vor.u32 %v2097_v59, %v1920_v58 }
  0xbe   : > { %1360 = vmatpush.bf16.msrb.mxu0 %v1953_v9  ;;  %1329 = vmatmul.bf16.vlgmr.msra.gmra.mxu1 %v2759_v42  ;;  %v1730_v2 = vld [vmem:[%s2647_s9 + $0xb8] sm:$0xf0]  ;;  %v1985_v4 = vor.u32 %v2113_v62, %v1984_v60  ;;  %v1669_v5 = vor.u32 %v2032_v63, %v1666_v0  ;;  %v1912_v6 = vld [vmem:[%s2647_s9 + $0x220] sm:$0xf]  ;;  %v2095_v7 = vld [vmem:[%s2647_s9 + $0x224] sm:$0xf0] }
  0xbf   : > { %1373 = vmatpush.bf16.msrb.mxu1 %v2017_v10  ;;  %1342 = vmatmul.bf16.vlgmr.msra.gmra.mxu2 %v2764_v47  ;;  %v1976_v8 = vld [vmem:[%s2647_s9 + $0x2a0] sm:$0xf]  ;;  %v1733_v9 = vor.u32 %v2048_v1, %v1730_v2  ;;  %v2111_v10 = vld [vmem:[%s2647_s9 + $0x2a4] sm:$0xf0]  ;;  %v1658_v12 = vld [vmem:[%s2647_s9 + $0x28] sm:$0xf0] }
  0xc0   : > { %1386 = vmatpush.bf16.msrb.mxu2 %v1701_v11  ;;  %1355 = vmatmul.bf16.vlgmr.msra.gmra.mxu3 %v2766_v48  ;;  %v2030_v11 = vld [vmem:[%s2647_s9 + $0x24] sm:$0xf]  ;;  %v1722_v14 = vld [vmem:[%s2647_s9 + $0xa8] sm:$0xf0]  ;;  %v1977_v16 = vor.u32 %v2111_v10, %v1976_v8  ;;  %v1904_v18 = vld [vmem:[%s2647_s9 + $0x210] sm:$0xf] }
  0xc1   : > { %1399 = vmatpush.bf16.msrb.mxu3 %v1765_v15  ;;  %v2046_v13 = vld [vmem:[%s2647_s9 + $0xa4] sm:$0xf]  ;;  %v1913_v15 = vor.u32 %v2095_v7, %v1912_v6  ;;  %v1661_v17 = vor.u32 %v2030_v11, %v1658_v12  ;;  %v2093_v19 = vld [vmem:[%s2647_s9 + $0x214] sm:$0xf0]  ;;  %v1968_v20 = vld [vmem:[%s2647_s9 + $0x290] sm:$0xf] }
  0xc2   : > { %1361 = vmatpush.bf16.msrb.mxu0 %v1945_v21  ;;  %v1725_v21 = vor.u32 %v2046_v13, %v1722_v14  ;;  %v2109_v22 = vld [vmem:[%s2647_s9 + $0x294] sm:$0xf0]  ;;  %v2028_v23 = vld [vmem:[%s2647_s9 + $0x14] sm:$0xf]  ;;  %v1714_v26 = vld [vmem:[%s2647_s9 + $0x98] sm:$0xf0]  ;;  %v1905_v27 = vor.u32 %v2093_v19, %v1904_v18 }
  0xc3   : > { %1374 = vmatpush.bf16.msrb.mxu1 %v2009_v24  ;;  %v1650_v24 = vld [vmem:[%s2647_s9 + $0x18] sm:$0xf0]  ;;  %v1896_v28 = vld [vmem:[%s2647_s9 + $0x200] sm:$0xf]  ;;  %v1969_v31 = vor.u32 %v2109_v22, %v1968_v20  ;;  %v2107_v33 = vld [vmem:[%s2647_s9 + $0x284] sm:$0xf0] }
  0xc4   : > { %1387 = vmatpush.bf16.msrb.mxu2 %v1693_v25  ;;  %v2044_v25 = vld [vmem:[%s2647_s9 + $0x94] sm:$0xf]  ;;  %v1960_v30 = vld [vmem:[%s2647_s9 + $0x280] sm:$0xf]  ;;  %v1653_v32 = vor.u32 %v2028_v23, %v1650_v24  ;;  %v2026_v34 = vld [vmem:[%s2647_s9 + $0x4] sm:$0xf] }
  0xc5   : > { %1400 = vmatpush.bf16.msrb.mxu3 %v1757_v29  ;;  %v2091_v29 = vld [vmem:[%s2647_s9 + $0x204] sm:$0xf0]  ;;  %v710_v35 = vld [vmem:[%s2664_s5 + $0x10] sm:$0xff]  ;;  %v1717_v36 = vor.u32 %v2044_v25, %v1714_v26  ;;  %v1642_v37 = vld [vmem:[%s2647_s9 + $0x8] sm:$0xf0]  ;;  %v1961_v52 = vor.u32 %v2107_v33, %v1960_v30 }
  0xc6   : > { %1362 = vmatpush.bf16.msrb.mxu0 %v1937_v39  ;;  %v2042_v38 = vld [vmem:[%s2647_s9 + $0x84] sm:$0xf]  ;;  %v1706_v39 = vld [vmem:[%s2647_s9 + $0x88] sm:$0xf0]  ;;  %v2088_v44 = vld [vmem:[%s2647_s9 + $0x1f4] sm:$0xf]  ;;  %v1897_v45 = vor.u32 %v2091_v29, %v1896_v28  ;;  %v814_v51 = vunpack.c.l.b16 %v710_v35  ;;  %v1645_v53 = vor.u32 %v2026_v34, %v1642_v37  ;;  %v815_v58 = vunpack.c.h.b16 %v710_v35 }
  0xc7   : > { %1375 = vmatpush.bf16.msrb.mxu1 %v2001_v40  ;;  %v2072_v40 = vld [vmem:[%s2647_s9 + $0x174] sm:$0xf]  ;;  %v1890_v46 = vld [vmem:[%s2647_s9 + $0x1f8] sm:$0xf0]  ;;  %v1818_v62 = vld [vmem:[%s2647_s9 + $0x168] sm:$0xf0] }
  0xc8   : > { %1388 = vmatpush.bf16.msrb.mxu2 %v1685_v43  ;;  %v1826_v43 = vld [vmem:[%s2647_s9 + $0x178] sm:$0xf0]  ;;  %v2120_v54 = vld [vmem:[%s2647_s9 + $0x2f4] sm:$0xf]  ;;  %v1893_v59 = vor.u32 %v2088_v44, %v1890_v46  ;;  %v2086_v63 = vld [vmem:[%s2647_s9 + $0x1e4] sm:$0xf]  ;;  %v2828_v8 = vpack.c.b16 %v815_v58, %v815_v58 }
  0xc9   : > { %1401 = vmatpush.bf16.msrb.mxu3 %v1749_v49  ;;  %v2104_v49 = vld [vmem:[%s2647_s9 + $0x274] sm:$0xf]  ;;  %v1954_v50 = vld [vmem:[%s2647_s9 + $0x278] sm:$0xf0]  ;;  %v1882_v1 = vld [vmem:[%s2647_s9 + $0x1e8] sm:$0xf0] }
  0xca   : > { %1363 = vmatpush.bf16.msrb.mxu0 %v1929_v55  ;;  %v2018_v55 = vld [vmem:[%s2647_s9 + $0x2f8] sm:$0xf0]  ;;  %v1957_v60 = vor.u32 %v2104_v49, %v1954_v50  ;;  %v2102_v2 = vld [vmem:[%s2647_s9 + $0x264] sm:$0xf]  ;;  %v2010_v6 = vld [vmem:[%s2647_s9 + $0x2e8] sm:$0xf0] }
  0xcb   : > { %1376 = vmatpush.bf16.msrb.mxu1 %v1993_v56  ;;  %v1709_v56 = vor.u32 %v2042_v38, %v1706_v39  ;;  %v2021_v0 = vor.u32 %v2120_v54, %v2018_v55  ;;  %v2068_v11 = vld [vmem:[%s2647_s9 + $0x154] sm:$0xf]  ;;  %v1810_v12 = vld [vmem:[%s2647_s9 + $0x158] sm:$0xf0]  ;;  %v2066_v23 = vld [vmem:[%s2647_s9 + $0x144] sm:$0xf] }
  0xcc   : > { %1389 = vmatpush.bf16.msrb.mxu2 %v1677_v57  ;;  %v1829_v57 = vor.u32 %v2072_v40, %v1826_v43  ;;  %v2084_v13 = vld [vmem:[%s2647_s9 + $0x1d4] sm:$0xf]  ;;  %v2002_v19 = vld [vmem:[%s2647_s9 + $0x2d8] sm:$0xf0]  ;;  %v1813_v20 = vor.u32 %v2068_v11, %v1810_v12  ;;  %v2082_v24 = vld [vmem:[%s2647_s9 + $0x1c4] sm:$0xf] }
  0xcd   : > { %1402 = vmatpush.bf16.msrb.mxu3 %v1741_v61  ;;  %v2070_v61 = vld [vmem:[%s2647_s9 + $0x164] sm:$0xf]  ;;  %v2116_v18 = vld [vmem:[%s2647_s9 + $0x2d4] sm:$0xf]  ;;  %v1866_v25 = vld [vmem:[%s2647_s9 + $0x1c8] sm:$0xf0] }
  0xce   : > { %1364 = vmatpush.bf16.msrb.mxu0 %v1921_v3  ;;  %v1946_v3 = vld [vmem:[%s2647_s9 + $0x268] sm:$0xf0]  ;;  %v1821_v7 = vor.u32 %v2070_v61, %v1818_v62  ;;  %v2098_v26 = vld [vmem:[%s2647_s9 + $0x244] sm:$0xf]  ;;  %v2064_v33 = vld [vmem:[%s2647_s9 + $0x134] sm:$0xf] }
  0xcf   : > { %1377 = vmatpush.bf16.msrb.mxu1 %v1985_v4  ;;  %v2824_v4 = vpack.c.b16 %v814_v51, %v814_v51  ;;  %v1949_v10 = vor.u32 %v2102_v2, %v1946_v3  ;;  %v2114_v28 = vld [vmem:[%s2647_s9 + $0x2c4] sm:$0xf]  ;;  %v1994_v29 = vld [vmem:[%s2647_s9 + $0x2c8] sm:$0xf0]  ;;  %v1794_v34 = vld [vmem:[%s2647_s9 + $0x138] sm:$0xf0] }
  0xd0   : > { %1390 = vmatpush.bf16.msrb.mxu2 %v1669_v5  ;;  %v2118_v5 = vld [vmem:[%s2647_s9 + $0x2e4] sm:$0xf]  ;;  %v2080_v35 = vld [vmem:[%s2647_s9 + $0x1b4] sm:$0xf]  ;;  %v1858_v37 = vld [vmem:[%s2647_s9 + $0x1b8] sm:$0xf0]  ;;  %v1797_v44 = vor.u32 %v2064_v33, %v1794_v34 }
  0xd1   : > { %1403 = vmatpush.bf16.msrb.mxu3 %v1733_v9  ;;  %v1885_v9 = vor.u32 %v2086_v63, %v1882_v1  ;;  %v2013_v14 = vor.u32 %v2118_v5, %v2010_v6  ;;  %v2096_v38 = vld [vmem:[%s2647_s9 + $0x234] sm:$0xf]  ;;  %v1922_v39 = vld [vmem:[%s2647_s9 + $0x238] sm:$0xf0]  ;;  %v2062_v49 = vld [vmem:[%s2647_s9 + $0x124] sm:$0xf] }
  0xd2   : > { %1365 = vmatpush.bf16.msrb.mxu0 %v1913_v15  ;;  %v1874_v15 = vld [vmem:[%s2647_s9 + $0x1d8] sm:$0xf0]  ;;  %v2112_v40 = vld [vmem:[%s2647_s9 + $0x2b4] sm:$0xf]  ;;  %v1925_v46 = vor.u32 %v2096_v38, %v1922_v39  ;;  %v1786_v50 = vld [vmem:[%s2647_s9 + $0x128] sm:$0xf0] }
  0xd3   : > { %1378 = vmatpush.bf16.msrb.mxu1 %v1977_v16  ;;  %v2100_v16 = vld [vmem:[%s2647_s9 + $0x254] sm:$0xf]  ;;  %v1986_v43 = vld [vmem:[%s2647_s9 + $0x2b8] sm:$0xf0]  ;;  %v2078_v51 = vld [vmem:[%s2647_s9 + $0x1a4] sm:$0xf]  ;;  %v1789_v58 = vor.u32 %v2062_v49, %v1786_v50 }
  0xd4   : > { %1391 = vmatpush.bf16.msrb.mxu2 %v1661_v17  ;;  %v1938_v17 = vld [vmem:[%s2647_s9 + $0x258] sm:$0xf0]  ;;  %v2094_v54 = vld [vmem:[%s2647_s9 + $0x224] sm:$0xf]  ;;  %v1914_v55 = vld [vmem:[%s2647_s9 + $0x228] sm:$0xf0] }
  0xd5   : > { %1404 = vmatpush.bf16.msrb.mxu3 %v1725_v21  ;;  %v1877_v21 = vor.u32 %v2084_v13, %v1874_v15  ;;  %v1941_v22 = vor.u32 %v2100_v16, %v1938_v17  ;;  %v2060_v61 = vld [vmem:[%s2647_s9 + $0x114] sm:$0xf]  ;;  %v1778_v62 = vld [vmem:[%s2647_s9 + $0x118] sm:$0xf0]  ;;  %v2058_v11 = vld [vmem:[%s2647_s9 + $0x104] sm:$0xf] }
  0xd6   : > { %1366 = vmatpush.bf16.msrb.mxu0 %v1905_v27  ;;  %v1930_v27 = vld [vmem:[%s2647_s9 + $0x248] sm:$0xf0]  ;;  %v2076_v63 = vld [vmem:[%s2647_s9 + $0x194] sm:$0xf]  ;;  %v1842_v1 = vld [vmem:[%s2647_s9 + $0x198] sm:$0xf0] }
  0xd7   : > { %1379 = vmatpush.bf16.msrb.mxu1 %v1969_v31  ;;  %v1869_v31 = vor.u32 %v2082_v24, %v1866_v25  ;;  %v2092_v2 = vld [vmem:[%s2647_s9 + $0x214] sm:$0xf]  ;;  %v1906_v3 = vld [vmem:[%s2647_s9 + $0x218] sm:$0xf0]  ;;  %v1770_v12 = vld [vmem:[%s2647_s9 + $0x108] sm:$0xf0] }
  0xd8   : > { %1392 = vmatpush.bf16.msrb.mxu2 %v1653_v32  ;;  %v1933_v32 = vor.u32 %v2098_v26, %v1930_v27  ;;  %v2108_v5 = vld [vmem:[%s2647_s9 + $0x294] sm:$0xf]  ;;  %v1970_v6 = vld [vmem:[%s2647_s9 + $0x298] sm:$0xf0]  ;;  %v2074_v13 = vld [vmem:[%s2647_s9 + $0x184] sm:$0xf] }
  0xd9   : > { %1405 = vmatpush.bf16.msrb.mxu3 %v1717_v36  ;;  %v1997_v36 = vor.u32 %v2114_v28, %v1994_v29  ;;  %v1834_v15 = vld [vmem:[%s2647_s9 + $0x188] sm:$0xf0]  ;;  %v2090_v16 = vld [vmem:[%s2647_s9 + $0x204] sm:$0xf] }
  0xda   : > { %1367 = vmatpush.bf16.msrb.mxu0 %v1897_v45  ;;  %v1861_v45 = vor.u32 %v2080_v35, %v1858_v37  ;;  %v1898_v17 = vld [vmem:[%s2647_s9 + $0x208] sm:$0xf0] }
  0xdb   : > { %1380 = vmatpush.bf16.msrb.mxu1 %v1961_v52  ;;  %v1989_v52 = vor.u32 %v2112_v40, %v1986_v43 }
  0xdc   : > { %1393 = vmatpush.bf16.msrb.mxu2 %v1645_v53  ;;  %v1850_v53 = vld [vmem:[%s2647_s9 + $0x1a8] sm:$0xf0] }
  0xdd   : > { %1406 = vmatpush.bf16.msrb.mxu3 %v1709_v56  ;;  %1368 = vmatmul.bf16.vlgmr.msrb.gmra.mxu0 %v2824_v4  ;;  %v2110_v56 = vld [vmem:[%s2647_s9 + $0x2a4] sm:$0xf] }
  0xde   : > { %1412 = vmatpush.bf16.msra.mxu0 %v1829_v57  ;;  %1381 = vmatmul.bf16.vlgmr.msrb.gmra.mxu1 %v2828_v8  ;;  %v1978_v57 = vld [vmem:[%s2647_s9 + $0x2a8] sm:$0xf0] }
  0xdf   : > { %1425 = vmatpush.bf16.msra.mxu1 %v1893_v59  ;;  %1394 = vmatmul.bf16.vlgmr.msrb.gmra.mxu2 %v2757_v41  ;;  %v1802_v41 = vld [vmem:[%s2647_s9 + $0x148] sm:$0xf0]  ;;  %v1853_v59 = vor.u32 %v2078_v51, %v1850_v53 }
  0xe0   : > { %1438 = vmatpush.bf16.msra.mxu2 %v1957_v60  ;;  %1407 = vmatmul.bf16.vlgmr.msrb.gmra.mxu3 %v2759_v42  ;;  %v2005_v42 = vor.u32 %v2116_v18, %v2002_v19  ;;  %v1805_v30 = vor.u32 %v2066_v23, %v1802_v41  ;;  %v1917_v60 = vor.u32 %v2094_v54, %v1914_v55  ;;  %v2106_v18 = vld [vmem:[%s2647_s9 + $0x284] sm:$0xf]  ;;  %v1962_v19 = vld [vmem:[%s2647_s9 + $0x288] sm:$0xf0]  ;;  %v707_v54 = vld [vmem:[#allocation2 + $0x8] sm:$0xff] }
  0xe1   : > { %1451 = vmatpush.bf16.msra.mxu3 %v2021_v0  ;;  %v1981_v0 = vor.u32 %v2110_v56, %v1978_v57  ;;  %v1965_v23 = vor.u32 %v2106_v18, %v1962_v19 }
  0xe2   : > { %1413 = vmatpush.bf16.msra.mxu0 %v1821_v7  ;;  %v1781_v7 = vor.u32 %v2060_v61, %v1778_v62 }
  0xe3   : > { %1426 = vmatpush.bf16.msra.mxu1 %v1885_v9  ;;  %v1845_v9 = vor.u32 %v2076_v63, %v1842_v1 }
  0xe4   : > { %1439 = vmatpush.bf16.msra.mxu2 %v1949_v10  ;;  %v1909_v10 = vor.u32 %v2092_v2, %v1906_v3 }
  0xe5   : > { %1452 = vmatpush.bf16.msra.mxu3 %v2013_v14  ;;  %v1973_v14 = vor.u32 %v2108_v5, %v1970_v6 }
  0xe6   : > { %1414 = vmatpush.bf16.msra.mxu0 %v1813_v20  ;;  %v1773_v20 = vor.u32 %v2058_v11, %v1770_v12 }
  0xe7   : > { %1427 = vmatpush.bf16.msra.mxu1 %v1877_v21  ;;  %v1837_v21 = vor.u32 %v2074_v13, %v1834_v15 }
  0xe8   : > { %1440 = vmatpush.bf16.msra.mxu2 %v1941_v22  ;;  %v1901_v22 = vor.u32 %v2090_v16, %v1898_v17 }
  0xe9   : > { %1453 = vmatpush.bf16.msra.mxu3 %v2005_v42 }
  0xea   : > { %1415 = vmatpush.bf16.msra.mxu0 %v1805_v30 }
  0xeb   : > { %1428 = vmatpush.bf16.msra.mxu1 %v1869_v31 }
  0xec   : > { %1441 = vmatpush.bf16.msra.mxu2 %v1933_v32 }
  0xed   : > { %1454 = vmatpush.bf16.msra.mxu3 %v1997_v36 }
  0xee   : > { %1416 = vmatpush.bf16.msra.mxu0 %v1797_v44 }
  0xef   : > { %1429 = vmatpush.bf16.msra.mxu1 %v1861_v45 }
  0xf0   : > { %1442 = vmatpush.bf16.msra.mxu2 %v1925_v46 }
  0xf1   : > { %1455 = vmatpush.bf16.msra.mxu3 %v1989_v52 }
  0xf2   : > { %1417 = vmatpush.bf16.msra.mxu0 %v1789_v58 }
  0xf3   : > { %1430 = vmatpush.bf16.msra.mxu1 %v1853_v59 }
  0xf4   : > { %1443 = vmatpush.bf16.msra.mxu2 %v1917_v60 }
  0xf5   : > { %1456 = vmatpush.bf16.msra.mxu3 %v1981_v0 }
  0xf6   : > { %1418 = vmatpush.bf16.msra.mxu0 %v1781_v7 }
  0xf7   : > { %1431 = vmatpush.bf16.msra.mxu1 %v1845_v9 }
  0xf8   : > { %1444 = vmatpush.bf16.msra.mxu2 %v1909_v10 }
  0xf9   : > { %1457 = vmatpush.bf16.msra.mxu3 %v1973_v14 }
  0xfa   : > { %1419 = vmatpush.bf16.msra.mxu0 %v1773_v20 }
  0xfb   : > { %1432 = vmatpush.bf16.msra.mxu1 %v1837_v21 }
  0xfc   : > { %1445 = vmatpush.bf16.msra.mxu2 %v1901_v22 }
  0xfd   : > { %1458 = vmatpush.bf16.msra.mxu3 %v1965_v23  ;;  %1420 = vmatmul.bf16.vlgmr.msra.gmra.mxu0 %v2764_v47  ;;  %v706_v47 = vld [vmem:[#allocation2] sm:$0xff] }
  0xfe   : > { %1433 = vmatmul.bf16.vlgmr.msra.gmra.mxu1 %v2766_v48 }
  0xff   : > { %1446 = vmatmul.bf16.vlgmr.msra.gmra.mxu2 %v2824_v4 }
 0x100   : > { %1459 = vmatmul.bf16.vlgmr.msra.gmra.mxu3 %v2828_v8 }
 0x13a   : > { %v1317_v41 = vpop.f32.mrf.mxu0 }
 0x13b   : > { %v1330_v24 = vpop.f32.mrf.mxu1 }
 0x13c   : > { %v1331_v28 = vadd.f32 %v1330_v24, %v1317_v41 }
 0x142   : > { %v1343_v42 = vpop.f32.mrf.mxu2  ;;  %v1319_v26 = vpop.f32.mrf.mxu0 }
 0x143   : > { %v1356_v25 = vpop.f32.mrf.mxu3  ;;  %v1332_v27 = vpop.f32.mrf.mxu1  ;;  %v1344_v31 = vadd.f32 %v1343_v42, %v1331_v28 }
 0x145   : > { %v1357_v32 = vadd.f32 %v1356_v25, %v1344_v31 }
 0x14a   : > { %v1345_v29 = vpop.f32.mrf.mxu2 }
 0x14b   : > { %v1358_v30 = vpop.f32.mrf.mxu3 }
 0x15a   : > { %v1369_v33 = vpop.f32.mrf.mxu0 }
 0x15b   : > { %v1370_v34 = vadd.f32 %v1369_v33, %v1357_v32  ;;  %v1382_v35 = vpop.f32.mrf.mxu1 }
 0x15d   : > { %v1383_v48 = vadd.f32 %v1382_v35, %v1370_v34 }
 0x15f   : > { %v1464_v36 = vadd.f32 %v1383_v48, %v706_v47 }
 0x161   : > { %1466 = vst [vmem:[#allocation2] sm:$0xff] %v1464_v36 }
 0x162   : > { %v1395_v4 = vpop.f32.mrf.mxu2  ;;  %v1371_v37 = vpop.f32.mrf.mxu0 }
 0x163   : > { %v1408_v8 = vpop.f32.mrf.mxu3  ;;  %v1384_v38 = vpop.f32.mrf.mxu1 }
 0x164   : > { %v1409_v43 = vadd.f32 %v1408_v8, %v1395_v4 }
 0x16a   : > { %v1397_v39 = vpop.f32.mrf.mxu2 }
 0x16b   : > { %v1410_v40 = vpop.f32.mrf.mxu3 }
 0x17a   : > { %v1421_v44 = vpop.f32.mrf.mxu0 }
 0x17b   : > { %v1434_v45 = vpop.f32.mrf.mxu1  ;;  %v1422_v46 = vadd.f32 %v1421_v44, %v1409_v43 }
 0x17d   : > { %v1435_v49 = vadd.f32 %v1434_v45, %v1422_v46 }
 0x182   : > { %v1447_v50 = vpop.f32.mrf.mxu2  ;;  %v1423_v53 = vpop.f32.mrf.mxu0 }
 0x183   : > { %v1448_v51 = vadd.f32 %v1447_v50, %v1435_v49  ;;  %v1460_v52 = vpop.f32.mrf.mxu3  ;;  %v1436_v55 = vpop.f32.mrf.mxu1 }
 0x185   : > { %v1461_v56 = vadd.f32 %v1460_v52, %v1448_v51 }
 0x187   : > { %v1465_v57 = vadd.f32 %v1461_v56, %v707_v54  ;;  %1471 = sbr.rel (%p2022_p5) target bundleno = 408 (0x198), region = 82 }
 0x189   : > { %1467 = vst [vmem:[#allocation2 + $0x8] sm:$0xff] %v1465_v57 }
 0x18a   : > { %v1449_v58 = vpop.f32.mrf.mxu2 }
 0x18b   : > { %v1462_v59 = vpop.f32.mrf.mxu3 }
 0x18c   : > { %v1472_v60 = vld [vmem:[#allocation2] sm:$0xff]  ;;  %v1474_v62 = vld [vmem:[%s636_s30] sm:$0x3] }
 0x18d   : > { %v1476_v63 = vperm.slane %v1474_v62, 0  ;;  %v1477_v0 = vperm.slane %v1474_v62, 1 }
 0x18f   : > { %v1480_v1 = vadd.f32 %v1476_v63, %v1472_v60 }
 0x190   : > { %v1473_v61 = vld [vmem:[#allocation2 + $0x8] sm:$0xff] }
 0x191   : > { %v1481_v2 = vadd.f32 %v1477_v0, %v1473_v61  ;;  %v1482_v3 = vmax.f32 %v1480_v1, 0.0 }
 0x193   : > { %v1483_v5 = vmax.f32 %v1481_v2, 0.0 }
 0x195   : > { %v1484_v6 = vpack.c.bf16 %v1483_v5, %v1482_v3 }
 0x197   : > { %1485 = vst [vmem:[%s2659_s27] sm:$0xff] %v1484_v6 }
 0x198 PF: > { %s16_s21 = sadd.s32 1, %s2317_s21   ;;  %s2927_s12 = smov %s2285_s13 }
 0x199   : > { %p13_p6 = scmp.ge.s32.totalorder %s16_s21, 8   ;;  %s2928_s13 = smov %s2289_s14 }
 0x19a   : > { %s2929_s14 = smov %s2424_s6  ;;  %s2930_s15 = smov %s2297_s16 }
 0x19b   : > { %s2931_s16 = smov %s2427_s7  ;;  %s2932_s17 = smov %s2309_s19 }
 0x19c   : > { %s2933_s18 = smov %s2313_s20  ;;  %s2934_s19 = smov %s2937_s23 }
 0x19d   : > { %s2935_s20 = smov %s2941_s24  ;;  %15 = sbr.rel (!%p13_p6) target bundleno = 6 (0x6), region = 129 }
 0x1a2   :  { %1516 = vsyncpa [#allocation5], 1 }
 0x1a3   :  { %1518 = vsyncpa [#allocation5 + $0x1], 1 }

// kernel: resnet18_forward.40
= control target key start
LH: loop header
LB: loop body
LE: loop exit
PB: predicated region body
PF: predicated region fallthrough
CT: control target
= control target key end

     0   :  { %9 = vsyncpa [#allocation5], 0  ;;  %s3019_s0 = inlined_call_operand.vmem [shape: bf16[8,4608], index: 0, kind: input, shape index: {}]   ;;  %s3020_s1 = inlined_call_operand.vmem [shape: bf16[4608,512], index: 1, kind: input, shape index: {}]   ;;  %s3021_s2 = inlined_call_operand.hbm [shape: f32[1,512], index: 2, kind: input, shape index: {}]   ;;  %s3022_s3 = inlined_call_operand.vmem [shape: bf16[8,512], index: 3, kind: input, shape index: {}]   ;;  %s3023_s4 = inlined_call_operand.vmem [shape: bf16[8,512], index: 4, kind: output, shape index: {}]  }
   0x1   :  { %11 = vsyncpa [#allocation5 + $0x1], 0  ;;  %s2433_s15 = smov 0   ;;  %s2435_s16 = smov 0  }
   0x2   :  { %s2437_s17 = smov 0   ;;  %s2439_s18 = smov 0  }
   0x3   :  { %s2441_s19 = smov 0   ;;  %s2443_s20 = smov 0  }
   0x4   :  { %s2445_s21 = smov 0   ;;  %s2447_s22 = smov 0  }
   0x5   :  { %s2449_s23 = smov 0   ;;  %s2451_s24 = smov 0  }
   0x6 LB: > { %s1709_s25 = sadd.s32 4294967295, %s2405_s24   ;;  %s29_s26 = sadd.s32 1, %s2397_s22  ;;  %s2405_s24 = sphi %s2451_s24, %s17_s24   ;;  %s2401_s23 = sphi %s2449_s23, %s3036_s23   ;;  %s2397_s22 = sphi %s2447_s22, %s3035_s22   ;;  %s2393_s21 = sphi %s2445_s21, %s3034_s21   ;;  %s2389_s20 = sphi %s2443_s20, %s3033_s20   ;;  %s2385_s19 = sphi %s2441_s19, %s3032_s19   ;;  %s2381_s18 = sphi %s2439_s18, %s3031_s18   ;;  %s2377_s17 = sphi %s2437_s17, %s3030_s17   ;;  %s2373_s16 = sphi %s2435_s16, %s3029_s16   ;;  %s2369_s15 = sphi %s2433_s15, %s3028_s15  }
   0x7   : > { %p30_p0 = scmp.ge.s32.totalorder %s29_s26, 6  ;;  %s32_s27 = sadd.s32 1, %s2401_s23 }
   0x8   : > { %s73_s28 = sadd.s32 1, %s2385_s19  ;;  %p80_p1 = scmp.ne.s32.totalorder %s2385_s19, %s2381_s18 }
   0x9   : > { %s3038_s26 = smov (%p30_p0, %s29_s26), 0  ;;  %s3040_s27 = smov (!%p30_p0, %s32_s27), %s2401_s23 }
   0xa   : > { %s68_s29 = ssub.s32 %s2397_s22, %s3038_s26  ;;  %p81_p2 = scmp.eq.s32.totalorder %s2405_s24, 0 }
   0xb   : > { %p34_p3 = scmp.ge.s32.totalorder %s3040_s27, 2  ;;  %s99_s30 = sadd.s32 1, %s2377_s17 }
   0xc   : > { %p2496_p4 = por %p81_p2, %p80_p1  ;;  %p106_p5 = scmp.ne.s32.totalorder %s2377_s17, %s2373_s16 }
   0xd   : > { %s3042_s27 = smov (%p34_p3, %s3040_s27), 0  ;;  %p112_p7 = scmp.ne.s32.totalorder %s2373_s16, %s2369_s15 }
   0xe   : > { %p2504_p6 = por %p106_p5, %p81_p2  ;;  %s69_s7 = ssub.s32 %s2401_s23, %s3042_s27 }
   0xf   : > { %p113_p8 = scmp.eq.s32.totalorder %s1709_s25, 0  ;;  %s70_s8 = sor.u32 %s69_s7, %s68_s29 }
  0x10   : > { %p97_p9 = scmp.eq.s32.totalorder %s69_s7, 0  ;;  %p71_p10 = scmp.eq.s32.totalorder %s70_s8, 0 }
  0x11   : > { %p2512_p11 = por %p113_p8, %p112_p7  ;;  %p1712_p12 = scmp.ge.s32.totalorder %s2405_s24, 12 }
  0x12   : > { %s2517_s10 = scalar_select %p97_p9, %s2377_s17, %s99_s30  }
  0x13   : > { %s2520_s11 = scalar_select %p71_p10, %s2385_s19, %s73_s28  }
  0x14   : > { %188 = sbr.rel (%p1712_p12) target bundleno = 134 (0x86), region = 16 }
  0x19   : > { %204 = sbr.rel (!%p2496_p4) target bundleno = 129 (0x81), region = 24  ;;  %s206_s12 = sand.u32 (%p2496_p4), 1, %s2385_s19  }
  0x1a   : > { %s2210_s13 = smul.u32 (%p2496_p4), 768, %s206_s12  ;;  %s1713_s14 = sshll.u32 (%p2496_p4), %s2401_s23, 1 }
  0x1b   : > { %s2113_s15 = smul.u32 (%p2496_p4), 384, %s2397_s22 }
  0x1c   : > { %s2536_s5 = scalar_lea.vmem (%p2496_p4), [#allocation3], %s2210_s13 }
  0x1d   : > { %s212_s25 = sadd.s32 (%p2496_p4), %s2113_s15, %s1713_s14 }
  0x1e   : > { %s1715_s29 = sshll.u32 %s212_s25, 2 }
  0x1f   : > { %s2531_s28 = scalar_lea.vmem %s3020_s1, %s1715_s29 }
  0x20   : > { %v433_v0 = vld [vmem:[%s2531_s28] sm:$0xff]  ;;  %v435_v1 = vld [vmem:[%s2531_s28 + $0x10] sm:$0xff] }
  0x21   : > { %v437_v2 = vld [vmem:[%s2531_s28 + $0x20] sm:$0xff]  ;;  %434 = vst [vmem:[%s2536_s5] sm:$0xff] %v433_v0  ;;  %v439_v3 = vld [vmem:[%s2531_s28 + $0x30] sm:$0xff] }
  0x22   : > { %436 = vst [vmem:[%s2536_s5 + $0x8] sm:$0xff] %v435_v1  ;;  %v441_v4 = vld [vmem:[%s2531_s28 + $0x40] sm:$0xff]  ;;  %v443_v5 = vld [vmem:[%s2531_s28 + $0x50] sm:$0xff] }
  0x23   : > { %438 = vst [vmem:[%s2536_s5 + $0x10] sm:$0xff] %v437_v2  ;;  %v445_v6 = vld [vmem:[%s2531_s28 + $0x60] sm:$0xff]  ;;  %v447_v7 = vld [vmem:[%s2531_s28 + $0x70] sm:$0xff] }
  0x24   : > { %440 = vst [vmem:[%s2536_s5 + $0x18] sm:$0xff] %v439_v3  ;;  %v449_v8 = vld [vmem:[%s2531_s28 + $0x80] sm:$0xff]  ;;  %v451_v9 = vld [vmem:[%s2531_s28 + $0x90] sm:$0xff] }
  0x25   : > { %442 = vst [vmem:[%s2536_s5 + $0x20] sm:$0xff] %v441_v4  ;;  %v453_v10 = vld [vmem:[%s2531_s28 + $0xa0] sm:$0xff]  ;;  %v455_v11 = vld [vmem:[%s2531_s28 + $0xb0] sm:$0xff] }
  0x26   : > { %444 = vst [vmem:[%s2536_s5 + $0x28] sm:$0xff] %v443_v5  ;;  %v457_v12 = vld [vmem:[%s2531_s28 + $0xc0] sm:$0xff]  ;;  %v459_v13 = vld [vmem:[%s2531_s28 + $0xd0] sm:$0xff] }
  0x27   : > { %446 = vst [vmem:[%s2536_s5 + $0x30] sm:$0xff] %v445_v6  ;;  %v461_v14 = vld [vmem:[%s2531_s28 + $0xe0] sm:$0xff]  ;;  %v463_v15 = vld [vmem:[%s2531_s28 + $0xf0] sm:$0xff] }
  0x28   : > { %448 = vst [vmem:[%s2536_s5 + $0x38] sm:$0xff] %v447_v7  ;;  %v465_v16 = vld [vmem:[%s2531_s28 + $0x100] sm:$0xff]  ;;  %v467_v17 = vld [vmem:[%s2531_s28 + $0x110] sm:$0xff] }
  0x29   : > { %450 = vst [vmem:[%s2536_s5 + $0x40] sm:$0xff] %v449_v8  ;;  %v469_v18 = vld [vmem:[%s2531_s28 + $0x120] sm:$0xff]  ;;  %v471_v19 = vld [vmem:[%s2531_s28 + $0x130] sm:$0xff] }
  0x2a   : > { %452 = vst [vmem:[%s2536_s5 + $0x48] sm:$0xff] %v451_v9  ;;  %v473_v20 = vld [vmem:[%s2531_s28 + $0x140] sm:$0xff]  ;;  %v475_v21 = vld [vmem:[%s2531_s28 + $0x150] sm:$0xff] }
  0x2b   : > { %454 = vst [vmem:[%s2536_s5 + $0x50] sm:$0xff] %v453_v10  ;;  %v477_v22 = vld [vmem:[%s2531_s28 + $0x160] sm:$0xff]  ;;  %v479_v23 = vld [vmem:[%s2531_s28 + $0x170] sm:$0xff] }
  0x2c   : > { %456 = vst [vmem:[%s2536_s5 + $0x58] sm:$0xff] %v455_v11  ;;  %v481_v24 = vld [vmem:[%s2531_s28 + $0x180] sm:$0xff]  ;;  %v483_v25 = vld [vmem:[%s2531_s28 + $0x190] sm:$0xff] }
  0x2d   : > { %458 = vst [vmem:[%s2536_s5 + $0x60] sm:$0xff] %v457_v12  ;;  %v485_v26 = vld [vmem:[%s2531_s28 + $0x1a0] sm:$0xff]  ;;  %v487_v27 = vld [vmem:[%s2531_s28 + $0x1b0] sm:$0xff] }
  0x2e   : > { %460 = vst [vmem:[%s2536_s5 + $0x68] sm:$0xff] %v459_v13  ;;  %v489_v28 = vld [vmem:[%s2531_s28 + $0x1c0] sm:$0xff]  ;;  %v491_v29 = vld [vmem:[%s2531_s28 + $0x1d0] sm:$0xff] }
  0x2f   : > { %462 = vst [vmem:[%s2536_s5 + $0x70] sm:$0xff] %v461_v14  ;;  %v493_v30 = vld [vmem:[%s2531_s28 + $0x1e0] sm:$0xff]  ;;  %v495_v31 = vld [vmem:[%s2531_s28 + $0x1f0] sm:$0xff] }
  0x30   : > { %464 = vst [vmem:[%s2536_s5 + $0x78] sm:$0xff] %v463_v15  ;;  %v497_v32 = vld [vmem:[%s2531_s28 + $0x200] sm:$0xff]  ;;  %v499_v33 = vld [vmem:[%s2531_s28 + $0x210] sm:$0xff] }
  0x31   : > { %466 = vst [vmem:[%s2536_s5 + $0x80] sm:$0xff] %v465_v16  ;;  %v501_v34 = vld [vmem:[%s2531_s28 + $0x220] sm:$0xff]  ;;  %v503_v35 = vld [vmem:[%s2531_s28 + $0x230] sm:$0xff] }
  0x32   : > { %468 = vst [vmem:[%s2536_s5 + $0x88] sm:$0xff] %v467_v17  ;;  %v505_v36 = vld [vmem:[%s2531_s28 + $0x240] sm:$0xff]  ;;  %v507_v37 = vld [vmem:[%s2531_s28 + $0x250] sm:$0xff] }
  0x33   : > { %470 = vst [vmem:[%s2536_s5 + $0x90] sm:$0xff] %v469_v18  ;;  %v509_v38 = vld [vmem:[%s2531_s28 + $0x260] sm:$0xff]  ;;  %v511_v39 = vld [vmem:[%s2531_s28 + $0x270] sm:$0xff] }
  0x34   : > { %472 = vst [vmem:[%s2536_s5 + $0x98] sm:$0xff] %v471_v19  ;;  %v513_v40 = vld [vmem:[%s2531_s28 + $0x280] sm:$0xff]  ;;  %v515_v41 = vld [vmem:[%s2531_s28 + $0x290] sm:$0xff] }
  0x35   : > { %474 = vst [vmem:[%s2536_s5 + $0xa0] sm:$0xff] %v473_v20  ;;  %v517_v42 = vld [vmem:[%s2531_s28 + $0x2a0] sm:$0xff]  ;;  %v519_v43 = vld [vmem:[%s2531_s28 + $0x2b0] sm:$0xff] }
  0x36   : > { %476 = vst [vmem:[%s2536_s5 + $0xa8] sm:$0xff] %v475_v21  ;;  %v521_v44 = vld [vmem:[%s2531_s28 + $0x2c0] sm:$0xff]  ;;  %v523_v45 = vld [vmem:[%s2531_s28 + $0x2d0] sm:$0xff] }
  0x37   : > { %478 = vst [vmem:[%s2536_s5 + $0xb0] sm:$0xff] %v477_v22  ;;  %v525_v46 = vld [vmem:[%s2531_s28 + $0x2e0] sm:$0xff]  ;;  %v527_v47 = vld [vmem:[%s2531_s28 + $0x2f0] sm:$0xff] }
  0x38   : > { %480 = vst [vmem:[%s2536_s5 + $0xb8] sm:$0xff] %v479_v23  ;;  %v529_v48 = vld [vmem:[%s2531_s28 + $0x300] sm:$0xff]  ;;  %v531_v49 = vld [vmem:[%s2531_s28 + $0x310] sm:$0xff] }
  0x39   : > { %482 = vst [vmem:[%s2536_s5 + $0xc0] sm:$0xff] %v481_v24  ;;  %v533_v50 = vld [vmem:[%s2531_s28 + $0x320] sm:$0xff]  ;;  %v535_v51 = vld [vmem:[%s2531_s28 + $0x330] sm:$0xff] }
  0x3a   : > { %484 = vst [vmem:[%s2536_s5 + $0xc8] sm:$0xff] %v483_v25  ;;  %v537_v52 = vld [vmem:[%s2531_s28 + $0x340] sm:$0xff]  ;;  %v539_v53 = vld [vmem:[%s2531_s28 + $0x350] sm:$0xff] }
  0x3b   : > { %486 = vst [vmem:[%s2536_s5 + $0xd0] sm:$0xff] %v485_v26  ;;  %v541_v54 = vld [vmem:[%s2531_s28 + $0x360] sm:$0xff]  ;;  %v543_v55 = vld [vmem:[%s2531_s28 + $0x370] sm:$0xff] }
  0x3c   : > { %488 = vst [vmem:[%s2536_s5 + $0xd8] sm:$0xff] %v487_v27  ;;  %v545_v56 = vld [vmem:[%s2531_s28 + $0x380] sm:$0xff]  ;;  %v547_v57 = vld [vmem:[%s2531_s28 + $0x390] sm:$0xff] }
  0x3d   : > { %490 = vst [vmem:[%s2536_s5 + $0xe0] sm:$0xff] %v489_v28  ;;  %v549_v58 = vld [vmem:[%s2531_s28 + $0x3a0] sm:$0xff]  ;;  %v551_v59 = vld [vmem:[%s2531_s28 + $0x3b0] sm:$0xff] }
  0x3e   : > { %492 = vst [vmem:[%s2536_s5 + $0xe8] sm:$0xff] %v491_v29  ;;  %v553_v60 = vld [vmem:[%s2531_s28 + $0x3c0] sm:$0xff]  ;;  %v555_v61 = vld [vmem:[%s2531_s28 + $0x3d0] sm:$0xff] }
  0x3f   : > { %494 = vst [vmem:[%s2536_s5 + $0xf0] sm:$0xff] %v493_v30  ;;  %v557_v62 = vld [vmem:[%s2531_s28 + $0x3e0] sm:$0xff]  ;;  %v559_v63 = vld [vmem:[%s2531_s28 + $0x3f0] sm:$0xff] }
  0x40   : > { %496 = vst [vmem:[%s2536_s5 + $0xf8] sm:$0xff] %v495_v31  ;;  %v561_v0 = vld [vmem:[%s2531_s28 + $0x400] sm:$0xff]  ;;  %v563_v1 = vld [vmem:[%s2531_s28 + $0x410] sm:$0xff] }
  0x41   : > { %498 = vst [vmem:[%s2536_s5 + $0x100] sm:$0xff] %v497_v32  ;;  %v565_v2 = vld [vmem:[%s2531_s28 + $0x420] sm:$0xff]  ;;  %v567_v3 = vld [vmem:[%s2531_s28 + $0x430] sm:$0xff] }
  0x42   : > { %500 = vst [vmem:[%s2536_s5 + $0x108] sm:$0xff] %v499_v33  ;;  %v569_v4 = vld [vmem:[%s2531_s28 + $0x440] sm:$0xff]  ;;  %v571_v5 = vld [vmem:[%s2531_s28 + $0x450] sm:$0xff] }
  0x43   : > { %502 = vst [vmem:[%s2536_s5 + $0x110] sm:$0xff] %v501_v34  ;;  %v573_v6 = vld [vmem:[%s2531_s28 + $0x460] sm:$0xff]  ;;  %v575_v7 = vld [vmem:[%s2531_s28 + $0x470] sm:$0xff] }
  0x44   : > { %504 = vst [vmem:[%s2536_s5 + $0x118] sm:$0xff] %v503_v35  ;;  %v577_v8 = vld [vmem:[%s2531_s28 + $0x480] sm:$0xff]  ;;  %v579_v9 = vld [vmem:[%s2531_s28 + $0x490] sm:$0xff] }
  0x45   : > { %506 = vst [vmem:[%s2536_s5 + $0x120] sm:$0xff] %v505_v36  ;;  %v581_v10 = vld [vmem:[%s2531_s28 + $0x4a0] sm:$0xff]  ;;  %v583_v11 = vld [vmem:[%s2531_s28 + $0x4b0] sm:$0xff] }
  0x46   : > { %508 = vst [vmem:[%s2536_s5 + $0x128] sm:$0xff] %v507_v37  ;;  %v585_v12 = vld [vmem:[%s2531_s28 + $0x4c0] sm:$0xff]  ;;  %v587_v13 = vld [vmem:[%s2531_s28 + $0x4d0] sm:$0xff] }
  0x47   : > { %510 = vst [vmem:[%s2536_s5 + $0x130] sm:$0xff] %v509_v38  ;;  %v589_v14 = vld [vmem:[%s2531_s28 + $0x4e0] sm:$0xff]  ;;  %v591_v15 = vld [vmem:[%s2531_s28 + $0x4f0] sm:$0xff] }
  0x48   : > { %512 = vst [vmem:[%s2536_s5 + $0x138] sm:$0xff] %v511_v39  ;;  %v593_v16 = vld [vmem:[%s2531_s28 + $0x500] sm:$0xff]  ;;  %v595_v17 = vld [vmem:[%s2531_s28 + $0x510] sm:$0xff] }
  0x49   : > { %514 = vst [vmem:[%s2536_s5 + $0x140] sm:$0xff] %v513_v40  ;;  %v597_v18 = vld [vmem:[%s2531_s28 + $0x520] sm:$0xff]  ;;  %v599_v19 = vld [vmem:[%s2531_s28 + $0x530] sm:$0xff] }
  0x4a   : > { %516 = vst [vmem:[%s2536_s5 + $0x148] sm:$0xff] %v515_v41  ;;  %v601_v20 = vld [vmem:[%s2531_s28 + $0x540] sm:$0xff]  ;;  %v603_v21 = vld [vmem:[%s2531_s28 + $0x550] sm:$0xff] }
  0x4b   : > { %518 = vst [vmem:[%s2536_s5 + $0x150] sm:$0xff] %v517_v42  ;;  %v605_v22 = vld [vmem:[%s2531_s28 + $0x560] sm:$0xff]  ;;  %v607_v23 = vld [vmem:[%s2531_s28 + $0x570] sm:$0xff] }
  0x4c   : > { %520 = vst [vmem:[%s2536_s5 + $0x158] sm:$0xff] %v519_v43  ;;  %v609_v24 = vld [vmem:[%s2531_s28 + $0x580] sm:$0xff]  ;;  %v611_v25 = vld [vmem:[%s2531_s28 + $0x590] sm:$0xff] }
  0x4d   : > { %522 = vst [vmem:[%s2536_s5 + $0x160] sm:$0xff] %v521_v44  ;;  %v613_v26 = vld [vmem:[%s2531_s28 + $0x5a0] sm:$0xff]  ;;  %v615_v27 = vld [vmem:[%s2531_s28 + $0x5b0] sm:$0xff] }
  0x4e   : > { %524 = vst [vmem:[%s2536_s5 + $0x168] sm:$0xff] %v523_v45  ;;  %v617_v28 = vld [vmem:[%s2531_s28 + $0x5c0] sm:$0xff]  ;;  %v619_v29 = vld [vmem:[%s2531_s28 + $0x5d0] sm:$0xff] }
  0x4f   : > { %526 = vst [vmem:[%s2536_s5 + $0x170] sm:$0xff] %v525_v46  ;;  %v621_v30 = vld [vmem:[%s2531_s28 + $0x5e0] sm:$0xff]  ;;  %v623_v31 = vld [vmem:[%s2531_s28 + $0x5f0] sm:$0xff] }
  0x50   : > { %528 = vst [vmem:[%s2536_s5 + $0x178] sm:$0xff] %v527_v47 }
  0x51   : > { %530 = vst [vmem:[%s2536_s5 + $0x180] sm:$0xff] %v529_v48 }
  0x52   : > { %532 = vst [vmem:[%s2536_s5 + $0x188] sm:$0xff] %v531_v49 }
  0x53   : > { %534 = vst [vmem:[%s2536_s5 + $0x190] sm:$0xff] %v533_v50 }
  0x54   : > { %536 = vst [vmem:[%s2536_s5 + $0x198] sm:$0xff] %v535_v51 }
  0x55   : > { %538 = vst [vmem:[%s2536_s5 + $0x1a0] sm:$0xff] %v537_v52 }
  0x56   : > { %540 = vst [vmem:[%s2536_s5 + $0x1a8] sm:$0xff] %v539_v53 }
  0x57   : > { %542 = vst [vmem:[%s2536_s5 + $0x1b0] sm:$0xff] %v541_v54 }
  0x58   : > { %544 = vst [vmem:[%s2536_s5 + $0x1b8] sm:$0xff] %v543_v55 }
  0x59   : > { %546 = vst [vmem:[%s2536_s5 + $0x1c0] sm:$0xff] %v545_v56 }
  0x5a   : > { %548 = vst [vmem:[%s2536_s5 + $0x1c8] sm:$0xff] %v547_v57 }
  0x5b   : > { %550 = vst [vmem:[%s2536_s5 + $0x1d0] sm:$0xff] %v549_v58 }
  0x5c   : > { %552 = vst [vmem:[%s2536_s5 + $0x1d8] sm:$0xff] %v551_v59 }
  0x5d   : > { %554 = vst [vmem:[%s2536_s5 + $0x1e0] sm:$0xff] %v553_v60 }
  0x5e   : > { %556 = vst [vmem:[%s2536_s5 + $0x1e8] sm:$0xff] %v555_v61 }
  0x5f   : > { %558 = vst [vmem:[%s2536_s5 + $0x1f0] sm:$0xff] %v557_v62 }
  0x60   : > { %560 = vst [vmem:[%s2536_s5 + $0x1f8] sm:$0xff] %v559_v63 }
  0x61   : > { %562 = vst [vmem:[%s2536_s5 + $0x200] sm:$0xff] %v561_v0 }
  0x62   : > { %564 = vst [vmem:[%s2536_s5 + $0x208] sm:$0xff] %v563_v1 }
  0x63   : > { %566 = vst [vmem:[%s2536_s5 + $0x210] sm:$0xff] %v565_v2 }
  0x64   : > { %568 = vst [vmem:[%s2536_s5 + $0x218] sm:$0xff] %v567_v3 }
  0x65   : > { %570 = vst [vmem:[%s2536_s5 + $0x220] sm:$0xff] %v569_v4 }
  0x66   : > { %572 = vst [vmem:[%s2536_s5 + $0x228] sm:$0xff] %v571_v5 }
  0x67   : > { %574 = vst [vmem:[%s2536_s5 + $0x230] sm:$0xff] %v573_v6 }
  0x68   : > { %576 = vst [vmem:[%s2536_s5 + $0x238] sm:$0xff] %v575_v7 }
  0x69   : > { %578 = vst [vmem:[%s2536_s5 + $0x240] sm:$0xff] %v577_v8 }
  0x6a   : > { %580 = vst [vmem:[%s2536_s5 + $0x248] sm:$0xff] %v579_v9 }
  0x6b   : > { %582 = vst [vmem:[%s2536_s5 + $0x250] sm:$0xff] %v581_v10 }
  0x6c   : > { %584 = vst [vmem:[%s2536_s5 + $0x258] sm:$0xff] %v583_v11 }
  0x6d   : > { %586 = vst [vmem:[%s2536_s5 + $0x260] sm:$0xff] %v585_v12 }
  0x6e   : > { %588 = vst [vmem:[%s2536_s5 + $0x268] sm:$0xff] %v587_v13 }
  0x6f   : > { %590 = vst [vmem:[%s2536_s5 + $0x270] sm:$0xff] %v589_v14 }
  0x70   : > { %592 = vst [vmem:[%s2536_s5 + $0x278] sm:$0xff] %v591_v15 }
  0x71   : > { %594 = vst [vmem:[%s2536_s5 + $0x280] sm:$0xff] %v593_v16 }
  0x72   : > { %596 = vst [vmem:[%s2536_s5 + $0x288] sm:$0xff] %v595_v17 }
  0x73   : > { %598 = vst [vmem:[%s2536_s5 + $0x290] sm:$0xff] %v597_v18 }
  0x74   : > { %600 = vst [vmem:[%s2536_s5 + $0x298] sm:$0xff] %v599_v19 }
  0x75   : > { %602 = vst [vmem:[%s2536_s5 + $0x2a0] sm:$0xff] %v601_v20 }
  0x76   : > { %604 = vst [vmem:[%s2536_s5 + $0x2a8] sm:$0xff] %v603_v21 }
  0x77   : > { %606 = vst [vmem:[%s2536_s5 + $0x2b0] sm:$0xff] %v605_v22 }
  0x78   : > { %608 = vst [vmem:[%s2536_s5 + $0x2b8] sm:$0xff] %v607_v23 }
  0x79   : > { %610 = vst [vmem:[%s2536_s5 + $0x2c0] sm:$0xff] %v609_v24 }
  0x7a   : > { %612 = vst [vmem:[%s2536_s5 + $0x2c8] sm:$0xff] %v611_v25 }
  0x7b   : > { %614 = vst [vmem:[%s2536_s5 + $0x2d0] sm:$0xff] %v613_v26 }
  0x7c   : > { %616 = vst [vmem:[%s2536_s5 + $0x2d8] sm:$0xff] %v615_v27 }
  0x7d   : > { %618 = vst [vmem:[%s2536_s5 + $0x2e0] sm:$0xff] %v617_v28 }
  0x7e   : > { %620 = vst [vmem:[%s2536_s5 + $0x2e8] sm:$0xff] %v619_v29 }
  0x7f   : > { %622 = vst [vmem:[%s2536_s5 + $0x2f0] sm:$0xff] %v621_v30 }
  0x80   : > { %624 = vst [vmem:[%s2536_s5 + $0x2f8] sm:$0xff] %v623_v31 }
  0x81 PF: > { %s631_s8 = sand.u32 1, %s2377_s17   ;;  %s1717_s12 = sshll.u32 %s2401_s23, 1 }
  0x82   : > { %s1716_s13 = sshll.u32 %s631_s8, 1  ;;  %s639_s25 = scalar_lea.hbm %s3021_s2, %s1717_s12 }
  0x83   : > { %s641_s29 = sshll.u32 %s639_s25, 4  ;;  %s635_s7 = scalar_lea.vmem [#allocation4], %s1716_s13  ;;  %s642_s29 = int_to_ptr.hbm [resolvable:$true] %s641_s29 }
  0x84   : > { %s643_s30 = sshll.u32 %s635_s7, 4  ;;  %s632_s28 = scalar_lea.sflag [#allocation5], %s631_s8  ;;  %s644_s30 = int_to_ptr.vmem [resolvable:$true] %s643_s30 }
  0x85   : > { %2212 = dma.hbm_to_vmem [thread:$0]  (%p2504_p6), %s642_s29, 32, %s644_s30, %s632_s28  }
  0x86 PF: > { %p1718_p13 = scmp.ge.s32.totalorder %s2405_s24, 1  ;;  %p661_p0 = scmp.lt.s32.totalorder %s2405_s24, 13 }
  0x88   : > { %p662_p1 = pnand %p1718_p13, %p661_p0 }
  0x89   : > { %s668_s5 = sand.u32 (!%p662_p1), 1, %s2381_s18   ;;  %s674_s12 = sand.u32 (!%p662_p1), 1, %s2373_s16  }
  0x8a   : > { %665 = sbr.rel (%p662_p1) target bundleno = 410 (0x19a), region = 70  ;;  %s2738_s13 = sshll.u32 (!%p662_p1), %s674_s12, 1 }
  0x8b   : > { %s2211_s14 = smul.u32 (!%p662_p1), 768, %s668_s5  ;;  %s675_s6 = scalar_lea.sflag (!%p662_p1), [#allocation5], %s674_s12 }
  0x8d   : > { %s2740_s15 = scalar_lea.vmem (!%p662_p1), [#allocation3], %s2211_s14 }
  0x8f   : > { %2364 = dma.done.wait (%p2512_p11), %s675_s6, 32  }
  0x90   : > { %2366 = vsyncadd (%p2512_p11), %s675_s6, 4294967264  ;;  %s730_s25 = smul.u32 6, %s2389_s20  ;;  %s1721_s29 = sshll.u32 %s2393_s21, 1 }
  0x91   : > { %p746_p2 = scmp.lt.s32.totalorder %s1721_s29, 3  ;;  %p1725_p4 = scmp.ne.s32.totalorder %s2389_s20, 0 }
  0x92   : > { %p733_p3 = scmp.lt.s32.totalorder %s730_s25, 35 }
  0x93   : > { %s3044_s29 = smov (!%p746_p2, %s1721_s29), 3  ;;  %766 = sbr.rel (%p1725_p4) target bundleno = 155 (0x9b), region = 82 }
  0x94   : > { %s3046_s25 = smov (!%p733_p3, %s730_s25), 35  ;;  %s1722_s18 = sshll.u32 %s3044_s29, 2 }
  0x95   : > { %s1720_s7 = sshll.u32 %s3046_s25, 2  ;;  %s2752_s5 = scalar_lea.vmem %s3022_s3, %s1722_s18 }
  0x96   : > { %s2757_s9 = scalar_lea.vmem %s3019_s0, %s1720_s7  ;;  %s2762_s21 = scalar_lea.vmem %s3023_s4, %s1722_s18 }
  0x98   : > { %v2407_v32 = vmov 0.0  }
  0x99   : > { %767 = vst [vmem:[#allocation2] sm:$0xff] %v2407_v32 }
  0x9a   : > { %768 = vst [vmem:[#allocation2 + $0x8] sm:$0xff] %v2407_v32 }
  0x9b PF: > { %v1784_v33 = vld [vmem:[%s2740_s15 + $0x70] sm:$0xf]  ;;  %v2129_v34 = vld [vmem:[%s2740_s15 + $0x74] sm:$0xf0]  ;;  %v1776_v44 = vld [vmem:[%s2740_s15 + $0x60] sm:$0xf] }
  0x9c   : > { %v1848_v35 = vld [vmem:[%s2740_s15 + $0xf0] sm:$0xf]  ;;  %v1785_v36 = vor.u32 %v2129_v34, %v1784_v33  ;;  %v2145_v37 = vld [vmem:[%s2740_s15 + $0xf4] sm:$0xf0]  ;;  %v2127_v46 = vld [vmem:[%s2740_s15 + $0x64] sm:$0xf0] }
  0x9d   : > { %v1912_v38 = vld [vmem:[%s2740_s15 + $0x170] sm:$0xf]  ;;  %v2161_v39 = vld [vmem:[%s2740_s15 + $0x174] sm:$0xf0]  ;;  %v1849_v40 = vor.u32 %v2145_v37, %v1848_v35  ;;  %v1840_v47 = vld [vmem:[%s2740_s15 + $0xe0] sm:$0xf]  ;;  %v1777_v49 = vor.u32 %v2127_v46, %v1776_v44 }
  0x9e   : > { %v1913_v41 = vor.u32 %v2161_v39, %v1912_v38  ;;  %v1976_v42 = vld [vmem:[%s2740_s15 + $0x1f0] sm:$0xf]  ;;  %v2177_v43 = vld [vmem:[%s2740_s15 + $0x1f4] sm:$0xf0]  ;;  %1371 = vmatpush.bf16.msra.mxu0 %v1785_v36  ;;  %v2143_v48 = vld [vmem:[%s2740_s15 + $0xe4] sm:$0xf0] }
  0x9f   : > { %v1977_v45 = vor.u32 %v2177_v43, %v1976_v42  ;;  %1384 = vmatpush.bf16.msra.mxu1 %v1849_v40  ;;  %v1841_v50 = vor.u32 %v2143_v48, %v1840_v47  ;;  %v1904_v51 = vld [vmem:[%s2740_s15 + $0x160] sm:$0xf]  ;;  %v2159_v52 = vld [vmem:[%s2740_s15 + $0x164] sm:$0xf0]  ;;  %v1768_v56 = vld [vmem:[%s2740_s15 + $0x50] sm:$0xf] }
  0xa0   : > { %1397 = vmatpush.bf16.msra.mxu2 %v1913_v41  ;;  %v1968_v53 = vld [vmem:[%s2740_s15 + $0x1e0] sm:$0xf]  ;;  %v1905_v54 = vor.u32 %v2159_v52, %v1904_v51  ;;  %v2175_v55 = vld [vmem:[%s2740_s15 + $0x1e4] sm:$0xf0]  ;;  %v2125_v57 = vld [vmem:[%s2740_s15 + $0x54] sm:$0xf0] }
  0xa1   : > { %1410 = vmatpush.bf16.msra.mxu3 %v1977_v45  ;;  %v1969_v58 = vor.u32 %v2175_v55, %v1968_v53  ;;  %v1832_v59 = vld [vmem:[%s2740_s15 + $0xd0] sm:$0xf]  ;;  %v2141_v60 = vld [vmem:[%s2740_s15 + $0xd4] sm:$0xf0]  ;;  %v1769_v62 = vor.u32 %v2125_v57, %v1768_v56  ;;  %v1760_v4 = vld [vmem:[%s2740_s15 + $0x40] sm:$0xf] }
  0xa2   : > { %v1896_v61 = vld [vmem:[%s2740_s15 + $0x150] sm:$0xf]  ;;  %1372 = vmatpush.bf16.msra.mxu0 %v1777_v49  ;;  %v2157_v63 = vld [vmem:[%s2740_s15 + $0x154] sm:$0xf0]  ;;  %v1833_v2 = vor.u32 %v2141_v60, %v1832_v59  ;;  %v2123_v5 = vld [vmem:[%s2740_s15 + $0x44] sm:$0xf0] }
  0xa3   : > { %v1960_v0 = vld [vmem:[%s2740_s15 + $0x1d0] sm:$0xf]  ;;  %v2173_v1 = vld [vmem:[%s2740_s15 + $0x1d4] sm:$0xf0]  ;;  %1385 = vmatpush.bf16.msra.mxu1 %v1841_v50  ;;  %v1897_v3 = vor.u32 %v2157_v63, %v1896_v61  ;;  %v1824_v6 = vld [vmem:[%s2740_s15 + $0xc0] sm:$0xf]  ;;  %v1761_v13 = vor.u32 %v2123_v5, %v1760_v4 }
  0xa4   : > { %1398 = vmatpush.bf16.msra.mxu2 %v1905_v54  ;;  %v1961_v7 = vor.u32 %v2173_v1, %v1960_v0  ;;  %v2139_v8 = vld [vmem:[%s2740_s15 + $0xc4] sm:$0xf0]  ;;  %v1888_v9 = vld [vmem:[%s2740_s15 + $0x140] sm:$0xf]  ;;  %v1752_v16 = vld [vmem:[%s2740_s15 + $0x30] sm:$0xf] }
  0xa5   : > { %1411 = vmatpush.bf16.msra.mxu3 %v1969_v58  ;;  %v2155_v10 = vld [vmem:[%s2740_s15 + $0x144] sm:$0xf0]  ;;  %v1952_v11 = vld [vmem:[%s2740_s15 + $0x1c0] sm:$0xf]  ;;  %v1825_v14 = vor.u32 %v2139_v8, %v1824_v6  ;;  %v2121_v17 = vld [vmem:[%s2740_s15 + $0x34] sm:$0xf0] }
  0xa6   : > { %v2171_v12 = vld [vmem:[%s2740_s15 + $0x1c4] sm:$0xf0]  ;;  %1373 = vmatpush.bf16.msra.mxu0 %v1769_v62  ;;  %v1889_v15 = vor.u32 %v2155_v10, %v1888_v9  ;;  %v1816_v18 = vld [vmem:[%s2740_s15 + $0xb0] sm:$0xf]  ;;  %v2137_v20 = vld [vmem:[%s2740_s15 + $0xb4] sm:$0xf0]  ;;  %v1753_v25 = vor.u32 %v2121_v17, %v1752_v16 }
  0xa7   : > { %1386 = vmatpush.bf16.msra.mxu1 %v1833_v2  ;;  %v1953_v19 = vor.u32 %v2171_v12, %v1952_v11  ;;  %v1880_v21 = vld [vmem:[%s2740_s15 + $0x130] sm:$0xf]  ;;  %v2153_v22 = vld [vmem:[%s2740_s15 + $0x134] sm:$0xf0]  ;;  %v1817_v26 = vor.u32 %v2137_v20, %v1816_v18  ;;  %v1744_v28 = vld [vmem:[%s2740_s15 + $0x20] sm:$0xf] }
  0xa8   : > { %1399 = vmatpush.bf16.msra.mxu2 %v1897_v3  ;;  %v1944_v23 = vld [vmem:[%s2740_s15 + $0x1b0] sm:$0xf]  ;;  %v2169_v24 = vld [vmem:[%s2740_s15 + $0x1b4] sm:$0xf0]  ;;  %v1881_v27 = vor.u32 %v2153_v22, %v1880_v21  ;;  %v2119_v29 = vld [vmem:[%s2740_s15 + $0x24] sm:$0xf0] }
  0xa9   : > { %1412 = vmatpush.bf16.msra.mxu3 %v1961_v7  ;;  %v1808_v30 = vld [vmem:[%s2740_s15 + $0xa0] sm:$0xf]  ;;  %v1945_v31 = vor.u32 %v2169_v24, %v1944_v23  ;;  %v2135_v32 = vld [vmem:[%s2740_s15 + $0xa4] sm:$0xf0]  ;;  %v1745_v37 = vor.u32 %v2119_v29, %v1744_v28  ;;  %v1736_v40 = vld [vmem:[%s2740_s15 + $0x10] sm:$0xf] }
  0xaa   : > { %1374 = vmatpush.bf16.msra.mxu0 %v1761_v13  ;;  %v1872_v33 = vld [vmem:[%s2740_s15 + $0x120] sm:$0xf]  ;;  %v2151_v34 = vld [vmem:[%s2740_s15 + $0x124] sm:$0xf0]  ;;  %v1809_v38 = vor.u32 %v2135_v32, %v1808_v30  ;;  %v2117_v41 = vld [vmem:[%s2740_s15 + $0x14] sm:$0xf0] }
  0xab   : > { %1387 = vmatpush.bf16.msra.mxu1 %v1825_v14  ;;  %v1936_v35 = vld [vmem:[%s2740_s15 + $0x1a0] sm:$0xf]  ;;  %v2167_v36 = vld [vmem:[%s2740_s15 + $0x1a4] sm:$0xf0]  ;;  %v1873_v39 = vor.u32 %v2151_v34, %v1872_v33  ;;  %v1800_v42 = vld [vmem:[%s2740_s15 + $0x90] sm:$0xf]  ;;  %v1737_v49 = vor.u32 %v2117_v41, %v1736_v40 }
  0xac   : > { %1400 = vmatpush.bf16.msra.mxu2 %v1889_v15  ;;  %v1937_v43 = vor.u32 %v2167_v36, %v1936_v35  ;;  %v2133_v44 = vld [vmem:[%s2740_s15 + $0x94] sm:$0xf0]  ;;  %v1864_v45 = vld [vmem:[%s2740_s15 + $0x110] sm:$0xf]  ;;  %v1728_v50 = vld [vmem:[%s2740_s15] sm:$0xf] }
  0xad   : > { %1413 = vmatpush.bf16.msra.mxu3 %v1953_v19  ;;  %v2149_v46 = vld [vmem:[%s2740_s15 + $0x114] sm:$0xf0]  ;;  %v1928_v47 = vld [vmem:[%s2740_s15 + $0x190] sm:$0xf]  ;;  %v2115_v51 = vld [vmem:[%s2740_s15 + $0x4] sm:$0xf0]  ;;  %v1801_v52 = vor.u32 %v2133_v44, %v1800_v42 }
  0xae   : > { %1375 = vmatpush.bf16.msra.mxu0 %v1753_v25  ;;  %v2165_v48 = vld [vmem:[%s2740_s15 + $0x194] sm:$0xf0]  ;;  %v1865_v53 = vor.u32 %v2149_v46, %v1864_v45  ;;  %v1792_v54 = vld [vmem:[%s2740_s15 + $0x80] sm:$0xf]  ;;  %v2131_v55 = vld [vmem:[%s2740_s15 + $0x84] sm:$0xf0]  ;;  %v1729_v0 = vor.u32 %v2115_v51, %v1728_v50 }
  0xaf   : > { %1388 = vmatpush.bf16.msra.mxu1 %v1817_v26  ;;  %v1856_v56 = vld [vmem:[%s2740_s15 + $0x100] sm:$0xf]  ;;  %v1929_v57 = vor.u32 %v2165_v48, %v1928_v47  ;;  %v2147_v58 = vld [vmem:[%s2740_s15 + $0x104] sm:$0xf0]  ;;  %v2040_v61 = vld [vmem:[%s2740_s15 + $0x270] sm:$0xf]  ;;  %v1793_v4 = vor.u32 %v2131_v55, %v1792_v54 }
  0xb0   : > { %1401 = vmatpush.bf16.msra.mxu2 %v1881_v27  ;;  %v1920_v59 = vld [vmem:[%s2740_s15 + $0x180] sm:$0xf]  ;;  %v2163_v60 = vld [vmem:[%s2740_s15 + $0x184] sm:$0xf0]  ;;  %v2193_v62 = vld [vmem:[%s2740_s15 + $0x274] sm:$0xf0]  ;;  %v1857_v5 = vor.u32 %v2147_v58, %v1856_v56 }
  0xb1   : > { %1414 = vmatpush.bf16.msra.mxu3 %v1945_v31  ;;  %v2104_v63 = vld [vmem:[%s2740_s15 + $0x2f0] sm:$0xf]  ;;  %v2209_v1 = vld [vmem:[%s2740_s15 + $0x2f4] sm:$0xf0]  ;;  %v2128_v2 = vld [vmem:[%s2740_s15 + $0x74] sm:$0xf]  ;;  %v1921_v8 = vor.u32 %v2163_v60, %v1920_v59  ;;  %v2041_v9 = vor.u32 %v2193_v62, %v2040_v61 }
  0xb2   : > { %1376 = vmatpush.bf16.msra.mxu0 %v1745_v37  ;;  %v1786_v3 = vld [vmem:[%s2740_s15 + $0x78] sm:$0xf0]  ;;  %v2144_v6 = vld [vmem:[%s2740_s15 + $0xf4] sm:$0xf]  ;;  %v2105_v10 = vor.u32 %v2209_v1, %v2104_v63  ;;  %v2032_v12 = vld [vmem:[%s2740_s15 + $0x260] sm:$0xf] }
  0xb3   : > { %1389 = vmatpush.bf16.msra.mxu1 %v1809_v38  ;;  %v1850_v7 = vld [vmem:[%s2740_s15 + $0xf8] sm:$0xf0]  ;;  %v1789_v11 = vor.u32 %v2128_v2, %v1786_v3  ;;  %v2191_v13 = vld [vmem:[%s2740_s15 + $0x264] sm:$0xf0]  ;;  %v2096_v14 = vld [vmem:[%s2740_s15 + $0x2e0] sm:$0xf] }
  0xb4   : > { %1402 = vmatpush.bf16.msra.mxu2 %v1873_v39  ;;  %v1853_v15 = vor.u32 %v2144_v6, %v1850_v7  ;;  %v2207_v16 = vld [vmem:[%s2740_s15 + $0x2e4] sm:$0xf0]  ;;  %v2126_v17 = vld [vmem:[%s2740_s15 + $0x64] sm:$0xf]  ;;  %v1778_v18 = vld [vmem:[%s2740_s15 + $0x68] sm:$0xf0]  ;;  %v2033_v21 = vor.u32 %v2191_v13, %v2032_v12 }
  0xb5   : > { %1415 = vmatpush.bf16.msra.mxu3 %v1937_v43  ;;  %v2142_v19 = vld [vmem:[%s2740_s15 + $0xe4] sm:$0xf]  ;;  %v1842_v20 = vld [vmem:[%s2740_s15 + $0xe8] sm:$0xf0]  ;;  %v2024_v22 = vld [vmem:[%s2740_s15 + $0x250] sm:$0xf]  ;;  %v2097_v24 = vor.u32 %v2207_v16, %v2096_v14  ;;  %v1781_v25 = vor.u32 %v2126_v17, %v1778_v18 }
  0xb6   : > { %1377 = vmatpush.bf16.msra.mxu0 %v1737_v49  ;;  %v2189_v23 = vld [vmem:[%s2740_s15 + $0x254] sm:$0xf0]  ;;  %v2088_v26 = vld [vmem:[%s2740_s15 + $0x2d0] sm:$0xf]  ;;  %v1845_v29 = vor.u32 %v2142_v19, %v1842_v20  ;;  %v2124_v30 = vld [vmem:[%s2740_s15 + $0x54] sm:$0xf] }
  0xb7   : > { %1390 = vmatpush.bf16.msra.mxu1 %v1801_v52  ;;  %v2205_v27 = vld [vmem:[%s2740_s15 + $0x2d4] sm:$0xf0]  ;;  %v771_v28 = vld [vmem:[%s2757_s9] sm:$0xff]  ;;  %v1770_v31 = vld [vmem:[%s2740_s15 + $0x58] sm:$0xf0]  ;;  %v2025_v39 = vor.u32 %v2189_v23, %v2024_v22  ;;  %p2110_p5 = scmp.ne.s32.totalorder %s2389_s20, 5 }
  0xb8   : > { %1403 = vmatpush.bf16.msra.mxu2 %v1865_v53  ;;  %v873_v32 = vunpack.c.l.b16 %v771_v28  ;;  %v772_v33 = vld [vmem:[%s2757_s9 + $0x8] sm:$0xff]  ;;  %v874_v34 = vunpack.c.h.b16 %v771_v28  ;;  %v2140_v35 = vld [vmem:[%s2740_s15 + $0xd4] sm:$0xf]  ;;  %v2089_v40 = vor.u32 %v2205_v27, %v2088_v26  ;;  %v1773_v43 = vor.u32 %v2124_v30, %v1770_v31  ;;  %v2016_v44 = vld [vmem:[%s2740_s15 + $0x240] sm:$0xf] }
  0xb9   : > { %1416 = vmatpush.bf16.msra.mxu3 %v1929_v57  ;;  %v1834_v36 = vld [vmem:[%s2740_s15 + $0xd8] sm:$0xf0]  ;;  %v875_v37 = vunpack.c.l.b16 %v772_v33  ;;  %v876_v38 = vunpack.c.h.b16 %v772_v33  ;;  %v2187_v45 = vld [vmem:[%s2740_s15 + $0x244] sm:$0xf0]  ;;  %v2080_v46 = vld [vmem:[%s2740_s15 + $0x2c0] sm:$0xf] }
  0xba   : > { %1378 = vmatpush.bf16.msra.mxu0 %v1729_v0  ;;  %v2855_v41 = vpack.c.b16 %v873_v32, %v873_v32  ;;  %v2857_v42 = vpack.c.b16 %v874_v34, %v874_v34  ;;  %v1837_v49 = vor.u32 %v2140_v35, %v1834_v36  ;;  %v2203_v50 = vld [vmem:[%s2740_s15 + $0x2c4] sm:$0xf0]  ;;  %v2122_v51 = vld [vmem:[%s2740_s15 + $0x44] sm:$0xf]  ;;  %v1762_v52 = vld [vmem:[%s2740_s15 + $0x48] sm:$0xf0]  ;;  %v2017_v55 = vor.u32 %v2187_v45, %v2016_v44 }
  0xbb   : > { %1391 = vmatpush.bf16.msra.mxu1 %v1793_v4  ;;  %v2862_v47 = vpack.c.b16 %v875_v37, %v875_v37  ;;  %v2864_v48 = vpack.c.b16 %v876_v38, %v876_v38  ;;  %v2138_v53 = vld [vmem:[%s2740_s15 + $0xc4] sm:$0xf]  ;;  %v1826_v54 = vld [vmem:[%s2740_s15 + $0xc8] sm:$0xf0]  ;;  %v2081_v56 = vor.u32 %v2203_v50, %v2080_v46  ;;  %v1765_v57 = vor.u32 %v2122_v51, %v1762_v52  ;;  %v2008_v58 = vld [vmem:[%s2740_s15 + $0x230] sm:$0xf] }
  0xbc   : > { %1404 = vmatpush.bf16.msra.mxu2 %v1857_v5  ;;  %v2185_v59 = vld [vmem:[%s2740_s15 + $0x234] sm:$0xf0]  ;;  %v2072_v60 = vld [vmem:[%s2740_s15 + $0x2b0] sm:$0xf]  ;;  %v1829_v61 = vor.u32 %v2138_v53, %v1826_v54  ;;  %v2120_v63 = vld [vmem:[%s2740_s15 + $0x34] sm:$0xf] }
  0xbd   : > { %1417 = vmatpush.bf16.msra.mxu3 %v1921_v8  ;;  %1379 = vmatmul.bf16.vlgmr.msra.gmra.mxu0 %v2855_v41  ;;  %v2201_v62 = vld [vmem:[%s2740_s15 + $0x2b4] sm:$0xf0]  ;;  %v1754_v0 = vld [vmem:[%s2740_s15 + $0x38] sm:$0xf0]  ;;  %v2136_v1 = vld [vmem:[%s2740_s15 + $0xb4] sm:$0xf]  ;;  %v2009_v3 = vor.u32 %v2185_v59, %v2008_v58 }
  0xbe   : > { %1423 = vmatpush.bf16.msrb.mxu0 %v2041_v9  ;;  %1392 = vmatmul.bf16.vlgmr.msra.gmra.mxu1 %v2857_v42  ;;  %v1818_v2 = vld [vmem:[%s2740_s15 + $0xb8] sm:$0xf0]  ;;  %v2073_v4 = vor.u32 %v2201_v62, %v2072_v60  ;;  %v1757_v5 = vor.u32 %v2120_v63, %v1754_v0  ;;  %v2000_v6 = vld [vmem:[%s2740_s15 + $0x220] sm:$0xf]  ;;  %v2183_v7 = vld [vmem:[%s2740_s15 + $0x224] sm:$0xf0] }
  0xbf   : > { %1436 = vmatpush.bf16.msrb.mxu1 %v2105_v10  ;;  %1405 = vmatmul.bf16.vlgmr.msra.gmra.mxu2 %v2862_v47  ;;  %v2064_v8 = vld [vmem:[%s2740_s15 + $0x2a0] sm:$0xf]  ;;  %v1821_v9 = vor.u32 %v2136_v1, %v1818_v2  ;;  %v2199_v10 = vld [vmem:[%s2740_s15 + $0x2a4] sm:$0xf0]  ;;  %v1746_v12 = vld [vmem:[%s2740_s15 + $0x28] sm:$0xf0] }
  0xc0   : > { %1449 = vmatpush.bf16.msrb.mxu2 %v1789_v11  ;;  %1418 = vmatmul.bf16.vlgmr.msra.gmra.mxu3 %v2864_v48  ;;  %v2118_v11 = vld [vmem:[%s2740_s15 + $0x24] sm:$0xf]  ;;  %v1810_v14 = vld [vmem:[%s2740_s15 + $0xa8] sm:$0xf0]  ;;  %v2065_v16 = vor.u32 %v2199_v10, %v2064_v8  ;;  %v1992_v18 = vld [vmem:[%s2740_s15 + $0x210] sm:$0xf] }
  0xc1   : > { %1462 = vmatpush.bf16.msrb.mxu3 %v1853_v15  ;;  %v2134_v13 = vld [vmem:[%s2740_s15 + $0xa4] sm:$0xf]  ;;  %v2001_v15 = vor.u32 %v2183_v7, %v2000_v6  ;;  %v1749_v17 = vor.u32 %v2118_v11, %v1746_v12  ;;  %v2181_v19 = vld [vmem:[%s2740_s15 + $0x214] sm:$0xf0]  ;;  %v2056_v20 = vld [vmem:[%s2740_s15 + $0x290] sm:$0xf] }
  0xc2   : > { %1424 = vmatpush.bf16.msrb.mxu0 %v2033_v21  ;;  %v1813_v21 = vor.u32 %v2134_v13, %v1810_v14  ;;  %v2197_v22 = vld [vmem:[%s2740_s15 + $0x294] sm:$0xf0]  ;;  %v2116_v23 = vld [vmem:[%s2740_s15 + $0x14] sm:$0xf]  ;;  %v1802_v26 = vld [vmem:[%s2740_s15 + $0x98] sm:$0xf0]  ;;  %v1993_v27 = vor.u32 %v2181_v19, %v1992_v18 }
  0xc3   : > { %1437 = vmatpush.bf16.msrb.mxu1 %v2097_v24  ;;  %v1738_v24 = vld [vmem:[%s2740_s15 + $0x18] sm:$0xf0]  ;;  %v1984_v28 = vld [vmem:[%s2740_s15 + $0x200] sm:$0xf]  ;;  %v2057_v31 = vor.u32 %v2197_v22, %v2056_v20  ;;  %v2195_v33 = vld [vmem:[%s2740_s15 + $0x284] sm:$0xf0] }
  0xc4   : > { %1450 = vmatpush.bf16.msrb.mxu2 %v1781_v25  ;;  %v2132_v25 = vld [vmem:[%s2740_s15 + $0x94] sm:$0xf]  ;;  %v2048_v30 = vld [vmem:[%s2740_s15 + $0x280] sm:$0xf]  ;;  %v1741_v32 = vor.u32 %v2116_v23, %v1738_v24  ;;  %v2114_v34 = vld [vmem:[%s2740_s15 + $0x4] sm:$0xf] }
  0xc5   : > { %1463 = vmatpush.bf16.msrb.mxu3 %v1845_v29  ;;  %v2179_v29 = vld [vmem:[%s2740_s15 + $0x204] sm:$0xf0]  ;;  %v773_v35 = vld [vmem:[%s2757_s9 + $0x10] sm:$0xff]  ;;  %v1805_v36 = vor.u32 %v2132_v25, %v1802_v26  ;;  %v1730_v37 = vld [vmem:[%s2740_s15 + $0x8] sm:$0xf0]  ;;  %v2049_v52 = vor.u32 %v2195_v33, %v2048_v30 }
  0xc6   : > { %1425 = vmatpush.bf16.msrb.mxu0 %v2025_v39  ;;  %v2130_v38 = vld [vmem:[%s2740_s15 + $0x84] sm:$0xf]  ;;  %v1794_v39 = vld [vmem:[%s2740_s15 + $0x88] sm:$0xf0]  ;;  %v2176_v44 = vld [vmem:[%s2740_s15 + $0x1f4] sm:$0xf]  ;;  %v1985_v45 = vor.u32 %v2179_v29, %v1984_v28  ;;  %v877_v51 = vunpack.c.l.b16 %v773_v35  ;;  %v1733_v53 = vor.u32 %v2114_v34, %v1730_v37  ;;  %v878_v58 = vunpack.c.h.b16 %v773_v35 }
  0xc7   : > { %1438 = vmatpush.bf16.msrb.mxu1 %v2089_v40  ;;  %v2160_v40 = vld [vmem:[%s2740_s15 + $0x174] sm:$0xf]  ;;  %v1978_v46 = vld [vmem:[%s2740_s15 + $0x1f8] sm:$0xf0]  ;;  %v1906_v62 = vld [vmem:[%s2740_s15 + $0x168] sm:$0xf0] }
  0xc8   : > { %1451 = vmatpush.bf16.msrb.mxu2 %v1773_v43  ;;  %v1914_v43 = vld [vmem:[%s2740_s15 + $0x178] sm:$0xf0]  ;;  %v2208_v54 = vld [vmem:[%s2740_s15 + $0x2f4] sm:$0xf]  ;;  %v1981_v59 = vor.u32 %v2176_v44, %v1978_v46  ;;  %v2174_v63 = vld [vmem:[%s2740_s15 + $0x1e4] sm:$0xf]  ;;  %v2926_v8 = vpack.c.b16 %v878_v58, %v878_v58 }
  0xc9   : > { %1464 = vmatpush.bf16.msrb.mxu3 %v1837_v49  ;;  %v2192_v49 = vld [vmem:[%s2740_s15 + $0x274] sm:$0xf]  ;;  %v2042_v50 = vld [vmem:[%s2740_s15 + $0x278] sm:$0xf0]  ;;  %v1970_v1 = vld [vmem:[%s2740_s15 + $0x1e8] sm:$0xf0] }
  0xca   : > { %1426 = vmatpush.bf16.msrb.mxu0 %v2017_v55  ;;  %v2106_v55 = vld [vmem:[%s2740_s15 + $0x2f8] sm:$0xf0]  ;;  %v2045_v60 = vor.u32 %v2192_v49, %v2042_v50  ;;  %v2190_v2 = vld [vmem:[%s2740_s15 + $0x264] sm:$0xf]  ;;  %v2098_v6 = vld [vmem:[%s2740_s15 + $0x2e8] sm:$0xf0] }
  0xcb   : > { %1439 = vmatpush.bf16.msrb.mxu1 %v2081_v56  ;;  %v1797_v56 = vor.u32 %v2130_v38, %v1794_v39  ;;  %v2109_v0 = vor.u32 %v2208_v54, %v2106_v55  ;;  %v2156_v11 = vld [vmem:[%s2740_s15 + $0x154] sm:$0xf]  ;;  %v1898_v12 = vld [vmem:[%s2740_s15 + $0x158] sm:$0xf0]  ;;  %v2154_v23 = vld [vmem:[%s2740_s15 + $0x144] sm:$0xf] }
  0xcc   : > { %1452 = vmatpush.bf16.msrb.mxu2 %v1765_v57  ;;  %v1917_v57 = vor.u32 %v2160_v40, %v1914_v43  ;;  %v2172_v13 = vld [vmem:[%s2740_s15 + $0x1d4] sm:$0xf]  ;;  %v2090_v19 = vld [vmem:[%s2740_s15 + $0x2d8] sm:$0xf0]  ;;  %v1901_v20 = vor.u32 %v2156_v11, %v1898_v12  ;;  %v2170_v24 = vld [vmem:[%s2740_s15 + $0x1c4] sm:$0xf] }
  0xcd   : > { %1465 = vmatpush.bf16.msrb.mxu3 %v1829_v61  ;;  %v2158_v61 = vld [vmem:[%s2740_s15 + $0x164] sm:$0xf]  ;;  %v2204_v18 = vld [vmem:[%s2740_s15 + $0x2d4] sm:$0xf]  ;;  %v1954_v25 = vld [vmem:[%s2740_s15 + $0x1c8] sm:$0xf0] }
  0xce   : > { %1427 = vmatpush.bf16.msrb.mxu0 %v2009_v3  ;;  %v2034_v3 = vld [vmem:[%s2740_s15 + $0x268] sm:$0xf0]  ;;  %v1909_v7 = vor.u32 %v2158_v61, %v1906_v62  ;;  %v2186_v26 = vld [vmem:[%s2740_s15 + $0x244] sm:$0xf]  ;;  %v2152_v33 = vld [vmem:[%s2740_s15 + $0x134] sm:$0xf] }
  0xcf   : > { %1440 = vmatpush.bf16.msrb.mxu1 %v2073_v4  ;;  %v2922_v4 = vpack.c.b16 %v877_v51, %v877_v51  ;;  %v2037_v10 = vor.u32 %v2190_v2, %v2034_v3  ;;  %v2202_v28 = vld [vmem:[%s2740_s15 + $0x2c4] sm:$0xf]  ;;  %v2082_v29 = vld [vmem:[%s2740_s15 + $0x2c8] sm:$0xf0]  ;;  %v1882_v34 = vld [vmem:[%s2740_s15 + $0x138] sm:$0xf0] }
  0xd0   : > { %1453 = vmatpush.bf16.msrb.mxu2 %v1757_v5  ;;  %v2206_v5 = vld [vmem:[%s2740_s15 + $0x2e4] sm:$0xf]  ;;  %v2168_v35 = vld [vmem:[%s2740_s15 + $0x1b4] sm:$0xf]  ;;  %v1946_v37 = vld [vmem:[%s2740_s15 + $0x1b8] sm:$0xf0]  ;;  %v1885_v44 = vor.u32 %v2152_v33, %v1882_v34 }
  0xd1   : > { %1466 = vmatpush.bf16.msrb.mxu3 %v1821_v9  ;;  %v1973_v9 = vor.u32 %v2174_v63, %v1970_v1  ;;  %v2101_v14 = vor.u32 %v2206_v5, %v2098_v6  ;;  %v2184_v38 = vld [vmem:[%s2740_s15 + $0x234] sm:$0xf]  ;;  %v2010_v39 = vld [vmem:[%s2740_s15 + $0x238] sm:$0xf0]  ;;  %v2150_v49 = vld [vmem:[%s2740_s15 + $0x124] sm:$0xf] }
  0xd2   : > { %1428 = vmatpush.bf16.msrb.mxu0 %v2001_v15  ;;  %v1962_v15 = vld [vmem:[%s2740_s15 + $0x1d8] sm:$0xf0]  ;;  %v2200_v40 = vld [vmem:[%s2740_s15 + $0x2b4] sm:$0xf]  ;;  %v2013_v46 = vor.u32 %v2184_v38, %v2010_v39  ;;  %v1874_v50 = vld [vmem:[%s2740_s15 + $0x128] sm:$0xf0] }
  0xd3   : > { %1441 = vmatpush.bf16.msrb.mxu1 %v2065_v16  ;;  %v2188_v16 = vld [vmem:[%s2740_s15 + $0x254] sm:$0xf]  ;;  %v2074_v43 = vld [vmem:[%s2740_s15 + $0x2b8] sm:$0xf0]  ;;  %v2166_v51 = vld [vmem:[%s2740_s15 + $0x1a4] sm:$0xf]  ;;  %v1877_v58 = vor.u32 %v2150_v49, %v1874_v50 }
  0xd4   : > { %1454 = vmatpush.bf16.msrb.mxu2 %v1749_v17  ;;  %v2026_v17 = vld [vmem:[%s2740_s15 + $0x258] sm:$0xf0]  ;;  %v2182_v54 = vld [vmem:[%s2740_s15 + $0x224] sm:$0xf]  ;;  %v2002_v55 = vld [vmem:[%s2740_s15 + $0x228] sm:$0xf0] }
  0xd5   : > { %1467 = vmatpush.bf16.msrb.mxu3 %v1813_v21  ;;  %v1965_v21 = vor.u32 %v2172_v13, %v1962_v15  ;;  %v2029_v22 = vor.u32 %v2188_v16, %v2026_v17  ;;  %v2148_v61 = vld [vmem:[%s2740_s15 + $0x114] sm:$0xf]  ;;  %v1866_v62 = vld [vmem:[%s2740_s15 + $0x118] sm:$0xf0]  ;;  %v2146_v11 = vld [vmem:[%s2740_s15 + $0x104] sm:$0xf] }
  0xd6   : > { %1429 = vmatpush.bf16.msrb.mxu0 %v1993_v27  ;;  %v2018_v27 = vld [vmem:[%s2740_s15 + $0x248] sm:$0xf0]  ;;  %v2164_v63 = vld [vmem:[%s2740_s15 + $0x194] sm:$0xf]  ;;  %v1930_v1 = vld [vmem:[%s2740_s15 + $0x198] sm:$0xf0] }
  0xd7   : > { %1442 = vmatpush.bf16.msrb.mxu1 %v2057_v31  ;;  %v1957_v31 = vor.u32 %v2170_v24, %v1954_v25  ;;  %v2180_v2 = vld [vmem:[%s2740_s15 + $0x214] sm:$0xf]  ;;  %v1994_v3 = vld [vmem:[%s2740_s15 + $0x218] sm:$0xf0]  ;;  %v1858_v12 = vld [vmem:[%s2740_s15 + $0x108] sm:$0xf0] }
  0xd8   : > { %1455 = vmatpush.bf16.msrb.mxu2 %v1741_v32  ;;  %v2021_v32 = vor.u32 %v2186_v26, %v2018_v27  ;;  %v2196_v5 = vld [vmem:[%s2740_s15 + $0x294] sm:$0xf]  ;;  %v2058_v6 = vld [vmem:[%s2740_s15 + $0x298] sm:$0xf0]  ;;  %v2162_v13 = vld [vmem:[%s2740_s15 + $0x184] sm:$0xf] }
  0xd9   : > { %1468 = vmatpush.bf16.msrb.mxu3 %v1805_v36  ;;  %v2085_v36 = vor.u32 %v2202_v28, %v2082_v29  ;;  %v1922_v15 = vld [vmem:[%s2740_s15 + $0x188] sm:$0xf0]  ;;  %v2178_v16 = vld [vmem:[%s2740_s15 + $0x204] sm:$0xf] }
  0xda   : > { %1430 = vmatpush.bf16.msrb.mxu0 %v1985_v45  ;;  %v1949_v45 = vor.u32 %v2168_v35, %v1946_v37  ;;  %v1986_v17 = vld [vmem:[%s2740_s15 + $0x208] sm:$0xf0] }
  0xdb   : > { %1443 = vmatpush.bf16.msrb.mxu1 %v2049_v52  ;;  %v2077_v52 = vor.u32 %v2200_v40, %v2074_v43 }
  0xdc   : > { %1456 = vmatpush.bf16.msrb.mxu2 %v1733_v53  ;;  %v1938_v53 = vld [vmem:[%s2740_s15 + $0x1a8] sm:$0xf0] }
  0xdd   : > { %1469 = vmatpush.bf16.msrb.mxu3 %v1797_v56  ;;  %1431 = vmatmul.bf16.vlgmr.msrb.gmra.mxu0 %v2922_v4  ;;  %v2198_v56 = vld [vmem:[%s2740_s15 + $0x2a4] sm:$0xf] }
  0xde   : > { %1475 = vmatpush.bf16.msra.mxu0 %v1917_v57  ;;  %1444 = vmatmul.bf16.vlgmr.msrb.gmra.mxu1 %v2926_v8  ;;  %v2066_v57 = vld [vmem:[%s2740_s15 + $0x2a8] sm:$0xf0] }
  0xdf   : > { %1488 = vmatpush.bf16.msra.mxu1 %v1981_v59  ;;  %1457 = vmatmul.bf16.vlgmr.msrb.gmra.mxu2 %v2855_v41  ;;  %v1890_v41 = vld [vmem:[%s2740_s15 + $0x148] sm:$0xf0]  ;;  %v1941_v59 = vor.u32 %v2166_v51, %v1938_v53 }
  0xe0   : > { %1501 = vmatpush.bf16.msra.mxu2 %v2045_v60  ;;  %1470 = vmatmul.bf16.vlgmr.msrb.gmra.mxu3 %v2857_v42  ;;  %v2093_v42 = vor.u32 %v2204_v18, %v2090_v19  ;;  %v1893_v30 = vor.u32 %v2154_v23, %v1890_v41  ;;  %v2005_v60 = vor.u32 %v2182_v54, %v2002_v55  ;;  %v2194_v18 = vld [vmem:[%s2740_s15 + $0x284] sm:$0xf]  ;;  %v2050_v19 = vld [vmem:[%s2740_s15 + $0x288] sm:$0xf0]  ;;  %v770_v54 = vld [vmem:[#allocation2 + $0x8] sm:$0xff]  ;;  %s3027_s15 = scalar_lea.vmem (!%p2110_p5), [#allocation4], %s2738_s13 }
  0xe1   : > { %1514 = vmatpush.bf16.msra.mxu3 %v2109_v0  ;;  %v2069_v0 = vor.u32 %v2198_v56, %v2066_v57  ;;  %v2053_v23 = vor.u32 %v2194_v18, %v2050_v19 }
  0xe2   : > { %1476 = vmatpush.bf16.msra.mxu0 %v1909_v7  ;;  %v1869_v7 = vor.u32 %v2148_v61, %v1866_v62 }
  0xe3   : > { %1489 = vmatpush.bf16.msra.mxu1 %v1973_v9  ;;  %v1933_v9 = vor.u32 %v2164_v63, %v1930_v1 }
  0xe4   : > { %1502 = vmatpush.bf16.msra.mxu2 %v2037_v10  ;;  %v1997_v10 = vor.u32 %v2180_v2, %v1994_v3 }
  0xe5   : > { %1515 = vmatpush.bf16.msra.mxu3 %v2101_v14  ;;  %v2061_v14 = vor.u32 %v2196_v5, %v2058_v6 }
  0xe6   : > { %1477 = vmatpush.bf16.msra.mxu0 %v1901_v20  ;;  %v1861_v20 = vor.u32 %v2146_v11, %v1858_v12 }
  0xe7   : > { %1490 = vmatpush.bf16.msra.mxu1 %v1965_v21  ;;  %v1925_v21 = vor.u32 %v2162_v13, %v1922_v15 }
  0xe8   : > { %1503 = vmatpush.bf16.msra.mxu2 %v2029_v22  ;;  %v1989_v22 = vor.u32 %v2178_v16, %v1986_v17 }
  0xe9   : > { %1516 = vmatpush.bf16.msra.mxu3 %v2093_v42 }
  0xea   : > { %1478 = vmatpush.bf16.msra.mxu0 %v1893_v30 }
  0xeb   : > { %1491 = vmatpush.bf16.msra.mxu1 %v1957_v31 }
  0xec   : > { %1504 = vmatpush.bf16.msra.mxu2 %v2021_v32 }
  0xed   : > { %1517 = vmatpush.bf16.msra.mxu3 %v2085_v36 }
  0xee   : > { %1479 = vmatpush.bf16.msra.mxu0 %v1885_v44 }
  0xef   : > { %1492 = vmatpush.bf16.msra.mxu1 %v1949_v45 }
  0xf0   : > { %1505 = vmatpush.bf16.msra.mxu2 %v2013_v46 }
  0xf1   : > { %1518 = vmatpush.bf16.msra.mxu3 %v2077_v52 }
  0xf2   : > { %1480 = vmatpush.bf16.msra.mxu0 %v1877_v58 }
  0xf3   : > { %1493 = vmatpush.bf16.msra.mxu1 %v1941_v59 }
  0xf4   : > { %1506 = vmatpush.bf16.msra.mxu2 %v2005_v60 }
  0xf5   : > { %1519 = vmatpush.bf16.msra.mxu3 %v2069_v0 }
  0xf6   : > { %1481 = vmatpush.bf16.msra.mxu0 %v1869_v7 }
  0xf7   : > { %1494 = vmatpush.bf16.msra.mxu1 %v1933_v9 }
  0xf8   : > { %1507 = vmatpush.bf16.msra.mxu2 %v1997_v10 }
  0xf9   : > { %1520 = vmatpush.bf16.msra.mxu3 %v2061_v14 }
  0xfa   : > { %1482 = vmatpush.bf16.msra.mxu0 %v1861_v20 }
  0xfb   : > { %1495 = vmatpush.bf16.msra.mxu1 %v1925_v21 }
  0xfc   : > { %1508 = vmatpush.bf16.msra.mxu2 %v1989_v22 }
  0xfd   : > { %1521 = vmatpush.bf16.msra.mxu3 %v2053_v23  ;;  %1483 = vmatmul.bf16.vlgmr.msra.gmra.mxu0 %v2862_v47  ;;  %v769_v47 = vld [vmem:[#allocation2] sm:$0xff] }
  0xfe   : > { %1496 = vmatmul.bf16.vlgmr.msra.gmra.mxu1 %v2864_v48 }
  0xff   : > { %1509 = vmatmul.bf16.vlgmr.msra.gmra.mxu2 %v2922_v4 }
 0x100   : > { %1522 = vmatmul.bf16.vlgmr.msra.gmra.mxu3 %v2926_v8 }
 0x13a   : > { %v1380_v41 = vpop.f32.mrf.mxu0 }
 0x13b   : > { %v1393_v24 = vpop.f32.mrf.mxu1 }
 0x13c   : > { %v1394_v28 = vadd.f32 %v1393_v24, %v1380_v41 }
 0x142   : > { %v1406_v42 = vpop.f32.mrf.mxu2  ;;  %v1382_v26 = vpop.f32.mrf.mxu0 }
 0x143   : > { %v1419_v25 = vpop.f32.mrf.mxu3  ;;  %v1395_v27 = vpop.f32.mrf.mxu1  ;;  %v1407_v31 = vadd.f32 %v1406_v42, %v1394_v28 }
 0x145   : > { %v1420_v32 = vadd.f32 %v1419_v25, %v1407_v31 }
 0x14a   : > { %v1408_v29 = vpop.f32.mrf.mxu2 }
 0x14b   : > { %v1421_v30 = vpop.f32.mrf.mxu3 }
 0x15a   : > { %v1432_v33 = vpop.f32.mrf.mxu0 }
 0x15b   : > { %v1433_v34 = vadd.f32 %v1432_v33, %v1420_v32  ;;  %v1445_v35 = vpop.f32.mrf.mxu1 }
 0x15d   : > { %v1446_v48 = vadd.f32 %v1445_v35, %v1433_v34 }
 0x15f   : > { %v1527_v36 = vadd.f32 %v1446_v48, %v769_v47 }
 0x161   : > { %1529 = vst [vmem:[#allocation2] sm:$0xff] %v1527_v36 }
 0x162   : > { %v1458_v4 = vpop.f32.mrf.mxu2  ;;  %v1434_v37 = vpop.f32.mrf.mxu0 }
 0x163   : > { %v1471_v8 = vpop.f32.mrf.mxu3  ;;  %v1447_v38 = vpop.f32.mrf.mxu1 }
 0x164   : > { %v1472_v43 = vadd.f32 %v1471_v8, %v1458_v4 }
 0x16a   : > { %v1460_v39 = vpop.f32.mrf.mxu2 }
 0x16b   : > { %v1473_v40 = vpop.f32.mrf.mxu3 }
 0x17a   : > { %v1484_v44 = vpop.f32.mrf.mxu0 }
 0x17b   : > { %v1497_v45 = vpop.f32.mrf.mxu1  ;;  %v1485_v46 = vadd.f32 %v1484_v44, %v1472_v43 }
 0x17d   : > { %v1498_v49 = vadd.f32 %v1497_v45, %v1485_v46 }
 0x182   : > { %v1510_v50 = vpop.f32.mrf.mxu2  ;;  %v1486_v53 = vpop.f32.mrf.mxu0 }
 0x183   : > { %v1511_v51 = vadd.f32 %v1510_v50, %v1498_v49  ;;  %v1523_v52 = vpop.f32.mrf.mxu3  ;;  %v1499_v55 = vpop.f32.mrf.mxu1 }
 0x185   : > { %v1524_v56 = vadd.f32 %v1523_v52, %v1511_v51 }
 0x187   : > { %v1528_v57 = vadd.f32 %v1524_v56, %v770_v54  ;;  %1534 = sbr.rel (%p2110_p5) target bundleno = 410 (0x19a), region = 86 }
 0x189   : > { %1530 = vst [vmem:[#allocation2 + $0x8] sm:$0xff] %v1528_v57 }
 0x18a   : > { %v1512_v58 = vpop.f32.mrf.mxu2 }
 0x18b   : > { %v1525_v59 = vpop.f32.mrf.mxu3 }
 0x18c   : > { %v1535_v60 = vld [vmem:[#allocation2] sm:$0xff]  ;;  %v1537_v62 = vld [vmem:[%s3027_s15] sm:$0x3] }
 0x18d   : > { %v1539_v63 = vperm.slane %v1537_v62, 0  ;;  %v1540_v0 = vperm.slane %v1537_v62, 1  ;;  %v1545_v1 = vld [vmem:[%s2752_s5] sm:$0xff] }
 0x18e   : > { %v1546_v2 = vunpack.c.l.bf16 %v1545_v1  ;;  %v1547_v3 = vunpack.c.h.bf16 %v1545_v1 }
 0x18f   : > { %v1543_v5 = vadd.f32 %v1539_v63, %v1535_v60 }
 0x190   : > { %v1536_v61 = vld [vmem:[#allocation2 + $0x8] sm:$0xff] }
 0x191   : > { %v1544_v6 = vadd.f32 %v1540_v0, %v1536_v61  ;;  %v1548_v7 = vadd.f32 %v1546_v2, %v1543_v5 }
 0x193   : > { %v1549_v9 = vadd.f32 %v1547_v3, %v1544_v6  ;;  %v1550_v10 = vmax.f32 %v1548_v7, 0.0 }
 0x195   : > { %v1551_v11 = vmax.f32 %v1549_v9, 0.0 }
 0x197   : > { %v1552_v12 = vpack.c.bf16 %v1551_v11, %v1550_v10 }
 0x199   : > { %1553 = vst [vmem:[%s2762_s21] sm:$0xff] %v1552_v12 }
 0x19a PF: > { %s17_s24 = sadd.s32 1, %s2405_s24   ;;  %s3028_s15 = smov %s2373_s16 }
 0x19b   : > { %p14_p6 = scmp.ge.s32.totalorder %s17_s24, 14   ;;  %s3029_s16 = smov %s2377_s17 }
 0x19c   : > { %s3030_s17 = smov %s2517_s10  ;;  %s3031_s18 = smov %s2385_s19 }
 0x19d   : > { %s3032_s19 = smov %s2520_s11  ;;  %s3033_s20 = smov %s2397_s22 }
 0x19e   : > { %s3034_s21 = smov %s2401_s23  ;;  %s3035_s22 = smov %s3038_s26 }
 0x19f   : > { %s3036_s23 = smov %s3042_s27  ;;  %16 = sbr.rel (!%p14_p6) target bundleno = 6 (0x6), region = 136 }
 0x1a4   :  { %1584 = vsyncpa [#allocation5], 1 }
 0x1a5   :  { %1586 = vsyncpa [#allocation5 + $0x1], 1 }

// kernel: resnet18_forward.41
= control target key start
LH: loop header
LB: loop body
LE: loop exit
PB: predicated region body
PF: predicated region fallthrough
CT: control target
= control target key end

     0   :  { %8 = vsyncpa [#allocation5], 0  ;;  %s2920_s0 = inlined_call_operand.vmem [shape: bf16[8,4608], index: 0, kind: input, shape index: {}]   ;;  %s2921_s1 = inlined_call_operand.vmem [shape: bf16[4608,512], index: 1, kind: input, shape index: {}]   ;;  %s2922_s2 = inlined_call_operand.hbm [shape: f32[1,512], index: 2, kind: input, shape index: {}]   ;;  %s2923_s3 = inlined_call_operand.vmem [shape: bf16[8,512], index: 3, kind: output, shape index: {}]  }
   0x1   :  { %10 = vsyncpa [#allocation5 + $0x1], 0  ;;  %s2340_s12 = smov 0   ;;  %s2342_s13 = smov 0  }
   0x2   :  { %s2344_s14 = smov 0   ;;  %s2346_s15 = smov 0  }
   0x3   :  { %s2348_s16 = smov 0   ;;  %s2350_s17 = smov 0  }
   0x4   :  { %s2352_s18 = smov 0   ;;  %s2354_s19 = smov 0  }
   0x5   :  { %s2356_s20 = smov 0   ;;  %s2358_s21 = smov 0  }
   0x6 LB: > { %s1623_s22 = sadd.s32 4294967295, %s2317_s21   ;;  %s28_s23 = sadd.s32 1, %s2309_s19  ;;  %s2317_s21 = sphi %s2358_s21, %s16_s21   ;;  %s2313_s20 = sphi %s2356_s20, %s2935_s20   ;;  %s2309_s19 = sphi %s2354_s19, %s2934_s19   ;;  %s2305_s18 = sphi %s2352_s18, %s2933_s18   ;;  %s2301_s17 = sphi %s2350_s17, %s2932_s17   ;;  %s2297_s16 = sphi %s2348_s16, %s2931_s16   ;;  %s2293_s15 = sphi %s2346_s15, %s2930_s15   ;;  %s2289_s14 = sphi %s2344_s14, %s2929_s14   ;;  %s2285_s13 = sphi %s2342_s13, %s2928_s13   ;;  %s2281_s12 = sphi %s2340_s12, %s2927_s12  }
   0x7   : > { %p29_p0 = scmp.ge.s32.totalorder %s28_s23, 6  ;;  %s31_s24 = sadd.s32 1, %s2313_s20 }
   0x8   : > { %s72_s25 = sadd.s32 1, %s2297_s16  ;;  %p79_p1 = scmp.ne.s32.totalorder %s2297_s16, %s2293_s15 }
   0x9   : > { %s2937_s23 = smov (%p29_p0, %s28_s23), 0  ;;  %s2939_s24 = smov (!%p29_p0, %s31_s24), %s2313_s20 }
   0xa   : > { %s67_s26 = ssub.s32 %s2309_s19, %s2937_s23  ;;  %p80_p2 = scmp.eq.s32.totalorder %s2317_s21, 0 }
   0xb   : > { %p33_p3 = scmp.ge.s32.totalorder %s2939_s24, 2  ;;  %s98_s27 = sadd.s32 1, %s2289_s14 }
   0xc   : > { %p2403_p4 = por %p80_p2, %p79_p1  ;;  %p105_p5 = scmp.ne.s32.totalorder %s2289_s14, %s2285_s13 }
   0xd   : > { %s2941_s24 = smov (%p33_p3, %s2939_s24), 0  ;;  %p111_p7 = scmp.ne.s32.totalorder %s2285_s13, %s2281_s12 }
   0xe   : > { %p2411_p6 = por %p105_p5, %p80_p2  ;;  %s68_s30 = ssub.s32 %s2313_s20, %s2941_s24 }
   0xf   : > { %p112_p8 = scmp.eq.s32.totalorder %s1623_s22, 0  ;;  %s69_s4 = sor.u32 %s68_s30, %s67_s26 }
  0x10   : > { %p96_p9 = scmp.eq.s32.totalorder %s68_s30, 0  ;;  %p70_p10 = scmp.eq.s32.totalorder %s69_s4, 0 }
  0x11   : > { %p2419_p11 = por %p112_p8, %p111_p7  ;;  %p1626_p12 = scmp.ge.s32.totalorder %s2317_s21, 12 }
  0x12   : > { %s2424_s6 = scalar_select %p96_p9, %s2289_s14, %s98_s27  }
  0x13   : > { %s2427_s7 = scalar_select %p70_p10, %s2297_s16, %s72_s25  }
  0x14   : > { %159 = sbr.rel (%p1626_p12) target bundleno = 134 (0x86), region = 16 }
  0x19   : > { %175 = sbr.rel (!%p2403_p4) target bundleno = 129 (0x81), region = 24  ;;  %s177_s8 = sand.u32 (%p2403_p4), 1, %s2297_s16  }
  0x1a   : > { %s2122_s9 = smul.u32 (%p2403_p4), 768, %s177_s8  ;;  %s1627_s10 = sshll.u32 (%p2403_p4), %s2313_s20, 1 }
  0x1b   : > { %s2025_s11 = smul.u32 (%p2403_p4), 384, %s2309_s19 }
  0x1c   : > { %s2443_s28 = scalar_lea.vmem (%p2403_p4), [#allocation3], %s2122_s9 }
  0x1d   : > { %s183_s12 = sadd.s32 (%p2403_p4), %s2025_s11, %s1627_s10 }
  0x1e   : > { %s1629_s22 = sshll.u32 %s183_s12, 2 }
  0x1f   : > { %s2438_s25 = scalar_lea.vmem %s2921_s1, %s1629_s22 }
  0x20   : > { %v404_v0 = vld [vmem:[%s2438_s25] sm:$0xff]  ;;  %v406_v1 = vld [vmem:[%s2438_s25 + $0x10] sm:$0xff] }
  0x21   : > { %v408_v2 = vld [vmem:[%s2438_s25 + $0x20] sm:$0xff]  ;;  %405 = vst [vmem:[%s2443_s28] sm:$0xff] %v404_v0  ;;  %v410_v3 = vld [vmem:[%s2438_s25 + $0x30] sm:$0xff] }
  0x22   : > { %407 = vst [vmem:[%s2443_s28 + $0x8] sm:$0xff] %v406_v1  ;;  %v412_v4 = vld [vmem:[%s2438_s25 + $0x40] sm:$0xff]  ;;  %v414_v5 = vld [vmem:[%s2438_s25 + $0x50] sm:$0xff] }
  0x23   : > { %409 = vst [vmem:[%s2443_s28 + $0x10] sm:$0xff] %v408_v2  ;;  %v416_v6 = vld [vmem:[%s2438_s25 + $0x60] sm:$0xff]  ;;  %v418_v7 = vld [vmem:[%s2438_s25 + $0x70] sm:$0xff] }
  0x24   : > { %411 = vst [vmem:[%s2443_s28 + $0x18] sm:$0xff] %v410_v3  ;;  %v420_v8 = vld [vmem:[%s2438_s25 + $0x80] sm:$0xff]  ;;  %v422_v9 = vld [vmem:[%s2438_s25 + $0x90] sm:$0xff] }
  0x25   : > { %413 = vst [vmem:[%s2443_s28 + $0x20] sm:$0xff] %v412_v4  ;;  %v424_v10 = vld [vmem:[%s2438_s25 + $0xa0] sm:$0xff]  ;;  %v426_v11 = vld [vmem:[%s2438_s25 + $0xb0] sm:$0xff] }
  0x26   : > { %415 = vst [vmem:[%s2443_s28 + $0x28] sm:$0xff] %v414_v5  ;;  %v428_v12 = vld [vmem:[%s2438_s25 + $0xc0] sm:$0xff]  ;;  %v430_v13 = vld [vmem:[%s2438_s25 + $0xd0] sm:$0xff] }
  0x27   : > { %417 = vst [vmem:[%s2443_s28 + $0x30] sm:$0xff] %v416_v6  ;;  %v432_v14 = vld [vmem:[%s2438_s25 + $0xe0] sm:$0xff]  ;;  %v434_v15 = vld [vmem:[%s2438_s25 + $0xf0] sm:$0xff] }
  0x28   : > { %419 = vst [vmem:[%s2443_s28 + $0x38] sm:$0xff] %v418_v7  ;;  %v436_v16 = vld [vmem:[%s2438_s25 + $0x100] sm:$0xff]  ;;  %v438_v17 = vld [vmem:[%s2438_s25 + $0x110] sm:$0xff] }
  0x29   : > { %421 = vst [vmem:[%s2443_s28 + $0x40] sm:$0xff] %v420_v8  ;;  %v440_v18 = vld [vmem:[%s2438_s25 + $0x120] sm:$0xff]  ;;  %v442_v19 = vld [vmem:[%s2438_s25 + $0x130] sm:$0xff] }
  0x2a   : > { %423 = vst [vmem:[%s2443_s28 + $0x48] sm:$0xff] %v422_v9  ;;  %v444_v20 = vld [vmem:[%s2438_s25 + $0x140] sm:$0xff]  ;;  %v446_v21 = vld [vmem:[%s2438_s25 + $0x150] sm:$0xff] }
  0x2b   : > { %425 = vst [vmem:[%s2443_s28 + $0x50] sm:$0xff] %v424_v10  ;;  %v448_v22 = vld [vmem:[%s2438_s25 + $0x160] sm:$0xff]  ;;  %v450_v23 = vld [vmem:[%s2438_s25 + $0x170] sm:$0xff] }
  0x2c   : > { %427 = vst [vmem:[%s2443_s28 + $0x58] sm:$0xff] %v426_v11  ;;  %v452_v24 = vld [vmem:[%s2438_s25 + $0x180] sm:$0xff]  ;;  %v454_v25 = vld [vmem:[%s2438_s25 + $0x190] sm:$0xff] }
  0x2d   : > { %429 = vst [vmem:[%s2443_s28 + $0x60] sm:$0xff] %v428_v12  ;;  %v456_v26 = vld [vmem:[%s2438_s25 + $0x1a0] sm:$0xff]  ;;  %v458_v27 = vld [vmem:[%s2438_s25 + $0x1b0] sm:$0xff] }
  0x2e   : > { %431 = vst [vmem:[%s2443_s28 + $0x68] sm:$0xff] %v430_v13  ;;  %v460_v28 = vld [vmem:[%s2438_s25 + $0x1c0] sm:$0xff]  ;;  %v462_v29 = vld [vmem:[%s2438_s25 + $0x1d0] sm:$0xff] }
  0x2f   : > { %433 = vst [vmem:[%s2443_s28 + $0x70] sm:$0xff] %v432_v14  ;;  %v464_v30 = vld [vmem:[%s2438_s25 + $0x1e0] sm:$0xff]  ;;  %v466_v31 = vld [vmem:[%s2438_s25 + $0x1f0] sm:$0xff] }
  0x30   : > { %435 = vst [vmem:[%s2443_s28 + $0x78] sm:$0xff] %v434_v15  ;;  %v468_v32 = vld [vmem:[%s2438_s25 + $0x200] sm:$0xff]  ;;  %v470_v33 = vld [vmem:[%s2438_s25 + $0x210] sm:$0xff] }
  0x31   : > { %437 = vst [vmem:[%s2443_s28 + $0x80] sm:$0xff] %v436_v16  ;;  %v472_v34 = vld [vmem:[%s2438_s25 + $0x220] sm:$0xff]  ;;  %v474_v35 = vld [vmem:[%s2438_s25 + $0x230] sm:$0xff] }
  0x32   : > { %439 = vst [vmem:[%s2443_s28 + $0x88] sm:$0xff] %v438_v17  ;;  %v476_v36 = vld [vmem:[%s2438_s25 + $0x240] sm:$0xff]  ;;  %v478_v37 = vld [vmem:[%s2438_s25 + $0x250] sm:$0xff] }
  0x33   : > { %441 = vst [vmem:[%s2443_s28 + $0x90] sm:$0xff] %v440_v18  ;;  %v480_v38 = vld [vmem:[%s2438_s25 + $0x260] sm:$0xff]  ;;  %v482_v39 = vld [vmem:[%s2438_s25 + $0x270] sm:$0xff] }
  0x34   : > { %443 = vst [vmem:[%s2443_s28 + $0x98] sm:$0xff] %v442_v19  ;;  %v484_v40 = vld [vmem:[%s2438_s25 + $0x280] sm:$0xff]  ;;  %v486_v41 = vld [vmem:[%s2438_s25 + $0x290] sm:$0xff] }
  0x35   : > { %445 = vst [vmem:[%s2443_s28 + $0xa0] sm:$0xff] %v444_v20  ;;  %v488_v42 = vld [vmem:[%s2438_s25 + $0x2a0] sm:$0xff]  ;;  %v490_v43 = vld [vmem:[%s2438_s25 + $0x2b0] sm:$0xff] }
  0x36   : > { %447 = vst [vmem:[%s2443_s28 + $0xa8] sm:$0xff] %v446_v21  ;;  %v492_v44 = vld [vmem:[%s2438_s25 + $0x2c0] sm:$0xff]  ;;  %v494_v45 = vld [vmem:[%s2438_s25 + $0x2d0] sm:$0xff] }
  0x37   : > { %449 = vst [vmem:[%s2443_s28 + $0xb0] sm:$0xff] %v448_v22  ;;  %v496_v46 = vld [vmem:[%s2438_s25 + $0x2e0] sm:$0xff]  ;;  %v498_v47 = vld [vmem:[%s2438_s25 + $0x2f0] sm:$0xff] }
  0x38   : > { %451 = vst [vmem:[%s2443_s28 + $0xb8] sm:$0xff] %v450_v23  ;;  %v500_v48 = vld [vmem:[%s2438_s25 + $0x300] sm:$0xff]  ;;  %v502_v49 = vld [vmem:[%s2438_s25 + $0x310] sm:$0xff] }
  0x39   : > { %453 = vst [vmem:[%s2443_s28 + $0xc0] sm:$0xff] %v452_v24  ;;  %v504_v50 = vld [vmem:[%s2438_s25 + $0x320] sm:$0xff]  ;;  %v506_v51 = vld [vmem:[%s2438_s25 + $0x330] sm:$0xff] }
  0x3a   : > { %455 = vst [vmem:[%s2443_s28 + $0xc8] sm:$0xff] %v454_v25  ;;  %v508_v52 = vld [vmem:[%s2438_s25 + $0x340] sm:$0xff]  ;;  %v510_v53 = vld [vmem:[%s2438_s25 + $0x350] sm:$0xff] }
  0x3b   : > { %457 = vst [vmem:[%s2443_s28 + $0xd0] sm:$0xff] %v456_v26  ;;  %v512_v54 = vld [vmem:[%s2438_s25 + $0x360] sm:$0xff]  ;;  %v514_v55 = vld [vmem:[%s2438_s25 + $0x370] sm:$0xff] }
  0x3c   : > { %459 = vst [vmem:[%s2443_s28 + $0xd8] sm:$0xff] %v458_v27  ;;  %v516_v56 = vld [vmem:[%s2438_s25 + $0x380] sm:$0xff]  ;;  %v518_v57 = vld [vmem:[%s2438_s25 + $0x390] sm:$0xff] }
  0x3d   : > { %461 = vst [vmem:[%s2443_s28 + $0xe0] sm:$0xff] %v460_v28  ;;  %v520_v58 = vld [vmem:[%s2438_s25 + $0x3a0] sm:$0xff]  ;;  %v522_v59 = vld [vmem:[%s2438_s25 + $0x3b0] sm:$0xff] }
  0x3e   : > { %463 = vst [vmem:[%s2443_s28 + $0xe8] sm:$0xff] %v462_v29  ;;  %v524_v60 = vld [vmem:[%s2438_s25 + $0x3c0] sm:$0xff]  ;;  %v526_v61 = vld [vmem:[%s2438_s25 + $0x3d0] sm:$0xff] }
  0x3f   : > { %465 = vst [vmem:[%s2443_s28 + $0xf0] sm:$0xff] %v464_v30  ;;  %v528_v62 = vld [vmem:[%s2438_s25 + $0x3e0] sm:$0xff]  ;;  %v530_v63 = vld [vmem:[%s2438_s25 + $0x3f0] sm:$0xff] }
  0x40   : > { %467 = vst [vmem:[%s2443_s28 + $0xf8] sm:$0xff] %v466_v31  ;;  %v532_v0 = vld [vmem:[%s2438_s25 + $0x400] sm:$0xff]  ;;  %v534_v1 = vld [vmem:[%s2438_s25 + $0x410] sm:$0xff] }
  0x41   : > { %469 = vst [vmem:[%s2443_s28 + $0x100] sm:$0xff] %v468_v32  ;;  %v536_v2 = vld [vmem:[%s2438_s25 + $0x420] sm:$0xff]  ;;  %v538_v3 = vld [vmem:[%s2438_s25 + $0x430] sm:$0xff] }
  0x42   : > { %471 = vst [vmem:[%s2443_s28 + $0x108] sm:$0xff] %v470_v33  ;;  %v540_v4 = vld [vmem:[%s2438_s25 + $0x440] sm:$0xff]  ;;  %v542_v5 = vld [vmem:[%s2438_s25 + $0x450] sm:$0xff] }
  0x43   : > { %473 = vst [vmem:[%s2443_s28 + $0x110] sm:$0xff] %v472_v34  ;;  %v544_v6 = vld [vmem:[%s2438_s25 + $0x460] sm:$0xff]  ;;  %v546_v7 = vld [vmem:[%s2438_s25 + $0x470] sm:$0xff] }
  0x44   : > { %475 = vst [vmem:[%s2443_s28 + $0x118] sm:$0xff] %v474_v35  ;;  %v548_v8 = vld [vmem:[%s2438_s25 + $0x480] sm:$0xff]  ;;  %v550_v9 = vld [vmem:[%s2438_s25 + $0x490] sm:$0xff] }
  0x45   : > { %477 = vst [vmem:[%s2443_s28 + $0x120] sm:$0xff] %v476_v36  ;;  %v552_v10 = vld [vmem:[%s2438_s25 + $0x4a0] sm:$0xff]  ;;  %v554_v11 = vld [vmem:[%s2438_s25 + $0x4b0] sm:$0xff] }
  0x46   : > { %479 = vst [vmem:[%s2443_s28 + $0x128] sm:$0xff] %v478_v37  ;;  %v556_v12 = vld [vmem:[%s2438_s25 + $0x4c0] sm:$0xff]  ;;  %v558_v13 = vld [vmem:[%s2438_s25 + $0x4d0] sm:$0xff] }
  0x47   : > { %481 = vst [vmem:[%s2443_s28 + $0x130] sm:$0xff] %v480_v38  ;;  %v560_v14 = vld [vmem:[%s2438_s25 + $0x4e0] sm:$0xff]  ;;  %v562_v15 = vld [vmem:[%s2438_s25 + $0x4f0] sm:$0xff] }
  0x48   : > { %483 = vst [vmem:[%s2443_s28 + $0x138] sm:$0xff] %v482_v39  ;;  %v564_v16 = vld [vmem:[%s2438_s25 + $0x500] sm:$0xff]  ;;  %v566_v17 = vld [vmem:[%s2438_s25 + $0x510] sm:$0xff] }
  0x49   : > { %485 = vst [vmem:[%s2443_s28 + $0x140] sm:$0xff] %v484_v40  ;;  %v568_v18 = vld [vmem:[%s2438_s25 + $0x520] sm:$0xff]  ;;  %v570_v19 = vld [vmem:[%s2438_s25 + $0x530] sm:$0xff] }
  0x4a   : > { %487 = vst [vmem:[%s2443_s28 + $0x148] sm:$0xff] %v486_v41  ;;  %v572_v20 = vld [vmem:[%s2438_s25 + $0x540] sm:$0xff]  ;;  %v574_v21 = vld [vmem:[%s2438_s25 + $0x550] sm:$0xff] }
  0x4b   : > { %489 = vst [vmem:[%s2443_s28 + $0x150] sm:$0xff] %v488_v42  ;;  %v576_v22 = vld [vmem:[%s2438_s25 + $0x560] sm:$0xff]  ;;  %v578_v23 = vld [vmem:[%s2438_s25 + $0x570] sm:$0xff] }
  0x4c   : > { %491 = vst [vmem:[%s2443_s28 + $0x158] sm:$0xff] %v490_v43  ;;  %v580_v24 = vld [vmem:[%s2438_s25 + $0x580] sm:$0xff]  ;;  %v582_v25 = vld [vmem:[%s2438_s25 + $0x590] sm:$0xff] }
  0x4d   : > { %493 = vst [vmem:[%s2443_s28 + $0x160] sm:$0xff] %v492_v44  ;;  %v584_v26 = vld [vmem:[%s2438_s25 + $0x5a0] sm:$0xff]  ;;  %v586_v27 = vld [vmem:[%s2438_s25 + $0x5b0] sm:$0xff] }
  0x4e   : > { %495 = vst [vmem:[%s2443_s28 + $0x168] sm:$0xff] %v494_v45  ;;  %v588_v28 = vld [vmem:[%s2438_s25 + $0x5c0] sm:$0xff]  ;;  %v590_v29 = vld [vmem:[%s2438_s25 + $0x5d0] sm:$0xff] }
  0x4f   : > { %497 = vst [vmem:[%s2443_s28 + $0x170] sm:$0xff] %v496_v46  ;;  %v592_v30 = vld [vmem:[%s2438_s25 + $0x5e0] sm:$0xff]  ;;  %v594_v31 = vld [vmem:[%s2438_s25 + $0x5f0] sm:$0xff] }
  0x50   : > { %499 = vst [vmem:[%s2443_s28 + $0x178] sm:$0xff] %v498_v47 }
  0x51   : > { %501 = vst [vmem:[%s2443_s28 + $0x180] sm:$0xff] %v500_v48 }
  0x52   : > { %503 = vst [vmem:[%s2443_s28 + $0x188] sm:$0xff] %v502_v49 }
  0x53   : > { %505 = vst [vmem:[%s2443_s28 + $0x190] sm:$0xff] %v504_v50 }
  0x54   : > { %507 = vst [vmem:[%s2443_s28 + $0x198] sm:$0xff] %v506_v51 }
  0x55   : > { %509 = vst [vmem:[%s2443_s28 + $0x1a0] sm:$0xff] %v508_v52 }
  0x56   : > { %511 = vst [vmem:[%s2443_s28 + $0x1a8] sm:$0xff] %v510_v53 }
  0x57   : > { %513 = vst [vmem:[%s2443_s28 + $0x1b0] sm:$0xff] %v512_v54 }
  0x58   : > { %515 = vst [vmem:[%s2443_s28 + $0x1b8] sm:$0xff] %v514_v55 }
  0x59   : > { %517 = vst [vmem:[%s2443_s28 + $0x1c0] sm:$0xff] %v516_v56 }
  0x5a   : > { %519 = vst [vmem:[%s2443_s28 + $0x1c8] sm:$0xff] %v518_v57 }
  0x5b   : > { %521 = vst [vmem:[%s2443_s28 + $0x1d0] sm:$0xff] %v520_v58 }
  0x5c   : > { %523 = vst [vmem:[%s2443_s28 + $0x1d8] sm:$0xff] %v522_v59 }
  0x5d   : > { %525 = vst [vmem:[%s2443_s28 + $0x1e0] sm:$0xff] %v524_v60 }
  0x5e   : > { %527 = vst [vmem:[%s2443_s28 + $0x1e8] sm:$0xff] %v526_v61 }
  0x5f   : > { %529 = vst [vmem:[%s2443_s28 + $0x1f0] sm:$0xff] %v528_v62 }
  0x60   : > { %531 = vst [vmem:[%s2443_s28 + $0x1f8] sm:$0xff] %v530_v63 }
  0x61   : > { %533 = vst [vmem:[%s2443_s28 + $0x200] sm:$0xff] %v532_v0 }
  0x62   : > { %535 = vst [vmem:[%s2443_s28 + $0x208] sm:$0xff] %v534_v1 }
  0x63   : > { %537 = vst [vmem:[%s2443_s28 + $0x210] sm:$0xff] %v536_v2 }
  0x64   : > { %539 = vst [vmem:[%s2443_s28 + $0x218] sm:$0xff] %v538_v3 }
  0x65   : > { %541 = vst [vmem:[%s2443_s28 + $0x220] sm:$0xff] %v540_v4 }
  0x66   : > { %543 = vst [vmem:[%s2443_s28 + $0x228] sm:$0xff] %v542_v5 }
  0x67   : > { %545 = vst [vmem:[%s2443_s28 + $0x230] sm:$0xff] %v544_v6 }
  0x68   : > { %547 = vst [vmem:[%s2443_s28 + $0x238] sm:$0xff] %v546_v7 }
  0x69   : > { %549 = vst [vmem:[%s2443_s28 + $0x240] sm:$0xff] %v548_v8 }
  0x6a   : > { %551 = vst [vmem:[%s2443_s28 + $0x248] sm:$0xff] %v550_v9 }
  0x6b   : > { %553 = vst [vmem:[%s2443_s28 + $0x250] sm:$0xff] %v552_v10 }
  0x6c   : > { %555 = vst [vmem:[%s2443_s28 + $0x258] sm:$0xff] %v554_v11 }
  0x6d   : > { %557 = vst [vmem:[%s2443_s28 + $0x260] sm:$0xff] %v556_v12 }
  0x6e   : > { %559 = vst [vmem:[%s2443_s28 + $0x268] sm:$0xff] %v558_v13 }
  0x6f   : > { %561 = vst [vmem:[%s2443_s28 + $0x270] sm:$0xff] %v560_v14 }
  0x70   : > { %563 = vst [vmem:[%s2443_s28 + $0x278] sm:$0xff] %v562_v15 }
  0x71   : > { %565 = vst [vmem:[%s2443_s28 + $0x280] sm:$0xff] %v564_v16 }
  0x72   : > { %567 = vst [vmem:[%s2443_s28 + $0x288] sm:$0xff] %v566_v17 }
  0x73   : > { %569 = vst [vmem:[%s2443_s28 + $0x290] sm:$0xff] %v568_v18 }
  0x74   : > { %571 = vst [vmem:[%s2443_s28 + $0x298] sm:$0xff] %v570_v19 }
  0x75   : > { %573 = vst [vmem:[%s2443_s28 + $0x2a0] sm:$0xff] %v572_v20 }
  0x76   : > { %575 = vst [vmem:[%s2443_s28 + $0x2a8] sm:$0xff] %v574_v21 }
  0x77   : > { %577 = vst [vmem:[%s2443_s28 + $0x2b0] sm:$0xff] %v576_v22 }
  0x78   : > { %579 = vst [vmem:[%s2443_s28 + $0x2b8] sm:$0xff] %v578_v23 }
  0x79   : > { %581 = vst [vmem:[%s2443_s28 + $0x2c0] sm:$0xff] %v580_v24 }
  0x7a   : > { %583 = vst [vmem:[%s2443_s28 + $0x2c8] sm:$0xff] %v582_v25 }
  0x7b   : > { %585 = vst [vmem:[%s2443_s28 + $0x2d0] sm:$0xff] %v584_v26 }
  0x7c   : > { %587 = vst [vmem:[%s2443_s28 + $0x2d8] sm:$0xff] %v586_v27 }
  0x7d   : > { %589 = vst [vmem:[%s2443_s28 + $0x2e0] sm:$0xff] %v588_v28 }
  0x7e   : > { %591 = vst [vmem:[%s2443_s28 + $0x2e8] sm:$0xff] %v590_v29 }
  0x7f   : > { %593 = vst [vmem:[%s2443_s28 + $0x2f0] sm:$0xff] %v592_v30 }
  0x80   : > { %595 = vst [vmem:[%s2443_s28 + $0x2f8] sm:$0xff] %v594_v31 }
  0x81 PF: > { %s602_s30 = sand.u32 1, %s2289_s14   ;;  %s1631_s4 = sshll.u32 %s2313_s20, 1 }
  0x82   : > { %s1630_s8 = sshll.u32 %s602_s30, 1  ;;  %s610_s11 = scalar_lea.hbm %s2922_s2, %s1631_s4 }
  0x83   : > { %s612_s12 = sshll.u32 %s610_s11, 4  ;;  %s606_s22 = scalar_lea.vmem [#allocation4], %s1630_s8  ;;  %s613_s12 = int_to_ptr.hbm [resolvable:$true] %s612_s12 }
  0x84   : > { %s614_s26 = sshll.u32 %s606_s22, 4  ;;  %s603_s27 = scalar_lea.sflag [#allocation5], %s602_s30  ;;  %s615_s26 = int_to_ptr.vmem [resolvable:$true] %s614_s26 }
  0x85   : > { %2124 = dma.hbm_to_vmem [thread:$0]  (%p2411_p6), %s613_s12, 32, %s615_s26, %s603_s27  }
  0x86 PF: > { %p1632_p13 = scmp.ge.s32.totalorder %s2317_s21, 1  ;;  %p619_p0 = scmp.lt.s32.totalorder %s2317_s21, 13 }
  0x88   : > { %p620_p1 = pnand %p1632_p13, %p619_p0 }
  0x89   : > { %s626_s25 = sand.u32 (!%p620_p1), 1, %s2293_s15   ;;  %s632_s28 = sand.u32 (!%p620_p1), 1, %s2285_s13  }
  0x8a   : > { %623 = sbr.rel (%p620_p1) target bundleno = 408 (0x198), region = 66  ;;  %s2645_s8 = sshll.u32 (!%p620_p1), %s632_s28, 1 }
  0x8b   : > { %s2123_s4 = smul.u32 (!%p620_p1), 768, %s626_s25  ;;  %s633_s29 = scalar_lea.sflag (!%p620_p1), [#allocation5], %s632_s28 }
  0x8c   : > { %s636_s30 = scalar_lea.vmem (!%p620_p1), [#allocation4], %s2645_s8 }
  0x8d   : > { %s2647_s9 = scalar_lea.vmem (!%p620_p1), [#allocation3], %s2123_s4 }
  0x8f   : > { %2276 = dma.done.wait (%p2419_p11), %s633_s29, 32  }
  0x90   : > { %2278 = vsyncadd (%p2419_p11), %s633_s29, 4294967264  ;;  %s677_s10 = smul.u32 6, %s2301_s17  ;;  %s1635_s11 = sshll.u32 %s2305_s18, 1 }
  0x91   : > { %p693_p2 = scmp.lt.s32.totalorder %s1635_s11, 3  ;;  %p1637_p4 = scmp.ne.s32.totalorder %s2301_s17, 0 }
  0x92   : > { %p680_p3 = scmp.lt.s32.totalorder %s677_s10, 35 }
  0x93   : > { %s2943_s11 = smov (!%p693_p2, %s1635_s11), 3  ;;  %703 = sbr.rel (%p1637_p4) target bundleno = 155 (0x9b), region = 78 }
  0x94   : > { %s2945_s10 = smov (!%p680_p3, %s677_s10), 35  ;;  %s1636_s15 = sshll.u32 %s2943_s11, 2 }
  0x95   : > { %s1634_s12 = sshll.u32 %s2945_s10, 2  ;;  %s2659_s27 = scalar_lea.vmem %s2923_s3, %s1636_s15 }
  0x96   : > { %s2664_s5 = scalar_lea.vmem %s2920_s0, %s1634_s12 }
  0x98   : > { %v2319_v32 = vmov 0.0  }
  0x99   : > { %704 = vst [vmem:[#allocation2] sm:$0xff] %v2319_v32 }
  0x9a   : > { %705 = vst [vmem:[#allocation2 + $0x8] sm:$0xff] %v2319_v32 }
  0x9b PF: > { %v1696_v33 = vld [vmem:[%s2647_s9 + $0x70] sm:$0xf]  ;;  %v2041_v34 = vld [vmem:[%s2647_s9 + $0x74] sm:$0xf0]  ;;  %v1688_v44 = vld [vmem:[%s2647_s9 + $0x60] sm:$0xf] }
  0x9c   : > { %v1760_v35 = vld [vmem:[%s2647_s9 + $0xf0] sm:$0xf]  ;;  %v1697_v36 = vor.u32 %v2041_v34, %v1696_v33  ;;  %v2057_v37 = vld [vmem:[%s2647_s9 + $0xf4] sm:$0xf0]  ;;  %v2039_v46 = vld [vmem:[%s2647_s9 + $0x64] sm:$0xf0] }
  0x9d   : > { %v1824_v38 = vld [vmem:[%s2647_s9 + $0x170] sm:$0xf]  ;;  %v2073_v39 = vld [vmem:[%s2647_s9 + $0x174] sm:$0xf0]  ;;  %v1761_v40 = vor.u32 %v2057_v37, %v1760_v35  ;;  %v1752_v47 = vld [vmem:[%s2647_s9 + $0xe0] sm:$0xf]  ;;  %v1689_v49 = vor.u32 %v2039_v46, %v1688_v44 }
  0x9e   : > { %v1825_v41 = vor.u32 %v2073_v39, %v1824_v38  ;;  %v1888_v42 = vld [vmem:[%s2647_s9 + $0x1f0] sm:$0xf]  ;;  %v2089_v43 = vld [vmem:[%s2647_s9 + $0x1f4] sm:$0xf0]  ;;  %1308 = vmatpush.bf16.msra.mxu0 %v1697_v36  ;;  %v2055_v48 = vld [vmem:[%s2647_s9 + $0xe4] sm:$0xf0] }
  0x9f   : > { %v1889_v45 = vor.u32 %v2089_v43, %v1888_v42  ;;  %1321 = vmatpush.bf16.msra.mxu1 %v1761_v40  ;;  %v1753_v50 = vor.u32 %v2055_v48, %v1752_v47  ;;  %v1816_v51 = vld [vmem:[%s2647_s9 + $0x160] sm:$0xf]  ;;  %v2071_v52 = vld [vmem:[%s2647_s9 + $0x164] sm:$0xf0]  ;;  %v1680_v56 = vld [vmem:[%s2647_s9 + $0x50] sm:$0xf] }
  0xa0   : > { %1334 = vmatpush.bf16.msra.mxu2 %v1825_v41  ;;  %v1880_v53 = vld [vmem:[%s2647_s9 + $0x1e0] sm:$0xf]  ;;  %v1817_v54 = vor.u32 %v2071_v52, %v1816_v51  ;;  %v2087_v55 = vld [vmem:[%s2647_s9 + $0x1e4] sm:$0xf0]  ;;  %v2037_v57 = vld [vmem:[%s2647_s9 + $0x54] sm:$0xf0] }
  0xa1   : > { %1347 = vmatpush.bf16.msra.mxu3 %v1889_v45  ;;  %v1881_v58 = vor.u32 %v2087_v55, %v1880_v53  ;;  %v1744_v59 = vld [vmem:[%s2647_s9 + $0xd0] sm:$0xf]  ;;  %v2053_v60 = vld [vmem:[%s2647_s9 + $0xd4] sm:$0xf0]  ;;  %v1681_v62 = vor.u32 %v2037_v57, %v1680_v56  ;;  %v1672_v4 = vld [vmem:[%s2647_s9 + $0x40] sm:$0xf] }
  0xa2   : > { %v1808_v61 = vld [vmem:[%s2647_s9 + $0x150] sm:$0xf]  ;;  %1309 = vmatpush.bf16.msra.mxu0 %v1689_v49  ;;  %v2069_v63 = vld [vmem:[%s2647_s9 + $0x154] sm:$0xf0]  ;;  %v1745_v2 = vor.u32 %v2053_v60, %v1744_v59  ;;  %v2035_v5 = vld [vmem:[%s2647_s9 + $0x44] sm:$0xf0] }
  0xa3   : > { %v1872_v0 = vld [vmem:[%s2647_s9 + $0x1d0] sm:$0xf]  ;;  %v2085_v1 = vld [vmem:[%s2647_s9 + $0x1d4] sm:$0xf0]  ;;  %1322 = vmatpush.bf16.msra.mxu1 %v1753_v50  ;;  %v1809_v3 = vor.u32 %v2069_v63, %v1808_v61  ;;  %v1736_v6 = vld [vmem:[%s2647_s9 + $0xc0] sm:$0xf]  ;;  %v1673_v13 = vor.u32 %v2035_v5, %v1672_v4 }
  0xa4   : > { %1335 = vmatpush.bf16.msra.mxu2 %v1817_v54  ;;  %v1873_v7 = vor.u32 %v2085_v1, %v1872_v0  ;;  %v2051_v8 = vld [vmem:[%s2647_s9 + $0xc4] sm:$0xf0]  ;;  %v1800_v9 = vld [vmem:[%s2647_s9 + $0x140] sm:$0xf]  ;;  %v1664_v16 = vld [vmem:[%s2647_s9 + $0x30] sm:$0xf] }
  0xa5   : > { %1348 = vmatpush.bf16.msra.mxu3 %v1881_v58  ;;  %v2067_v10 = vld [vmem:[%s2647_s9 + $0x144] sm:$0xf0]  ;;  %v1864_v11 = vld [vmem:[%s2647_s9 + $0x1c0] sm:$0xf]  ;;  %v1737_v14 = vor.u32 %v2051_v8, %v1736_v6  ;;  %v2033_v17 = vld [vmem:[%s2647_s9 + $0x34] sm:$0xf0] }
  0xa6   : > { %v2083_v12 = vld [vmem:[%s2647_s9 + $0x1c4] sm:$0xf0]  ;;  %1310 = vmatpush.bf16.msra.mxu0 %v1681_v62  ;;  %v1801_v15 = vor.u32 %v2067_v10, %v1800_v9  ;;  %v1728_v18 = vld [vmem:[%s2647_s9 + $0xb0] sm:$0xf]  ;;  %v2049_v20 = vld [vmem:[%s2647_s9 + $0xb4] sm:$0xf0]  ;;  %v1665_v25 = vor.u32 %v2033_v17, %v1664_v16 }
  0xa7   : > { %1323 = vmatpush.bf16.msra.mxu1 %v1745_v2  ;;  %v1865_v19 = vor.u32 %v2083_v12, %v1864_v11  ;;  %v1792_v21 = vld [vmem:[%s2647_s9 + $0x130] sm:$0xf]  ;;  %v2065_v22 = vld [vmem:[%s2647_s9 + $0x134] sm:$0xf0]  ;;  %v1729_v26 = vor.u32 %v2049_v20, %v1728_v18  ;;  %v1656_v28 = vld [vmem:[%s2647_s9 + $0x20] sm:$0xf] }
  0xa8   : > { %1336 = vmatpush.bf16.msra.mxu2 %v1809_v3  ;;  %v1856_v23 = vld [vmem:[%s2647_s9 + $0x1b0] sm:$0xf]  ;;  %v2081_v24 = vld [vmem:[%s2647_s9 + $0x1b4] sm:$0xf0]  ;;  %v1793_v27 = vor.u32 %v2065_v22, %v1792_v21  ;;  %v2031_v29 = vld [vmem:[%s2647_s9 + $0x24] sm:$0xf0] }
  0xa9   : > { %1349 = vmatpush.bf16.msra.mxu3 %v1873_v7  ;;  %v1720_v30 = vld [vmem:[%s2647_s9 + $0xa0] sm:$0xf]  ;;  %v1857_v31 = vor.u32 %v2081_v24, %v1856_v23  ;;  %v2047_v32 = vld [vmem:[%s2647_s9 + $0xa4] sm:$0xf0]  ;;  %v1657_v37 = vor.u32 %v2031_v29, %v1656_v28  ;;  %v1648_v40 = vld [vmem:[%s2647_s9 + $0x10] sm:$0xf] }
  0xaa   : > { %1311 = vmatpush.bf16.msra.mxu0 %v1673_v13  ;;  %v1784_v33 = vld [vmem:[%s2647_s9 + $0x120] sm:$0xf]  ;;  %v2063_v34 = vld [vmem:[%s2647_s9 + $0x124] sm:$0xf0]  ;;  %v1721_v38 = vor.u32 %v2047_v32, %v1720_v30  ;;  %v2029_v41 = vld [vmem:[%s2647_s9 + $0x14] sm:$0xf0] }
  0xab   : > { %1324 = vmatpush.bf16.msra.mxu1 %v1737_v14  ;;  %v1848_v35 = vld [vmem:[%s2647_s9 + $0x1a0] sm:$0xf]  ;;  %v2079_v36 = vld [vmem:[%s2647_s9 + $0x1a4] sm:$0xf0]  ;;  %v1785_v39 = vor.u32 %v2063_v34, %v1784_v33  ;;  %v1712_v42 = vld [vmem:[%s2647_s9 + $0x90] sm:$0xf]  ;;  %v1649_v49 = vor.u32 %v2029_v41, %v1648_v40 }
  0xac   : > { %1337 = vmatpush.bf16.msra.mxu2 %v1801_v15  ;;  %v1849_v43 = vor.u32 %v2079_v36, %v1848_v35  ;;  %v2045_v44 = vld [vmem:[%s2647_s9 + $0x94] sm:$0xf0]  ;;  %v1776_v45 = vld [vmem:[%s2647_s9 + $0x110] sm:$0xf]  ;;  %v1640_v50 = vld [vmem:[%s2647_s9] sm:$0xf] }
  0xad   : > { %1350 = vmatpush.bf16.msra.mxu3 %v1865_v19  ;;  %v2061_v46 = vld [vmem:[%s2647_s9 + $0x114] sm:$0xf0]  ;;  %v1840_v47 = vld [vmem:[%s2647_s9 + $0x190] sm:$0xf]  ;;  %v2027_v51 = vld [vmem:[%s2647_s9 + $0x4] sm:$0xf0]  ;;  %v1713_v52 = vor.u32 %v2045_v44, %v1712_v42 }
  0xae   : > { %1312 = vmatpush.bf16.msra.mxu0 %v1665_v25  ;;  %v2077_v48 = vld [vmem:[%s2647_s9 + $0x194] sm:$0xf0]  ;;  %v1777_v53 = vor.u32 %v2061_v46, %v1776_v45  ;;  %v1704_v54 = vld [vmem:[%s2647_s9 + $0x80] sm:$0xf]  ;;  %v2043_v55 = vld [vmem:[%s2647_s9 + $0x84] sm:$0xf0]  ;;  %v1641_v0 = vor.u32 %v2027_v51, %v1640_v50 }
  0xaf   : > { %1325 = vmatpush.bf16.msra.mxu1 %v1729_v26  ;;  %v1768_v56 = vld [vmem:[%s2647_s9 + $0x100] sm:$0xf]  ;;  %v1841_v57 = vor.u32 %v2077_v48, %v1840_v47  ;;  %v2059_v58 = vld [vmem:[%s2647_s9 + $0x104] sm:$0xf0]  ;;  %v1952_v61 = vld [vmem:[%s2647_s9 + $0x270] sm:$0xf]  ;;  %v1705_v4 = vor.u32 %v2043_v55, %v1704_v54 }
  0xb0   : > { %1338 = vmatpush.bf16.msra.mxu2 %v1793_v27  ;;  %v1832_v59 = vld [vmem:[%s2647_s9 + $0x180] sm:$0xf]  ;;  %v2075_v60 = vld [vmem:[%s2647_s9 + $0x184] sm:$0xf0]  ;;  %v2105_v62 = vld [vmem:[%s2647_s9 + $0x274] sm:$0xf0]  ;;  %v1769_v5 = vor.u32 %v2059_v58, %v1768_v56 }
  0xb1   : > { %1351 = vmatpush.bf16.msra.mxu3 %v1857_v31  ;;  %v2016_v63 = vld [vmem:[%s2647_s9 + $0x2f0] sm:$0xf]  ;;  %v2121_v1 = vld [vmem:[%s2647_s9 + $0x2f4] sm:$0xf0]  ;;  %v2040_v2 = vld [vmem:[%s2647_s9 + $0x74] sm:$0xf]  ;;  %v1833_v8 = vor.u32 %v2075_v60, %v1832_v59  ;;  %v1953_v9 = vor.u32 %v2105_v62, %v1952_v61 }
  0xb2   : > { %1313 = vmatpush.bf16.msra.mxu0 %v1657_v37  ;;  %v1698_v3 = vld [vmem:[%s2647_s9 + $0x78] sm:$0xf0]  ;;  %v2056_v6 = vld [vmem:[%s2647_s9 + $0xf4] sm:$0xf]  ;;  %v2017_v10 = vor.u32 %v2121_v1, %v2016_v63  ;;  %v1944_v12 = vld [vmem:[%s2647_s9 + $0x260] sm:$0xf] }
  0xb3   : > { %1326 = vmatpush.bf16.msra.mxu1 %v1721_v38  ;;  %v1762_v7 = vld [vmem:[%s2647_s9 + $0xf8] sm:$0xf0]  ;;  %v1701_v11 = vor.u32 %v2040_v2, %v1698_v3  ;;  %v2103_v13 = vld [vmem:[%s2647_s9 + $0x264] sm:$0xf0]  ;;  %v2008_v14 = vld [vmem:[%s2647_s9 + $0x2e0] sm:$0xf] }
  0xb4   : > { %1339 = vmatpush.bf16.msra.mxu2 %v1785_v39  ;;  %v1765_v15 = vor.u32 %v2056_v6, %v1762_v7  ;;  %v2119_v16 = vld [vmem:[%s2647_s9 + $0x2e4] sm:$0xf0]  ;;  %v2038_v17 = vld [vmem:[%s2647_s9 + $0x64] sm:$0xf]  ;;  %v1690_v18 = vld [vmem:[%s2647_s9 + $0x68] sm:$0xf0]  ;;  %v1945_v21 = vor.u32 %v2103_v13, %v1944_v12 }
  0xb5   : > { %1352 = vmatpush.bf16.msra.mxu3 %v1849_v43  ;;  %v2054_v19 = vld [vmem:[%s2647_s9 + $0xe4] sm:$0xf]  ;;  %v1754_v20 = vld [vmem:[%s2647_s9 + $0xe8] sm:$0xf0]  ;;  %v1936_v22 = vld [vmem:[%s2647_s9 + $0x250] sm:$0xf]  ;;  %v2009_v24 = vor.u32 %v2119_v16, %v2008_v14  ;;  %v1693_v25 = vor.u32 %v2038_v17, %v1690_v18 }
  0xb6   : > { %1314 = vmatpush.bf16.msra.mxu0 %v1649_v49  ;;  %v2101_v23 = vld [vmem:[%s2647_s9 + $0x254] sm:$0xf0]  ;;  %v2000_v26 = vld [vmem:[%s2647_s9 + $0x2d0] sm:$0xf]  ;;  %v1757_v29 = vor.u32 %v2054_v19, %v1754_v20  ;;  %v2036_v30 = vld [vmem:[%s2647_s9 + $0x54] sm:$0xf] }
  0xb7   : > { %1327 = vmatpush.bf16.msra.mxu1 %v1713_v52  ;;  %v2117_v27 = vld [vmem:[%s2647_s9 + $0x2d4] sm:$0xf0]  ;;  %v708_v28 = vld [vmem:[%s2664_s5] sm:$0xff]  ;;  %v1682_v31 = vld [vmem:[%s2647_s9 + $0x58] sm:$0xf0]  ;;  %v1937_v39 = vor.u32 %v2101_v23, %v1936_v22  ;;  %p2022_p5 = scmp.ne.s32.totalorder %s2301_s17, 5 }
  0xb8   : > { %1340 = vmatpush.bf16.msra.mxu2 %v1777_v53  ;;  %v810_v32 = vunpack.c.l.b16 %v708_v28  ;;  %v709_v33 = vld [vmem:[%s2664_s5 + $0x8] sm:$0xff]  ;;  %v811_v34 = vunpack.c.h.b16 %v708_v28  ;;  %v2052_v35 = vld [vmem:[%s2647_s9 + $0xd4] sm:$0xf]  ;;  %v2001_v40 = vor.u32 %v2117_v27, %v2000_v26  ;;  %v1685_v43 = vor.u32 %v2036_v30, %v1682_v31  ;;  %v1928_v44 = vld [vmem:[%s2647_s9 + $0x240] sm:$0xf] }
  0xb9   : > { %1353 = vmatpush.bf16.msra.mxu3 %v1841_v57  ;;  %v1746_v36 = vld [vmem:[%s2647_s9 + $0xd8] sm:$0xf0]  ;;  %v812_v37 = vunpack.c.l.b16 %v709_v33  ;;  %v813_v38 = vunpack.c.h.b16 %v709_v33  ;;  %v2099_v45 = vld [vmem:[%s2647_s9 + $0x244] sm:$0xf0]  ;;  %v1992_v46 = vld [vmem:[%s2647_s9 + $0x2c0] sm:$0xf] }
  0xba   : > { %1315 = vmatpush.bf16.msra.mxu0 %v1641_v0  ;;  %v2757_v41 = vpack.c.b16 %v810_v32, %v810_v32  ;;  %v2759_v42 = vpack.c.b16 %v811_v34, %v811_v34  ;;  %v1749_v49 = vor.u32 %v2052_v35, %v1746_v36  ;;  %v2115_v50 = vld [vmem:[%s2647_s9 + $0x2c4] sm:$0xf0]  ;;  %v2034_v51 = vld [vmem:[%s2647_s9 + $0x44] sm:$0xf]  ;;  %v1674_v52 = vld [vmem:[%s2647_s9 + $0x48] sm:$0xf0]  ;;  %v1929_v55 = vor.u32 %v2099_v45, %v1928_v44 }
  0xbb   : > { %1328 = vmatpush.bf16.msra.mxu1 %v1705_v4  ;;  %v2764_v47 = vpack.c.b16 %v812_v37, %v812_v37  ;;  %v2766_v48 = vpack.c.b16 %v813_v38, %v813_v38  ;;  %v2050_v53 = vld [vmem:[%s2647_s9 + $0xc4] sm:$0xf]  ;;  %v1738_v54 = vld [vmem:[%s2647_s9 + $0xc8] sm:$0xf0]  ;;  %v1993_v56 = vor.u32 %v2115_v50, %v1992_v46  ;;  %v1677_v57 = vor.u32 %v2034_v51, %v1674_v52  ;;  %v1920_v58 = vld [vmem:[%s2647_s9 + $0x230] sm:$0xf] }
  0xbc   : > { %1341 = vmatpush.bf16.msra.mxu2 %v1769_v5  ;;  %v2097_v59 = vld [vmem:[%s2647_s9 + $0x234] sm:$0xf0]  ;;  %v1984_v60 = vld [vmem:[%s2647_s9 + $0x2b0] sm:$0xf]  ;;  %v1741_v61 = vor.u32 %v2050_v53, %v1738_v54  ;;  %v2032_v63 = vld [vmem:[%s2647_s9 + $0x34] sm:$0xf] }
  0xbd   : > { %1354 = vmatpush.bf16.msra.mxu3 %v1833_v8  ;;  %1316 = vmatmul.bf16.vlgmr.msra.gmra.mxu0 %v2757_v41  ;;  %v2113_v62 = vld [vmem:[%s2647_s9 + $0x2b4] sm:$0xf0]  ;;  %v1666_v0 = vld [vmem:[%s2647_s9 + $0x38] sm:$0xf0]  ;;  %v2048_v1 = vld [vmem:[%s2647_s9 + $0xb4] sm:$0xf]  ;;  %v1921_v3 = vor.u32 %v2097_v59, %v1920_v58 }
  0xbe   : > { %1360 = vmatpush.bf16.msrb.mxu0 %v1953_v9  ;;  %1329 = vmatmul.bf16.vlgmr.msra.gmra.mxu1 %v2759_v42  ;;  %v1730_v2 = vld [vmem:[%s2647_s9 + $0xb8] sm:$0xf0]  ;;  %v1985_v4 = vor.u32 %v2113_v62, %v1984_v60  ;;  %v1669_v5 = vor.u32 %v2032_v63, %v1666_v0  ;;  %v1912_v6 = vld [vmem:[%s2647_s9 + $0x220] sm:$0xf]  ;;  %v2095_v7 = vld [vmem:[%s2647_s9 + $0x224] sm:$0xf0] }
  0xbf   : > { %1373 = vmatpush.bf16.msrb.mxu1 %v2017_v10  ;;  %1342 = vmatmul.bf16.vlgmr.msra.gmra.mxu2 %v2764_v47  ;;  %v1976_v8 = vld [vmem:[%s2647_s9 + $0x2a0] sm:$0xf]  ;;  %v1733_v9 = vor.u32 %v2048_v1, %v1730_v2  ;;  %v2111_v10 = vld [vmem:[%s2647_s9 + $0x2a4] sm:$0xf0]  ;;  %v1658_v12 = vld [vmem:[%s2647_s9 + $0x28] sm:$0xf0] }
  0xc0   : > { %1386 = vmatpush.bf16.msrb.mxu2 %v1701_v11  ;;  %1355 = vmatmul.bf16.vlgmr.msra.gmra.mxu3 %v2766_v48  ;;  %v2030_v11 = vld [vmem:[%s2647_s9 + $0x24] sm:$0xf]  ;;  %v1722_v14 = vld [vmem:[%s2647_s9 + $0xa8] sm:$0xf0]  ;;  %v1977_v16 = vor.u32 %v2111_v10, %v1976_v8  ;;  %v1904_v18 = vld [vmem:[%s2647_s9 + $0x210] sm:$0xf] }
  0xc1   : > { %1399 = vmatpush.bf16.msrb.mxu3 %v1765_v15  ;;  %v2046_v13 = vld [vmem:[%s2647_s9 + $0xa4] sm:$0xf]  ;;  %v1913_v15 = vor.u32 %v2095_v7, %v1912_v6  ;;  %v1661_v17 = vor.u32 %v2030_v11, %v1658_v12  ;;  %v2093_v19 = vld [vmem:[%s2647_s9 + $0x214] sm:$0xf0]  ;;  %v1968_v20 = vld [vmem:[%s2647_s9 + $0x290] sm:$0xf] }
  0xc2   : > { %1361 = vmatpush.bf16.msrb.mxu0 %v1945_v21  ;;  %v1725_v21 = vor.u32 %v2046_v13, %v1722_v14  ;;  %v2109_v22 = vld [vmem:[%s2647_s9 + $0x294] sm:$0xf0]  ;;  %v2028_v23 = vld [vmem:[%s2647_s9 + $0x14] sm:$0xf]  ;;  %v1714_v26 = vld [vmem:[%s2647_s9 + $0x98] sm:$0xf0]  ;;  %v1905_v27 = vor.u32 %v2093_v19, %v1904_v18 }
  0xc3   : > { %1374 = vmatpush.bf16.msrb.mxu1 %v2009_v24  ;;  %v1650_v24 = vld [vmem:[%s2647_s9 + $0x18] sm:$0xf0]  ;;  %v1896_v28 = vld [vmem:[%s2647_s9 + $0x200] sm:$0xf]  ;;  %v1969_v31 = vor.u32 %v2109_v22, %v1968_v20  ;;  %v2107_v33 = vld [vmem:[%s2647_s9 + $0x284] sm:$0xf0] }
  0xc4   : > { %1387 = vmatpush.bf16.msrb.mxu2 %v1693_v25  ;;  %v2044_v25 = vld [vmem:[%s2647_s9 + $0x94] sm:$0xf]  ;;  %v1960_v30 = vld [vmem:[%s2647_s9 + $0x280] sm:$0xf]  ;;  %v1653_v32 = vor.u32 %v2028_v23, %v1650_v24  ;;  %v2026_v34 = vld [vmem:[%s2647_s9 + $0x4] sm:$0xf] }
  0xc5   : > { %1400 = vmatpush.bf16.msrb.mxu3 %v1757_v29  ;;  %v2091_v29 = vld [vmem:[%s2647_s9 + $0x204] sm:$0xf0]  ;;  %v710_v35 = vld [vmem:[%s2664_s5 + $0x10] sm:$0xff]  ;;  %v1717_v36 = vor.u32 %v2044_v25, %v1714_v26  ;;  %v1642_v37 = vld [vmem:[%s2647_s9 + $0x8] sm:$0xf0]  ;;  %v1961_v52 = vor.u32 %v2107_v33, %v1960_v30 }
  0xc6   : > { %1362 = vmatpush.bf16.msrb.mxu0 %v1937_v39  ;;  %v2042_v38 = vld [vmem:[%s2647_s9 + $0x84] sm:$0xf]  ;;  %v1706_v39 = vld [vmem:[%s2647_s9 + $0x88] sm:$0xf0]  ;;  %v2088_v44 = vld [vmem:[%s2647_s9 + $0x1f4] sm:$0xf]  ;;  %v1897_v45 = vor.u32 %v2091_v29, %v1896_v28  ;;  %v814_v51 = vunpack.c.l.b16 %v710_v35  ;;  %v1645_v53 = vor.u32 %v2026_v34, %v1642_v37  ;;  %v815_v58 = vunpack.c.h.b16 %v710_v35 }
  0xc7   : > { %1375 = vmatpush.bf16.msrb.mxu1 %v2001_v40  ;;  %v2072_v40 = vld [vmem:[%s2647_s9 + $0x174] sm:$0xf]  ;;  %v1890_v46 = vld [vmem:[%s2647_s9 + $0x1f8] sm:$0xf0]  ;;  %v1818_v62 = vld [vmem:[%s2647_s9 + $0x168] sm:$0xf0] }
  0xc8   : > { %1388 = vmatpush.bf16.msrb.mxu2 %v1685_v43  ;;  %v1826_v43 = vld [vmem:[%s2647_s9 + $0x178] sm:$0xf0]  ;;  %v2120_v54 = vld [vmem:[%s2647_s9 + $0x2f4] sm:$0xf]  ;;  %v1893_v59 = vor.u32 %v2088_v44, %v1890_v46  ;;  %v2086_v63 = vld [vmem:[%s2647_s9 + $0x1e4] sm:$0xf]  ;;  %v2828_v8 = vpack.c.b16 %v815_v58, %v815_v58 }
  0xc9   : > { %1401 = vmatpush.bf16.msrb.mxu3 %v1749_v49  ;;  %v2104_v49 = vld [vmem:[%s2647_s9 + $0x274] sm:$0xf]  ;;  %v1954_v50 = vld [vmem:[%s2647_s9 + $0x278] sm:$0xf0]  ;;  %v1882_v1 = vld [vmem:[%s2647_s9 + $0x1e8] sm:$0xf0] }
  0xca   : > { %1363 = vmatpush.bf16.msrb.mxu0 %v1929_v55  ;;  %v2018_v55 = vld [vmem:[%s2647_s9 + $0x2f8] sm:$0xf0]  ;;  %v1957_v60 = vor.u32 %v2104_v49, %v1954_v50  ;;  %v2102_v2 = vld [vmem:[%s2647_s9 + $0x264] sm:$0xf]  ;;  %v2010_v6 = vld [vmem:[%s2647_s9 + $0x2e8] sm:$0xf0] }
  0xcb   : > { %1376 = vmatpush.bf16.msrb.mxu1 %v1993_v56  ;;  %v1709_v56 = vor.u32 %v2042_v38, %v1706_v39  ;;  %v2021_v0 = vor.u32 %v2120_v54, %v2018_v55  ;;  %v2068_v11 = vld [vmem:[%s2647_s9 + $0x154] sm:$0xf]  ;;  %v1810_v12 = vld [vmem:[%s2647_s9 + $0x158] sm:$0xf0]  ;;  %v2066_v23 = vld [vmem:[%s2647_s9 + $0x144] sm:$0xf] }
  0xcc   : > { %1389 = vmatpush.bf16.msrb.mxu2 %v1677_v57  ;;  %v1829_v57 = vor.u32 %v2072_v40, %v1826_v43  ;;  %v2084_v13 = vld [vmem:[%s2647_s9 + $0x1d4] sm:$0xf]  ;;  %v2002_v19 = vld [vmem:[%s2647_s9 + $0x2d8] sm:$0xf0]  ;;  %v1813_v20 = vor.u32 %v2068_v11, %v1810_v12  ;;  %v2082_v24 = vld [vmem:[%s2647_s9 + $0x1c4] sm:$0xf] }
  0xcd   : > { %1402 = vmatpush.bf16.msrb.mxu3 %v1741_v61  ;;  %v2070_v61 = vld [vmem:[%s2647_s9 + $0x164] sm:$0xf]  ;;  %v2116_v18 = vld [vmem:[%s2647_s9 + $0x2d4] sm:$0xf]  ;;  %v1866_v25 = vld [vmem:[%s2647_s9 + $0x1c8] sm:$0xf0] }
  0xce   : > { %1364 = vmatpush.bf16.msrb.mxu0 %v1921_v3  ;;  %v1946_v3 = vld [vmem:[%s2647_s9 + $0x268] sm:$0xf0]  ;;  %v1821_v7 = vor.u32 %v2070_v61, %v1818_v62  ;;  %v2098_v26 = vld [vmem:[%s2647_s9 + $0x244] sm:$0xf]  ;;  %v2064_v33 = vld [vmem:[%s2647_s9 + $0x134] sm:$0xf] }
  0xcf   : > { %1377 = vmatpush.bf16.msrb.mxu1 %v1985_v4  ;;  %v2824_v4 = vpack.c.b16 %v814_v51, %v814_v51  ;;  %v1949_v10 = vor.u32 %v2102_v2, %v1946_v3  ;;  %v2114_v28 = vld [vmem:[%s2647_s9 + $0x2c4] sm:$0xf]  ;;  %v1994_v29 = vld [vmem:[%s2647_s9 + $0x2c8] sm:$0xf0]  ;;  %v1794_v34 = vld [vmem:[%s2647_s9 + $0x138] sm:$0xf0] }
  0xd0   : > { %1390 = vmatpush.bf16.msrb.mxu2 %v1669_v5  ;;  %v2118_v5 = vld [vmem:[%s2647_s9 + $0x2e4] sm:$0xf]  ;;  %v2080_v35 = vld [vmem:[%s2647_s9 + $0x1b4] sm:$0xf]  ;;  %v1858_v37 = vld [vmem:[%s2647_s9 + $0x1b8] sm:$0xf0]  ;;  %v1797_v44 = vor.u32 %v2064_v33, %v1794_v34 }
  0xd1   : > { %1403 = vmatpush.bf16.msrb.mxu3 %v1733_v9  ;;  %v1885_v9 = vor.u32 %v2086_v63, %v1882_v1  ;;  %v2013_v14 = vor.u32 %v2118_v5, %v2010_v6  ;;  %v2096_v38 = vld [vmem:[%s2647_s9 + $0x234] sm:$0xf]  ;;  %v1922_v39 = vld [vmem:[%s2647_s9 + $0x238] sm:$0xf0]  ;;  %v2062_v49 = vld [vmem:[%s2647_s9 + $0x124] sm:$0xf] }
  0xd2   : > { %1365 = vmatpush.bf16.msrb.mxu0 %v1913_v15  ;;  %v1874_v15 = vld [vmem:[%s2647_s9 + $0x1d8] sm:$0xf0]  ;;  %v2112_v40 = vld [vmem:[%s2647_s9 + $0x2b4] sm:$0xf]  ;;  %v1925_v46 = vor.u32 %v2096_v38, %v1922_v39  ;;  %v1786_v50 = vld [vmem:[%s2647_s9 + $0x128] sm:$0xf0] }
  0xd3   : > { %1378 = vmatpush.bf16.msrb.mxu1 %v1977_v16  ;;  %v2100_v16 = vld [vmem:[%s2647_s9 + $0x254] sm:$0xf]  ;;  %v1986_v43 = vld [vmem:[%s2647_s9 + $0x2b8] sm:$0xf0]  ;;  %v2078_v51 = vld [vmem:[%s2647_s9 + $0x1a4] sm:$0xf]  ;;  %v1789_v58 = vor.u32 %v2062_v49, %v1786_v50 }
  0xd4   : > { %1391 = vmatpush.bf16.msrb.mxu2 %v1661_v17  ;;  %v1938_v17 = vld [vmem:[%s2647_s9 + $0x258] sm:$0xf0]  ;;  %v2094_v54 = vld [vmem:[%s2647_s9 + $0x224] sm:$0xf]  ;;  %v1914_v55 = vld [vmem:[%s2647_s9 + $0x228] sm:$0xf0] }
  0xd5   : > { %1404 = vmatpush.bf16.msrb.mxu3 %v1725_v21  ;;  %v1877_v21 = vor.u32 %v2084_v13, %v1874_v15  ;;  %v1941_v22 = vor.u32 %v2100_v16, %v1938_v17  ;;  %v2060_v61 = vld [vmem:[%s2647_s9 + $0x114] sm:$0xf]  ;;  %v1778_v62 = vld [vmem:[%s2647_s9 + $0x118] sm:$0xf0]  ;;  %v2058_v11 = vld [vmem:[%s2647_s9 + $0x104] sm:$0xf] }
  0xd6   : > { %1366 = vmatpush.bf16.msrb.mxu0 %v1905_v27  ;;  %v1930_v27 = vld [vmem:[%s2647_s9 + $0x248] sm:$0xf0]  ;;  %v2076_v63 = vld [vmem:[%s2647_s9 + $0x194] sm:$0xf]  ;;  %v1842_v1 = vld [vmem:[%s2647_s9 + $0x198] sm:$0xf0] }
  0xd7   : > { %1379 = vmatpush.bf16.msrb.mxu1 %v1969_v31  ;;  %v1869_v31 = vor.u32 %v2082_v24, %v1866_v25  ;;  %v2092_v2 = vld [vmem:[%s2647_s9 + $0x214] sm:$0xf]  ;;  %v1906_v3 = vld [vmem:[%s2647_s9 + $0x218] sm:$0xf0]  ;;  %v1770_v12 = vld [vmem:[%s2647_s9 + $0x108] sm:$0xf0] }
  0xd8   : > { %1392 = vmatpush.bf16.msrb.mxu2 %v1653_v32  ;;  %v1933_v32 = vor.u32 %v2098_v26, %v1930_v27  ;;  %v2108_v5 = vld [vmem:[%s2647_s9 + $0x294] sm:$0xf]  ;;  %v1970_v6 = vld [vmem:[%s2647_s9 + $0x298] sm:$0xf0]  ;;  %v2074_v13 = vld [vmem:[%s2647_s9 + $0x184] sm:$0xf] }
  0xd9   : > { %1405 = vmatpush.bf16.msrb.mxu3 %v1717_v36  ;;  %v1997_v36 = vor.u32 %v2114_v28, %v1994_v29  ;;  %v1834_v15 = vld [vmem:[%s2647_s9 + $0x188] sm:$0xf0]  ;;  %v2090_v16 = vld [vmem:[%s2647_s9 + $0x204] sm:$0xf] }
  0xda   : > { %1367 = vmatpush.bf16.msrb.mxu0 %v1897_v45  ;;  %v1861_v45 = vor.u32 %v2080_v35, %v1858_v37  ;;  %v1898_v17 = vld [vmem:[%s2647_s9 + $0x208] sm:$0xf0] }
  0xdb   : > { %1380 = vmatpush.bf16.msrb.mxu1 %v1961_v52  ;;  %v1989_v52 = vor.u32 %v2112_v40, %v1986_v43 }
  0xdc   : > { %1393 = vmatpush.bf16.msrb.mxu2 %v1645_v53  ;;  %v1850_v53 = vld [vmem:[%s2647_s9 + $0x1a8] sm:$0xf0] }
  0xdd   : > { %1406 = vmatpush.bf16.msrb.mxu3 %v1709_v56  ;;  %1368 = vmatmul.bf16.vlgmr.msrb.gmra.mxu0 %v2824_v4  ;;  %v2110_v56 = vld [vmem:[%s2647_s9 + $0x2a4] sm:$0xf] }
  0xde   : > { %1412 = vmatpush.bf16.msra.mxu0 %v1829_v57  ;;  %1381 = vmatmul.bf16.vlgmr.msrb.gmra.mxu1 %v2828_v8  ;;  %v1978_v57 = vld [vmem:[%s2647_s9 + $0x2a8] sm:$0xf0] }
  0xdf   : > { %1425 = vmatpush.bf16.msra.mxu1 %v1893_v59  ;;  %1394 = vmatmul.bf16.vlgmr.msrb.gmra.mxu2 %v2757_v41  ;;  %v1802_v41 = vld [vmem:[%s2647_s9 + $0x148] sm:$0xf0]  ;;  %v1853_v59 = vor.u32 %v2078_v51, %v1850_v53 }
  0xe0   : > { %1438 = vmatpush.bf16.msra.mxu2 %v1957_v60  ;;  %1407 = vmatmul.bf16.vlgmr.msrb.gmra.mxu3 %v2759_v42  ;;  %v2005_v42 = vor.u32 %v2116_v18, %v2002_v19  ;;  %v1805_v30 = vor.u32 %v2066_v23, %v1802_v41  ;;  %v1917_v60 = vor.u32 %v2094_v54, %v1914_v55  ;;  %v2106_v18 = vld [vmem:[%s2647_s9 + $0x284] sm:$0xf]  ;;  %v1962_v19 = vld [vmem:[%s2647_s9 + $0x288] sm:$0xf0]  ;;  %v707_v54 = vld [vmem:[#allocation2 + $0x8] sm:$0xff] }
  0xe1   : > { %1451 = vmatpush.bf16.msra.mxu3 %v2021_v0  ;;  %v1981_v0 = vor.u32 %v2110_v56, %v1978_v57  ;;  %v1965_v23 = vor.u32 %v2106_v18, %v1962_v19 }
  0xe2   : > { %1413 = vmatpush.bf16.msra.mxu0 %v1821_v7  ;;  %v1781_v7 = vor.u32 %v2060_v61, %v1778_v62 }
  0xe3   : > { %1426 = vmatpush.bf16.msra.mxu1 %v1885_v9  ;;  %v1845_v9 = vor.u32 %v2076_v63, %v1842_v1 }
  0xe4   : > { %1439 = vmatpush.bf16.msra.mxu2 %v1949_v10  ;;  %v1909_v10 = vor.u32 %v2092_v2, %v1906_v3 }
  0xe5   : > { %1452 = vmatpush.bf16.msra.mxu3 %v2013_v14  ;;  %v1973_v14 = vor.u32 %v2108_v5, %v1970_v6 }
  0xe6   : > { %1414 = vmatpush.bf16.msra.mxu0 %v1813_v20  ;;  %v1773_v20 = vor.u32 %v2058_v11, %v1770_v12 }
  0xe7   : > { %1427 = vmatpush.bf16.msra.mxu1 %v1877_v21  ;;  %v1837_v21 = vor.u32 %v2074_v13, %v1834_v15 }
  0xe8   : > { %1440 = vmatpush.bf16.msra.mxu2 %v1941_v22  ;;  %v1901_v22 = vor.u32 %v2090_v16, %v1898_v17 }
  0xe9   : > { %1453 = vmatpush.bf16.msra.mxu3 %v2005_v42 }
  0xea   : > { %1415 = vmatpush.bf16.msra.mxu0 %v1805_v30 }
  0xeb   : > { %1428 = vmatpush.bf16.msra.mxu1 %v1869_v31 }
  0xec   : > { %1441 = vmatpush.bf16.msra.mxu2 %v1933_v32 }
  0xed   : > { %1454 = vmatpush.bf16.msra.mxu3 %v1997_v36 }
  0xee   : > { %1416 = vmatpush.bf16.msra.mxu0 %v1797_v44 }
  0xef   : > { %1429 = vmatpush.bf16.msra.mxu1 %v1861_v45 }
  0xf0   : > { %1442 = vmatpush.bf16.msra.mxu2 %v1925_v46 }
  0xf1   : > { %1455 = vmatpush.bf16.msra.mxu3 %v1989_v52 }
  0xf2   : > { %1417 = vmatpush.bf16.msra.mxu0 %v1789_v58 }
  0xf3   : > { %1430 = vmatpush.bf16.msra.mxu1 %v1853_v59 }
  0xf4   : > { %1443 = vmatpush.bf16.msra.mxu2 %v1917_v60 }
  0xf5   : > { %1456 = vmatpush.bf16.msra.mxu3 %v1981_v0 }
  0xf6   : > { %1418 = vmatpush.bf16.msra.mxu0 %v1781_v7 }
  0xf7   : > { %1431 = vmatpush.bf16.msra.mxu1 %v1845_v9 }
  0xf8   : > { %1444 = vmatpush.bf16.msra.mxu2 %v1909_v10 }
  0xf9   : > { %1457 = vmatpush.bf16.msra.mxu3 %v1973_v14 }
  0xfa   : > { %1419 = vmatpush.bf16.msra.mxu0 %v1773_v20 }
  0xfb   : > { %1432 = vmatpush.bf16.msra.mxu1 %v1837_v21 }
  0xfc   : > { %1445 = vmatpush.bf16.msra.mxu2 %v1901_v22 }
  0xfd   : > { %1458 = vmatpush.bf16.msra.mxu3 %v1965_v23  ;;  %1420 = vmatmul.bf16.vlgmr.msra.gmra.mxu0 %v2764_v47  ;;  %v706_v47 = vld [vmem:[#allocation2] sm:$0xff] }
  0xfe   : > { %1433 = vmatmul.bf16.vlgmr.msra.gmra.mxu1 %v2766_v48 }
  0xff   : > { %1446 = vmatmul.bf16.vlgmr.msra.gmra.mxu2 %v2824_v4 }
 0x100   : > { %1459 = vmatmul.bf16.vlgmr.msra.gmra.mxu3 %v2828_v8 }
 0x13a   : > { %v1317_v41 = vpop.f32.mrf.mxu0 }
 0x13b   : > { %v1330_v24 = vpop.f32.mrf.mxu1 }
 0x13c   : > { %v1331_v28 = vadd.f32 %v1330_v24, %v1317_v41 }
 0x142   : > { %v1343_v42 = vpop.f32.mrf.mxu2  ;;  %v1319_v26 = vpop.f32.mrf.mxu0 }
 0x143   : > { %v1356_v25 = vpop.f32.mrf.mxu3  ;;  %v1332_v27 = vpop.f32.mrf.mxu1  ;;  %v1344_v31 = vadd.f32 %v1343_v42, %v1331_v28 }
 0x145   : > { %v1357_v32 = vadd.f32 %v1356_v25, %v1344_v31 }
 0x14a   : > { %v1345_v29 = vpop.f32.mrf.mxu2 }
 0x14b   : > { %v1358_v30 = vpop.f32.mrf.mxu3 }
 0x15a   : > { %v1369_v33 = vpop.f32.mrf.mxu0 }
 0x15b   : > { %v1370_v34 = vadd.f32 %v1369_v33, %v1357_v32  ;;  %v1382_v35 = vpop.f32.mrf.mxu1 }
 0x15d   : > { %v1383_v48 = vadd.f32 %v1382_v35, %v1370_v34 }
 0x15f   : > { %v1464_v36 = vadd.f32 %v1383_v48, %v706_v47 }
 0x161   : > { %1466 = vst [vmem:[#allocation2] sm:$0xff] %v1464_v36 }
 0x162   : > { %v1395_v4 = vpop.f32.mrf.mxu2  ;;  %v1371_v37 = vpop.f32.mrf.mxu0 }
 0x163   : > { %v1408_v8 = vpop.f32.mrf.mxu3  ;;  %v1384_v38 = vpop.f32.mrf.mxu1 }
 0x164   : > { %v1409_v43 = vadd.f32 %v1408_v8, %v1395_v4 }
 0x16a   : > { %v1397_v39 = vpop.f32.mrf.mxu2 }
 0x16b   : > { %v1410_v40 = vpop.f32.mrf.mxu3 }
 0x17a   : > { %v1421_v44 = vpop.f32.mrf.mxu0 }
 0x17b   : > { %v1434_v45 = vpop.f32.mrf.mxu1  ;;  %v1422_v46 = vadd.f32 %v1421_v44, %v1409_v43 }
 0x17d   : > { %v1435_v49 = vadd.f32 %v1434_v45, %v1422_v46 }
 0x182   : > { %v1447_v50 = vpop.f32.mrf.mxu2  ;;  %v1423_v53 = vpop.f32.mrf.mxu0 }
 0x183   : > { %v1448_v51 = vadd.f32 %v1447_v50, %v1435_v49  ;;  %v1460_v52 = vpop.f32.mrf.mxu3  ;;  %v1436_v55 = vpop.f32.mrf.mxu1 }
 0x185   : > { %v1461_v56 = vadd.f32 %v1460_v52, %v1448_v51 }
 0x187   : > { %v1465_v57 = vadd.f32 %v1461_v56, %v707_v54  ;;  %1471 = sbr.rel (%p2022_p5) target bundleno = 408 (0x198), region = 82 }
 0x189   : > { %1467 = vst [vmem:[#allocation2 + $0x8] sm:$0xff] %v1465_v57 }
 0x18a   : > { %v1449_v58 = vpop.f32.mrf.mxu2 }
 0x18b   : > { %v1462_v59 = vpop.f32.mrf.mxu3 }
 0x18c   : > { %v1472_v60 = vld [vmem:[#allocation2] sm:$0xff]  ;;  %v1474_v62 = vld [vmem:[%s636_s30] sm:$0x3] }
 0x18d   : > { %v1476_v63 = vperm.slane %v1474_v62, 0  ;;  %v1477_v0 = vperm.slane %v1474_v62, 1 }
 0x18f   : > { %v1480_v1 = vadd.f32 %v1476_v63, %v1472_v60 }
 0x190   : > { %v1473_v61 = vld [vmem:[#allocation2 + $0x8] sm:$0xff] }
 0x191   : > { %v1481_v2 = vadd.f32 %v1477_v0, %v1473_v61  ;;  %v1482_v3 = vmax.f32 %v1480_v1, 0.0 }
 0x193   : > { %v1483_v5 = vmax.f32 %v1481_v2, 0.0 }
 0x195   : > { %v1484_v6 = vpack.c.bf16 %v1483_v5, %v1482_v3 }
 0x197   : > { %1485 = vst [vmem:[%s2659_s27] sm:$0xff] %v1484_v6 }
 0x198 PF: > { %s16_s21 = sadd.s32 1, %s2317_s21   ;;  %s2927_s12 = smov %s2285_s13 }
 0x199   : > { %p13_p6 = scmp.ge.s32.totalorder %s16_s21, 14   ;;  %s2928_s13 = smov %s2289_s14 }
 0x19a   : > { %s2929_s14 = smov %s2424_s6  ;;  %s2930_s15 = smov %s2297_s16 }
 0x19b   : > { %s2931_s16 = smov %s2427_s7  ;;  %s2932_s17 = smov %s2309_s19 }
 0x19c   : > { %s2933_s18 = smov %s2313_s20  ;;  %s2934_s19 = smov %s2937_s23 }
 0x19d   : > { %s2935_s20 = smov %s2941_s24  ;;  %15 = sbr.rel (!%p13_p6) target bundleno = 6 (0x6), region = 129 }
 0x1a2   :  { %1516 = vsyncpa [#allocation5], 1 }
 0x1a3   :  { %1518 = vsyncpa [#allocation5 + $0x1], 1 }

// kernel: resnet18_forward.43
= control target key start
LH: loop header
LB: loop body
LE: loop exit
PB: predicated region body
PF: predicated region fallthrough
CT: control target
= control target key end

     0   :  { %s675_s0 = inlined_call_operand.vmem [shape: bf16[1,2,512], index: 0, kind: input, shape index: {}]   ;;  %s676_s1 = inlined_call_operand.vmem [shape: bf16[512,128], index: 1, kind: input, shape index: {}]   ;;  %s677_s2 = inlined_call_operand.vmem [shape: f32[1,128], index: 2, kind: input, shape index: {}]   ;;  %s678_s3 = inlined_call_operand.hbm [shape: f32[2,128], index: 3, kind: output, shape index: {}]  }
   0x1   :  { %v496_v0 = vld [vmem:[%s676_s1 + $0x38] sm:$0xff]  ;;  %v495_v4 = vld [vmem:[%s676_s1 + $0x30] sm:$0xff]  ;;  %v494_v8 = vld [vmem:[%s676_s1 + $0x28] sm:$0xff] }
   0x2   :  { %v504_v1 = vld [vmem:[%s676_s1 + $0x78] sm:$0xff]  ;;  %292 = vmatpush.bf16.msra.mxu0 %v496_v0  ;;  %v503_v5 = vld [vmem:[%s676_s1 + $0x70] sm:$0xff]  ;;  %v502_v9 = vld [vmem:[%s676_s1 + $0x68] sm:$0xff] }
   0x3   :  { %v512_v2 = vld [vmem:[%s676_s1 + $0xb8] sm:$0xff]  ;;  %305 = vmatpush.bf16.msra.mxu1 %v504_v1  ;;  %v511_v6 = vld [vmem:[%s676_s1 + $0xb0] sm:$0xff]  ;;  %v510_v10 = vld [vmem:[%s676_s1 + $0xa8] sm:$0xff] }
   0x4   :  { %v520_v3 = vld [vmem:[%s676_s1 + $0xf8] sm:$0xff]  ;;  %318 = vmatpush.bf16.msra.mxu2 %v512_v2  ;;  %v519_v7 = vld [vmem:[%s676_s1 + $0xf0] sm:$0xff]  ;;  %v518_v11 = vld [vmem:[%s676_s1 + $0xe8] sm:$0xff] }
   0x5   :  { %331 = vmatpush.bf16.msra.mxu3 %v520_v3  ;;  %v493_v12 = vld [vmem:[%s676_s1 + $0x20] sm:$0xff] }
   0x6   :  { %293 = vmatpush.bf16.msra.mxu0 %v495_v4  ;;  %v501_v13 = vld [vmem:[%s676_s1 + $0x60] sm:$0xff] }
   0x7   :  { %306 = vmatpush.bf16.msra.mxu1 %v503_v5  ;;  %v509_v14 = vld [vmem:[%s676_s1 + $0xa0] sm:$0xff] }
   0x8   :  { %319 = vmatpush.bf16.msra.mxu2 %v511_v6  ;;  %v15_v15 = vld [vmem:[%s675_s0] sm:$0xf] }
   0x9   :  { %332 = vmatpush.bf16.msra.mxu3 %v519_v7  ;;  %v517_v16 = vld [vmem:[%s676_s1 + $0xe0] sm:$0xff]  ;;  %v16_v17 = vunpack.c.l.bf16 %v15_v15 }
   0xa   :  { %294 = vmatpush.bf16.msra.mxu0 %v494_v8 }
   0xb   :  { %307 = vmatpush.bf16.msra.mxu1 %v502_v9 }
   0xc   :  { %320 = vmatpush.bf16.msra.mxu2 %v510_v10 }
   0xd   :  { %333 = vmatpush.bf16.msra.mxu3 %v518_v11 }
   0xe   :  { %8 = vsyncpa [#allocation3], 0  ;;  %19 = vst [vmem:[#allocation1] ss:$4 sm:$0xff] %v16_v17  ;;  %295 = vmatpush.bf16.msra.mxu0 %v493_v12  ;;  %v492_v18 = vld [vmem:[%s676_s1 + $0x18] sm:$0xff]  ;;  %v491_v22 = vld [vmem:[%s676_s1 + $0x10] sm:$0xff] }
   0xf   :  { %308 = vmatpush.bf16.msra.mxu1 %v501_v13  ;;  %v500_v19 = vld [vmem:[%s676_s1 + $0x58] sm:$0xff]  ;;  %v499_v23 = vld [vmem:[%s676_s1 + $0x50] sm:$0xff]  ;;  %v490_v26 = vld [vmem:[%s676_s1 + $0x8] sm:$0xff]  ;;  %s549_s23 = smov [#allocation2]   ;;  %s352_s27 = sshll.u32 %s678_s3, 4  ;;  %s353_s27 = int_to_ptr.hbm [resolvable:$true] %s352_s27 }
  0x10   :  { %321 = vmatpush.bf16.msra.mxu2 %v509_v14  ;;  %v508_v20 = vld [vmem:[%s676_s1 + $0x98] sm:$0xff]  ;;  %v507_v24 = vld [vmem:[%s676_s1 + $0x90] sm:$0xff]  ;;  %v498_v27 = vld [vmem:[%s676_s1 + $0x48] sm:$0xff]  ;;  %s350_s24 = sshll.u32 %s549_s23, 4  ;;  %s351_s24 = int_to_ptr.vmem [resolvable:$true] %s350_s24 }
  0x11   :  { %334 = vmatpush.bf16.msra.mxu3 %v517_v16  ;;  %v516_v21 = vld [vmem:[%s676_s1 + $0xd8] sm:$0xff]  ;;  %v515_v25 = vld [vmem:[%s676_s1 + $0xd0] sm:$0xff]  ;;  %v506_v28 = vld [vmem:[%s676_s1 + $0x88] sm:$0xff] }
  0x12   :  { %296 = vmatpush.bf16.msra.mxu0 %v492_v18  ;;  %v514_v29 = vld [vmem:[%s676_s1 + $0xc8] sm:$0xff]  ;;  %v489_v30 = vld [vmem:[%s676_s1] sm:$0xff] }
  0x13   :  { %309 = vmatpush.bf16.msra.mxu1 %v500_v19  ;;  %v497_v31 = vld [vmem:[%s676_s1 + $0x40] sm:$0xff] }
  0x14   :  { %322 = vmatpush.bf16.msra.mxu2 %v508_v20  ;;  %v505_v32 = vld [vmem:[%s676_s1 + $0x80] sm:$0xff] }
  0x15   :  { %335 = vmatpush.bf16.msra.mxu3 %v516_v21  ;;  %v513_v33 = vld [vmem:[%s676_s1 + $0xc0] sm:$0xff]  ;;  %v21_v35 = vld.sshfl [vmem:[#allocation1 + $0x8] sm:$0xff pattern:$0x73625140] }
  0x16   :  { %297 = vmatpush.bf16.msra.mxu0 %v491_v22  ;;  %v20_v34 = vld.sshfl [vmem:[#allocation1] sm:$0xff pattern:$0x73625140]  ;;  %v22_v36 = vld.sshfl [vmem:[#allocation1 + $0x10] sm:$0xff pattern:$0x73625140]  ;;  %v29_v39 = vpack.c.bf16 %v21_v35, %v21_v35 }
  0x17   :  { %310 = vmatpush.bf16.msra.mxu1 %v499_v23  ;;  %v23_v37 = vld.sshfl [vmem:[#allocation1 + $0x18] sm:$0xff pattern:$0x73625140]  ;;  %v28_v38 = vpack.c.bf16 %v20_v34, %v20_v34  ;;  %v30_v40 = vpack.c.bf16 %v22_v36, %v22_v36  ;;  %v522_v42 = vld [vmem:[%s677_s2] ss:$0 sm:$0xff] }
  0x18   :  { %323 = vmatpush.bf16.msra.mxu2 %v507_v24  ;;  %v31_v41 = vpack.c.bf16 %v23_v37, %v23_v37 }
  0x19   :  { %336 = vmatpush.bf16.msra.mxu3 %v515_v25 }
  0x1a   :  { %298 = vmatpush.bf16.msra.mxu0 %v490_v26 }
  0x1b   :  { %311 = vmatpush.bf16.msra.mxu1 %v498_v27 }
  0x1c   :  { %324 = vmatpush.bf16.msra.mxu2 %v506_v28 }
  0x1d   :  { %337 = vmatpush.bf16.msra.mxu3 %v514_v29 }
  0x1e   :  { %299 = vmatpush.bf16.msra.mxu0 %v489_v30 }
  0x1f   :  { %312 = vmatpush.bf16.msra.mxu1 %v497_v31 }
  0x20   :  { %325 = vmatpush.bf16.msra.mxu2 %v505_v32 }
  0x21   :  { %338 = vmatpush.bf16.msra.mxu3 %v513_v33  ;;  %300 = vmatmul.bf16.vlgmr.msra.gmra.mxu0 %v28_v38 }
  0x22   :  { %313 = vmatmul.bf16.vlgmr.msra.gmra.mxu1 %v29_v39 }
  0x23   :  { %326 = vmatmul.bf16.vlgmr.msra.gmra.mxu2 %v30_v40 }
  0x24   :  { %339 = vmatmul.bf16.vlgmr.msra.gmra.mxu3 %v31_v41 }
  0x9e   :  { %v301_v43 = vpop.f32.mrf.mxu0 }
  0x9f   :  { %v314_v44 = vpop.f32.mrf.mxu1  ;;  %v302_v45 = vadd.f32 %v522_v42, %v301_v43 }
  0xa1   :  { %v315_v46 = vadd.f32 %v314_v44, %v302_v45 }
  0xa6   :  { %v327_v47 = vpop.f32.mrf.mxu2  ;;  %v303_v50 = vpop.f32.mrf.mxu0 }
  0xa7   :  { %v340_v48 = vpop.f32.mrf.mxu3  ;;  %v328_v49 = vadd.f32 %v327_v47, %v315_v46  ;;  %v316_v51 = vpop.f32.mrf.mxu1 }
  0xa9   :  { %v341_v52 = vadd.f32 %v340_v48, %v328_v49 }
  0xab   :  { %344 = vst [vmem:[#allocation2] sm:$0x3] %v341_v52 }
  0xac   :  { %355 = dma.vmem_to_hbm [thread:$0]  %s351_s24, 32, %s353_s27, [#allocation3]  }
  0xae   :  { %v329_v53 = vpop.f32.mrf.mxu2 }
  0xaf   :  { %v342_v54 = vpop.f32.mrf.mxu3 }
  0xb0   :  { %547 = dma.done.wait [#allocation3], 32  }
  0xb1   :  { %548 = vsyncadd [#allocation3], 4294967264 }
  0xb2   :  { %360 = vsyncpa [#allocation3], 1 }

</bundles_post_ra>
